<compile_context>
chip_gen: v5e
topology: v5e:2x2
jax: 0.10.0
libtpu: 0.0.40
codegen_flags: <defaults>
</compile_context>

<pallas_src>
import functools

import jax
import jax.numpy as jnp
from jax.experimental import pallas as pl
from jax.experimental.pallas import tpu as pltpu


# --------------------------------------------------------------------------
# In-kernel helper: 3x3 partial conv (first c3 channels, zero padded) folded
# into the 1x1 pointwise.  Per tap t the folded weight is
#     Wf[t] = W3[t] @ Wp[:c3]   (dense)   or   diag(wdw[t]) @ Wp[:c3]  (dw)
# so   out = sum_t tap_t @ Wf[t]  +  x_untouched @ Wp[c3:]   [+ ReLU]
# All matmuls run on the MXU (bf16 operands, f32 accumulation); the
# partial-conv intermediate never materializes.
# --------------------------------------------------------------------------
def _pconv_folded(pad_ref, x2_bf, wf_ref, wp2_ref, *, rows, cols, c3, relu):
    acc = jnp.dot(x2_bf, wp2_ref[...], preferred_element_type=jnp.float32)
    for dy in range(3):
        for dx in range(3):
            tap = pad_ref[dy:dy + rows, dx:dx + cols, :c3]   # (rows, cols, c3) bf16
            acc = acc + jnp.dot(tap.reshape(rows * cols, c3),
                                wf_ref[dy * 3 + dx],
                                preferred_element_type=jnp.float32)
    if relu:
        acc = jnp.maximum(acc, 0.0)
    return acc                                               # (rows*cols, cout) f32


def _decoder_stage_kernel(inp_ref, skip_ref, upmat_ref,
                          w0f, w0p2, w1f, w1p2, wuf, wup2, wpf, wpp2,
                          o_ref, pad_s, pad_b,
                          *, H, W, Cin, Cskip, Cout, c3d, c3u, c3p):
    H2, W2 = 2 * H, 2 * W

    # Zero the halo scratch once per grid step; only the interiors are
    # rewritten below, so the 1-pixel border stays zero for every conv.
    pad_s[...] = jnp.zeros_like(pad_s)
    pad_b[...] = jnp.zeros_like(pad_b)

    inp = inp_ref[0]                                   # (H, W, Cin) f32
    inp_bf = inp.astype(jnp.bfloat16)

    # ---- DecoderBlock.conv0 : partial 3x3 (depthwise) + 1x1 + ReLU ----
    pad_s[1:H + 1, 1:W + 1, :] = inp_bf[:, :, :c3d]
    x0 = _pconv_folded(pad_s, inp_bf[:, :, c3d:].reshape(H * W, Cin - c3d),
                       w0f, w0p2, rows=H, cols=W, c3=c3d, relu=True)

    # ---- DecoderBlock.conv1 : partial 3x3 (depthwise) + 1x1, then + inp ----
    x0_bf = x0.astype(jnp.bfloat16)                    # (H*W, Cin)
    pad_s[1:H + 1, 1:W + 1, :] = x0_bf[:, :c3d].reshape(H, W, c3d)
    x1 = _pconv_folded(pad_s, x0_bf[:, c3d:],
                       w1f, w1p2, rows=H, cols=W, c3=c3d, relu=False)
    x1 = x1 + inp.reshape(H * W, Cin)                  # residual add in f32

    # ---- upsample conv : partial 3x3 (dense, c3u <= c3d) + 1x1, no ReLU ----
    x1_bf = x1.astype(jnp.bfloat16)
    pad_s[1:H + 1, 1:W + 1, :] = x1_bf[:, :c3d].reshape(H, W, c3d)
    xu = _pconv_folded(pad_s, x1_bf[:, c3u:],
                       wuf, wup2, rows=H, cols=W, c3=c3u, relu=False)  # (H*W, Cout) f32

    # ---- bilinear 2x upsample (align_corners=False) as one f32 matmul ----
    xup = jnp.dot(upmat_ref[...], xu,
                  preferred_element_type=jnp.float32)  # (H2*W2, Cout) f32

    # ---- proj conv on skip : partial 3x3 (dense) + 1x1 + ReLU ----
    skip_bf = skip_ref[0].astype(jnp.bfloat16)         # (H2, W2, Cskip)
    pad_b[1:H2 + 1, 1:W2 + 1, :] = skip_bf[:, :, :c3p]
    y = _pconv_folded(pad_b, skip_bf[:, :, c3p:].reshape(H2 * W2, Cskip - c3p),
                      wpf, wpp2, rows=H2, cols=W2, c3=c3p, relu=True)

    o_ref[0] = (xup + y).reshape(H2, W2, Cout).astype(o_ref.dtype)


@functools.lru_cache(maxsize=None)
def _bilinear2x_matrix(H, W):
    """(4HW, HW) matrix implementing nn.Upsample(scale_factor=2, 'bilinear',
    align_corners=False) on an HxW plane with channels last (applied as M @ x)."""
    def axis(n):
        m = [[0.0] * n for _ in range(2 * n)]
        for o in range(2 * n):
            s = max((o + 0.5) / 2.0 - 0.5, 0.0)
            i0 = min(int(s), n - 1)
            i1 = min(i0 + 1, n - 1)
            f = s - i0
            m[o][i0] += 1.0 - f
            m[o][i1] += f
        return jnp.asarray(m, jnp.float32)
    return jnp.kron(axis(H), axis(W))


@functools.lru_cache(maxsize=None)
def _build_call(N, H, W, Cin, Cskip, Cout, c3d, c3u, c3p):
    assert c3u <= c3d, "up-conv partial channels must fit the shared halo buffer"
    H2, W2 = 2 * H, 2 * W

    def const_spec(shape):                      # grid-invariant operand (weights)
        nd = len(shape)
        return pl.BlockSpec(shape, lambda n, _nd=nd: (0,) * _nd)

    in_specs = [
        pl.BlockSpec((1, H, W, Cin), lambda n: (n, 0, 0, 0)),         # inp
        pl.BlockSpec((1, H2, W2, Cskip), lambda n: (n, 0, 0, 0)),     # skip
        const_spec((H2 * W2, H * W)),                                 # upsample matrix
        const_spec((9, c3d, Cin)), const_spec((Cin - c3d, Cin)),      # conv0
        const_spec((9, c3d, Cin)), const_spec((Cin - c3d, Cin)),      # conv1
        const_spec((9, c3u, Cout)), const_spec((Cin - c3u, Cout)),    # upsample conv
        const_spec((9, c3p, Cout)), const_spec((Cskip - c3p, Cout)),  # proj conv
    ]
    kernel = functools.partial(_decoder_stage_kernel, H=H, W=W, Cin=Cin,
                               Cskip=Cskip, Cout=Cout,
                               c3d=c3d, c3u=c3u, c3p=c3p)
    fn = pl.pallas_call(
        kernel,
        out_shape=jax.ShapeDtypeStruct((N, H2, W2, Cout), jnp.float32),
        grid_spec=pltpu.PrefetchScalarGridSpec(
            num_scalar_prefetch=0,
            grid=(N,),
            in_specs=in_specs,
            out_specs=pl.BlockSpec((1, H2, W2, Cout), lambda n: (n, 0, 0, 0)),
            scratch_shapes=[
                pltpu.VMEM((H + 2, W + 2, c3d), jnp.bfloat16),    # halo buf (HxW convs)
                pltpu.VMEM((H2 + 2, W2 + 2, c3p), jnp.bfloat16),  # halo buf (skip conv)
            ],
        ),
        compiler_params=pltpu.CompilerParams(
            dimension_semantics=("parallel",)),   # N>=2 keeps both v7x TCs busy
    )
    return jax.jit(fn)


def decoder_stage_fwd(params, inp, skip):
    """inp: (N,H,W,Cin) f32, skip: (N,2H,2W,Cskip) f32 -> (N,2H,2W,Cout) f32."""
    N, H, W, Cin = inp.shape
    Ns, H2, W2, Cskip = skip.shape
    assert Ns == N and H2 == 2 * H and W2 == 2 * W
    d0, d1, up, pj = params['dec0'], params['dec1'], params['up'], params['proj']
    call = _build_call(N, H, W, Cin, Cskip, params['cout'],
                       d0['c3'], up['c3'], pj['c3'])
    return call(inp.astype(jnp.float32), skip.astype(jnp.float32),
                _bilinear2x_matrix(H, W),
                d0['wf'], d0['wp2'], d1['wf'], d1['wp2'],
                up['wf'], up['wp2'], pj['wf'], pj['wp2'])


# --------------------------------------------------------------------------
# Deterministic parameters mirroring the PyTorch module structure, with the
# 3x3 partial-conv weights folded into the 1x1 pointwise at build time.
# --------------------------------------------------------------------------
class ParamGen:
    def __init__(self, key):
        self.key = key
        self.count = 0

    def normal(self, shape, std):
        self.count += 1
        k = jax.random.fold_in(self.key, self.count)
        return std * jax.random.normal(k, shape, jnp.float32)


def make_pconv_folded(pg, cin, cout, n_div):
    """Conv2D(is_seperable=True, stride=1): Partial_conv3 (3x3 on the first
    cin//n_div channels, depthwise iff that is >= 32) + 1x1 pointwise
    (bias=False), with the 3x3 folded into the pointwise per tap."""
    c3 = cin // n_div
    dw = c3 >= 32                                        # dw_status rule from Conv2D
    wp = pg.normal((cin, cout), cin ** -0.5)             # pointwise (in, out), no bias
    if dw:
        wdw = pg.normal((9, c3), 9.0 ** -0.5)            # depthwise 3x3, tap-major
        wf = wdw[:, :, None] * wp[None, :c3, :]          # diag fold -> (9, c3, cout)
    else:
        w3 = pg.normal((9, c3, c3), (9 * c3) ** -0.5)    # dense 3x3 (tap, cin, c3out)
        wf = jnp.einsum('tic,co->tio', w3, wp[:c3, :])   # (9, c3, cout)
    return dict(c3=c3, wf=wf.astype(jnp.bfloat16),
                wp2=wp[c3:, :].astype(jnp.bfloat16))


def make_decoder_stage(pg, in_channels, skip_in_channels, out_channels, n_div=4):
    return dict(
        dec0=make_pconv_folded(pg, in_channels, in_channels, n_div),   # DecoderBlock.conv0
        dec1=make_pconv_folded(pg, in_channels, in_channels, n_div),   # DecoderBlock.conv1
        up=make_pconv_folded(pg, in_channels, out_channels, 4),        # upsample conv (default n_div)
        proj=make_pconv_folded(pg, skip_in_channels, out_channels, n_div),
        cout=out_channels,
    )


if __name__ == "__main__":
    key = jax.random.PRNGKey(0)
    pg = ParamGen(key)

    # DecoderStage(in_channels=64, skip_in_channels=32, out_channels=32, n_div=2)
    # -> decode convs take the depthwise partial-conv path (c3=32),
    #    up/proj convs the dense partial-conv path (c3=16).
    in_ch, skip_ch, out_ch, n_div = 64, 32, 32, 2
    params = make_decoder_stage(pg, in_ch, skip_ch, out_ch, n_div)

    N, H, W = 2, 8, 8
    inp_nchw = jax.random.normal(jax.random.fold_in(key, 101),
                                 (N, in_ch, H, W), jnp.float32)
    skip_nchw = jax.random.normal(jax.random.fold_in(key, 102),
                                  (N, skip_ch, 2 * H, 2 * W), jnp.float32)

    inp = jnp.transpose(inp_nchw, (0, 2, 3, 1))      # NCHW -> NHWC
    skip = jnp.transpose(skip_nchw, (0, 2, 3, 1))

    out = decoder_stage_fwd(params, inp, skip)
    out_nchw = jnp.transpose(out, (0, 3, 1, 2))      # back to NCHW
    jax.block_until_ready(out_nchw)

    assert out_nchw.shape == (N, out_ch, 2 * H, 2 * W), out_nchw.shape
    assert bool(jnp.all(jnp.isfinite(out_nchw)))
    print("KERNEL_OK")
</pallas_src>

<mosaic_0001>
module attributes {stable_mosaic.version = 11 : i64} {
  func.func @_decoder_stage_kernel(%arg0: i32, %arg1: memref<1x8x8x64xf32, #tpu.memory_space<vmem>>, %arg2: memref<1x16x16x32xf32, #tpu.memory_space<vmem>>, %arg3: memref<256x64xf32, #tpu.memory_space<vmem>>, %arg4: memref<9x32x64xbf16, #tpu.memory_space<vmem>>, %arg5: memref<32x64xbf16, #tpu.memory_space<vmem>>, %arg6: memref<9x32x64xbf16, #tpu.memory_space<vmem>>, %arg7: memref<32x64xbf16, #tpu.memory_space<vmem>>, %arg8: memref<9x16x32xbf16, #tpu.memory_space<vmem>>, %arg9: memref<48x32xbf16, #tpu.memory_space<vmem>>, %arg10: memref<9x16x32xbf16, #tpu.memory_space<vmem>>, %arg11: memref<16x32xbf16, #tpu.memory_space<vmem>>, %arg12: memref<1x16x16x32xf32, #tpu.memory_space<vmem>>, %arg13: memref<10x10x32xbf16, #tpu.memory_space<vmem>>, %arg14: memref<18x18x16xbf16, #tpu.memory_space<vmem>>) attributes {dimension_semantics = [#tpu.dimension_semantics<parallel>], iteration_bounds = array<i64: 2>, scalar_prefetch = 0 : i64, scratch_operands = 2 : i64, tpu.core_type = #tpu.core_type<tc>, window_params = [{transform_indices = @transform_0, window_bounds = array<i64: 1, 8, 8, 64>}, {transform_indices = @transform_1, window_bounds = array<i64: 1, 16, 16, 32>}, {pipeline_mode = #tpu.pipeline_mode<synchronous>, transform_indices = @transform_2, window_bounds = array<i64: 256, 64>}, {pipeline_mode = #tpu.pipeline_mode<synchronous>, transform_indices = @transform_3, window_bounds = array<i64: 9, 32, 64>}, {pipeline_mode = #tpu.pipeline_mode<synchronous>, transform_indices = @transform_4, window_bounds = array<i64: 32, 64>}, {pipeline_mode = #tpu.pipeline_mode<synchronous>, transform_indices = @transform_5, window_bounds = array<i64: 9, 32, 64>}, {pipeline_mode = #tpu.pipeline_mode<synchronous>, transform_indices = @transform_6, window_bounds = array<i64: 32, 64>}, {pipeline_mode = #tpu.pipeline_mode<synchronous>, transform_indices = @transform_7, window_bounds = array<i64: 9, 16, 32>}, {pipeline_mode = #tpu.pipeline_mode<synchronous>, transform_indices = @transform_8, window_bounds = array<i64: 48, 32>}, {pipeline_mode = #tpu.pipeline_mode<synchronous>, transform_indices = @transform_9, window_bounds = array<i64: 9, 16, 32>}, {pipeline_mode = #tpu.pipeline_mode<synchronous>, transform_indices = @transform_10, window_bounds = array<i64: 16, 32>}, {transform_indices = @transform_11, window_bounds = array<i64: 1, 16, 16, 32>}]} {
    %cst = arith.constant 0.000000e+00 : bf16
    %0 = vector.broadcast %cst : bf16 to vector<10x10x32xbf16>
    %c0 = arith.constant 0 : index
    %c0_0 = arith.constant 0 : index
    %c0_1 = arith.constant 0 : index
    %1 = vector.load %arg13[%c0, %c0_0, %c0_1] : memref<10x10x32xbf16, #tpu.memory_space<vmem>>, vector<10x10x32xbf16>
    tpu.vector_store %arg13[%c0, %c0_0, %c0_1], %0 {strides = array<i32>} : memref<10x10x32xbf16, #tpu.memory_space<vmem>>, vector<10x10x32xbf16>,
    %cst_2 = arith.constant 0.000000e+00 : bf16
    %2 = vector.broadcast %cst_2 : bf16 to vector<18x18x16xbf16>
    %c0_3 = arith.constant 0 : index
    %c0_4 = arith.constant 0 : index
    %c0_5 = arith.constant 0 : index
    %3 = vector.load %arg14[%c0_3, %c0_4, %c0_5] : memref<18x18x16xbf16, #tpu.memory_space<vmem>>, vector<18x18x16xbf16>
    tpu.vector_store %arg14[%c0_3, %c0_4, %c0_5], %2 {strides = array<i32>} : memref<18x18x16xbf16, #tpu.memory_space<vmem>>, vector<18x18x16xbf16>,
    %c0_6 = arith.constant 0 : index
    %c0_7 = arith.constant 0 : index
    %c0_8 = arith.constant 0 : index
    %c0_9 = arith.constant 0 : index
    %4 = vector.load %arg1[%c0_6, %c0_7, %c0_8, %c0_9] : memref<1x8x8x64xf32, #tpu.memory_space<vmem>>, vector<1x8x8x64xf32>
    %5 = vector.shape_cast %4 : vector<1x8x8x64xf32> to vector<8x8x64xf32>
    %6 = arith.truncf %5 : vector<8x8x64xf32> to vector<8x8x64xbf16>
    %7 = vector.extract_strided_slice %6 {offsets = [0, 0, 0], sizes = [8, 8, 32], strides = [1, 1, 1]} : vector<8x8x64xbf16> to vector<8x8x32xbf16>
    %c1 = arith.constant 1 : index
    %c1_10 = arith.constant 1 : index
    %c0_11 = arith.constant 0 : index
    %8 = vector.load %arg13[%c1, %c1_10, %c0_11] : memref<10x10x32xbf16, #tpu.memory_space<vmem>>, vector<8x8x32xbf16>
    tpu.vector_store %arg13[%c1, %c1_10, %c0_11], %7 {strides = array<i32>} : memref<10x10x32xbf16, #tpu.memory_space<vmem>>, vector<8x8x32xbf16>,
    %9 = vector.extract_strided_slice %6 {offsets = [0, 0, 32], sizes = [8, 8, 32], strides = [1, 1, 1]} : vector<8x8x64xbf16> to vector<8x8x32xbf16>
    %10 = vector.shape_cast %9 : vector<8x8x32xbf16> to vector<64x32xbf16>
    %c0_12 = arith.constant 0 : index
    %c0_13 = arith.constant 0 : index
    %11 = vector.load %arg5[%c0_12, %c0_13] : memref<32x64xbf16, #tpu.memory_space<vmem>>, vector<32x64xbf16>
    %cst_14 = arith.constant dense<0.000000e+00> : vector<64x64xf32>
    %12 = tpu.matmul %10, %11, %cst_14 {dimension_numbers = #tpu.dot_dimension_numbers<[1], [0], [0], [1], [0, 0, 1, 1], [], []>} : vector<64x32xbf16>, vector<32x64xbf16>, vector<64x64xf32> -> vector<64x64xf32>
    %c0_15 = arith.constant 0 : index
    %c0_16 = arith.constant 0 : index
    %c0_17 = arith.constant 0 : index
    %13 = vector.load %arg13[%c0_15, %c0_16, %c0_17] : memref<10x10x32xbf16, #tpu.memory_space<vmem>>, vector<8x8x32xbf16>
    %14 = vector.shape_cast %13 : vector<8x8x32xbf16> to vector<64x32xbf16>
    %c0_18 = arith.constant 0 : index
    %c0_19 = arith.constant 0 : index
    %c0_20 = arith.constant 0 : index
    %15 = vector.load %arg4[%c0_18, %c0_19, %c0_20] : memref<9x32x64xbf16, #tpu.memory_space<vmem>>, vector<1x32x64xbf16>
    %16 = vector.shape_cast %15 : vector<1x32x64xbf16> to vector<32x64xbf16>
    %cst_21 = arith.constant dense<0.000000e+00> : vector<64x64xf32>
    %17 = tpu.matmul %14, %16, %cst_21 {dimension_numbers = #tpu.dot_dimension_numbers<[1], [0], [0], [1], [0, 0, 1, 1], [], []>} : vector<64x32xbf16>, vector<32x64xbf16>, vector<64x64xf32> -> vector<64x64xf32>
    %18 = arith.addf %12, %17 : vector<64x64xf32>
    %c0_22 = arith.constant 0 : index
    %c1_23 = arith.constant 1 : index
    %c0_24 = arith.constant 0 : index
    %19 = vector.load %arg13[%c0_22, %c1_23, %c0_24] : memref<10x10x32xbf16, #tpu.memory_space<vmem>>, vector<8x8x32xbf16>
    %20 = vector.shape_cast %19 : vector<8x8x32xbf16> to vector<64x32xbf16>
    %c1_25 = arith.constant 1 : index
    %c0_26 = arith.constant 0 : index
    %c0_27 = arith.constant 0 : index
    %21 = vector.load %arg4[%c1_25, %c0_26, %c0_27] : memref<9x32x64xbf16, #tpu.memory_space<vmem>>, vector<1x32x64xbf16>
    %22 = vector.shape_cast %21 : vector<1x32x64xbf16> to vector<32x64xbf16>
    %cst_28 = arith.constant dense<0.000000e+00> : vector<64x64xf32>
    %23 = tpu.matmul %20, %22, %cst_28 {dimension_numbers = #tpu.dot_dimension_numbers<[1], [0], [0], [1], [0, 0, 1, 1], [], []>} : vector<64x32xbf16>, vector<32x64xbf16>, vector<64x64xf32> -> vector<64x64xf32>
    %24 = arith.addf %18, %23 : vector<64x64xf32>
    %c0_29 = arith.constant 0 : index
    %c2 = arith.constant 2 : index
    %c0_30 = arith.constant 0 : index
    %25 = vector.load %arg13[%c0_29, %c2, %c0_30] : memref<10x10x32xbf16, #tpu.memory_space<vmem>>, vector<8x8x32xbf16>
    %26 = vector.shape_cast %25 : vector<8x8x32xbf16> to vector<64x32xbf16>
    %c2_31 = arith.constant 2 : index
    %c0_32 = arith.constant 0 : index
    %c0_33 = arith.constant 0 : index
    %27 = vector.load %arg4[%c2_31, %c0_32, %c0_33] : memref<9x32x64xbf16, #tpu.memory_space<vmem>>, vector<1x32x64xbf16>
    %28 = vector.shape_cast %27 : vector<1x32x64xbf16> to vector<32x64xbf16>
    %cst_34 = arith.constant dense<0.000000e+00> : vector<64x64xf32>
    %29 = tpu.matmul %26, %28, %cst_34 {dimension_numbers = #tpu.dot_dimension_numbers<[1], [0], [0], [1], [0, 0, 1, 1], [], []>} : vector<64x32xbf16>, vector<32x64xbf16>, vector<64x64xf32> -> vector<64x64xf32>
    %30 = arith.addf %24, %29 : vector<64x64xf32>
    %c1_35 = arith.constant 1 : index
    %c0_36 = arith.constant 0 : index
    %c0_37 = arith.constant 0 : index
    %31 = vector.load %arg13[%c1_35, %c0_36, %c0_37] : memref<10x10x32xbf16, #tpu.memory_space<vmem>>, vector<8x8x32xbf16>
    %32 = vector.shape_cast %31 : vector<8x8x32xbf16> to vector<64x32xbf16>
    %c3 = arith.constant 3 : index
    %c0_38 = arith.constant 0 : index
    %c0_39 = arith.constant 0 : index
    %33 = vector.load %arg4[%c3, %c0_38, %c0_39] : memref<9x32x64xbf16, #tpu.memory_space<vmem>>, vector<1x32x64xbf16>
    %34 = vector.shape_cast %33 : vector<1x32x64xbf16> to vector<32x64xbf16>
    %cst_40 = arith.constant dense<0.000000e+00> : vector<64x64xf32>
    %35 = tpu.matmul %32, %34, %cst_40 {dimension_numbers = #tpu.dot_dimension_numbers<[1], [0], [0], [1], [0, 0, 1, 1], [], []>} : vector<64x32xbf16>, vector<32x64xbf16>, vector<64x64xf32> -> vector<64x64xf32>
    %36 = arith.addf %30, %35 : vector<64x64xf32>
    %c1_41 = arith.constant 1 : index
    %c1_42 = arith.constant 1 : index
    %c0_43 = arith.constant 0 : index
    %37 = vector.load %arg13[%c1_41, %c1_42, %c0_43] : memref<10x10x32xbf16, #tpu.memory_space<vmem>>, vector<8x8x32xbf16>
    %38 = vector.shape_cast %37 : vector<8x8x32xbf16> to vector<64x32xbf16>
    %c4 = arith.constant 4 : index
    %c0_44 = arith.constant 0 : index
    %c0_45 = arith.constant 0 : index
    %39 = vector.load %arg4[%c4, %c0_44, %c0_45] : memref<9x32x64xbf16, #tpu.memory_space<vmem>>, vector<1x32x64xbf16>
    %40 = vector.shape_cast %39 : vector<1x32x64xbf16> to vector<32x64xbf16>
    %cst_46 = arith.constant dense<0.000000e+00> : vector<64x64xf32>
    %41 = tpu.matmul %38, %40, %cst_46 {dimension_numbers = #tpu.dot_dimension_numbers<[1], [0], [0], [1], [0, 0, 1, 1], [], []>} : vector<64x32xbf16>, vector<32x64xbf16>, vector<64x64xf32> -> vector<64x64xf32>
    %42 = arith.addf %36, %41 : vector<64x64xf32>
    %c1_47 = arith.constant 1 : index
    %c2_48 = arith.constant 2 : index
    %c0_49 = arith.constant 0 : index
    %43 = vector.load %arg13[%c1_47, %c2_48, %c0_49] : memref<10x10x32xbf16, #tpu.memory_space<vmem>>, vector<8x8x32xbf16>
    %44 = vector.shape_cast %43 : vector<8x8x32xbf16> to vector<64x32xbf16>
    %c5 = arith.constant 5 : index
    %c0_50 = arith.constant 0 : index
    %c0_51 = arith.constant 0 : index
    %45 = vector.load %arg4[%c5, %c0_50, %c0_51] : memref<9x32x64xbf16, #tpu.memory_space<vmem>>, vector<1x32x64xbf16>
    %46 = vector.shape_cast %45 : vector<1x32x64xbf16> to vector<32x64xbf16>
    %cst_52 = arith.constant dense<0.000000e+00> : vector<64x64xf32>
    %47 = tpu.matmul %44, %46, %cst_52 {dimension_numbers = #tpu.dot_dimension_numbers<[1], [0], [0], [1], [0, 0, 1, 1], [], []>} : vector<64x32xbf16>, vector<32x64xbf16>, vector<64x64xf32> -> vector<64x64xf32>
    %48 = arith.addf %42, %47 : vector<64x64xf32>
    %c2_53 = arith.constant 2 : index
    %c0_54 = arith.constant 0 : index
    %c0_55 = arith.constant 0 : index
    %49 = vector.load %arg13[%c2_53, %c0_54, %c0_55] : memref<10x10x32xbf16, #tpu.memory_space<vmem>>, vector<8x8x32xbf16>
    %50 = vector.shape_cast %49 : vector<8x8x32xbf16> to vector<64x32xbf16>
    %c6 = arith.constant 6 : index
    %c0_56 = arith.constant 0 : index
    %c0_57 = arith.constant 0 : index
    %51 = vector.load %arg4[%c6, %c0_56, %c0_57] : memref<9x32x64xbf16, #tpu.memory_space<vmem>>, vector<1x32x64xbf16>
    %52 = vector.shape_cast %51 : vector<1x32x64xbf16> to vector<32x64xbf16>
    %cst_58 = arith.constant dense<0.000000e+00> : vector<64x64xf32>
    %53 = tpu.matmul %50, %52, %cst_58 {dimension_numbers = #tpu.dot_dimension_numbers<[1], [0], [0], [1], [0, 0, 1, 1], [], []>} : vector<64x32xbf16>, vector<32x64xbf16>, vector<64x64xf32> -> vector<64x64xf32>
    %54 = arith.addf %48, %53 : vector<64x64xf32>
    %c2_59 = arith.constant 2 : index
    %c1_60 = arith.constant 1 : index
    %c0_61 = arith.constant 0 : index
    %55 = vector.load %arg13[%c2_59, %c1_60, %c0_61] : memref<10x10x32xbf16, #tpu.memory_space<vmem>>, vector<8x8x32xbf16>
    %56 = vector.shape_cast %55 : vector<8x8x32xbf16> to vector<64x32xbf16>
    %c7 = arith.constant 7 : index
    %c0_62 = arith.constant 0 : index
    %c0_63 = arith.constant 0 : index
    %57 = vector.load %arg4[%c7, %c0_62, %c0_63] : memref<9x32x64xbf16, #tpu.memory_space<vmem>>, vector<1x32x64xbf16>
    %58 = vector.shape_cast %57 : vector<1x32x64xbf16> to vector<32x64xbf16>
    %cst_64 = arith.constant dense<0.000000e+00> : vector<64x64xf32>
    %59 = tpu.matmul %56, %58, %cst_64 {dimension_numbers = #tpu.dot_dimension_numbers<[1], [0], [0], [1], [0, 0, 1, 1], [], []>} : vector<64x32xbf16>, vector<32x64xbf16>, vector<64x64xf32> -> vector<64x64xf32>
    %60 = arith.addf %54, %59 : vector<64x64xf32>
    %c2_65 = arith.constant 2 : index
    %c2_66 = arith.constant 2 : index
    %c0_67 = arith.constant 0 : index
    %61 = vector.load %arg13[%c2_65, %c2_66, %c0_67] : memref<10x10x32xbf16, #tpu.memory_space<vmem>>, vector<8x8x32xbf16>
    %62 = vector.shape_cast %61 : vector<8x8x32xbf16> to vector<64x32xbf16>
    %c8 = arith.constant 8 : index
    %c0_68 = arith.constant 0 : index
    %c0_69 = arith.constant 0 : index
    %63 = vector.load %arg4[%c8, %c0_68, %c0_69] : memref<9x32x64xbf16, #tpu.memory_space<vmem>>, vector<1x32x64xbf16>
    %64 = vector.shape_cast %63 : vector<1x32x64xbf16> to vector<32x64xbf16>
    %cst_70 = arith.constant dense<0.000000e+00> : vector<64x64xf32>
    %65 = tpu.matmul %62, %64, %cst_70 {dimension_numbers = #tpu.dot_dimension_numbers<[1], [0], [0], [1], [0, 0, 1, 1], [], []>} : vector<64x32xbf16>, vector<32x64xbf16>, vector<64x64xf32> -> vector<64x64xf32>
    %66 = arith.addf %60, %65 : vector<64x64xf32>
    %cst_71 = arith.constant 0.000000e+00 : f32
    %67 = vector.broadcast %cst_71 : f32 to vector<64x64xf32>
    %68 = arith.maximumf %66, %67 : vector<64x64xf32>
    %69 = arith.truncf %68 : vector<64x64xf32> to vector<64x64xbf16>
    %70 = vector.extract_strided_slice %69 {offsets = [0, 0], sizes = [64, 32], strides = [1, 1]} : vector<64x64xbf16> to vector<64x32xbf16>
    %71 = vector.shape_cast %70 : vector<64x32xbf16> to vector<8x8x32xbf16>
    %c1_72 = arith.constant 1 : index
    %c1_73 = arith.constant 1 : index
    %c0_74 = arith.constant 0 : index
    %72 = vector.load %arg13[%c1_72, %c1_73, %c0_74] : memref<10x10x32xbf16, #tpu.memory_space<vmem>>, vector<8x8x32xbf16>
    tpu.vector_store %arg13[%c1_72, %c1_73, %c0_74], %71 {strides = array<i32>} : memref<10x10x32xbf16, #tpu.memory_space<vmem>>, vector<8x8x32xbf16>,
    %73 = vector.extract_strided_slice %69 {offsets = [0, 32], sizes = [64, 32], strides = [1, 1]} : vector<64x64xbf16> to vector<64x32xbf16>
    %c0_75 = arith.constant 0 : index
    %c0_76 = arith.constant 0 : index
    %74 = vector.load %arg7[%c0_75, %c0_76] : memref<32x64xbf16, #tpu.memory_space<vmem>>, vector<32x64xbf16>
    %cst_77 = arith.constant dense<0.000000e+00> : vector<64x64xf32>
    %75 = tpu.matmul %73, %74, %cst_77 {dimension_numbers = #tpu.dot_dimension_numbers<[1], [0], [0], [1], [0, 0, 1, 1], [], []>} : vector<64x32xbf16>, vector<32x64xbf16>, vector<64x64xf32> -> vector<64x64xf32>
    %c0_78 = arith.constant 0 : index
    %c0_79 = arith.constant 0 : index
    %c0_80 = arith.constant 0 : index
    %76 = vector.load %arg13[%c0_78, %c0_79, %c0_80] : memref<10x10x32xbf16, #tpu.memory_space<vmem>>, vector<8x8x32xbf16>
    %77 = vector.shape_cast %76 : vector<8x8x32xbf16> to vector<64x32xbf16>
    %c0_81 = arith.constant 0 : index
    %c0_82 = arith.constant 0 : index
    %c0_83 = arith.constant 0 : index
    %78 = vector.load %arg6[%c0_81, %c0_82, %c0_83] : memref<9x32x64xbf16, #tpu.memory_space<vmem>>, vector<1x32x64xbf16>
    %79 = vector.shape_cast %78 : vector<1x32x64xbf16> to vector<32x64xbf16>
    %cst_84 = arith.constant dense<0.000000e+00> : vector<64x64xf32>
    %80 = tpu.matmul %77, %79, %cst_84 {dimension_numbers = #tpu.dot_dimension_numbers<[1], [0], [0], [1], [0, 0, 1, 1], [], []>} : vector<64x32xbf16>, vector<32x64xbf16>, vector<64x64xf32> -> vector<64x64xf32>
    %81 = arith.addf %75, %80 : vector<64x64xf32>
    %c0_85 = arith.constant 0 : index
    %c1_86 = arith.constant 1 : index
    %c0_87 = arith.constant 0 : index
    %82 = vector.load %arg13[%c0_85, %c1_86, %c0_87] : memref<10x10x32xbf16, #tpu.memory_space<vmem>>, vector<8x8x32xbf16>
    %83 = vector.shape_cast %82 : vector<8x8x32xbf16> to vector<64x32xbf16>
    %c1_88 = arith.constant 1 : index
    %c0_89 = arith.constant 0 : index
    %c0_90 = arith.constant 0 : index
    %84 = vector.load %arg6[%c1_88, %c0_89, %c0_90] : memref<9x32x64xbf16, #tpu.memory_space<vmem>>, vector<1x32x64xbf16>
    %85 = vector.shape_cast %84 : vector<1x32x64xbf16> to vector<32x64xbf16>
    %cst_91 = arith.constant dense<0.000000e+00> : vector<64x64xf32>
    %86 = tpu.matmul %83, %85, %cst_91 {dimension_numbers = #tpu.dot_dimension_numbers<[1], [0], [0], [1], [0, 0, 1, 1], [], []>} : vector<64x32xbf16>, vector<32x64xbf16>, vector<64x64xf32> -> vector<64x64xf32>
    %87 = arith.addf %81, %86 : vector<64x64xf32>
    %c0_92 = arith.constant 0 : index
    %c2_93 = arith.constant 2 : index
    %c0_94 = arith.constant 0 : index
    %88 = vector.load %arg13[%c0_92, %c2_93, %c0_94] : memref<10x10x32xbf16, #tpu.memory_space<vmem>>, vector<8x8x32xbf16>
    %89 = vector.shape_cast %88 : vector<8x8x32xbf16> to vector<64x32xbf16>
    %c2_95 = arith.constant 2 : index
    %c0_96 = arith.constant 0 : index
    %c0_97 = arith.constant 0 : index
    %90 = vector.load %arg6[%c2_95, %c0_96, %c0_97] : memref<9x32x64xbf16, #tpu.memory_space<vmem>>, vector<1x32x64xbf16>
    %91 = vector.shape_cast %90 : vector<1x32x64xbf16> to vector<32x64xbf16>
    %cst_98 = arith.constant dense<0.000000e+00> : vector<64x64xf32>
    %92 = tpu.matmul %89, %91, %cst_98 {dimension_numbers = #tpu.dot_dimension_numbers<[1], [0], [0], [1], [0, 0, 1, 1], [], []>} : vector<64x32xbf16>, vector<32x64xbf16>, vector<64x64xf32> -> vector<64x64xf32>
    %93 = arith.addf %87, %92 : vector<64x64xf32>
    %c1_99 = arith.constant 1 : index
    %c0_100 = arith.constant 0 : index
    %c0_101 = arith.constant 0 : index
    %94 = vector.load %arg13[%c1_99, %c0_100, %c0_101] : memref<10x10x32xbf16, #tpu.memory_space<vmem>>, vector<8x8x32xbf16>
    %95 = vector.shape_cast %94 : vector<8x8x32xbf16> to vector<64x32xbf16>
    %c3_102 = arith.constant 3 : index
    %c0_103 = arith.constant 0 : index
    %c0_104 = arith.constant 0 : index
    %96 = vector.load %arg6[%c3_102, %c0_103, %c0_104] : memref<9x32x64xbf16, #tpu.memory_space<vmem>>, vector<1x32x64xbf16>
    %97 = vector.shape_cast %96 : vector<1x32x64xbf16> to vector<32x64xbf16>
    %cst_105 = arith.constant dense<0.000000e+00> : vector<64x64xf32>
    %98 = tpu.matmul %95, %97, %cst_105 {dimension_numbers = #tpu.dot_dimension_numbers<[1], [0], [0], [1], [0, 0, 1, 1], [], []>} : vector<64x32xbf16>, vector<32x64xbf16>, vector<64x64xf32> -> vector<64x64xf32>
    %99 = arith.addf %93, %98 : vector<64x64xf32>
    %c1_106 = arith.constant 1 : index
    %c1_107 = arith.constant 1 : index
    %c0_108 = arith.constant 0 : index
    %100 = vector.load %arg13[%c1_106, %c1_107, %c0_108] : memref<10x10x32xbf16, #tpu.memory_space<vmem>>, vector<8x8x32xbf16>
    %101 = vector.shape_cast %100 : vector<8x8x32xbf16> to vector<64x32xbf16>
    %c4_109 = arith.constant 4 : index
    %c0_110 = arith.constant 0 : index
    %c0_111 = arith.constant 0 : index
    %102 = vector.load %arg6[%c4_109, %c0_110, %c0_111] : memref<9x32x64xbf16, #tpu.memory_space<vmem>>, vector<1x32x64xbf16>
    %103 = vector.shape_cast %102 : vector<1x32x64xbf16> to vector<32x64xbf16>
    %cst_112 = arith.constant dense<0.000000e+00> : vector<64x64xf32>
    %104 = tpu.matmul %101, %103, %cst_112 {dimension_numbers = #tpu.dot_dimension_numbers<[1], [0], [0], [1], [0, 0, 1, 1], [], []>} : vector<64x32xbf16>, vector<32x64xbf16>, vector<64x64xf32> -> vector<64x64xf32>
    %105 = arith.addf %99, %104 : vector<64x64xf32>
    %c1_113 = arith.constant 1 : index
    %c2_114 = arith.constant 2 : index
    %c0_115 = arith.constant 0 : index
    %106 = vector.load %arg13[%c1_113, %c2_114, %c0_115] : memref<10x10x32xbf16, #tpu.memory_space<vmem>>, vector<8x8x32xbf16>
    %107 = vector.shape_cast %106 : vector<8x8x32xbf16> to vector<64x32xbf16>
    %c5_116 = arith.constant 5 : index
    %c0_117 = arith.constant 0 : index
    %c0_118 = arith.constant 0 : index
    %108 = vector.load %arg6[%c5_116, %c0_117, %c0_118] : memref<9x32x64xbf16, #tpu.memory_space<vmem>>, vector<1x32x64xbf16>
    %109 = vector.shape_cast %108 : vector<1x32x64xbf16> to vector<32x64xbf16>
    %cst_119 = arith.constant dense<0.000000e+00> : vector<64x64xf32>
    %110 = tpu.matmul %107, %109, %cst_119 {dimension_numbers = #tpu.dot_dimension_numbers<[1], [0], [0], [1], [0, 0, 1, 1], [], []>} : vector<64x32xbf16>, vector<32x64xbf16>, vector<64x64xf32> -> vector<64x64xf32>
    %111 = arith.addf %105, %110 : vector<64x64xf32>
    %c2_120 = arith.constant 2 : index
    %c0_121 = arith.constant 0 : index
    %c0_122 = arith.constant 0 : index
    %112 = vector.load %arg13[%c2_120, %c0_121, %c0_122] : memref<10x10x32xbf16, #tpu.memory_space<vmem>>, vector<8x8x32xbf16>
    %113 = vector.shape_cast %112 : vector<8x8x32xbf16> to vector<64x32xbf16>
    %c6_123 = arith.constant 6 : index
    %c0_124 = arith.constant 0 : index
    %c0_125 = arith.constant 0 : index
    %114 = vector.load %arg6[%c6_123, %c0_124, %c0_125] : memref<9x32x64xbf16, #tpu.memory_space<vmem>>, vector<1x32x64xbf16>
    %115 = vector.shape_cast %114 : vector<1x32x64xbf16> to vector<32x64xbf16>
    %cst_126 = arith.constant dense<0.000000e+00> : vector<64x64xf32>
    %116 = tpu.matmul %113, %115, %cst_126 {dimension_numbers = #tpu.dot_dimension_numbers<[1], [0], [0], [1], [0, 0, 1, 1], [], []>} : vector<64x32xbf16>, vector<32x64xbf16>, vector<64x64xf32> -> vector<64x64xf32>
    %117 = arith.addf %111, %116 : vector<64x64xf32>
    %c2_127 = arith.constant 2 : index
    %c1_128 = arith.constant 1 : index
    %c0_129 = arith.constant 0 : index
    %118 = vector.load %arg13[%c2_127, %c1_128, %c0_129] : memref<10x10x32xbf16, #tpu.memory_space<vmem>>, vector<8x8x32xbf16>
    %119 = vector.shape_cast %118 : vector<8x8x32xbf16> to vector<64x32xbf16>
    %c7_130 = arith.constant 7 : index
    %c0_131 = arith.constant 0 : index
    %c0_132 = arith.constant 0 : index
    %120 = vector.load %arg6[%c7_130, %c0_131, %c0_132] : memref<9x32x64xbf16, #tpu.memory_space<vmem>>, vector<1x32x64xbf16>
    %121 = vector.shape_cast %120 : vector<1x32x64xbf16> to vector<32x64xbf16>
    %cst_133 = arith.constant dense<0.000000e+00> : vector<64x64xf32>
    %122 = tpu.matmul %119, %121, %cst_133 {dimension_numbers = #tpu.dot_dimension_numbers<[1], [0], [0], [1], [0, 0, 1, 1], [], []>} : vector<64x32xbf16>, vector<32x64xbf16>, vector<64x64xf32> -> vector<64x64xf32>
    %123 = arith.addf %117, %122 : vector<64x64xf32>
    %c2_134 = arith.constant 2 : index
    %c2_135 = arith.constant 2 : index
    %c0_136 = arith.constant 0 : index
    %124 = vector.load %arg13[%c2_134, %c2_135, %c0_136] : memref<10x10x32xbf16, #tpu.memory_space<vmem>>, vector<8x8x32xbf16>
    %125 = vector.shape_cast %124 : vector<8x8x32xbf16> to vector<64x32xbf16>
    %c8_137 = arith.constant 8 : index
    %c0_138 = arith.constant 0 : index
    %c0_139 = arith.constant 0 : index
    %126 = vector.load %arg6[%c8_137, %c0_138, %c0_139] : memref<9x32x64xbf16, #tpu.memory_space<vmem>>, vector<1x32x64xbf16>
    %127 = vector.shape_cast %126 : vector<1x32x64xbf16> to vector<32x64xbf16>
    %cst_140 = arith.constant dense<0.000000e+00> : vector<64x64xf32>
    %128 = tpu.matmul %125, %127, %cst_140 {dimension_numbers = #tpu.dot_dimension_numbers<[1], [0], [0], [1], [0, 0, 1, 1], [], []>} : vector<64x32xbf16>, vector<32x64xbf16>, vector<64x64xf32> -> vector<64x64xf32>
    %129 = arith.addf %123, %128 : vector<64x64xf32>
    %130 = vector.shape_cast %5 : vector<8x8x64xf32> to vector<64x64xf32>
    %131 = arith.addf %129, %130 : vector<64x64xf32>
    %132 = arith.truncf %131 : vector<64x64xf32> to vector<64x64xbf16>
    %133 = vector.extract_strided_slice %132 {offsets = [0, 0], sizes = [64, 32], strides = [1, 1]} : vector<64x64xbf16> to vector<64x32xbf16>
    %134 = vector.shape_cast %133 : vector<64x32xbf16> to vector<8x8x32xbf16>
    %c1_141 = arith.constant 1 : index
    %c1_142 = arith.constant 1 : index
    %c0_143 = arith.constant 0 : index
    %135 = vector.load %arg13[%c1_141, %c1_142, %c0_143] : memref<10x10x32xbf16, #tpu.memory_space<vmem>>, vector<8x8x32xbf16>
    tpu.vector_store %arg13[%c1_141, %c1_142, %c0_143], %134 {strides = array<i32>} : memref<10x10x32xbf16, #tpu.memory_space<vmem>>, vector<8x8x32xbf16>,
    %136 = vector.extract_strided_slice %132 {offsets = [0, 16], sizes = [64, 48], strides = [1, 1]} : vector<64x64xbf16> to vector<64x48xbf16>
    %c0_144 = arith.constant 0 : index
    %c0_145 = arith.constant 0 : index
    %137 = vector.load %arg9[%c0_144, %c0_145] : memref<48x32xbf16, #tpu.memory_space<vmem>>, vector<48x32xbf16>
    %cst_146 = arith.constant dense<0.000000e+00> : vector<64x32xf32>
    %138 = tpu.matmul %136, %137, %cst_146 {dimension_numbers = #tpu.dot_dimension_numbers<[1], [0], [0], [1], [0, 0, 1, 1], [], []>} : vector<64x48xbf16>, vector<48x32xbf16>, vector<64x32xf32> -> vector<64x32xf32>
    %c0_147 = arith.constant 0 : index
    %c0_148 = arith.constant 0 : index
    %c0_149 = arith.constant 0 : index
    %139 = vector.load %arg13[%c0_147, %c0_148, %c0_149] : memref<10x10x32xbf16, #tpu.memory_space<vmem>>, vector<8x8x16xbf16>
    %140 = vector.shape_cast %139 : vector<8x8x16xbf16> to vector<64x16xbf16>
    %c0_150 = arith.constant 0 : index
    %c0_151 = arith.constant 0 : index
    %c0_152 = arith.constant 0 : index
    %141 = vector.load %arg8[%c0_150, %c0_151, %c0_152] : memref<9x16x32xbf16, #tpu.memory_space<vmem>>, vector<1x16x32xbf16>
    %142 = vector.shape_cast %141 : vector<1x16x32xbf16> to vector<16x32xbf16>
    %cst_153 = arith.constant dense<0.000000e+00> : vector<64x32xf32>
    %143 = tpu.matmul %140, %142, %cst_153 {dimension_numbers = #tpu.dot_dimension_numbers<[1], [0], [0], [1], [0, 0, 1, 1], [], []>} : vector<64x16xbf16>, vector<16x32xbf16>, vector<64x32xf32> -> vector<64x32xf32>
    %144 = arith.addf %138, %143 : vector<64x32xf32>
    %c0_154 = arith.constant 0 : index
    %c1_155 = arith.constant 1 : index
    %c0_156 = arith.constant 0 : index
    %145 = vector.load %arg13[%c0_154, %c1_155, %c0_156] : memref<10x10x32xbf16, #tpu.memory_space<vmem>>, vector<8x8x16xbf16>
    %146 = vector.shape_cast %145 : vector<8x8x16xbf16> to vector<64x16xbf16>
    %c1_157 = arith.constant 1 : index
    %c0_158 = arith.constant 0 : index
    %c0_159 = arith.constant 0 : index
    %147 = vector.load %arg8[%c1_157, %c0_158, %c0_159] : memref<9x16x32xbf16, #tpu.memory_space<vmem>>, vector<1x16x32xbf16>
    %148 = vector.shape_cast %147 : vector<1x16x32xbf16> to vector<16x32xbf16>
    %cst_160 = arith.constant dense<0.000000e+00> : vector<64x32xf32>
    %149 = tpu.matmul %146, %148, %cst_160 {dimension_numbers = #tpu.dot_dimension_numbers<[1], [0], [0], [1], [0, 0, 1, 1], [], []>} : vector<64x16xbf16>, vector<16x32xbf16>, vector<64x32xf32> -> vector<64x32xf32>
    %150 = arith.addf %144, %149 : vector<64x32xf32>
    %c0_161 = arith.constant 0 : index
    %c2_162 = arith.constant 2 : index
    %c0_163 = arith.constant 0 : index
    %151 = vector.load %arg13[%c0_161, %c2_162, %c0_163] : memref<10x10x32xbf16, #tpu.memory_space<vmem>>, vector<8x8x16xbf16>
    %152 = vector.shape_cast %151 : vector<8x8x16xbf16> to vector<64x16xbf16>
    %c2_164 = arith.constant 2 : index
    %c0_165 = arith.constant 0 : index
    %c0_166 = arith.constant 0 : index
    %153 = vector.load %arg8[%c2_164, %c0_165, %c0_166] : memref<9x16x32xbf16, #tpu.memory_space<vmem>>, vector<1x16x32xbf16>
    %154 = vector.shape_cast %153 : vector<1x16x32xbf16> to vector<16x32xbf16>
    %cst_167 = arith.constant dense<0.000000e+00> : vector<64x32xf32>
    %155 = tpu.matmul %152, %154, %cst_167 {dimension_numbers = #tpu.dot_dimension_numbers<[1], [0], [0], [1], [0, 0, 1, 1], [], []>} : vector<64x16xbf16>, vector<16x32xbf16>, vector<64x32xf32> -> vector<64x32xf32>
    %156 = arith.addf %150, %155 : vector<64x32xf32>
    %c1_168 = arith.constant 1 : index
    %c0_169 = arith.constant 0 : index
    %c0_170 = arith.constant 0 : index
    %157 = vector.load %arg13[%c1_168, %c0_169, %c0_170] : memref<10x10x32xbf16, #tpu.memory_space<vmem>>, vector<8x8x16xbf16>
    %158 = vector.shape_cast %157 : vector<8x8x16xbf16> to vector<64x16xbf16>
    %c3_171 = arith.constant 3 : index
    %c0_172 = arith.constant 0 : index
    %c0_173 = arith.constant 0 : index
    %159 = vector.load %arg8[%c3_171, %c0_172, %c0_173] : memref<9x16x32xbf16, #tpu.memory_space<vmem>>, vector<1x16x32xbf16>
    %160 = vector.shape_cast %159 : vector<1x16x32xbf16> to vector<16x32xbf16>
    %cst_174 = arith.constant dense<0.000000e+00> : vector<64x32xf32>
    %161 = tpu.matmul %158, %160, %cst_174 {dimension_numbers = #tpu.dot_dimension_numbers<[1], [0], [0], [1], [0, 0, 1, 1], [], []>} : vector<64x16xbf16>, vector<16x32xbf16>, vector<64x32xf32> -> vector<64x32xf32>
    %162 = arith.addf %156, %161 : vector<64x32xf32>
    %c1_175 = arith.constant 1 : index
    %c1_176 = arith.constant 1 : index
    %c0_177 = arith.constant 0 : index
    %163 = vector.load %arg13[%c1_175, %c1_176, %c0_177] : memref<10x10x32xbf16, #tpu.memory_space<vmem>>, vector<8x8x16xbf16>
    %164 = vector.shape_cast %163 : vector<8x8x16xbf16> to vector<64x16xbf16>
    %c4_178 = arith.constant 4 : index
    %c0_179 = arith.constant 0 : index
    %c0_180 = arith.constant 0 : index
    %165 = vector.load %arg8[%c4_178, %c0_179, %c0_180] : memref<9x16x32xbf16, #tpu.memory_space<vmem>>, vector<1x16x32xbf16>
    %166 = vector.shape_cast %165 : vector<1x16x32xbf16> to vector<16x32xbf16>
    %cst_181 = arith.constant dense<0.000000e+00> : vector<64x32xf32>
    %167 = tpu.matmul %164, %166, %cst_181 {dimension_numbers = #tpu.dot_dimension_numbers<[1], [0], [0], [1], [0, 0, 1, 1], [], []>} : vector<64x16xbf16>, vector<16x32xbf16>, vector<64x32xf32> -> vector<64x32xf32>
    %168 = arith.addf %162, %167 : vector<64x32xf32>
    %c1_182 = arith.constant 1 : index
    %c2_183 = arith.constant 2 : index
    %c0_184 = arith.constant 0 : index
    %169 = vector.load %arg13[%c1_182, %c2_183, %c0_184] : memref<10x10x32xbf16, #tpu.memory_space<vmem>>, vector<8x8x16xbf16>
    %170 = vector.shape_cast %169 : vector<8x8x16xbf16> to vector<64x16xbf16>
    %c5_185 = arith.constant 5 : index
    %c0_186 = arith.constant 0 : index
    %c0_187 = arith.constant 0 : index
    %171 = vector.load %arg8[%c5_185, %c0_186, %c0_187] : memref<9x16x32xbf16, #tpu.memory_space<vmem>>, vector<1x16x32xbf16>
    %172 = vector.shape_cast %171 : vector<1x16x32xbf16> to vector<16x32xbf16>
    %cst_188 = arith.constant dense<0.000000e+00> : vector<64x32xf32>
    %173 = tpu.matmul %170, %172, %cst_188 {dimension_numbers = #tpu.dot_dimension_numbers<[1], [0], [0], [1], [0, 0, 1, 1], [], []>} : vector<64x16xbf16>, vector<16x32xbf16>, vector<64x32xf32> -> vector<64x32xf32>
    %174 = arith.addf %168, %173 : vector<64x32xf32>
    %c2_189 = arith.constant 2 : index
    %c0_190 = arith.constant 0 : index
    %c0_191 = arith.constant 0 : index
    %175 = vector.load %arg13[%c2_189, %c0_190, %c0_191] : memref<10x10x32xbf16, #tpu.memory_space<vmem>>, vector<8x8x16xbf16>
    %176 = vector.shape_cast %175 : vector<8x8x16xbf16> to vector<64x16xbf16>
    %c6_192 = arith.constant 6 : index
    %c0_193 = arith.constant 0 : index
    %c0_194 = arith.constant 0 : index
    %177 = vector.load %arg8[%c6_192, %c0_193, %c0_194] : memref<9x16x32xbf16, #tpu.memory_space<vmem>>, vector<1x16x32xbf16>
    %178 = vector.shape_cast %177 : vector<1x16x32xbf16> to vector<16x32xbf16>
    %cst_195 = arith.constant dense<0.000000e+00> : vector<64x32xf32>
    %179 = tpu.matmul %176, %178, %cst_195 {dimension_numbers = #tpu.dot_dimension_numbers<[1], [0], [0], [1], [0, 0, 1, 1], [], []>} : vector<64x16xbf16>, vector<16x32xbf16>, vector<64x32xf32> -> vector<64x32xf32>
    %180 = arith.addf %174, %179 : vector<64x32xf32>
    %c2_196 = arith.constant 2 : index
    %c1_197 = arith.constant 1 : index
    %c0_198 = arith.constant 0 : index
    %181 = vector.load %arg13[%c2_196, %c1_197, %c0_198] : memref<10x10x32xbf16, #tpu.memory_space<vmem>>, vector<8x8x16xbf16>
    %182 = vector.shape_cast %181 : vector<8x8x16xbf16> to vector<64x16xbf16>
    %c7_199 = arith.constant 7 : index
    %c0_200 = arith.constant 0 : index
    %c0_201 = arith.constant 0 : index
    %183 = vector.load %arg8[%c7_199, %c0_200, %c0_201] : memref<9x16x32xbf16, #tpu.memory_space<vmem>>, vector<1x16x32xbf16>
    %184 = vector.shape_cast %183 : vector<1x16x32xbf16> to vector<16x32xbf16>
    %cst_202 = arith.constant dense<0.000000e+00> : vector<64x32xf32>
    %185 = tpu.matmul %182, %184, %cst_202 {dimension_numbers = #tpu.dot_dimension_numbers<[1], [0], [0], [1], [0, 0, 1, 1], [], []>} : vector<64x16xbf16>, vector<16x32xbf16>, vector<64x32xf32> -> vector<64x32xf32>
    %186 = arith.addf %180, %185 : vector<64x32xf32>
    %c2_203 = arith.constant 2 : index
    %c2_204 = arith.constant 2 : index
    %c0_205 = arith.constant 0 : index
    %187 = vector.load %arg13[%c2_203, %c2_204, %c0_205] : memref<10x10x32xbf16, #tpu.memory_space<vmem>>, vector<8x8x16xbf16>
    %188 = vector.shape_cast %187 : vector<8x8x16xbf16> to vector<64x16xbf16>
    %c8_206 = arith.constant 8 : index
    %c0_207 = arith.constant 0 : index
    %c0_208 = arith.constant 0 : index
    %189 = vector.load %arg8[%c8_206, %c0_207, %c0_208] : memref<9x16x32xbf16, #tpu.memory_space<vmem>>, vector<1x16x32xbf16>
    %190 = vector.shape_cast %189 : vector<1x16x32xbf16> to vector<16x32xbf16>
    %cst_209 = arith.constant dense<0.000000e+00> : vector<64x32xf32>
    %191 = tpu.matmul %188, %190, %cst_209 {dimension_numbers = #tpu.dot_dimension_numbers<[1], [0], [0], [1], [0, 0, 1, 1], [], []>} : vector<64x16xbf16>, vector<16x32xbf16>, vector<64x32xf32> -> vector<64x32xf32>
    %192 = arith.addf %186, %191 : vector<64x32xf32>
    %c0_210 = arith.constant 0 : index
    %c0_211 = arith.constant 0 : index
    %193 = vector.load %arg3[%c0_210, %c0_211] : memref<256x64xf32, #tpu.memory_space<vmem>>, vector<256x64xf32>
    %cst_212 = arith.constant dense<0.000000e+00> : vector<256x32xf32>
    %194 = tpu.matmul %193, %192, %cst_212 {dimension_numbers = #tpu.dot_dimension_numbers<[1], [0], [0], [1], [0, 0, 1, 1], [], []>} : vector<256x64xf32>, vector<64x32xf32>, vector<256x32xf32> -> vector<256x32xf32>
    %c0_213 = arith.constant 0 : index
    %c0_214 = arith.constant 0 : index
    %c0_215 = arith.constant 0 : index
    %c0_216 = arith.constant 0 : index
    %195 = vector.load %arg2[%c0_213, %c0_214, %c0_215, %c0_216] : memref<1x16x16x32xf32, #tpu.memory_space<vmem>>, vector<1x16x16x32xf32>
    %196 = vector.shape_cast %195 : vector<1x16x16x32xf32> to vector<16x16x32xf32>
    %197 = arith.truncf %196 : vector<16x16x32xf32> to vector<16x16x32xbf16>
    %198 = vector.extract_strided_slice %197 {offsets = [0, 0, 0], sizes = [16, 16, 16], strides = [1, 1, 1]} : vector<16x16x32xbf16> to vector<16x16x16xbf16>
    %c1_217 = arith.constant 1 : index
    %c1_218 = arith.constant 1 : index
    %c0_219 = arith.constant 0 : index
    %199 = vector.load %arg14[%c1_217, %c1_218, %c0_219] : memref<18x18x16xbf16, #tpu.memory_space<vmem>>, vector<16x16x16xbf16>
    tpu.vector_store %arg14[%c1_217, %c1_218, %c0_219], %198 {strides = array<i32>} : memref<18x18x16xbf16, #tpu.memory_space<vmem>>, vector<16x16x16xbf16>,
    %200 = vector.extract_strided_slice %197 {offsets = [0, 0, 16], sizes = [16, 16, 16], strides = [1, 1, 1]} : vector<16x16x32xbf16> to vector<16x16x16xbf16>
    %201 = vector.shape_cast %200 : vector<16x16x16xbf16> to vector<256x16xbf16>
    %c0_220 = arith.constant 0 : index
    %c0_221 = arith.constant 0 : index
    %202 = vector.load %arg11[%c0_220, %c0_221] : memref<16x32xbf16, #tpu.memory_space<vmem>>, vector<16x32xbf16>
    %cst_222 = arith.constant dense<0.000000e+00> : vector<256x32xf32>
    %203 = tpu.matmul %201, %202, %cst_222 {dimension_numbers = #tpu.dot_dimension_numbers<[1], [0], [0], [1], [0, 0, 1, 1], [], []>} : vector<256x16xbf16>, vector<16x32xbf16>, vector<256x32xf32> -> vector<256x32xf32>
    %c0_223 = arith.constant 0 : index
    %c0_224 = arith.constant 0 : index
    %c0_225 = arith.constant 0 : index
    %204 = vector.load %arg14[%c0_223, %c0_224, %c0_225] : memref<18x18x16xbf16, #tpu.memory_space<vmem>>, vector<16x16x16xbf16>
    %205 = vector.shape_cast %204 : vector<16x16x16xbf16> to vector<256x16xbf16>
    %c0_226 = arith.constant 0 : index
    %c0_227 = arith.constant 0 : index
    %c0_228 = arith.constant 0 : index
    %206 = vector.load %arg10[%c0_226, %c0_227, %c0_228] : memref<9x16x32xbf16, #tpu.memory_space<vmem>>, vector<1x16x32xbf16>
    %207 = vector.shape_cast %206 : vector<1x16x32xbf16> to vector<16x32xbf16>
    %cst_229 = arith.constant dense<0.000000e+00> : vector<256x32xf32>
    %208 = tpu.matmul %205, %207, %cst_229 {dimension_numbers = #tpu.dot_dimension_numbers<[1], [0], [0], [1], [0, 0, 1, 1], [], []>} : vector<256x16xbf16>, vector<16x32xbf16>, vector<256x32xf32> -> vector<256x32xf32>
    %209 = arith.addf %203, %208 : vector<256x32xf32>
    %c0_230 = arith.constant 0 : index
    %c1_231 = arith.constant 1 : index
    %c0_232 = arith.constant 0 : index
    %210 = vector.load %arg14[%c0_230, %c1_231, %c0_232] : memref<18x18x16xbf16, #tpu.memory_space<vmem>>, vector<16x16x16xbf16>
    %211 = vector.shape_cast %210 : vector<16x16x16xbf16> to vector<256x16xbf16>
    %c1_233 = arith.constant 1 : index
    %c0_234 = arith.constant 0 : index
    %c0_235 = arith.constant 0 : index
    %212 = vector.load %arg10[%c1_233, %c0_234, %c0_235] : memref<9x16x32xbf16, #tpu.memory_space<vmem>>, vector<1x16x32xbf16>
    %213 = vector.shape_cast %212 : vector<1x16x32xbf16> to vector<16x32xbf16>
    %cst_236 = arith.constant dense<0.000000e+00> : vector<256x32xf32>
    %214 = tpu.matmul %211, %213, %cst_236 {dimension_numbers = #tpu.dot_dimension_numbers<[1], [0], [0], [1], [0, 0, 1, 1], [], []>} : vector<256x16xbf16>, vector<16x32xbf16>, vector<256x32xf32> -> vector<256x32xf32>
    %215 = arith.addf %209, %214 : vector<256x32xf32>
    %c0_237 = arith.constant 0 : index
    %c2_238 = arith.constant 2 : index
    %c0_239 = arith.constant 0 : index
    %216 = vector.load %arg14[%c0_237, %c2_238, %c0_239] : memref<18x18x16xbf16, #tpu.memory_space<vmem>>, vector<16x16x16xbf16>
    %217 = vector.shape_cast %216 : vector<16x16x16xbf16> to vector<256x16xbf16>
    %c2_240 = arith.constant 2 : index
    %c0_241 = arith.constant 0 : index
    %c0_242 = arith.constant 0 : index
    %218 = vector.load %arg10[%c2_240, %c0_241, %c0_242] : memref<9x16x32xbf16, #tpu.memory_space<vmem>>, vector<1x16x32xbf16>
    %219 = vector.shape_cast %218 : vector<1x16x32xbf16> to vector<16x32xbf16>
    %cst_243 = arith.constant dense<0.000000e+00> : vector<256x32xf32>
    %220 = tpu.matmul %217, %219, %cst_243 {dimension_numbers = #tpu.dot_dimension_numbers<[1], [0], [0], [1], [0, 0, 1, 1], [], []>} : vector<256x16xbf16>, vector<16x32xbf16>, vector<256x32xf32> -> vector<256x32xf32>
    %221 = arith.addf %215, %220 : vector<256x32xf32>
    %c1_244 = arith.constant 1 : index
    %c0_245 = arith.constant 0 : index
    %c0_246 = arith.constant 0 : index
    %222 = vector.load %arg14[%c1_244, %c0_245, %c0_246] : memref<18x18x16xbf16, #tpu.memory_space<vmem>>, vector<16x16x16xbf16>
    %223 = vector.shape_cast %222 : vector<16x16x16xbf16> to vector<256x16xbf16>
    %c3_247 = arith.constant 3 : index
    %c0_248 = arith.constant 0 : index
    %c0_249 = arith.constant 0 : index
    %224 = vector.load %arg10[%c3_247, %c0_248, %c0_249] : memref<9x16x32xbf16, #tpu.memory_space<vmem>>, vector<1x16x32xbf16>
    %225 = vector.shape_cast %224 : vector<1x16x32xbf16> to vector<16x32xbf16>
    %cst_250 = arith.constant dense<0.000000e+00> : vector<256x32xf32>
    %226 = tpu.matmul %223, %225, %cst_250 {dimension_numbers = #tpu.dot_dimension_numbers<[1], [0], [0], [1], [0, 0, 1, 1], [], []>} : vector<256x16xbf16>, vector<16x32xbf16>, vector<256x32xf32> -> vector<256x32xf32>
    %227 = arith.addf %221, %226 : vector<256x32xf32>
    %c1_251 = arith.constant 1 : index
    %c1_252 = arith.constant 1 : index
    %c0_253 = arith.constant 0 : index
    %228 = vector.load %arg14[%c1_251, %c1_252, %c0_253] : memref<18x18x16xbf16, #tpu.memory_space<vmem>>, vector<16x16x16xbf16>
    %229 = vector.shape_cast %228 : vector<16x16x16xbf16> to vector<256x16xbf16>
    %c4_254 = arith.constant 4 : index
    %c0_255 = arith.constant 0 : index
    %c0_256 = arith.constant 0 : index
    %230 = vector.load %arg10[%c4_254, %c0_255, %c0_256] : memref<9x16x32xbf16, #tpu.memory_space<vmem>>, vector<1x16x32xbf16>
    %231 = vector.shape_cast %230 : vector<1x16x32xbf16> to vector<16x32xbf16>
    %cst_257 = arith.constant dense<0.000000e+00> : vector<256x32xf32>
    %232 = tpu.matmul %229, %231, %cst_257 {dimension_numbers = #tpu.dot_dimension_numbers<[1], [0], [0], [1], [0, 0, 1, 1], [], []>} : vector<256x16xbf16>, vector<16x32xbf16>, vector<256x32xf32> -> vector<256x32xf32>
    %233 = arith.addf %227, %232 : vector<256x32xf32>
    %c1_258 = arith.constant 1 : index
    %c2_259 = arith.constant 2 : index
    %c0_260 = arith.constant 0 : index
    %234 = vector.load %arg14[%c1_258, %c2_259, %c0_260] : memref<18x18x16xbf16, #tpu.memory_space<vmem>>, vector<16x16x16xbf16>
    %235 = vector.shape_cast %234 : vector<16x16x16xbf16> to vector<256x16xbf16>
    %c5_261 = arith.constant 5 : index
    %c0_262 = arith.constant 0 : index
    %c0_263 = arith.constant 0 : index
    %236 = vector.load %arg10[%c5_261, %c0_262, %c0_263] : memref<9x16x32xbf16, #tpu.memory_space<vmem>>, vector<1x16x32xbf16>
    %237 = vector.shape_cast %236 : vector<1x16x32xbf16> to vector<16x32xbf16>
    %cst_264 = arith.constant dense<0.000000e+00> : vector<256x32xf32>
    %238 = tpu.matmul %235, %237, %cst_264 {dimension_numbers = #tpu.dot_dimension_numbers<[1], [0], [0], [1], [0, 0, 1, 1], [], []>} : vector<256x16xbf16>, vector<16x32xbf16>, vector<256x32xf32> -> vector<256x32xf32>
    %239 = arith.addf %233, %238 : vector<256x32xf32>
    %c2_265 = arith.constant 2 : index
    %c0_266 = arith.constant 0 : index
    %c0_267 = arith.constant 0 : index
    %240 = vector.load %arg14[%c2_265, %c0_266, %c0_267] : memref<18x18x16xbf16, #tpu.memory_space<vmem>>, vector<16x16x16xbf16>
    %241 = vector.shape_cast %240 : vector<16x16x16xbf16> to vector<256x16xbf16>
    %c6_268 = arith.constant 6 : index
    %c0_269 = arith.constant 0 : index
    %c0_270 = arith.constant 0 : index
    %242 = vector.load %arg10[%c6_268, %c0_269, %c0_270] : memref<9x16x32xbf16, #tpu.memory_space<vmem>>, vector<1x16x32xbf16>
    %243 = vector.shape_cast %242 : vector<1x16x32xbf16> to vector<16x32xbf16>
    %cst_271 = arith.constant dense<0.000000e+00> : vector<256x32xf32>
    %244 = tpu.matmul %241, %243, %cst_271 {dimension_numbers = #tpu.dot_dimension_numbers<[1], [0], [0], [1], [0, 0, 1, 1], [], []>} : vector<256x16xbf16>, vector<16x32xbf16>, vector<256x32xf32> -> vector<256x32xf32>
    %245 = arith.addf %239, %244 : vector<256x32xf32>
    %c2_272 = arith.constant 2 : index
    %c1_273 = arith.constant 1 : index
    %c0_274 = arith.constant 0 : index
    %246 = vector.load %arg14[%c2_272, %c1_273, %c0_274] : memref<18x18x16xbf16, #tpu.memory_space<vmem>>, vector<16x16x16xbf16>
    %247 = vector.shape_cast %246 : vector<16x16x16xbf16> to vector<256x16xbf16>
    %c7_275 = arith.constant 7 : index
    %c0_276 = arith.constant 0 : index
    %c0_277 = arith.constant 0 : index
    %248 = vector.load %arg10[%c7_275, %c0_276, %c0_277] : memref<9x16x32xbf16, #tpu.memory_space<vmem>>, vector<1x16x32xbf16>
    %249 = vector.shape_cast %248 : vector<1x16x32xbf16> to vector<16x32xbf16>
    %cst_278 = arith.constant dense<0.000000e+00> : vector<256x32xf32>
    %250 = tpu.matmul %247, %249, %cst_278 {dimension_numbers = #tpu.dot_dimension_numbers<[1], [0], [0], [1], [0, 0, 1, 1], [], []>} : vector<256x16xbf16>, vector<16x32xbf16>, vector<256x32xf32> -> vector<256x32xf32>
    %251 = arith.addf %245, %250 : vector<256x32xf32>
    %c2_279 = arith.constant 2 : index
    %c2_280 = arith.constant 2 : index
    %c0_281 = arith.constant 0 : index
    %252 = vector.load %arg14[%c2_279, %c2_280, %c0_281] : memref<18x18x16xbf16, #tpu.memory_space<vmem>>, vector<16x16x16xbf16>
    %253 = vector.shape_cast %252 : vector<16x16x16xbf16> to vector<256x16xbf16>
    %c8_282 = arith.constant 8 : index
    %c0_283 = arith.constant 0 : index
    %c0_284 = arith.constant 0 : index
    %254 = vector.load %arg10[%c8_282, %c0_283, %c0_284] : memref<9x16x32xbf16, #tpu.memory_space<vmem>>, vector<1x16x32xbf16>
    %255 = vector.shape_cast %254 : vector<1x16x32xbf16> to vector<16x32xbf16>
    %cst_285 = arith.constant dense<0.000000e+00> : vector<256x32xf32>
    %256 = tpu.matmul %253, %255, %cst_285 {dimension_numbers = #tpu.dot_dimension_numbers<[1], [0], [0], [1], [0, 0, 1, 1], [], []>} : vector<256x16xbf16>, vector<16x32xbf16>, vector<256x32xf32> -> vector<256x32xf32>
    %257 = arith.addf %251, %256 : vector<256x32xf32>
    %cst_286 = arith.constant 0.000000e+00 : f32
    %258 = vector.broadcast %cst_286 : f32 to vector<256x32xf32>
    %259 = arith.maximumf %257, %258 : vector<256x32xf32>
    %260 = arith.addf %194, %259 : vector<256x32xf32>
    %261 = vector.shape_cast %260 : vector<256x32xf32> to vector<16x16x32xf32>
    %c0_287 = arith.constant 0 : index
    %c0_288 = arith.constant 0 : index
    %c0_289 = arith.constant 0 : index
    %c0_290 = arith.constant 0 : index
    %262 = vector.load %arg12[%c0_287, %c0_288, %c0_289, %c0_290] : memref<1x16x16x32xf32, #tpu.memory_space<vmem>>, vector<1x16x16x32xf32>
    %263 = vector.shape_cast %262 : vector<1x16x16x32xf32> to vector<16x16x32xf32>
    %264 = vector.shape_cast %261 : vector<16x16x32xf32> to vector<1x16x16x32xf32>
    tpu.vector_store %arg12[%c0_287, %c0_288, %c0_289, %c0_290], %264 {strides = array<i32>} : memref<1x16x16x32xf32, #tpu.memory_space<vmem>>, vector<1x16x16x32xf32>,
    return
  }
  func.func @transform_0(%arg0: i32) -> (i32, i32, i32, i32) {
    %c0_i32 = arith.constant 0 : i32
    %c0_i32_0 = arith.constant 0 : i32
    %c0_i32_1 = arith.constant 0 : i32
    %c0_i32_2 = arith.constant 0 : i32
    return %arg0, %c0_i32, %c0_i32_0, %c0_i32_1 : i32, i32, i32, i32
  }
  func.func @transform_1(%arg0: i32) -> (i32, i32, i32, i32) {
    %c0_i32 = arith.constant 0 : i32
    %c0_i32_0 = arith.constant 0 : i32
    %c0_i32_1 = arith.constant 0 : i32
    %c0_i32_2 = arith.constant 0 : i32
    return %arg0, %c0_i32, %c0_i32_0, %c0_i32_1 : i32, i32, i32, i32
  }
  func.func @transform_2(%arg0: i32) -> (i32, i32) {
    %c0_i32 = arith.constant 0 : i32
    %c0_i32_0 = arith.constant 0 : i32
    %c0_i32_1 = arith.constant 0 : i32
    return %c0_i32, %c0_i32_0 : i32, i32
  }
  func.func @transform_3(%arg0: i32) -> (i32, i32, i32) {
    %c0_i32 = arith.constant 0 : i32
    %c0_i32_0 = arith.constant 0 : i32
    %c0_i32_1 = arith.constant 0 : i32
    %c0_i32_2 = arith.constant 0 : i32
    return %c0_i32, %c0_i32_0, %c0_i32_1 : i32, i32, i32
  }
  func.func @transform_4(%arg0: i32) -> (i32, i32) {
    %c0_i32 = arith.constant 0 : i32
    %c0_i32_0 = arith.constant 0 : i32
    %c0_i32_1 = arith.constant 0 : i32
    return %c0_i32, %c0_i32_0 : i32, i32
  }
  func.func @transform_5(%arg0: i32) -> (i32, i32, i32) {
    %c0_i32 = arith.constant 0 : i32
    %c0_i32_0 = arith.constant 0 : i32
    %c0_i32_1 = arith.constant 0 : i32
    %c0_i32_2 = arith.constant 0 : i32
    return %c0_i32, %c0_i32_0, %c0_i32_1 : i32, i32, i32
  }
  func.func @transform_6(%arg0: i32) -> (i32, i32) {
    %c0_i32 = arith.constant 0 : i32
    %c0_i32_0 = arith.constant 0 : i32
    %c0_i32_1 = arith.constant 0 : i32
    return %c0_i32, %c0_i32_0 : i32, i32
  }
  func.func @transform_7(%arg0: i32) -> (i32, i32, i32) {
    %c0_i32 = arith.constant 0 : i32
    %c0_i32_0 = arith.constant 0 : i32
    %c0_i32_1 = arith.constant 0 : i32
    %c0_i32_2 = arith.constant 0 : i32
    return %c0_i32, %c0_i32_0, %c0_i32_1 : i32, i32, i32
  }
  func.func @transform_8(%arg0: i32) -> (i32, i32) {
    %c0_i32 = arith.constant 0 : i32
    %c0_i32_0 = arith.constant 0 : i32
    %c0_i32_1 = arith.constant 0 : i32
    return %c0_i32, %c0_i32_0 : i32, i32
  }
  func.func @transform_9(%arg0: i32) -> (i32, i32, i32) {
    %c0_i32 = arith.constant 0 : i32
    %c0_i32_0 = arith.constant 0 : i32
    %c0_i32_1 = arith.constant 0 : i32
    %c0_i32_2 = arith.constant 0 : i32
    return %c0_i32, %c0_i32_0, %c0_i32_1 : i32, i32, i32
  }
  func.func @transform_10(%arg0: i32) -> (i32, i32) {
    %c0_i32 = arith.constant 0 : i32
    %c0_i32_0 = arith.constant 0 : i32
    %c0_i32_1 = arith.constant 0 : i32
    return %c0_i32, %c0_i32_0 : i32, i32
  }
  func.func @transform_11(%arg0: i32) -> (i32, i32, i32, i32) {
    %c0_i32 = arith.constant 0 : i32
    %c0_i32_0 = arith.constant 0 : i32
    %c0_i32_1 = arith.constant 0 : i32
    %c0_i32_2 = arith.constant 0 : i32
    return %arg0, %c0_i32, %c0_i32_0, %c0_i32_1 : i32, i32, i32, i32
  }
}

</mosaic_0001>

<bundles_post_ra>
// kernel: tpu_custom_call.1
= control target key start
LH: loop header
LB: loop body
LE: loop exit
PB: predicated region body
PF: predicated region fallthrough
CT: control target
= control target key end

     0   :  { %s15372_s0 = inlined_call_operand.vmem [shape: f32[2,8,8,64], index: 0, kind: input, shape index: {}]   ;;  %s15373_s1 = inlined_call_operand.hbm [shape: f32[2,16,16,32], index: 1, kind: input, shape index: {}]   ;;  %s15374_s2 = inlined_call_operand.vmem [shape: f32[256,64], index: 2, kind: input, shape index: {}]   ;;  %s15375_s3 = inlined_call_operand.vmem [shape: bf16[9,32,64], index: 3, kind: input, shape index: {}]   ;;  %s15376_s4 = inlined_call_operand.hbm [shape: bf16[32,64], index: 4, kind: input, shape index: {}]   ;;  %s15377_s5 = inlined_call_operand.vmem [shape: bf16[9,32,64], index: 5, kind: input, shape index: {}]   ;;  %s15378_s6 = inlined_call_operand.hbm [shape: bf16[32,64], index: 6, kind: input, shape index: {}]   ;;  %s15379_s7 = inlined_call_operand.hbm [shape: bf16[9,16,32], index: 7, kind: input, shape index: {}]   ;;  %s15380_s8 = inlined_call_operand.vmem [shape: bf16[48,32], index: 8, kind: input, shape index: {}]   ;;  %s15381_s9 = inlined_call_operand.hbm [shape: bf16[9,16,32], index: 9, kind: input, shape index: {}]   ;;  %s15382_s10 = inlined_call_operand.vmem [shape: bf16[16,32], index: 10, kind: input, shape index: {}]   ;;  %s15383_s11 = inlined_call_operand.hbm [shape: f32[2,16,16,32], index: 11, kind: output, shape index: {}]  }
   0x1   :  { %15389 = sst [smem:[#allocation44_spill]] %s15376_s4 }
   0x2   :  { %15390 = sst [smem:[#allocation45_spill]] %s15378_s6 }
   0x3   :  { %15391 = sst [smem:[#allocation46_spill]] %s15379_s7 }
   0x4   :  { %15392 = sst [smem:[#allocation47_spill]] %s15381_s9 }
   0x5   :  { %16 = vsyncpa [#allocation5], 0 }
   0x6   :  { %18 = vsyncpa [#allocation5 + $0x1], 0 }
   0x7   :  { %19 = vsyncpa [#allocation8], 0 }
   0x8   :  { %20 = vsyncpa [#allocation11], 0 }
   0x9   :  { %21 = vsyncpa [#allocation6], 0 }
   0xa   :  { %23 = vsyncpa [#allocation6 + $0x1], 0  ;;  %s12007_s17 = smov 0   ;;  %s12009_s18 = smov 0  }
   0xb   :  { %s12011_s19 = smov 0   ;;  %s12013_s20 = smov 0  }
   0xc LB: > { %s12028_s21 = sadd.s32 4294967295, %s11932_s20   ;;  %s10312_s22 = sadd.s32 4294967294, %s11932_s20   ;;  %s11932_s20 = sphi %s12013_s20, %s15535_s20   ;;  %s11928_s19 = sphi %s12011_s19, %s15534_s19   ;;  %s11924_s18 = sphi %s12009_s18, %s15533_s18   ;;  %s11920_s17 = sphi %s12007_s17, %s15532_s17  }
   0xd   : > { %p75_p0 = scmp.ne.s32.totalorder %s11924_s18, %s11920_s17  ;;  %p76_p1 = scmp.eq.s32.totalorder %s12028_s21, 0 }
   0xe   : > { %p288_p2 = scmp.eq.s32.totalorder %s12028_s21, 1  ;;  %p294_p3 = scmp.eq.s32.totalorder %s10312_s22, 1 }
   0xf   : > { %p12037_p4 = por %p76_p1, %p75_p0  ;;  %p10313_p5 = scmp.ge.s32.totalorder %s11932_s20, 1 }
  0x10   : > { %p12042_p6 = por %p294_p3, %p75_p0  ;;  %p301_p7 = scmp.lt.s32.totalorder %s11932_s20, 3 }
  0x11   : > { %s15396_s4 = sld [smem:[#allocation44_spill]]  ;;  %s11934_s29 = smov [#allocation7]  }
  0x12   : > { %s15394_s24 = scalar_select %p12042_p6, 1, 0 }
  0x13   : > { %p12050_p8 = pnand %p10313_p5, %p301_p7  ;;  %s320_s30 = sshll.u32 %s11934_s29, 4  ;;  %s321_s30 = int_to_ptr.vmem [resolvable:$true] %s320_s30 }
  0x14   : > { %15395 = sst [smem:[#allocation18_spill]] %s15394_s24  ;;  %s11935_s16 = smov 64  }
  0x15   : > { %p11592_p9 = pneg %p12050_p8  ;;  %s15399_s7 = sld [smem:[#allocation46_spill]] }
  0x16   : > { %s11936_s22 = smov 4   ;;  %s11937_s25 = smov [#allocation10]  }
  0x17   : > { %s318_s27 = sshll.u32 %s15396_s4, 4  ;;  %p12058_p10 = pnand %p11592_p9, %p76_p1  ;;  %s319_s27 = int_to_ptr.hbm [resolvable:$true] %s318_s27 }
  0x18   : > { %s351_s26 = sshll.u32 %s11937_s25, 4  ;;  %s15400_s6 = sld [smem:[#allocation45_spill]]  ;;  %s352_s26 = int_to_ptr.vmem [resolvable:$true] %s351_s26 }
  0x19   : > { %11595 = dma.hbm_to_vmem [thread:$0]  (!%p12058_p10), %s319_s27, 256, %s321_s30, [#allocation8], %s11935_s16, %s11935_s16, %s11936_s22  }
  0x1a   : > { %s15401_s9 = sld [smem:[#allocation47_spill]]  ;;  %s11938_s30 = smov [#allocation9]  }
  0x1b   : > { %s349_s15 = sshll.u32 %s15399_s7, 4  ;;  %s337_s25 = sshll.u32 %s11938_s30, 4  ;;  %s350_s15 = int_to_ptr.hbm [resolvable:$true] %s349_s15  ;;  %s338_s25 = int_to_ptr.vmem [resolvable:$true] %s337_s25 }
  0x1c   : > { %11601 = dma.hbm_to_vmem [thread:$0]  (!%p12058_p10), %s350_s15, 1152, %s352_s26, [#allocation11], %s11935_s16, %s11935_s16, %s11936_s22  }
  0x1d   : > { %s11939_s4 = smov [#allocation12]   ;;  %s12081_s15 = sadd.s32 1, %s11932_s20  }
  0x1e   : > { %s335_s24 = sshll.u32 %s15400_s6, 4  ;;  %s368_s29 = sshll.u32 %s11939_s4, 4  ;;  %s336_s24 = int_to_ptr.hbm [resolvable:$true] %s335_s24  ;;  %s369_s29 = int_to_ptr.vmem [resolvable:$true] %s368_s29 }
  0x1f   : > { %11598 = dma.hbm_to_vmem [thread:$0]  (!%p12058_p10), %s336_s24, 256, %s338_s25, [#allocation8], %s11935_s16, %s11935_s16, %s11936_s22  }
  0x20   : > { %s366_s27 = sshll.u32 %s15401_s9, 4  ;;  %s62_s26 = sadd.s32 1, %s11928_s19  ;;  %s367_s27 = int_to_ptr.hbm [resolvable:$true] %s366_s27 }
  0x21   : > { %11604 = dma.hbm_to_vmem [thread:$0]  (!%p12058_p10), %s367_s27, 1152, %s369_s29, [#allocation11], %s11935_s16, %s11935_s16, %s11936_s22  }
  0x22   : > { %s59_s13 = ssub.s32 %s11932_s20, %s12081_s15  ;;  %p69_p12 = scmp.ne.s32.totalorder %s11928_s19, %s11924_s18 }
  0x23   : > { %p60_p13 = scmp.eq.s32.totalorder %s59_s13, 0  ;;  %p70_p0 = scmp.eq.s32.totalorder %s11932_s20, 0 }
  0x24   : > { %p12091_p3 = por %p288_p2, %p69_p12  ;;  %p11617_p5 = scmp.lt.s32.totalorder %s11932_s20, 2 }
  0x25   : > { %s12097_s24 = scalar_select %p60_p13, %s11928_s19, %s62_s26  }
  0x26   : > { %p71_p7 = por %p70_p0, %p69_p12  ;;  %s393_s30 = sand.u32 1, %s11928_s19  }
  0x27   : > { %s10319_s12 = sshll.u32 %s393_s30, 8  ;;  %s11416_s16 = sshll.u32 %s11932_s20, 8 }
  0x28   : > { %s402_s25 = scalar_lea.hbm %s15373_s1, %s11416_s16  ;;  %s397_s4 = scalar_lea.vmem [#allocation4], %s10319_s12 }
  0x29   : > { %s405_s29 = sshll.u32 %s397_s4, 4  ;;  %s403_s13 = sshll.u32 %s402_s25, 4  ;;  %s406_s29 = int_to_ptr.vmem [resolvable:$true] %s405_s29  ;;  %s404_s13 = int_to_ptr.hbm [resolvable:$true] %s403_s13 }
  0x2a   : > { %p12104_p2 = pnand %p11617_p5, %p71_p7  ;;  %s394_s26 = scalar_lea.sflag [#allocation5], %s393_s30 }
  0x2b   : > { %s11828_s7 = sshra.s32 %s404_s13, 4  ;;  %s11835_s22 = scalar_lea.hbm %s15373_s1, 512  ;;  %s11829_s7 = int_to_ptr.hbm [resolvable:$true] %s11828_s7 }
  0x2c   : > { %s11830_s9 = scalar_lea.hbm %s11829_s7, 256  ;;  %p11832_p10 = pneg %p12104_p2 }
  0x2d   : > { %p11831_p9 = scmp.ne.s32.totalorder %s11829_s7, %s11830_s9  ;;  %p11836_p0 = scmp.lt.s32.totalorder %s11829_s7, %s15373_s1 }
  0x2e   : > { %p11837_p5 = scmp.lt.s32.totalorder %s11835_s22, %s11830_s9 }
  0x2f   : > { %p11833_p12 = pnand %p11832_p10, %p11831_p9 }
  0x30   : > { %p11838_p7 = por %p11837_p5, %p11836_p0 }
  0x31   : > { %p11834_p13 = pneg %p11833_p12 }
  0x33   : > { %p11839_p11 = pnand %p11838_p7, %p11834_p13 }
  0x35   : > { %11842 = shalt.err (!%p11839_p11)
}
  0x36   : > { %s11940_s30 = smov 128   ;;  %s11941_s4 = smov 8  }
  0x37   : > { %11608 = dma.hbm_to_vmem [thread:$0]  (!%p12104_p2), %s404_s13, 4096, %s406_s29, %s394_s26, %s11940_s30, %s11940_s30, %s11941_s4  }
  0x38   : > { %417 = sbr.rel (%p12050_p8) target bundleno = 1996 (0x7cc), region = 64 }
  0x3d   : > { %s12121_s16 = sand.u32 1, %s11924_s18  }
  0x3e   : > { %s10323_s7 = sshll.u32 %s12121_s16, 8  ;;  %s420_s9 = scalar_lea.sflag [#allocation5], %s12121_s16 }
  0x3f   : > { %s12127_s12 = scalar_lea.vmem [#allocation4], %s10323_s7 }
  0x40   : > { %11903 = dma.done.wait (%p12037_p4), %s420_s9, 4096  }
  0x41   : > { %11905 = vsyncadd (%p12037_p4), %s420_s9, 4294963200 }
  0x42   : > { %11907 = dma.done.wait (%p76_p1), [#allocation8], 512  }
  0x43   : > { %11909 = vsyncadd (%p76_p1), [#allocation8], 4294966784 }
  0x44   : > { %11911 = dma.done.wait (%p76_p1), [#allocation11], 2304  }
  0x45   : > { %11913 = vsyncadd (%p76_p1), [#allocation11], 4294964992  ;;  %p488_p8 = scmp.lt.s32.totalorder %s12028_s21, 1  ;;  %vm494_vm0 = vcmask 257024   ;;  %vm496_vm1 = vcmask 253952   ;;  %v15385_v0 = vmov 0  }
  0x46   : > { %498 = vst.msk [vmem:[#allocation2 + $0x8] sm:$0xf] %vm494_vm0, %v15385_v0  ;;  %vm670_vm2 = vsmask.f32 7938  ;;  %vm676_vm3 = vsmask.f32 256 }
  0x47   : > { %s489_s6 = scalar_select %p488_p8, %s12028_s21, 1  ;;  %499 = vst.msk [vmem:[#allocation2 + $0xc] sm:$0x1] %vm496_vm1, %v15385_v0  ;;  %vm12184_vm4 = vmand %vm494_vm0, %vm670_vm2  ;;  %v11425_v36 = vld [vmem:[%s15375_s3 + $0x8] sm:$0xff]  ;;  %v11424_v44 = vld [vmem:[%s15375_s3] sm:$0xff]  ;;  %vm771_vm6 = vcmask 261120  }
  0x48   : > { %500 = vst.msk [vmem:[#allocation2 + $0x10] sm:$0xf] %vm494_vm0, %v15385_v0  ;;  %vm12194_vm5 = vmand %vm496_vm1, %vm676_vm3  ;;  %s11943_s26 = smov 96   ;;  %790 = vmatpush.bf16.msra.mxu0 %v11425_v36  ;;  %v11419_v45 = vld [vmem:[#allocation7 + $0x8] sm:$0xff]  ;;  %v11418_v55 = vld [vmem:[#allocation7] sm:$0xff]  ;;  %vm1127_vm10 = vcmask 1042432  }
  0x49   : > { %s11417_s23 = sshll.u32 %s489_s6, 6  ;;  %501 = vst.msk [vmem:[#allocation2 + $0x14] sm:$0x1] %vm496_vm1, %v15385_v0  ;;  %871 = vmatpush.bf16.msra.mxu1 %v11419_v45  ;;  %11565 = vmatpush.bf16.msra.mxu2 %v11419_v45  ;;  %vm910_vm7 = vsmask.f32 3328  ;;  %vm1128_vm11 = vcmask 1046532  }
  0x4a   : > { %s12152_s13 = scalar_lea.vmem %s15372_s0, %s11417_s23  ;;  %495 = vst.msk [vmem:[#allocation2] sm:$0xf] %vm494_vm0, %v15385_v0  ;;  %vm911_vm8 = vsmask.f32 7440  ;;  %vm12315_vm12 = vmor %vm1127_vm10, %vm1128_vm11  ;;  %s11944_s22 = smov 112   ;;  %vm3815_vm13 = vcmask 130048  }
  0x4b   : > { %v572_v1 = vld [vmem:[%s12152_s13] sm:$0xff]  ;;  %v573_v2 = vld [vmem:[%s12152_s13 + $0x8] sm:$0xff]  ;;  %497 = vst.msk [vmem:[#allocation2 + $0x4] sm:$0x1] %vm496_vm1, %v15385_v0  ;;  %v574_v3 = vld [vmem:[%s12152_s13 + $0x10] sm:$0xff]  ;;  %vm516_vm14 = vcmask 125952  }
  0x4c   : > { %v580_v4 = vpack.c.bf16 %v572_v1, %v572_v1  ;;  %v581_v5 = vpack.c.bf16 %v573_v2, %v573_v2  ;;  %502 = vst.msk [vmem:[#allocation2 + $0x18] sm:$0xf] %vm494_vm0, %v15385_v0  ;;  %v575_v6 = vld [vmem:[%s12152_s13 + $0x18] sm:$0xff]  ;;  %v576_v7 = vld [vmem:[%s12152_s13 + $0x20] sm:$0xff]  ;;  %v577_v8 = vld [vmem:[%s12152_s13 + $0x28] sm:$0xff]  ;;  %v582_v9 = vpack.c.bf16 %v574_v3, %v574_v3  ;;  %791 = vmatpush.bf16.msra.mxu0 %v11424_v44  ;;  %vm519_vm15 = vcmask 122880  }
  0x4d   : > { %503 = vst.msk [vmem:[#allocation2 + $0x1c] sm:$0x1] %vm496_vm1, %v15385_v0  ;;  %v12170_v10 = vpack.c.bf16 %v575_v6, %v575_v6  ;;  %v12176_v17 = vpack.c.bf16 %v576_v7, %v576_v7  ;;  %v12178_v18 = vpack.c.bf16 %v577_v8, %v577_v8  ;;  %v672_v21 = vld [vmem:[#allocation2 + $0x8] sm:$0xf]  ;;  %v578_v49 = vld [vmem:[%s12152_s13 + $0x30] sm:$0xff]  ;;  %v579_v50 = vld [vmem:[%s12152_s13 + $0x38] sm:$0xff]  ;;  %872 = vmatpush.bf16.msra.mxu1 %v11418_v55 }
  0x4e   : > { %v597_v11 = vshrl.u32 %v581_v5, 16  ;;  %v600_v12 = vshll.u32 %v581_v5, 16  ;;  %v821_v13 = vunpack.c.l.b16 %v580_v4  ;;  %v822_v14 = vunpack.c.l.b16 %v581_v5  ;;  %504 = vst.msk [vmem:[#allocation2 + $0x20] sm:$0xf] %vm494_vm0, %v15385_v0  ;;  %v678_v22 = vld [vmem:[#allocation2 + $0xc] sm:$0x1]  ;;  %11566 = vmatpush.bf16.msra.mxu2 %v11418_v55  ;;  %vm12301_vm9 = vmor %vm910_vm7, %vm911_vm8 }
  0x4f   : > { %v589_v15 = vshrl.u32 %v580_v4, 16  ;;  %v592_v16 = vshll.u32 %v580_v4, 16  ;;  %505 = vst.msk [vmem:[#allocation2 + $0x24] sm:$0x1] %vm496_vm1, %v15385_v0  ;;  %v681_v23 = vld [vmem:[#allocation2 + $0x10] sm:$0xf]  ;;  %v823_v29 = vunpack.c.l.b16 %v582_v9  ;;  %v824_v30 = vunpack.c.l.b16 %v12170_v10 }
  0x50   : > { %v599_v19 = vrot.slane %v597_v11, 7  ;;  %v829_v20 = vpack.c.b16 %v822_v14, %v821_v13  ;;  %506 = vst.msk [vmem:[#allocation2 + $0x28] sm:$0xf] %vm494_vm0, %v15385_v0  ;;  %v605_v24 = vshrl.u32 %v582_v9, 16  ;;  %v684_v27 = vld [vmem:[#allocation2 + $0x14] sm:$0x1]  ;;  %v825_v39 = vunpack.c.l.b16 %v12176_v17 }
  0x51   : > { %v591_v26 = vrot.slane %v589_v15, 7  ;;  %507 = vst.msk [vmem:[#allocation2 + $0x2c] sm:$0x1] %vm496_vm1, %v15385_v0  ;;  %v613_v28 = vshrl.u32 %v12170_v10, 16  ;;  %v608_v35 = vshll.u32 %v582_v9, 16  ;;  %v826_v40 = vunpack.c.l.b16 %v12178_v18  ;;  %s15098_s28 = scalar_lea.vmem [#allocation13], %s10323_s7 }
  0x52   : > { %v602_v31 = vor.u32 %v600_v12, %v599_v19  ;;  %v603_v32 = vrot.slane %v599_v19, 4  ;;  %833 = vrot.lane.b32.xlu0 %v829_v20, %s11943_s26  ;;  %508 = vst.msk [vmem:[#allocation2 + $0x30] sm:$0xf] %vm494_vm0, %v15385_v0  ;;  %v12201_v34 = vrot.slane %v605_v24, 7  ;;  %v616_v43 = vshll.u32 %v12170_v10, 16  ;;  %s11564_s23 = sshll.u32 %s12028_s21, 8 }
  0x53   : > { %v594_v37 = vor.u32 %v592_v16, %v591_v26  ;;  %v595_v38 = vrot.slane %v591_v26, 4  ;;  %509 = vst.msk [vmem:[#allocation2 + $0x34] sm:$0x1] %vm496_vm1, %v15385_v0  ;;  %v12214_v42 = vrot.slane %v613_v28, 7  ;;  %v830_v52 = vpack.c.b16 %v824_v30, %v823_v29  ;;  %v687_v53 = vld [vmem:[#allocation2 + $0x18] sm:$0xf] }
  0x54   : > { %v682_v41 = vsel %vm12184_vm4, %v602_v31, %v681_v23  ;;  %510 = vst.msk [vmem:[#allocation2 + $0x38] sm:$0xf] %vm494_vm0, %v15385_v0  ;;  %v685_v48 = vsel %vm12194_vm5, %v603_v32, %v684_v27  ;;  %v610_v51 = vor.u32 %v608_v35, %v12201_v34  ;;  %v629_v54 = vshrl.u32 %v12178_v18, 16  ;;  %v690_v56 = vld [vmem:[#allocation2 + $0x1c] sm:$0x1]  ;;  %s10186_s7 = sshll.u32 %s15098_s28, 4  ;;  %s10187_s7 = int_to_ptr.vmem [resolvable:$true] %s10186_s7 }
  0x55   : > { %v673_v46 = vsel %vm12184_vm4, %v594_v37, %v672_v21  ;;  %v679_v47 = vsel %vm12194_vm5, %v595_v38, %v678_v22  ;;  %683 = vst [vmem:[#allocation2 + $0x10] sm:$0xf] %v682_v41  ;;  %v831_v57 = vpack.c.b16 %v826_v40, %v825_v39  ;;  %v621_v58 = vshrl.u32 %v12176_v17, 16  ;;  %v693_v61 = vld [vmem:[#allocation2 + $0x20] sm:$0xf]  ;;  %s10174_s21 = scalar_lea.sflag [#allocation6], %s12121_s16 }
  0x56   : > { %674 = vst [vmem:[#allocation2 + $0x8] sm:$0xf] %v673_v46  ;;  %v611_v59 = vrot.slane %v12201_v34, 4  ;;  %v618_v60 = vor.u32 %v616_v43, %v12214_v42  ;;  %v624_v62 = vshll.u32 %v12176_v17, 16  ;;  %v586_v63 = vpack.c.bf16 %v578_v49, %v578_v49  ;;  %v696_v1 = vld [vmem:[#allocation2 + $0x24] sm:$0x1] }
  0x57   : > { %680 = vst [vmem:[#allocation2 + $0xc] sm:$0x1] %v679_v47  ;;  %v631_v2 = vrot.slane %v629_v54, 7  ;;  %v632_v3 = vshll.u32 %v12178_v18, 16  ;;  %837 = vrot.lane.b32.xlu1 %v831_v57, %s11943_s26  ;;  %v623_v4 = vrot.slane %v621_v58, 7  ;;  %v587_v5 = vpack.c.bf16 %v579_v50, %v579_v50  ;;  %s11878_s4 = scalar_lea.hbm %s15383_s11, 512 }
  0x58   : > { %686 = vst [vmem:[#allocation2 + $0x14] sm:$0x1] %v685_v48  ;;  %v619_v6 = vrot.slane %v12214_v42, 4  ;;  %v688_v7 = vsel %vm12184_vm4, %v610_v51, %v687_v53  ;;  %v699_v8 = vld [vmem:[#allocation2 + $0x28] sm:$0xf]  ;;  %v637_v9 = vshrl.u32 %v586_v63, 16  ;;  %v827_v14 = vunpack.c.l.b16 %v586_v63 }
  0x59   : > { %511 = vst.msk [vmem:[#allocation2 + $0x3c] sm:$0x1] %vm496_vm1, %v15385_v0  ;;  %v626_v10 = vor.u32 %v624_v62, %v623_v4  ;;  %v702_v11 = vld [vmem:[#allocation2 + $0x2c] sm:$0x1]  ;;  %v640_v12 = vshll.u32 %v586_v63, 16  ;;  %v645_v13 = vshrl.u32 %v587_v5, 16  ;;  %v691_v15 = vsel %vm12194_vm5, %v611_v59, %v690_v56 }
  0x5a   : > { %512 = vst.msk [vmem:[#allocation2 + $0x40] sm:$0xf] %vm494_vm0, %v15385_v0  ;;  %835 = vrot.lane.b32.xlu0 %v830_v52, %s11943_s26  ;;  %v694_v16 = vsel %vm12184_vm4, %v618_v60, %v693_v61  ;;  %v627_v17 = vrot.slane %v623_v4, 4  ;;  %v705_v18 = vld [vmem:[#allocation2 + $0x30] sm:$0xf]  ;;  %v639_v19 = vrot.slane %v637_v9, 7  ;;  %v634_v20 = vor.u32 %v632_v3, %v631_v2 }
  0x5b   : > { %513 = vst.msk [vmem:[#allocation2 + $0x44] sm:$0x1] %vm496_vm1, %v15385_v0  ;;  %v647_v21 = vrot.slane %v645_v13, 7  ;;  %v648_v22 = vshll.u32 %v587_v5, 16  ;;  %v828_v23 = vunpack.c.l.b16 %v587_v5  ;;  %v10333_v24 = vld [vmem:[#allocation2] sm:$0xf]  ;;  %v697_v26 = vsel %vm12194_vm5, %v619_v6, %v696_v1 }
  0x5c   : > { %514 = vst.msk [vmem:[#allocation2 + $0x48] sm:$0xf] %vm494_vm0, %v15385_v0  ;;  %v635_v27 = vrot.slane %v631_v2, 4  ;;  %v700_v29 = vsel %vm12184_vm4, %v626_v10, %v699_v8  ;;  %v708_v30 = vld [vmem:[#allocation2 + $0x34] sm:$0x1]  ;;  %v642_v31 = vor.u32 %v640_v12, %v639_v19  ;;  %v703_v35 = vsel %vm12194_vm5, %v627_v17, %v702_v11  ;;  %v11427_v51 = vld [vmem:[%s15375_s3 + $0x18] sm:$0xff] }
  0x5d   : > { %515 = vst.msk [vmem:[#allocation2 + $0x4c] sm:$0x1] %vm496_vm1, %v15385_v0  ;;  %v11420_v28 = vld [vmem:[#allocation2 + $0x4] sm:$0xf0]  ;;  %v832_v32 = vpack.c.b16 %v828_v23, %v827_v14  ;;  %v643_v36 = vrot.slane %v639_v19, 4  ;;  %v706_v38 = vsel %vm12184_vm4, %v634_v20, %v705_v18  ;;  %v650_v39 = vor.u32 %v648_v22, %v647_v21  ;;  %1072 = vmatpush.bf16.msrb.mxu1 %v11427_v51  ;;  %v11426_v59 = vld [vmem:[%s15375_s3 + $0x10] sm:$0xff]  ;;  %vm13180_vm1 = vmand %vm516_vm14, %vm670_vm2 }
  0x5e   : > { %689 = vst [vmem:[#allocation2 + $0x18] sm:$0xf] %v688_v7  ;;  %v10334_v34 = vor.u32 %v11420_v28, %v10333_v24  ;;  %v711_v37 = vld [vmem:[#allocation2 + $0x38] sm:$0xf]  ;;  %v709_v41 = vsel %vm12194_vm5, %v635_v27, %v708_v30  ;;  %v651_v42 = vrot.slane %v647_v21, 4  ;;  %11567 = vmatpush.bf16.msrb.mxu2 %v11427_v51  ;;  %v11434_v2 = vld [vmem:[%s15375_s3 + $0x30] sm:$0xff]  ;;  %vm13199_vm2 = vmand %vm519_vm15, %vm676_vm3 }
  0x5f   : > { %692 = vst [vmem:[#allocation2 + $0x1c] sm:$0x1] %v691_v15  ;;  %839 = vrot.lane.b32.xlu1 %v832_v32, %s11943_s26  ;;  %v712_v44 = vsel %vm12184_vm4, %v642_v31, %v711_v37  ;;  %v10337_v49 = vld [vmem:[#allocation2 + $0x10] sm:$0xf]  ;;  %v11435_v61 = vld [vmem:[%s15375_s3 + $0x38] sm:$0xff]  ;;  %v11429_v5 = vld [vmem:[%s15375_s3 + $0x28] sm:$0xff] }
  0x60   : > { %695 = vst [vmem:[#allocation2 + $0x20] sm:$0xf] %v694_v16  ;;  %v714_v40 = vld [vmem:[#allocation2 + $0x3c] sm:$0x1]  ;;  %10355 = vmatmul.msk.bf16.vlgmr.msra.gmra.mxu0 %vm771_vm6, %v10334_v34  ;;  %v894_v63 = vld [vmem:[#allocation2] sm:$0xf]  ;;  %11569 = vmatpush.bf16.msra.mxu3 %v11429_v5 }
  0x61   : > { %698 = vst [vmem:[#allocation2 + $0x24] sm:$0x1] %v697_v26  ;;  %v717_v43 = vld [vmem:[#allocation2 + $0x40] sm:$0xf]  ;;  %v715_v46 = vsel %vm12194_vm5, %v643_v36, %v714_v40  ;;  %1073 = vmatpush.bf16.msrb.mxu1 %v11426_v59  ;;  %1303 = vmatpush.bf16.msrb.mxu0 %v11435_v61  ;;  %v896_v1 = vld [vmem:[#allocation2 + $0x8] sm:$0xf] }
  0x62   : > { %701 = vst [vmem:[#allocation2 + $0x28] sm:$0xf] %v700_v29  ;;  %v720_v45 = vld [vmem:[#allocation2 + $0x44] sm:$0x1]  ;;  %v718_v47 = vsel %vm12184_vm4, %v650_v39, %v717_v43  ;;  %11568 = vmatpush.bf16.msrb.mxu2 %v11426_v59  ;;  %v10417_v3 = vld [vmem:[#allocation2 + $0x8] sm:$0xf] }
  0x63   : > { %704 = vst [vmem:[#allocation2 + $0x2c] sm:$0x1] %v703_v35  ;;  %v721_v48 = vsel %vm12194_vm5, %v651_v42, %v720_v45  ;;  %v11430_v4 = vld [vmem:[#allocation2 + $0xc] sm:$0xf0]  ;;  %v914_v7 = vshrl.u32 %v894_v63, 16  ;;  %v917_v8 = vshll.u32 %v894_v63, 16 }
  0x64   : > { %707 = vst [vmem:[#allocation2 + $0x30] sm:$0xf] %v706_v38  ;;  %v10418_v6 = vor.u32 %v11430_v4, %v10417_v3  ;;  %v928_v9 = vshrl.u32 %v896_v1, 16  ;;  %v931_v10 = vshll.u32 %v896_v1, 16  ;;  %v12295_v15 = vld [vmem:[#allocation2 + $0x4] sm:$0x1] }
  0x65   : > { %710 = vst [vmem:[#allocation2 + $0x34] sm:$0x1] %v709_v41  ;;  %v11421_v50 = vld [vmem:[#allocation2 + $0x14] sm:$0xf0]  ;;  %1304 = vmatpush.bf16.msrb.mxu0 %v11434_v2  ;;  %v916_v11 = vrot.slane %v914_v7, 4  ;;  %v919_v12 = vrot.slane %v917_v8, 5 }
  0x66   : > { %713 = vst [vmem:[#allocation2 + $0x38] sm:$0xf] %v712_v44  ;;  %v10338_v52 = vor.u32 %v11421_v50, %v10337_v49  ;;  %v930_v13 = vrot.slane %v928_v9, 4  ;;  %v933_v14 = vrot.slane %v931_v10, 5  ;;  %v12297_v16 = vld [vmem:[#allocation2 + $0xc] sm:$0x1] }
  0x67   : > { %716 = vst [vmem:[#allocation2 + $0x3c] sm:$0x1] %v715_v46  ;;  %v10341_v53 = vld [vmem:[#allocation2 + $0x20] sm:$0xf]  ;;  %v920_v17 = vor.u32 %v919_v12, %v916_v11  ;;  %v923_v18 = vshll.u32 %v12295_v15, 16  ;;  %v937_v20 = vshll.u32 %v12297_v16, 16 }
  0x68   : > { %719 = vst [vmem:[#allocation2 + $0x40] sm:$0xf] %v718_v47  ;;  %v934_v19 = vor.u32 %v933_v14, %v930_v13  ;;  %v15408_v22 = vmov 0  ;;  %v898_v28 = vld [vmem:[#allocation2 + $0x10] sm:$0xf]  ;;  %v11428_v32 = vld [vmem:[%s15375_s3 + $0x20] sm:$0xff] }
  0x69   : > { %722 = vst [vmem:[#allocation2 + $0x44] sm:$0x1] %v721_v48  ;;  %v11422_v54 = vld [vmem:[#allocation2 + $0x24] sm:$0xf0]  ;;  %v15409_v22 = vsel %vm12301_vm9, 4294967295, %v15408_v22  ;;  %v921_v23 = vrot.slane %v920_v17, 4  ;;  %11570 = vmatpush.bf16.msra.mxu3 %v11428_v32 }
  0x6a   : > { %v10342_v55 = vor.u32 %v11422_v54, %v10341_v53  ;;  %15410 = vst [vmem:[#allocation19_spill] sm:$0xff] %v15409_v22  ;;  %v925_v24 = vrot.slane %v923_v18, 5  ;;  %v935_v26 = vrot.slane %v934_v19, 4  ;;  %v939_v27 = vrot.slane %v937_v20, 5  ;;  %v900_v29 = vld [vmem:[#allocation2 + $0x18] sm:$0xf] }
  0x6b   : > { %v10345_v57 = vld [vmem:[#allocation2 + $0x30] sm:$0xf]  ;;  %v10421_v30 = vld [vmem:[#allocation2 + $0x18] sm:$0xf]  ;;  %v11431_v31 = vld [vmem:[#allocation2 + $0x1c] sm:$0xf0] }
  0x6c   : > { %v10422_v34 = vor.u32 %v11431_v31, %v10421_v30  ;;  %v12309_v35 = vld [vmem:[#allocation2 + $0x24] sm:$0x1]  ;;  %v12311_v36 = vld [vmem:[#allocation2 + $0x2c] sm:$0x1]  ;;  %v1107_v37 = vld [vmem:[#allocation2 + $0x20] sm:$0xe]  ;;  %v926_v46 = vsel %vm12301_vm9, %v921_v23, %v925_v24  ;;  %v940_v47 = vsel %vm12301_vm9, %v935_v26, %v939_v27 }
  0x6d   : > { %v11423_v58 = vld [vmem:[#allocation2 + $0x34] sm:$0xf0]  ;;  %v1108_v38 = vld [vmem:[#allocation2 + $0x28] sm:$0xe]  ;;  %v10391_v39 = vrot.slane %v1107_v37, 9  ;;  %v1148_v40 = vrot.slane %v12309_v35, 5 }
  0x6e   : > { %v10346_v60 = vor.u32 %v11423_v58, %v10345_v57  ;;  %v1152_v41 = vrot.slane %v12311_v36, 5  ;;  %v942_v42 = vshrl.u32 %v898_v28, 16  ;;  %v945_v43 = vshll.u32 %v898_v28, 16  ;;  %v12328_v58 = vld [vmem:[#allocation2 + $0x14] sm:$0x1] }
  0x6f   : > { %v10392_v45 = vrot.slane %v1108_v38, 9  ;;  %v1149_v48 = vsel %vm12315_vm12, %v10391_v39, %v1148_v40  ;;  %v956_v49 = vshrl.u32 %v900_v29, 16  ;;  %v959_v50 = vshll.u32 %v900_v29, 16  ;;  %v902_v7 = vld [vmem:[#allocation2 + $0x20] sm:$0xf]  ;;  %v5119_v44 = vld [vmem:[%s15374_s2 + $0xf0] sm:$0xff] }
  0x70   : > { %10356 = vmatmul.msk.bf16.gmra.mxu0 %vm771_vm6, %v10338_v52  ;;  %v1171_v52 = vunpack.c.l.b16 %v1149_v48  ;;  %v944_v54 = vrot.slane %v942_v42, 4  ;;  %v1031_v57 = vunpack.c.l.b16 %v940_v47  ;;  %v951_v1 = vshll.u32 %v12328_v58, 16  ;;  %v904_v8 = vld [vmem:[#allocation2 + $0x28] sm:$0xf]  ;;  %v11432_v11 = vld [vmem:[#allocation2 + $0x2c] sm:$0xf0] }
  0x71   : > { %v1153_v51 = vsel %vm12315_vm12, %v10392_v45, %v1152_v41  ;;  %v961_v61 = vrot.slane %v959_v50, 5  ;;  %v10425_v10 = vld [vmem:[#allocation2 + $0x28] sm:$0xf]  ;;  %v970_v17 = vshrl.u32 %v902_v7, 16  ;;  %v973_v18 = vshll.u32 %v902_v7, 16 }
  0x72   : > { %v1172_v53 = vunpack.c.l.b16 %v1153_v51  ;;  %v10426_v14 = vor.u32 %v11432_v11, %v10425_v10  ;;  %v984_v19 = vshrl.u32 %v904_v8, 16  ;;  %v906_v23 = vld [vmem:[#allocation2 + $0x30] sm:$0xf]  ;;  %v908_v24 = vld [vmem:[#allocation2 + $0x38] sm:$0xf]  ;;  %v979_v50 = vshll.u32 %v12309_v35, 16 }
  0x73   : > { %v998_v27 = vshrl.u32 %v906_v23, 16  ;;  %v1001_v28 = vshll.u32 %v906_v23, 16  ;;  %v1012_v29 = vshrl.u32 %v908_v24, 16  ;;  %v972_v30 = vrot.slane %v970_v17, 4  ;;  %v909_v45 = vld [vmem:[#allocation2 + $0x3c] sm:$0x1] }
  0x74   : > { %v1177_v59 = vpack.c.b16 %v1172_v53, %v1171_v52  ;;  %v975_v31 = vrot.slane %v973_v18, 5  ;;  %v993_v52 = vshll.u32 %v12311_v36, 16  ;;  %v1160_v36 = vrot.slane %v909_v45, 5  ;;  %v11437_v17 = vld [vmem:[%s15375_s3 + $0x48] sm:$0xff] }
  0x75   : > { %v1000_v37 = vrot.slane %v998_v27, 4  ;;  %v1003_v38 = vrot.slane %v1001_v28, 5  ;;  %v1014_v39 = vrot.slane %v1012_v29, 4  ;;  %vm5185_vm0 = vsmask.f32 4368 }
  0x76   : > { %10409 = vmatmul.msk.bf16.vlgmr.msra.gmra.mxu3 %vm771_vm6, %v1177_v59  ;;  %v995_v7 = vrot.slane %v993_v52, 5  ;;  %vm13187_vm7 = vmor %vm676_vm3, %vm5185_vm0  ;;  %vm3903_vm3 = vcmask 392192  }
  0x77   : > { %v1004_v47 = vor.u32 %v1003_v38, %v1000_v37  ;;  %v1136_v37 = vrot.slane %v12297_v16, 5  ;;  %v11439_v38 = vld [vmem:[%s15375_s3 + $0x58] sm:$0xff]  ;;  %v12380_v16 = vld [vmem:[#allocation2 + $0x14] sm:$0x1] }
  0x79   : > { %v1005_v53 = vrot.slane %v1004_v47, 4  ;;  %v1570_v47 = vrot.slane %v12380_v16, 5 }
  0x80   : > { %10357 = vmatmul.msk.bf16.gmra.mxu0 %vm771_vm6, %v10342_v55  ;;  %v947_v55 = vrot.slane %v945_v43, 5  ;;  %v907_v43 = vld [vmem:[#allocation2 + $0x34] sm:$0x1] }
  0x81   : > { %v1007_v48 = vshll.u32 %v907_v43, 16 }
  0x82   : > { %v948_v63 = vor.u32 %v947_v55, %v944_v54 }
  0x83   : > { %v1009_v54 = vrot.slane %v1007_v48, 5 }
  0x90   : > { %10358 = vmatmul.msk.bf16.gmra.mxu0 %vm771_vm6, %v10346_v60  ;;  %v958_v60 = vrot.slane %v956_v49, 4  ;;  %v1021_v49 = vshll.u32 %v909_v45, 16  ;;  %v1541_v45 = vld [vmem:[#allocation2 + $0x10] sm:$0xe] }
  0x92   : > { %v962_v3 = vor.u32 %v961_v61, %v958_v60  ;;  %v1023_v55 = vrot.slane %v1021_v49, 5  ;;  %v1109_v61 = vld [vmem:[#allocation2 + $0x30] sm:$0xe]  ;;  %v10460_v49 = vrot.slane %v1541_v45, 9 }
  0x94   : > { %v963_v12 = vrot.slane %v962_v3, 4  ;;  %v1156_v3 = vrot.slane %v907_v43, 5  ;;  %v1540_v43 = vld [vmem:[#allocation2 + $0x8] sm:$0xe] }
  0x95   : > { %v10459_v48 = vrot.slane %v1540_v43, 9 }
  0xa0   : > { %10439 = vmatmul.msk.bf16.vlgmr.msrb.gmra.mxu0 %vm771_vm6, %v10418_v6  ;;  %v953_v6 = vrot.slane %v951_v1, 5  ;;  %v1010_v1 = vsel %vm12301_vm9, %v1005_v53, %v1009_v54  ;;  %v1571_v53 = vsel %vm12315_vm12, %v10460_v49, %v1570_v47  ;;  %v12426_v47 = vld [vmem:[#allocation2 + $0x24] sm:$0x1] }
  0xb0   : > { %10440 = vmatmul.msk.bf16.gmra.mxu0 %vm771_vm6, %v10422_v34  ;;  %v986_v34 = vrot.slane %v984_v19, 4 }
  0xc0   : > { %10441 = vmatmul.msk.bf16.gmra.mxu0 %vm771_vm6, %v10426_v14  ;;  %v11433_v14 = vld [vmem:[#allocation2 + $0x3c] sm:$0xf0] }
  0xc4   : > { %v834_v56 = vpop.permute.xlu0 %833 }
  0xc5   : > { %10367 = vmatmul.msk.bf16.vlgmr.msra.gmra.mxu1 %vm771_vm6, %v834_v56  ;;  %v1030_v56 = vunpack.c.l.b16 %v926_v46 }
  0xc6   : > { %1209 = vmatpush.bf16.msra.mxu1 %v11429_v5  ;;  %v949_v5 = vrot.slane %v948_v63, 4  ;;  %v1110_v63 = vld [vmem:[#allocation2 + $0x38] sm:$0xe] }
  0xc7   : > { %v1038_v2 = vpack.c.b16 %v1031_v57, %v1030_v56  ;;  %v976_v57 = vor.u32 %v975_v31, %v972_v30  ;;  %v1103_v30 = vld [vmem:[#allocation2] sm:$0xe]  ;;  %v1104_v31 = vld [vmem:[#allocation2 + $0x8] sm:$0xe] }
  0xc8   : > { %v954_v20 = vsel %vm12301_vm9, %v949_v5, %v953_v6  ;;  %v1036_v5 = vunpack.c.l.b16 %v1010_v1  ;;  %v981_v6 = vrot.slane %v979_v50, 5 }
  0xc9   : > { %v838_v21 = vpop.permute.xlu1 %837  ;;  %v1032_v40 = vunpack.c.l.b16 %v954_v20  ;;  %v977_v10 = vrot.slane %v976_v57, 4 }
  0xca   : > { %1210 = vmatpush.bf16.msra.mxu1 %v11428_v32  ;;  %v1015_v32 = vshll.u32 %v908_v24, 16 }
  0xcb   : > { %v982_v24 = vsel %vm12301_vm9, %v977_v10, %v981_v6  ;;  %v10489_v6 = vld [vmem:[#allocation2 + $0x10] sm:$0xf]  ;;  %v12397_v10 = vld [vmem:[#allocation2 + $0x14] sm:$0x1] }
  0xcc   : > { %v836_v62 = vpop.permute.xlu0 %835  ;;  %v1017_v46 = vrot.slane %v1015_v32, 5  ;;  %v1034_v27 = vunpack.c.l.b16 %v982_v24  ;;  %v1132_v32 = vrot.slane %v12295_v15, 5  ;;  %v11444_v15 = vld [vmem:[%s15375_s3 + $0x60] sm:$0xff] }
  0xce   : > { %v1018_v51 = vor.u32 %v1017_v46, %v1014_v39  ;;  %v11445_v39 = vld [vmem:[%s15375_s3 + $0x68] sm:$0xff] }
  0xcf   : > { %1738 = vmatpush.bf16.msrb.mxu3 %v11445_v39 }
  0xd0   : > { %v1019_v60 = vrot.slane %v1018_v51, 4 }
  0xd1   : > { %v840_v9 = vpop.permute.xlu1 %839 }
  0xd2   : > { %10370 = vmatmul.msk.bf16.vlgmr.msra.gmra.mxu2 %vm771_vm6, %v840_v9  ;;  %v1024_v35 = vsel %vm12301_vm9, %v1019_v60, %v1023_v55  ;;  %v1602_v55 = vunpack.c.l.b16 %v1571_v53  ;;  %v1769_v60 = vld [vmem:[#allocation2 + $0x10] sm:$0xf]  ;;  %v1578_v53 = vrot.slane %v12426_v47, 5 }
  0xd3   : > { %1643 = vmatpush.bf16.msra.mxu2 %v11439_v38  ;;  %1739 = vmatpush.bf16.msrb.mxu3 %v11444_v15  ;;  %v1786_v1 = vshrl.u32 %v1769_v60, 16 }
  0xd5   : > { %10368 = vmatmul.msk.bf16.gmra.mxu1 %vm771_vm6, %v836_v62  ;;  %v12330_v62 = vld [vmem:[#allocation2 + $0x1c] sm:$0x1] }
  0xd6   : > { %v965_v4 = vshll.u32 %v12330_v62, 16 }
  0xd8   : > { %v967_v13 = vrot.slane %v965_v4, 5  ;;  %v10394_v4 = vrot.slane %v1110_v63, 9  ;;  %v1105_v63 = vld [vmem:[#allocation2 + $0x10] sm:$0xe] }
  0xda   : > { %v968_v26 = vsel %vm12301_vm9, %v963_v12, %v967_v13  ;;  %v1161_v11 = vsel %vm12315_vm12, %v10394_v4, %v1160_v36  ;;  %v10429_v13 = vld [vmem:[#allocation2 + $0x38] sm:$0xf]  ;;  %v11436_v36 = vld [vmem:[%s15375_s3 + $0x40] sm:$0xff] }
  0xdb   : > { %v1033_v41 = vunpack.c.l.b16 %v968_v26  ;;  %v1174_v20 = vunpack.c.l.b16 %v1161_v11  ;;  %v12399_v11 = vld [vmem:[#allocation2 + $0x1c] sm:$0x1] }
  0xdc   : > { %v1809_v24 = vshll.u32 %v12399_v11, 16 }
  0xdd   : > { %v1039_v56 = vpack.c.b16 %v1033_v41, %v1032_v40  ;;  %v11438_v40 = vld [vmem:[%s15375_s3 + $0x50] sm:$0xff]  ;;  %v10388_v41 = vrot.slane %v1104_v31, 9 }
  0xde   : > { %1644 = vmatpush.bf16.msra.mxu2 %v11438_v40  ;;  %v1811_v31 = vrot.slane %v1809_v24, 5 }
  0xdf   : > { %v1137_v51 = vsel %vm12315_vm12, %v10388_v41, %v1136_v37 }
  0xe0   : > { %v1168_v57 = vunpack.c.l.b16 %v1137_v51 }
  0xe5   : > { %10369 = vmatmul.msk.bf16.gmra.mxu1 %vm771_vm6, %v838_v21  ;;  %v987_v21 = vshll.u32 %v904_v8, 16  ;;  %v1037_v8 = vunpack.c.l.b16 %v1024_v35 }
  0xe7   : > { %v989_v42 = vrot.slane %v987_v21, 5  ;;  %v1041_v19 = vpack.c.b16 %v1037_v8, %v1036_v5  ;;  %v10430_v21 = vor.u32 %v11433_v14, %v10429_v13  ;;  %v1140_v5 = vrot.slane %v12328_v58, 5  ;;  %v11447_v58 = vld [vmem:[%s15375_s3 + $0x78] sm:$0xff] }
  0xe8   : > { %v10389_v14 = vrot.slane %v1105_v63, 9  ;;  %1944 = vmatpush.bf16.msra.mxu0 %v11447_v58 }
  0xe9   : > { %v990_v59 = vor.u32 %v989_v42, %v986_v34  ;;  %10386 = vmatmul.msk.bf16.vlgmr.msrb.gmra.mxu2 %vm771_vm6, %v1041_v19  ;;  %10442 = vmatmul.msk.bf16.gmra.mxu0 %vm771_vm6, %v10430_v21  ;;  %v10387_v34 = vrot.slane %v1103_v30, 9  ;;  %v12378_v42 = vld [vmem:[#allocation2 + $0xc] sm:$0x1] }
  0xea   : > { %v1566_v46 = vrot.slane %v12378_v42, 5 }
  0xeb   : > { %v991_v18 = vrot.slane %v990_v59, 4  ;;  %v1133_v50 = vsel %vm12315_vm12, %v10387_v34, %v1132_v32  ;;  %v1141_v32 = vsel %vm12315_vm12, %v10389_v14, %v1140_v5  ;;  %v1360_v5 = vshll.u32 %v12378_v42, 16  ;;  %v12437_v42 = vld [vmem:[#allocation2 + $0x24] sm:$0x1] }
  0xec   : > { %v1567_v52 = vsel %vm12315_vm12, %v10459_v48, %v1566_v46  ;;  %v12424_v46 = vld [vmem:[#allocation2 + $0x1c] sm:$0x1]  ;;  %v1542_v48 = vld [vmem:[#allocation2 + $0x18] sm:$0xe] }
  0xed   : > { %v996_v26 = vsel %vm12301_vm9, %v991_v18, %v995_v7  ;;  %v1601_v54 = vunpack.c.l.b16 %v1567_v52  ;;  %v11440_v7 = vld [vmem:[#allocation2 + $0x14] sm:$0xf0]  ;;  %v1795_v18 = vshll.u32 %v12397_v10, 16  ;;  %v10461_v51 = vrot.slane %v1542_v48, 9 }
  0xee   : > { %v1035_v28 = vunpack.c.l.b16 %v996_v26  ;;  %v12408_v26 = vld [vmem:[#allocation2 + $0x8] sm:$0xf]  ;;  %v1574_v52 = vrot.slane %v12424_v46, 5 }
  0xef   : > { %v1609_v59 = vpack.c.b16 %v1602_v55, %v1601_v54  ;;  %v1351_v37 = vshrl.u32 %v12408_v26, 16  ;;  %v1354_v40 = vshll.u32 %v12408_v26, 16  ;;  %v1169_v54 = vunpack.c.l.b16 %v1141_v32  ;;  %v11449_v32 = vld [vmem:[%s15375_s3 + $0x88] sm:$0xff] }
  0xf0   : > { %v1040_v29 = vpack.c.b16 %v1035_v28, %v1034_v27  ;;  %v1797_v27 = vrot.slane %v1795_v18, 5  ;;  %v11446_v28 = vld [vmem:[%s15375_s3 + $0x70] sm:$0xff]  ;;  %v10493_v18 = vld [vmem:[#allocation2 + $0x20] sm:$0xf] }
  0xf1   : > { %1945 = vmatpush.bf16.msra.mxu0 %v11446_v28  ;;  %v1362_v28 = vrot.slane %v1360_v5, 5 }
  0xf5   : > { %10383 = vmatmul.msk.bf16.vlgmr.msrb.gmra.mxu1 %vm771_vm6, %v1038_v2  ;;  %v10393_v2 = vrot.slane %v1109_v61, 9  ;;  %v1771_v61 = vld [vmem:[#allocation2 + $0x18] sm:$0xf] }
  0xf6   : > { %1509 = vmatpush.bf16.msrb.mxu1 %v11437_v17  ;;  %v1800_v4 = vshrl.u32 %v1771_v61, 16  ;;  %v1803_v35 = vshll.u32 %v1771_v61, 16  ;;  %v1144_v17 = vrot.slane %v12330_v62, 5  ;;  %v1336_v62 = vld [vmem:[#allocation2 + $0x10] sm:$0xf]  ;;  %v1575_v61 = vsel %vm12315_vm12, %v10461_v51, %v1574_v52 }
  0xf7   : > { %v1157_v9 = vsel %vm12315_vm12, %v10393_v2, %v1156_v3  ;;  %v1106_v2 = vld [vmem:[#allocation2 + $0x18] sm:$0xe]  ;;  %v1789_v3 = vshll.u32 %v1769_v60, 16  ;;  %v1365_v41 = vshrl.u32 %v1336_v62, 16  ;;  %v1368_v15 = vshll.u32 %v1336_v62, 16 }
  0xf8   : > { %v1173_v12 = vunpack.c.l.b16 %v1157_v9  ;;  %v10490_v9 = vor.u32 %v11440_v7, %v10489_v6  ;;  %v1802_v19 = vrot.slane %v1800_v4, 4  ;;  %v1773_v4 = vld [vmem:[#allocation2 + $0x20] sm:$0xf] }
  0xf9   : > { %10479 = vmatmul.msk.bf16.vlgmr.msra.gmra.mxu2 %vm771_vm6, %v1609_v59  ;;  %v1791_v13 = vrot.slane %v1789_v3, 5  ;;  %v1356_v59 = vrot.slane %v1354_v40, 5  ;;  %v1367_v63 = vrot.slane %v1365_v41, 4  ;;  %v1603_v3 = vunpack.c.l.b16 %v1575_v61 }
  0xfa   : > { %v1178_v23 = vpack.c.b16 %v1174_v20, %v1173_v12  ;;  %v1788_v12 = vrot.slane %v1786_v1, 4  ;;  %1510 = vmatpush.bf16.msrb.mxu1 %v11436_v36  ;;  %v10390_v20 = vrot.slane %v1106_v2, 9  ;;  %v1370_v1 = vrot.slane %v1368_v15, 5 }
  0xfb   : > { %v1374_v36 = vshll.u32 %v12380_v16, 16  ;;  %v1814_v7 = vshrl.u32 %v1773_v4, 16  ;;  %v12439_v16 = vld [vmem:[#allocation2 + $0x2c] sm:$0x1] }
  0xfc   : > { %10410 = vmatmul.msk.bf16.gmra.mxu3 %vm771_vm6, %v1178_v23  ;;  %v1792_v21 = vor.u32 %v1791_v13, %v1788_v12  ;;  %v1805_v23 = vrot.slane %v1803_v35, 5  ;;  %v1145_v34 = vsel %vm12315_vm12, %v10390_v20, %v1144_v17  ;;  %v1775_v35 = vld [vmem:[#allocation2 + $0x28] sm:$0xf]  ;;  %v1340_v12 = vld [vmem:[#allocation2 + $0x20] sm:$0xf]  ;;  %v1817_v13 = vshll.u32 %v1773_v4, 16 }
  0xfd   : > { %v1170_v55 = vunpack.c.l.b16 %v1145_v34  ;;  %v1828_v14 = vshrl.u32 %v1775_v35, 16  ;;  %v1816_v20 = vrot.slane %v1814_v7, 4  ;;  %v1393_v40 = vshrl.u32 %v1340_v12, 16 }
  0xfe   : > { %v1806_v30 = vor.u32 %v1805_v23, %v1802_v19  ;;  %v11441_v19 = vld [vmem:[#allocation2 + $0x24] sm:$0xf0]  ;;  %v1371_v23 = vor.u32 %v1370_v1, %v1367_v63  ;;  %v12457_v63 = vld [vmem:[#allocation2 + $0x2c] sm:$0x1]  ;;  %v12459_v1 = vld [vmem:[#allocation2 + $0x34] sm:$0x1] }
  0xff   : > { %v10494_v24 = vor.u32 %v11441_v19, %v10493_v18  ;;  %v1830_v62 = vrot.slane %v1828_v14, 4  ;;  %v1388_v7 = vshll.u32 %v12424_v46, 16  ;;  %v1777_v19 = vld [vmem:[#allocation2 + $0x30] sm:$0xf] }
 0x100   : > { %v1807_v39 = vrot.slane %v1806_v30, 4 }
 0x102   : > { %v1812_v45 = vsel %vm12301_vm9, %v1807_v39, %v1811_v31  ;;  %v1376_v31 = vrot.slane %v1374_v36, 5  ;;  %v1582_v36 = vrot.slane %v12457_v63, 5 }
 0x103   : > { %v1903_v49 = vunpack.c.l.b16 %v1812_v45  ;;  %v1372_v45 = vrot.slane %v1371_v23, 4  ;;  %v1402_v23 = vshll.u32 %v12426_v47, 16 }
 0x105   : > { %10384 = vmatmul.msk.bf16.gmra.mxu1 %vm771_vm6, %v1039_v56  ;;  %v1167_v56 = vunpack.c.l.b16 %v1133_v50  ;;  %v1543_v50 = vld [vmem:[#allocation2 + $0x20] sm:$0xe] }
 0x107   : > { %v1175_v8 = vpack.c.b16 %v1168_v57, %v1167_v56  ;;  %v10462_v56 = vrot.slane %v1543_v50, 9  ;;  %v1353_v57 = vrot.slane %v1351_v37, 4  ;;  %v1396_v50 = vshll.u32 %v1340_v12, 16 }
 0x109   : > { %v1579_v2 = vsel %vm12315_vm12, %v10462_v56, %v1578_v53  ;;  %v1357_v17 = vor.u32 %v1356_v59, %v1353_v57  ;;  %v1398_v4 = vrot.slane %v1396_v50, 5 }
 0x10a   : > { %v1604_v6 = vunpack.c.l.b16 %v1579_v2  ;;  %v1544_v2 = vld [vmem:[#allocation2 + $0x28] sm:$0xe] }
 0x10b   : > { %v10463_v5 = vrot.slane %v1544_v2, 9 }
 0x10c   : > { %10511 = vmatmul.msk.bf16.vlgmr.msrb.gmra.mxu3 %vm771_vm6, %v10490_v9  ;;  %v1338_v9 = vld [vmem:[#allocation2 + $0x18] sm:$0xf]  ;;  %v1610_v58 = vpack.c.b16 %v1604_v6, %v1603_v3  ;;  %v793_v3 = vpop.f32.mrf.mxu0  ;;  %v1586_v6 = vrot.slane %v12459_v1, 5 }
 0x10d   : > { %v1379_v34 = vshrl.u32 %v1338_v9, 16  ;;  %v1382_v39 = vshll.u32 %v1338_v9, 16 }
 0x10e   : > { %10480 = vmatmul.msk.bf16.gmra.mxu2 %vm771_vm6, %v1610_v58 }
 0x10f   : > { %v1381_v52 = vrot.slane %v1379_v34, 4 }
 0x115   : > { %10385 = vmatmul.msk.bf16.gmra.mxu1 %vm771_vm6, %v1040_v29  ;;  %v1793_v29 = vrot.slane %v1792_v21, 4  ;;  %v1831_v21 = vshll.u32 %v1775_v35, 16  ;;  %v1545_v35 = vld [vmem:[#allocation2 + $0x30] sm:$0xe] }
 0x116   : > { %v10464_v9 = vrot.slane %v1545_v35, 9 }
 0x117   : > { %v1798_v38 = vsel %vm12301_vm9, %v1793_v29, %v1797_v27  ;;  %v1819_v27 = vrot.slane %v1817_v13, 5  ;;  %v1823_v29 = vshll.u32 %v12437_v42, 16  ;;  %v1833_v30 = vrot.slane %v1831_v21, 5 }
 0x118   : > { %v1902_v43 = vunpack.c.l.b16 %v1798_v38  ;;  %v1837_v38 = vshll.u32 %v12439_v16, 16  ;;  %v1583_v13 = vsel %vm12315_vm12, %v10463_v5, %v1582_v36  ;;  %v1587_v58 = vsel %vm12315_vm12, %v10464_v9, %v1586_v6 }
 0x119   : > { %v1820_v37 = vor.u32 %v1819_v27, %v1816_v20  ;;  %v1825_v41 = vrot.slane %v1823_v29, 5  ;;  %v1834_v15 = vor.u32 %v1833_v30, %v1830_v62  ;;  %v1605_v18 = vunpack.c.l.b16 %v1583_v13  ;;  %v1779_v20 = vld [vmem:[#allocation2 + $0x38] sm:$0xf]  ;;  %v12493_v13 = vld [vmem:[#allocation2 + $0x44] sm:$0x1] }
 0x11a   : > { %v1910_v60 = vpack.c.b16 %v1903_v49, %v1902_v43  ;;  %v1358_v43 = vrot.slane %v1357_v17, 4  ;;  %v1839_v49 = vrot.slane %v1837_v38, 5  ;;  %v1606_v46 = vunpack.c.l.b16 %v1587_v58 }
 0x11b   : > { %v1821_v48 = vrot.slane %v1820_v37, 4  ;;  %v1835_v51 = vrot.slane %v1834_v15, 4  ;;  %v1842_v27 = vshrl.u32 %v1777_v19, 16  ;;  %v1845_v62 = vshll.u32 %v1777_v19, 16 }
 0x11c   : > { %10527 = vmatmul.msk.bf16.vlgmr.msra.gmra.mxu0 %vm771_vm6, %v1910_v60  ;;  %10512 = vmatmul.msk.bf16.gmra.mxu3 %vm771_vm6, %v10494_v24  ;;  %v1363_v59 = vsel %vm12301_vm9, %v1358_v43, %v1362_v28  ;;  %v1377_v60 = vsel %vm12301_vm9, %v1372_v45, %v1376_v31  ;;  %v1390_v24 = vrot.slane %v1388_v7, 5  ;;  %v1856_v28 = vshrl.u32 %v1779_v20, 16  ;;  %v10497_v31 = vld [vmem:[#allocation2 + $0x30] sm:$0xf] }
 0x11d   : > { %v1826_v53 = vsel %vm12301_vm9, %v1821_v48, %v1825_v41  ;;  %v1840_v56 = vsel %vm12301_vm9, %v1835_v51, %v1839_v49  ;;  %v1467_v14 = vunpack.c.l.b16 %v1363_v59  ;;  %v1468_v17 = vunpack.c.l.b16 %v1377_v60 }
 0x11e   : > { %v1904_v57 = vunpack.c.l.b16 %v1826_v53  ;;  %v1905_v61 = vunpack.c.l.b16 %v1840_v56  ;;  %v1611_v30 = vpack.c.b16 %v1606_v46, %v1605_v18  ;;  %v1859_v34 = vshll.u32 %v1779_v20, 16  ;;  %v1547_v18 = vld [vmem:[#allocation2 + $0x40] sm:$0xe] }
 0x11f   : > { %v1475_v37 = vpack.c.b16 %v1468_v17, %v1467_v14  ;;  %v1844_v41 = vrot.slane %v1842_v27, 4  ;;  %v1847_v47 = vrot.slane %v1845_v62, 5  ;;  %v1404_v45 = vrot.slane %v1402_v23, 5  ;;  %v1546_v14 = vld [vmem:[#allocation2 + $0x38] sm:$0xe] }
 0x120   : > { %10481 = vmatmul.msk.bf16.gmra.mxu2 %vm771_vm6, %v1611_v30  ;;  %v1858_v49 = vrot.slane %v1856_v28, 4  ;;  %v10465_v19 = vrot.slane %v1546_v14, 9 }
 0x121   : > { %v1848_v51 = vor.u32 %v1847_v47, %v1844_v41 }
 0x123   : > { %v1849_v59 = vrot.slane %v1848_v51, 4  ;;  %v1430_v51 = vshll.u32 %v12459_v1, 16 }
 0x125   : > { %10407 = vmatmul.msk.bf16.vlgmr.msra.gmra.mxu1 %vm771_vm6, %v1175_v8  ;;  %v1176_v8 = vpack.c.b16 %v1170_v55, %v1169_v54  ;;  %v1384_v54 = vrot.slane %v1382_v39, 5  ;;  %v1395_v55 = vrot.slane %v1393_v40, 4  ;;  %v12470_v39 = vld [vmem:[#allocation2 + $0x34] sm:$0x1]  ;;  %v12472_v40 = vld [vmem:[#allocation2 + $0x3c] sm:$0x1] }
 0x126   : > { %2078 = vmatpush.bf16.msra.mxu1 %v11449_v32  ;;  %v11442_v32 = vld [vmem:[#allocation2 + $0x34] sm:$0xf0]  ;;  %v1851_v48 = vshll.u32 %v12470_v39, 16  ;;  %v1865_v53 = vshll.u32 %v12472_v40, 16 }
 0x127   : > { %v1385_v12 = vor.u32 %v1384_v54, %v1381_v52  ;;  %v1399_v21 = vor.u32 %v1398_v4, %v1395_v55  ;;  %v10498_v38 = vor.u32 %v11442_v32, %v10497_v31  ;;  %v1861_v52 = vrot.slane %v1859_v34, 5  ;;  %v12480_v54 = vpop.f32.mrf.mxu0  ;;  %v1342_v55 = vld [vmem:[#allocation2 + $0x28] sm:$0xf] }
 0x128   : > { %v1853_v56 = vrot.slane %v1851_v48, 5  ;;  %v1407_v4 = vshrl.u32 %v1342_v55, 16  ;;  %v1410_v36 = vshll.u32 %v1342_v55, 16  ;;  %v11443_v55 = vld [vmem:[#allocation2 + $0x44] sm:$0xf0] }
 0x129   : > { %v1386_v29 = vrot.slane %v1385_v12, 4  ;;  %v1400_v43 = vrot.slane %v1399_v21, 4  ;;  %v1862_v60 = vor.u32 %v1861_v52, %v1858_v49  ;;  %v12491_v12 = vld [vmem:[#allocation2 + $0x3c] sm:$0x1]  ;;  %v1594_v21 = vrot.slane %v12493_v13, 5 }
 0x12a   : > { %v1854_v35 = vsel %vm12301_vm9, %v1849_v59, %v1853_v56  ;;  %v1590_v20 = vrot.slane %v12491_v12, 5  ;;  %v1409_v27 = vrot.slane %v1407_v4, 4  ;;  %v1412_v62 = vrot.slane %v1410_v36, 5  ;;  %v11448_v36 = vld [vmem:[%s15375_s3 + $0x80] sm:$0xff] }
 0x12b   : > { %v1391_v2 = vsel %vm12301_vm9, %v1386_v29, %v1390_v24  ;;  %v1863_v5 = vrot.slane %v1862_v60, 4  ;;  %v10466_v24 = vrot.slane %v1547_v18, 9  ;;  %2079 = vmatpush.bf16.msra.mxu1 %v11448_v36 }
 0x12c   : > { %10513 = vmatmul.msk.bf16.gmra.mxu3 %vm771_vm6, %v10498_v38  ;;  %v1469_v23 = vunpack.c.l.b16 %v1391_v2  ;;  %v1591_v29 = vsel %vm12315_vm12, %v10465_v19, %v1590_v20  ;;  %v1783_v38 = vld [vmem:[#allocation2 + $0x48] sm:$0xf]  ;;  %v12508_v2 = vld [vmem:[#allocation2 + $0x4c] sm:$0x1]  ;;  %v1432_v19 = vrot.slane %v1430_v51, 5 }
 0x12d   : > { %v1595_v32 = vsel %vm12315_vm12, %v10466_v24, %v1594_v21  ;;  %v1607_v34 = vunpack.c.l.b16 %v1591_v29  ;;  %v1884_v48 = vshrl.u32 %v1783_v38, 16  ;;  %v1346_v21 = vld [vmem:[#allocation2 + $0x38] sm:$0xf]  ;;  %v1348_v24 = vld [vmem:[#allocation2 + $0x40] sm:$0xf] }
 0x12e   : > { %v1608_v47 = vunpack.c.l.b16 %v1595_v32 }
 0x12f   : > { %v798_v41 = vpop.f32.mrf.mxu0 }
 0x130   : > { %v1612_v52 = vpack.c.b16 %v1608_v47, %v1607_v34 }
 0x132   : > { %10482 = vmatmul.msk.bf16.gmra.mxu2 %vm771_vm6, %v1612_v52 }
 0x135   : > { %10408 = vmatmul.msk.bf16.gmra.mxu1 %vm771_vm6, %v1176_v8  ;;  %v1911_v8 = vpack.c.b16 %v1905_v61, %v1904_v57  ;;  %v1344_v57 = vld [vmem:[#allocation2 + $0x30] sm:$0xf]  ;;  %v1867_v61 = vrot.slane %v1865_v53, 5  ;;  %v10501_v53 = vld [vmem:[#allocation2 + $0x40] sm:$0xf] }
 0x136   : > { %v1421_v6 = vshrl.u32 %v1344_v57, 16  ;;  %v1424_v7 = vshll.u32 %v1344_v57, 16  ;;  %v1413_v57 = vor.u32 %v1412_v62, %v1409_v27  ;;  %v10502_v60 = vor.u32 %v11443_v55, %v10501_v53 }
 0x137   : > { %10528 = vmatmul.msk.bf16.gmra.mxu0 %vm771_vm6, %v1911_v8  ;;  %v1906_v8 = vunpack.c.l.b16 %v1854_v35  ;;  %v1868_v9 = vsel %vm12301_vm9, %v1863_v5, %v1867_v61  ;;  %v12506_v61 = vld [vmem:[#allocation2 + $0x44] sm:$0x1]  ;;  %v1886_v35 = vrot.slane %v1884_v48, 4  ;;  %v1887_v5 = vshll.u32 %v1783_v38, 16  ;;  %v12522_v62 = vpop.f32.mrf.mxu0 }
 0x138   : > { %v1907_v58 = vunpack.c.l.b16 %v1868_v9  ;;  %v1423_v30 = vrot.slane %v1421_v6, 4  ;;  %v1426_v31 = vrot.slane %v1424_v7, 5  ;;  %v1893_v7 = vshll.u32 %v12508_v2, 16 }
 0x139   : > { %v1889_v14 = vrot.slane %v1887_v5, 5  ;;  %v1449_v38 = vshrl.u32 %v1348_v24, 16 }
 0x13a   : > { %v1912_v28 = vpack.c.b16 %v1907_v58, %v1906_v8  ;;  %v1427_v59 = vor.u32 %v1426_v31, %v1423_v30  ;;  %v1414_v58 = vrot.slane %v1413_v57, 4  ;;  %v1435_v31 = vshrl.u32 %v1346_v21, 16 }
 0x13b   : > { %v1451_v52 = vrot.slane %v1449_v38, 4 }
 0x13c   : > { %10514 = vmatmul.msk.bf16.gmra.mxu3 %vm771_vm6, %v10502_v60  ;;  %v1428_v18 = vrot.slane %v1427_v59, 4  ;;  %v1444_v60 = vshll.u32 %v12491_v12, 16 }
 0x13e   : > { %v1433_v30 = vsel %vm12301_vm9, %v1428_v18, %v1432_v19  ;;  %v1446_v5 = vrot.slane %v1444_v60, 5  ;;  %v1979_v60 = vld [vmem:[#allocation2 + $0x30] sm:$0xe] }
 0x142   : > { %v874_v15 = vpop.f32.mrf.mxu1 }
 0x143   : > { %v12476_v50 = vadd.f32 %v874_v15, %v793_v3  ;;  %v1405_v3 = vsel %vm12301_vm9, %v1400_v43, %v1404_v45  ;;  %v1416_v43 = vshll.u32 %v12457_v63, 16  ;;  %v1879_v63 = vshll.u32 %v12506_v61, 16 }
 0x144   : > { %v1470_v46 = vunpack.c.l.b16 %v1405_v3 }
 0x145   : > { %10455 = vmatmul.msk.bf16.vlgmr.msrb.gmra.mxu1 %vm771_vm6, %v1475_v37  ;;  %v1781_v37 = vld [vmem:[#allocation2 + $0x40] sm:$0xf]  ;;  %v1418_v8 = vrot.slane %v1416_v43, 5  ;;  %v1881_v9 = vrot.slane %v1879_v63, 5 }
 0x146   : > { %v1870_v15 = vshrl.u32 %v1781_v37, 16  ;;  %v1873_v45 = vshll.u32 %v1781_v37, 16  ;;  %v1476_v49 = vpack.c.b16 %v1470_v46, %v1469_v23  ;;  %v1890_v23 = vor.u32 %v1889_v14, %v1886_v35 }
 0x147   : > { %10529 = vmatmul.msk.bf16.gmra.mxu0 %vm771_vm6, %v1912_v28  ;;  %v1895_v46 = vrot.slane %v1893_v7, 5  ;;  %v1419_v29 = vsel %vm12301_vm9, %v1414_v58, %v1418_v8  ;;  %v1438_v37 = vshll.u32 %v1346_v21, 16  ;;  %v1976_v21 = vld [vmem:[#allocation2 + $0x18] sm:$0xe] }
 0x148   : > { %v1872_v56 = vrot.slane %v1870_v15, 4  ;;  %v1875_v3 = vrot.slane %v1873_v45, 5  ;;  %v1891_v28 = vrot.slane %v1890_v23, 4  ;;  %v1471_v43 = vunpack.c.l.b16 %v1419_v29 }
 0x149   : > { %v1472_v45 = vunpack.c.l.b16 %v1433_v30  ;;  %v1440_v51 = vrot.slane %v1438_v37, 5 }
 0x14a   : > { %v12495_v17 = vpop.f32.mrf.mxu1  ;;  %v1876_v6 = vor.u32 %v1875_v3, %v1872_v56  ;;  %v1896_v47 = vsel %vm12301_vm9, %v1891_v28, %v1895_v46  ;;  %v803_v56 = vpop.f32.mrf.mxu0  ;;  %v2001_v46 = vrot.slane %v12397_v10, 5 }
 0x14b   : > { %v1909_v15 = vunpack.c.l.b16 %v1896_v47  ;;  %v1477_v55 = vpack.c.b16 %v1472_v45, %v1471_v43  ;;  %v877_v28 = vadd.f32 %v12495_v17, %v12480_v54  ;;  %v1977_v54 = vld [vmem:[#allocation2 + $0x20] sm:$0xe]  ;;  %v1978_v17 = vld [vmem:[#allocation2 + $0x28] sm:$0xe]  ;;  %v2009_v45 = vrot.slane %v12437_v42, 5 }
 0x14c   : > { %v1877_v20 = vrot.slane %v1876_v6, 4  ;;  %v10533_v43 = vrot.slane %v1977_v54, 9  ;;  %v10535_v42 = vrot.slane %v1979_v60, 9 }
 0x14e   : > { %v1882_v27 = vsel %vm12301_vm9, %v1877_v20, %v1881_v9  ;;  %v1975_v20 = vld [vmem:[#allocation2 + $0x10] sm:$0xe] }
 0x14f   : > { %v1908_v32 = vunpack.c.l.b16 %v1882_v27  ;;  %v10531_v23 = vrot.slane %v1975_v20, 9  ;;  %v2005_v27 = vrot.slane %v12399_v11, 5  ;;  %v1982_v20 = vld [vmem:[#allocation2 + $0x48] sm:$0xe] }
 0x151   : > { %v1913_v48 = vpack.c.b16 %v1909_v15, %v1908_v32  ;;  %v2002_v32 = vsel %vm12315_vm12, %v10531_v23, %v2001_v46  ;;  %v2025_v23 = vrot.slane %v12506_v61, 5  ;;  %v10538_v46 = vrot.slane %v1982_v20, 9  ;;  %v11461_v20 = vld [vmem:[%s15377_s5 + $0x28] sm:$0xff] }
 0x152   : > { %v879_v4 = vpop.f32.mrf.mxu1  ;;  %v12542_v58 = vpop.f32.mrf.mxu0  ;;  %v2036_v10 = vunpack.c.l.b16 %v2002_v32  ;;  %2731 = vmatpush.bf16.msrb.mxu1 %v11461_v20 }
 0x153   : > { %v12512_v1 = vadd.f32 %v879_v4, %v798_v41  ;;  %v1452_v41 = vshll.u32 %v1348_v24, 16  ;;  %v1458_v4 = vshll.u32 %v12493_v13, 16  ;;  %v10532_v24 = vrot.slane %v1976_v21, 9 }
 0x155   : > { %10456 = vmatmul.msk.bf16.gmra.mxu1 %vm771_vm6, %v1476_v49  ;;  %v1437_v49 = vrot.slane %v1435_v31, 4  ;;  %v1454_v53 = vrot.slane %v1452_v41, 5  ;;  %v1460_v6 = vrot.slane %v1458_v4, 5  ;;  %v889_v30 = vpop.f32.mrf.mxu2 }
 0x157   : > { %10530 = vmatmul.msk.bf16.gmra.mxu0 %vm771_vm6, %v1913_v48  ;;  %v1441_v59 = vor.u32 %v1440_v51, %v1437_v49  ;;  %v1455_v3 = vor.u32 %v1454_v53, %v1451_v52  ;;  %v10534_v48 = vrot.slane %v1978_v17, 9  ;;  %v2013_v49 = vrot.slane %v12439_v16, 5 }
 0x158   : > { %v2010_v52 = vsel %vm12315_vm12, %v10533_v43, %v2009_v45  ;;  %v2017_v16 = vrot.slane %v12470_v39, 5  ;;  %v1981_v39 = vld [vmem:[#allocation2 + $0x40] sm:$0xe] }
 0x159   : > { %v1442_v35 = vrot.slane %v1441_v59, 4  ;;  %v1456_v36 = vrot.slane %v1455_v3, 4  ;;  %v2014_v53 = vsel %vm12315_vm12, %v10534_v48, %v2013_v49  ;;  %v1980_v3 = vld [vmem:[#allocation2 + $0x38] sm:$0xe]  ;;  %v10537_v21 = vrot.slane %v1981_v39, 9 }
 0x15a   : > { %v12528_v34 = vpop.f32.mrf.mxu1  ;;  %v808_v29 = vpop.f32.mrf.mxu0  ;;  %v10536_v4 = vrot.slane %v1980_v3, 9 }
 0x15b   : > { %v1447_v8 = vsel %vm12301_vm9, %v1442_v35, %v1446_v5  ;;  %v1461_v9 = vsel %vm12301_vm9, %v1456_v36, %v1460_v6  ;;  %v12554_v37 = vadd.f32 %v889_v30, %v808_v29  ;;  %v2021_v35 = vrot.slane %v12472_v40, 5 }
 0x15c   : > { %v1473_v14 = vunpack.c.l.b16 %v1447_v8  ;;  %v1474_v12 = vunpack.c.l.b16 %v1461_v9  ;;  %v2018_v6 = vsel %vm12315_vm12, %v10535_v42, %v2017_v16  ;;  %v2029_v40 = vrot.slane %v12508_v2, 5 }
 0x15d   : > { %v2040_v8 = vunpack.c.l.b16 %v2018_v6 }
 0x15e   : > { %v1478_v13 = vpack.c.b16 %v1474_v12, %v1473_v14 }
 0x162   : > { %v884_v57 = vpop.f32.mrf.mxu1  ;;  %v12573_v5 = vpop.f32.mrf.mxu0 }
 0x163   : > { %v885_v63 = vadd.f32 %v884_v57, %v803_v56 }
 0x165   : > { %10457 = vmatmul.msk.bf16.gmra.mxu1 %vm771_vm6, %v1477_v55  ;;  %v2038_v55 = vunpack.c.l.b16 %v2010_v52 }
 0x16a   : > { %v12536_v7 = vpop.f32.mrf.mxu1 }
 0x172   : > { %v1075_v18 = vpop.f32.mrf.mxu1 }
 0x173   : > { %v1095_v19 = vadd.f32 %v1075_v18, %v12476_v50  ;;  %v2006_v50 = vsel %vm12315_vm12, %v10532_v24, %v2005_v27  ;;  %v2026_v27 = vsel %vm12315_vm12, %v10537_v21, %v2025_v23 }
 0x174   : > { %v2037_v41 = vunpack.c.l.b16 %v2006_v50  ;;  %v2042_v30 = vunpack.c.l.b16 %v2026_v27 }
 0x175   : > { %10458 = vmatmul.msk.bf16.gmra.mxu1 %vm771_vm6, %v1478_v13  ;;  %v1306_v13 = vpop.f32.mrf.mxu0 }
 0x176   : > { %v2044_v47 = vpack.c.b16 %v2037_v41, %v2036_v10 }
 0x17a   : > { %v1077_v31 = vpop.f32.mrf.mxu1 }
 0x17b   : > { %v12556_v38 = vadd.f32 %v1077_v31, %v877_v28  ;;  %v2030_v28 = vsel %vm12315_vm12, %v10538_v46, %v2029_v40 }
 0x17d   : > { %v1308_v29 = vpop.f32.mrf.mxu0 }
 0x182   : > { %v1080_v11 = vpop.f32.mrf.mxu1 }
 0x183   : > { %v1097_v15 = vadd.f32 %v1080_v11, %v12512_v1  ;;  %v2039_v1 = vunpack.c.l.b16 %v2014_v53  ;;  %v12593_v11 = vpop.f32.mrf.mxu2 }
 0x185   : > { %10551 = vmatmul.msk.bf16.vlgmr.msra.gmra.mxu1 %vm771_vm6, %v2044_v47  ;;  %v2045_v56 = vpack.c.b16 %v2039_v1, %v2038_v55  ;;  %v1311_v2 = vpop.f32.mrf.mxu0  ;;  %v12591_v47 = vpop.f32.mrf.mxu3 }
 0x18a   : > { %v12562_v51 = vpop.f32.mrf.mxu1 }
 0x18b   : > { %v12599_v45 = vpop.f32.mrf.mxu2 }
 0x18d   : > { %v12589_v41 = vpop.f32.mrf.mxu0  ;;  %v12597_v43 = vpop.f32.mrf.mxu3 }
 0x192   : > { %v1085_v57 = vpop.f32.mrf.mxu1 }
 0x193   : > { %v12568_v59 = vadd.f32 %v1085_v57, %v885_v63  ;;  %v2022_v63 = vsel %vm12315_vm12, %v10536_v4, %v2021_v35  ;;  %v12607_v53 = vpop.f32.mrf.mxu2 }
 0x194   : > { %v2041_v9 = vunpack.c.l.b16 %v2022_v63  ;;  %v11457_v63 = vld [vmem:[%s15377_s5 + $0x8] sm:$0xff] }
 0x195   : > { %10552 = vmatmul.msk.bf16.gmra.mxu1 %vm771_vm6, %v2045_v56  ;;  %v12595_v17 = vpop.f32.mrf.mxu0  ;;  %v12603_v49 = vpop.f32.mrf.mxu3  ;;  %2318 = vmatpush.bf16.msrb.mxu2 %v11457_v63 }
 0x196   : > { %v2046_v14 = vpack.c.b16 %v2041_v9, %v2040_v8 }
 0x19a   : > { %v12575_v36 = vpop.f32.mrf.mxu1 }
 0x19b   : > { %v1646_v57 = vpop.f32.mrf.mxu2 }
 0x19d   : > { %v12611_v1 = vpop.f32.mrf.mxu3 }
 0x1a2   : > { %v1212_v12 = vpop.f32.mrf.mxu1 }
 0x1a3   : > { %v1232_v18 = vadd.f32 %v1212_v12, %v1095_v19  ;;  %v2043_v19 = vunpack.c.l.b16 %v2030_v28  ;;  %v1648_v16 = vpop.f32.mrf.mxu2 }
 0x1a5   : > { %10553 = vmatmul.msk.bf16.gmra.mxu1 %vm771_vm6, %v2046_v14  ;;  %v2047_v31 = vpack.c.b16 %v2043_v19, %v2042_v30  ;;  %v1741_v3 = vpop.f32.mrf.mxu3  ;;  %v1326_v8 = vadd.f32 %v1306_v13, %v1232_v18  ;;  %v11456_v14 = vld [vmem:[%s15377_s5] sm:$0xff] }
 0x1a6   : > { %2319 = vmatpush.bf16.msrb.mxu2 %v11456_v14  ;;  %v11460_v18 = vld [vmem:[%s15377_s5 + $0x20] sm:$0xff] }
 0x1a7   : > { %2732 = vmatpush.bf16.msrb.mxu1 %v11460_v18 }
 0x1aa   : > { %v1214_v24 = vpop.f32.mrf.mxu1 }
 0x1ab   : > { %v1233_v12 = vadd.f32 %v1214_v24, %v12556_v38  ;;  %v1651_v39 = vpop.f32.mrf.mxu2  ;;  %v11459_v38 = vld [vmem:[%s15377_s5 + $0x18] sm:$0xff] }
 0x1ac   : > { %2597 = vmatpush.bf16.msrb.mxu0 %v11459_v38 }
 0x1ad   : > { %v1743_v35 = vpop.f32.mrf.mxu3  ;;  %v1327_v13 = vadd.f32 %v1308_v29, %v1233_v12  ;;  %v11458_v29 = vld [vmem:[%s15377_s5 + $0x10] sm:$0xff]  ;;  %v2422_v12 = vld [vmem:[#allocation2] sm:$0xf] }
 0x1b0   : > { %2598 = vmatpush.bf16.msrb.mxu0 %v11458_v29 }
 0x1b2   : > { %v1217_v32 = vpop.f32.mrf.mxu1 }
 0x1b3   : > { %v1234_v50 = vadd.f32 %v1217_v32, %v1097_v15  ;;  %v12601_v15 = vpop.f32.mrf.mxu0  ;;  %v1653_v19 = vpop.f32.mrf.mxu2 }
 0x1b5   : > { %10554 = vmatmul.msk.bf16.gmra.mxu1 %vm771_vm6, %v2047_v31  ;;  %v1746_v46 = vpop.f32.mrf.mxu3  ;;  %v1328_v31 = vadd.f32 %v1311_v2, %v1234_v50  ;;  %v887_v50 = vadd.f32 %v12536_v7, %v12542_v58 }
 0x1ba   : > { %v1219_v10 = vpop.f32.mrf.mxu1 }
 0x1bb   : > { %v12609_v55 = vpop.f32.mrf.mxu0 }
 0x1c2   : > { %v1512_v61 = vpop.f32.mrf.mxu1 }
 0x1c3   : > { %v12615_v60 = vpop.f32.mrf.mxu0  ;;  %v1532_v9 = vadd.f32 %v1512_v61, %v1326_v8  ;;  %v882_v61 = vadd.f32 %v12528_v34, %v12522_v62  ;;  %v2439_v62 = vshrl.u32 %v2422_v12, 16  ;;  %v2442_v34 = vshll.u32 %v2422_v12, 16 }
 0x1c5   : > { %v1666_v40 = vadd.f32 %v1646_v57, %v1532_v9  ;;  %v1098_v63 = vadd.f32 %v12562_v51, %v882_v61  ;;  %v2441_v29 = vrot.slane %v2439_v62, 4 }
 0x1c7   : > { %v1761_v27 = vadd.f32 %v1741_v3, %v1666_v40 }
 0x1ca   : > { %v1514_v54 = vpop.f32.mrf.mxu1 }
 0x1cb   : > { %v1947_v4 = vpop.f32.mrf.mxu0  ;;  %v1533_v28 = vadd.f32 %v1514_v54, %v1327_v13 }
 0x1cc   : > { %v1967_v24 = vadd.f32 %v1947_v4, %v1761_v27  ;;  %v1748_v4 = vpop.f32.mrf.mxu3 }
 0x1cd   : > { %v1667_v30 = vadd.f32 %v1648_v16, %v1533_v28  ;;  %v1235_v16 = vadd.f32 %v1219_v10, %v1098_v63  ;;  %v1236_v10 = vadd.f32 %v12591_v47, %v12568_v59  ;;  %v2207_v28 = vld [vmem:[#allocation2 + $0xc] sm:$0x1]  ;;  %v2423_v47 = vld [vmem:[#allocation2 + $0x4] sm:$0x1] }
 0x1ce   : > { %v2654_v12 = vrot.slane %v2423_v47, 5 }
 0x1cf   : > { %v1762_v8 = vadd.f32 %v1743_v35, %v1667_v30  ;;  %v1329_v18 = vadd.f32 %v12589_v41, %v1235_v16  ;;  %v2444_v41 = vrot.slane %v2442_v34, 5 }
 0x1d2   : > { %v1517_v48 = vpop.f32.mrf.mxu1 }
 0x1d3   : > { %v1949_v21 = vpop.f32.mrf.mxu0  ;;  %v1534_v3 = vadd.f32 %v1517_v48, %v1328_v31  ;;  %v12648_v48 = vpop.f32.mrf.mxu2  ;;  %v892_v31 = vadd.f32 %v12593_v11, %v12573_v5 }
 0x1d4   : > { %v1968_v40 = vadd.f32 %v1949_v21, %v1762_v8  ;;  %v1751_v63 = vpop.f32.mrf.mxu3 }
 0x1d5   : > { %v1668_v20 = vadd.f32 %v1651_v39, %v1534_v3  ;;  %v1100_v39 = vadd.f32 %v12575_v36, %v887_v50 }
 0x1d7   : > { %v1763_v21 = vadd.f32 %v1746_v46, %v1668_v20  ;;  %v2628_v46 = vld [vmem:[#allocation2] sm:$0xe]  ;;  %v1237_v61 = vadd.f32 %v12597_v43, %v1100_v39  ;;  %v2445_v20 = vor.u32 %v2444_v41, %v2441_v29 }
 0x1d8   : > { %v10611_v16 = vrot.slane %v2628_v46, 9 }
 0x1da   : > { %v12605_v52 = vpop.f32.mrf.mxu1 }
 0x1db   : > { %v1952_v57 = vpop.f32.mrf.mxu0  ;;  %v1535_v38 = vadd.f32 %v12605_v52, %v1329_v18  ;;  %v1330_v52 = vadd.f32 %v12595_v17, %v1236_v10  ;;  %v1658_v62 = vpop.f32.mrf.mxu2  ;;  %v2446_v10 = vrot.slane %v2445_v20, 4 }
 0x1dc   : > { %v1969_v3 = vadd.f32 %v1952_v57, %v1763_v21  ;;  %v2213_v57 = vld [vmem:[#allocation2 + $0x14] sm:$0x1] }
 0x1dd   : > { %v1669_v5 = vadd.f32 %v1653_v19, %v1535_v38 }
 0x1df   : > { %v1764_v19 = vadd.f32 %v1748_v4, %v1669_v5 }
 0x1e2   : > { %v12613_v56 = vpop.f32.mrf.mxu1 }
 0x1e3   : > { %v1954_v7 = vpop.f32.mrf.mxu0 }
 0x1ea   : > { %v12617_v42 = vpop.f32.mrf.mxu1 }
 0x1eb   : > { %v1957_v21 = vpop.f32.mrf.mxu0 }
 0x1f2   : > { %v12619_v6 = vpop.f32.mrf.mxu1 }
 0x1fa   : > { %v12631_v23 = vpop.f32.mrf.mxu1 }
 0x202   : > { %v2081_v32 = vpop.f32.mrf.mxu1 }
 0x203   : > { %v2101_v54 = vadd.f32 %v2081_v32, %v1967_v24 }
 0x205   : > { %v2109_v9 = vmax.f32 %v2101_v54, 0.0  ;;  %v1101_v54 = vadd.f32 %v12599_v45, %v12554_v37  ;;  %v1536_v37 = vadd.f32 %v12613_v56, %v1330_v52  ;;  %v2210_v45 = vld [vmem:[#allocation2 + $0x10] sm:$0xf] }
 0x207   : > { %v2117_v14 = vpack.c.bf16 %v2109_v9, %v2109_v9 }
 0x209   : > { %v2126_v13 = vshrl.u32 %v2117_v14, 16  ;;  %v2129_v35 = vshll.u32 %v2117_v14, 16 }
 0x20a   : > { %v2083_v2 = vpop.f32.mrf.mxu1 }
 0x20b   : > { %v2128_v51 = vrot.slane %v2126_v13, 7  ;;  %v2102_v27 = vadd.f32 %v2083_v2, %v1968_v40  ;;  %v2448_v40 = vshll.u32 %v2423_v47, 16  ;;  %v1238_v2 = vadd.f32 %v12603_v49, %v1101_v54  ;;  %v1753_v47 = vpop.f32.mrf.mxu3 }
 0x20d   : > { %v2131_v58 = vor.u32 %v2129_v35, %v2128_v51  ;;  %v2132_v24 = vrot.slane %v2128_v51, 4  ;;  %v2110_v30 = vmax.f32 %v2102_v27, 0.0  ;;  %v10557_v51 = vld [vmem:[#allocation2] sm:$0xf]  ;;  %v1331_v35 = vadd.f32 %v12601_v15, %v1237_v61 }
 0x20e   : > { %v1102_v27 = vadd.f32 %v12607_v53, %v892_v31  ;;  %v2450_v39 = vrot.slane %v2448_v40, 5  ;;  %v1670_v15 = vadd.f32 %v12648_v48, %v1536_v37  ;;  %v1970_v31 = vadd.f32 %v1954_v7, %v1764_v19 }
 0x20f   : > { %v2205_v32 = vsel %vm12184_vm4, %v2131_v58, %v12408_v26  ;;  %v2208_v59 = vsel %vm12194_vm5, %v2132_v24, %v2207_v28  ;;  %v2118_v36 = vpack.c.bf16 %v2110_v30, %v2110_v30  ;;  %v2349_v26 = vunpack.c.l.b16 %v2117_v14 }
 0x210   : > { %2206 = vst [vmem:[#allocation2 + $0x8] sm:$0xf] %v2205_v32  ;;  %v2655_v58 = vsel %vm12315_vm12, %v10611_v16, %v2654_v12  ;;  %v2219_v16 = vld [vmem:[#allocation2 + $0x1c] sm:$0x1]  ;;  %v2451_v20 = vsel %vm12301_vm9, %v2446_v10, %v2450_v39 }
 0x211   : > { %2209 = vst [vmem:[#allocation2 + $0xc] sm:$0x1] %v2208_v59  ;;  %v2134_v11 = vshrl.u32 %v2118_v36, 16  ;;  %v2350_v8 = vunpack.c.l.b16 %v2118_v36  ;;  %v2137_v17 = vshll.u32 %v2118_v36, 16  ;;  %v2689_v61 = vunpack.c.l.b16 %v2655_v58 }
 0x212   : > { %v2086_v9 = vpop.f32.mrf.mxu1 }
 0x213   : > { %v2136_v13 = vrot.slane %v2134_v11, 7  ;;  %v2103_v50 = vadd.f32 %v2086_v9, %v1969_v3  ;;  %v2357_v43 = vpack.c.b16 %v2350_v8, %v2349_v26  ;;  %v1765_v26 = vadd.f32 %v1751_v63, %v1670_v15  ;;  %v2216_v9 = vld [vmem:[#allocation2 + $0x18] sm:$0xf] }
 0x214   : > { %v1537_v8 = vadd.f32 %v12617_v42, %v1331_v35  ;;  %v2555_v35 = vunpack.c.l.b16 %v2451_v20 }
 0x215   : > { %v2139_v34 = vor.u32 %v2137_v17, %v2136_v13  ;;  %v2140_v14 = vrot.slane %v2136_v13, 4  ;;  %v2111_v18 = vmax.f32 %v2103_v50, 0.0  ;;  %2361 = vrot.lane.b32.xlu2 %v2357_v43, %s11943_s26  ;;  %v1332_v43 = vadd.f32 %v12609_v55, %v1238_v2  ;;  %v1959_v2 = vpop.f32.mrf.mxu0 }
 0x217   : > { %v2211_v49 = vsel %vm12184_vm4, %v2139_v34, %v2210_v45  ;;  %v2214_v56 = vsel %vm12194_vm5, %v2140_v14, %v2213_v57  ;;  %v12674_v4 = vpack.c.bf16 %v2111_v18, %v2111_v18  ;;  %v11452_v28 = vld [vmem:[#allocation2 + $0x4] sm:$0xf0]  ;;  %v1661_v57 = vpop.f32.mrf.mxu2  ;;  %v1239_v14 = vadd.f32 %v12611_v1, %v1102_v27 }
 0x218   : > { %v2629_v38 = vld [vmem:[#allocation2 + $0x8] sm:$0xe]  ;;  %2215 = vst [vmem:[#allocation2 + $0x14] sm:$0x1] %v2214_v56  ;;  %v10558_v53 = vor.u32 %v11452_v28, %v10557_v51  ;;  %v2425_v30 = vld [vmem:[#allocation2 + $0xc] sm:$0x1]  ;;  %v1971_v18 = vadd.f32 %v1957_v21, %v1765_v26  ;;  %v1671_v51 = vadd.f32 %v1658_v62, %v1537_v8 }
 0x219   : > { %v2424_v24 = vld [vmem:[#allocation2 + $0x8] sm:$0xf]  ;;  %v10612_v29 = vrot.slane %v2629_v38, 9  ;;  %2212 = vst [vmem:[#allocation2 + $0x10] sm:$0xf] %v2211_v49  ;;  %v2142_v32 = vshrl.u32 %v12674_v4, 16  ;;  %v2351_v49 = vunpack.c.l.b16 %v12674_v4  ;;  %v1538_v38 = vadd.f32 %v12619_v6, %v1332_v43 }
 0x21a   : > { %v2453_v41 = vshrl.u32 %v2424_v24, 16  ;;  %v2658_v59 = vrot.slane %v2425_v30, 5  ;;  %v2456_v36 = vshll.u32 %v2424_v24, 16  ;;  %v2145_v46 = vshll.u32 %v12674_v4, 16  ;;  %v2088_v52 = vpop.f32.mrf.mxu1  ;;  %10579 = vmatmul.msk.bf16.vlgmr.msrb.gmra.mxu2 %vm771_vm6, %v10558_v53 }
 0x21b   : > { %v2462_v48 = vshll.u32 %v2425_v30, 16  ;;  %v2144_v3 = vrot.slane %v2142_v32, 7  ;;  %v2104_v5 = vadd.f32 %v2088_v52, %v1970_v31  ;;  %v2222_v31 = vld [vmem:[#allocation2 + $0x20] sm:$0xf]  ;;  %v2225_v32 = vld [vmem:[#allocation2 + $0x24] sm:$0x1] }
 0x21c   : > { %v2455_v54 = vrot.slane %v2453_v41, 4  ;;  %v2659_v11 = vsel %vm12315_vm12, %v10612_v29, %v2658_v59  ;;  %v2458_v7 = vrot.slane %v2456_v36, 5  ;;  %v1766_v29 = vadd.f32 %v1753_v47, %v1671_v51  ;;  %v1756_v41 = vpop.f32.mrf.mxu3 }
 0x21d   : > { %v2690_v12 = vunpack.c.l.b16 %v2659_v11  ;;  %v2147_v40 = vor.u32 %v2145_v46, %v2144_v3  ;;  %v2148_v13 = vrot.slane %v2144_v3, 4  ;;  %v2112_v17 = vmax.f32 %v2104_v5, 0.0 }
 0x21e   : > { %v2459_v50 = vor.u32 %v2458_v7, %v2455_v54  ;;  %v2464_v45 = vrot.slane %v2462_v48, 5  ;;  %v1333_v54 = vadd.f32 %v12615_v60, %v1239_v14  ;;  %v1672_v48 = vadd.f32 %v1661_v57, %v1538_v38 }
 0x21f   : > { %v2697_v37 = vpack.c.b16 %v2690_v12, %v2689_v61  ;;  %v2217_v63 = vsel %vm12184_vm4, %v2147_v40, %v2216_v9  ;;  %v2220_v42 = vsel %vm12194_vm5, %v2148_v13, %v2219_v16  ;;  %v2120_v19 = vpack.c.bf16 %v2112_v17, %v2112_v17  ;;  %v2427_v21 = vld [vmem:[#allocation2 + $0x14] sm:$0x1]  ;;  %v1663_v40 = vpop.f32.mrf.mxu2 }
 0x220   : > { %v2460_v34 = vrot.slane %v2459_v50, 4  ;;  %2221 = vst [vmem:[#allocation2 + $0x1c] sm:$0x1] %v2220_v42  ;;  %v2630_v55 = vld [vmem:[#allocation2 + $0x10] sm:$0xe]  ;;  %v2662_v6 = vrot.slane %v2427_v21, 5  ;;  %v1972_v9 = vadd.f32 %v1959_v2, %v1766_v29  ;;  %v1539_v16 = vadd.f32 %v12631_v23, %v1333_v54 }
 0x221   : > { %10631 = vmatmul.msk.bf16.vlgmr.msrb.gmra.mxu1 %vm771_vm6, %v2697_v37  ;;  %2218 = vst [vmem:[#allocation2 + $0x18] sm:$0xf] %v2217_v63  ;;  %v2150_v10 = vshrl.u32 %v2120_v19, 16  ;;  %v2352_v56 = vunpack.c.l.b16 %v2120_v19  ;;  %v2426_v28 = vld [vmem:[#allocation2 + $0x10] sm:$0xf]  ;;  %v2153_v1 = vshll.u32 %v2120_v19, 16  ;;  %v1767_v37 = vadd.f32 %v1756_v41, %v1672_v48  ;;  %v1962_v19 = vpop.f32.mrf.mxu0 }
 0x222   : > { %v2465_v39 = vsel %vm12301_vm9, %v2460_v34, %v2464_v45  ;;  %v2091_v27 = vpop.f32.mrf.mxu1  ;;  %v2467_v58 = vshrl.u32 %v2426_v28, 16  ;;  %v2470_v30 = vshll.u32 %v2426_v28, 16  ;;  %v10613_v36 = vrot.slane %v2630_v55, 9  ;;  %v10561_v7 = vld [vmem:[#allocation2 + $0x10] sm:$0xf] }
 0x223   : > { %v2556_v62 = vunpack.c.l.b16 %v2465_v39  ;;  %v2152_v24 = vrot.slane %v2150_v10, 7  ;;  %v2105_v15 = vadd.f32 %v2091_v27, %v1971_v18  ;;  %v2358_v53 = vpack.c.b16 %v2352_v56, %v2351_v49  ;;  %v2228_v55 = vld [vmem:[#allocation2 + $0x28] sm:$0xf]  ;;  %v2231_v2 = vld [vmem:[#allocation2 + $0x2c] sm:$0x1] }
 0x224   : > { %v2469_v4 = vrot.slane %v2467_v58, 4  ;;  %v2472_v3 = vrot.slane %v2470_v30, 5  ;;  %v2476_v8 = vshll.u32 %v2427_v21, 16  ;;  %v2663_v50 = vsel %vm12315_vm12, %v10613_v36, %v2662_v6  ;;  %v1758_v27 = vpop.f32.mrf.mxu3 }
 0x225   : > { %v2563_v59 = vpack.c.b16 %v2556_v62, %v2555_v35  ;;  %v2155_v46 = vor.u32 %v2153_v1, %v2152_v24  ;;  %v2156_v52 = vrot.slane %v2152_v24, 4  ;;  %v2113_v61 = vmax.f32 %v2105_v15, 0.0  ;;  %2363 = vrot.lane.b32.xlu2 %v2358_v53, %s11943_s26 }
 0x226   : > { %v2473_v20 = vor.u32 %v2472_v3, %v2469_v4  ;;  %v1673_v35 = vadd.f32 %v1663_v40, %v1539_v16  ;;  %v2691_v39 = vunpack.c.l.b16 %v2663_v50  ;;  %v2478_v49 = vrot.slane %v2476_v8, 5 }
 0x227   : > { %10607 = vmatmul.msk.bf16.vlgmr.msrb.gmra.mxu0 %vm771_vm6, %v2563_v59  ;;  %v2223_v47 = vsel %vm12184_vm4, %v2155_v46, %v2222_v31  ;;  %v2226_v5 = vsel %vm12194_vm5, %v2156_v52, %v2225_v32  ;;  %v12705_v11 = vpack.c.bf16 %v2113_v61, %v2113_v61  ;;  %v2429_v26 = vld [vmem:[#allocation2 + $0x1c] sm:$0x1]  ;;  %v1973_v41 = vadd.f32 %v1962_v19, %v1767_v37 }
 0x228   : > { %2227 = vst [vmem:[#allocation2 + $0x24] sm:$0x1] %v2226_v5  ;;  %v11453_v60 = vld [vmem:[#allocation2 + $0x14] sm:$0xf0]  ;;  %v2666_v63 = vrot.slane %v2429_v26, 5  ;;  %v2474_v23 = vrot.slane %v2473_v20, 4  ;;  %v1768_v59 = vadd.f32 %v1758_v27, %v1673_v35 }
 0x229   : > { %v2631_v12 = vld [vmem:[#allocation2 + $0x18] sm:$0xe]  ;;  %2224 = vst [vmem:[#allocation2 + $0x20] sm:$0xf] %v2223_v47  ;;  %v2158_v13 = vshrl.u32 %v12705_v11, 16  ;;  %v10562_v17 = vor.u32 %v11453_v60, %v10561_v7  ;;  %v2161_v45 = vshll.u32 %v12705_v11, 16  ;;  %v2353_v4 = vunpack.c.l.b16 %v12705_v11 }
 0x22a   : > { %v10614_v43 = vrot.slane %v2631_v12, 9  ;;  %v2093_v57 = vpop.f32.mrf.mxu1  ;;  %v2428_v42 = vld [vmem:[#allocation2 + $0x18] sm:$0xf]  ;;  %v2479_v62 = vsel %vm12301_vm9, %v2474_v23, %v2478_v49  ;;  %v2490_v24 = vshll.u32 %v2429_v26, 16  ;;  %v2234_v26 = vld [vmem:[#allocation2 + $0x30] sm:$0xf] }
 0x22b   : > { %v2160_v34 = vrot.slane %v2158_v13, 7  ;;  %v2106_v14 = vadd.f32 %v2093_v57, %v1972_v9  ;;  %10580 = vmatmul.msk.bf16.gmra.mxu2 %vm771_vm6, %v10562_v17  ;;  %v2481_v18 = vshrl.u32 %v2428_v42, 16  ;;  %v2484_v51 = vshll.u32 %v2428_v42, 16  ;;  %v11467_v61 = vld [vmem:[%s15377_s5 + $0x38] sm:$0xff]  ;;  %v2237_v60 = vld [vmem:[#allocation2 + $0x34] sm:$0x1]  ;;  %v1964_v13 = vpop.f32.mrf.mxu0 }
 0x22c   : > { %v2667_v10 = vsel %vm12315_vm12, %v10614_v43, %v2666_v63  ;;  %v2492_v3 = vrot.slane %v2490_v24, 5  ;;  %v2557_v47 = vunpack.c.l.b16 %v2479_v62  ;;  %2825 = vmatpush.bf16.msra.mxu2 %v11467_v61  ;;  %v11451_v49 = vld [vmem:[#allocation9 + $0x8] sm:$0xff]  ;;  %v11466_v62 = vld [vmem:[%s15377_s5 + $0x30] sm:$0xff] }
 0x22d   : > { %v2163_v56 = vor.u32 %v2161_v45, %v2160_v34  ;;  %v2164_v28 = vrot.slane %v2160_v34, 4  ;;  %v2114_v38 = vmax.f32 %v2106_v14, 0.0  ;;  %v2692_v1 = vunpack.c.l.b16 %v2667_v10  ;;  %2399 = vmatpush.bf16.msra.mxu3 %v11451_v49 }
 0x22e   : > { %v2483_v21 = vrot.slane %v2481_v18, 4  ;;  %v2486_v58 = vrot.slane %v2484_v51, 5  ;;  %v1974_v18 = vadd.f32 %v1964_v13, %v1768_v59 }
 0x22f   : > { %v2229_v15 = vsel %vm12184_vm4, %v2163_v56, %v2228_v55  ;;  %v2232_v53 = vsel %vm12194_vm5, %v2164_v28, %v2231_v2  ;;  %v2122_v30 = vpack.c.bf16 %v2114_v38, %v2114_v38  ;;  %v2698_v29 = vpack.c.b16 %v2692_v1, %v2691_v39  ;;  %v12721_v32 = vld [vmem:[#allocation2 + $0x24] sm:$0x1] }
 0x230   : > { %2233 = vst [vmem:[#allocation2 + $0x2c] sm:$0x1] %v2232_v53  ;;  %v2487_v31 = vor.u32 %v2486_v58, %v2483_v21  ;;  %v2632_v52 = vld [vmem:[#allocation2 + $0x20] sm:$0xe]  ;;  %v2670_v20 = vrot.slane %v12721_v32, 5  ;;  %v11477_v53 = vld [vmem:[%s15377_s5 + $0x68] sm:$0xff]  ;;  %2826 = vmatpush.bf16.msra.mxu2 %v11466_v62 }
 0x231   : > { %2230 = vst [vmem:[#allocation2 + $0x28] sm:$0xf] %v2229_v15  ;;  %v2166_v36 = vshrl.u32 %v2122_v30, 16  ;;  %10632 = vmatmul.msk.bf16.gmra.mxu1 %vm771_vm6, %v2698_v29  ;;  %v2354_v46 = vunpack.c.l.b16 %v2122_v30  ;;  %v2169_v6 = vshll.u32 %v2122_v30, 16  ;;  %v2430_v5 = vld [vmem:[#allocation2 + $0x20] sm:$0xf] }
 0x232   : > { %v2096_v54 = vpop.f32.mrf.mxu1  ;;  %v2488_v48 = vrot.slane %v2487_v31, 4  ;;  %v2495_v16 = vshrl.u32 %v2430_v5, 16  ;;  %v10615_v12 = vrot.slane %v2632_v52, 9  ;;  %v2498_v40 = vshll.u32 %v2430_v5, 16  ;;  %v10565_v34 = vld [vmem:[#allocation2 + $0x20] sm:$0xf]  ;;  %3259 = vmatpush.bf16.msra.mxu1 %v11477_v53 }
 0x233   : > { %v2168_v7 = vrot.slane %v2166_v36, 7  ;;  %v2107_v8 = vadd.f32 %v2096_v54, %v1973_v41  ;;  %v2359_v9 = vpack.c.b16 %v2354_v46, %v2353_v4  ;;  %v11471_v30 = vld [vmem:[%s15377_s5 + $0x58] sm:$0xff]  ;;  %v2504_v36 = vshll.u32 %v12721_v32, 16 }
 0x234   : > { %v2493_v11 = vsel %vm12301_vm9, %v2488_v48, %v2492_v3  ;;  %v2497_v45 = vrot.slane %v2495_v16, 4  ;;  %v2500_v57 = vrot.slane %v2498_v40, 5  ;;  %v2671_v10 = vsel %vm12315_vm12, %v10615_v12, %v2670_v20  ;;  %v2240_v29 = vld [vmem:[#allocation2 + $0x38] sm:$0xf]  ;;  %v2243_v41 = vld [vmem:[#allocation2 + $0x3c] sm:$0x1]  ;;  %3165 = vmatpush.bf16.msra.mxu0 %v11471_v30 }
 0x235   : > { %v2171_v17 = vor.u32 %v2169_v6, %v2168_v7  ;;  %v2172_v50 = vrot.slane %v2168_v7, 4  ;;  %v2115_v43 = vmax.f32 %v2107_v8, 0.0  ;;  %v2558_v37 = vunpack.c.l.b16 %v2493_v11  ;;  %2365 = vrot.lane.b32.xlu0 %v2359_v9, %s11943_s26  ;;  %v11470_v40 = vld [vmem:[%s15377_s5 + $0x50] sm:$0xff] }
 0x236   : > { %v2501_v27 = vor.u32 %v2500_v57, %v2497_v45  ;;  %v2693_v59 = vunpack.c.l.b16 %v2671_v10  ;;  %v2506_v8 = vrot.slane %v2504_v36, 5 }
 0x237   : > { %v2235_v63 = vsel %vm12184_vm4, %v2171_v17, %v2234_v26  ;;  %v2238_v42 = vsel %vm12194_vm5, %v2172_v50, %v2237_v60  ;;  %v12736_v23 = vpack.c.bf16 %v2115_v43, %v2115_v43  ;;  %v2564_v19 = vpack.c.b16 %v2558_v37, %v2557_v47  ;;  %v2433_v14 = vld [vmem:[#allocation2 + $0x2c] sm:$0x1]  ;;  %v11476_v47 = vld [vmem:[%s15377_s5 + $0x60] sm:$0xff] }
 0x238   : > { %2239 = vst [vmem:[#allocation2 + $0x34] sm:$0x1] %v2238_v42  ;;  %v11454_v51 = vld [vmem:[#allocation2 + $0x24] sm:$0xf0]  ;;  %v2674_v38 = vrot.slane %v2433_v14, 5  ;;  %v2502_v6 = vrot.slane %v2501_v27, 4  ;;  %3260 = vmatpush.bf16.msra.mxu1 %v11476_v47  ;;  %3166 = vmatpush.bf16.msra.mxu0 %v11470_v40 }
 0x239   : > { %v2633_v35 = vld [vmem:[#allocation2 + $0x28] sm:$0xe]  ;;  %2236 = vst [vmem:[#allocation2 + $0x30] sm:$0xf] %v2235_v63  ;;  %v2174_v55 = vshrl.u32 %v12736_v23, 16  ;;  %10608 = vmatmul.msk.bf16.gmra.mxu0 %vm771_vm6, %v2564_v19  ;;  %v10566_v2 = vor.u32 %v11454_v51, %v10565_v34  ;;  %v2177_v56 = vshll.u32 %v12736_v23, 16  ;;  %v2355_v11 = vunpack.c.l.b16 %v12736_v23 }
 0x23a   : > { %v10616_v39 = vrot.slane %v2633_v35, 9  ;;  %v2098_v28 = vpop.f32.mrf.mxu1  ;;  %v2432_v1 = vld [vmem:[#allocation2 + $0x28] sm:$0xf]  ;;  %v2518_v3 = vshll.u32 %v2433_v14, 16  ;;  %v2507_v17 = vsel %vm12301_vm9, %v2502_v6, %v2506_v8  ;;  %v2246_v23 = vld [vmem:[#allocation2 + $0x40] sm:$0xf] }
 0x23b   : > { %v2176_v21 = vrot.slane %v2174_v55, 7  ;;  %v2108_v58 = vadd.f32 %v2098_v28, %v1974_v18  ;;  %10581 = vmatmul.msk.bf16.gmra.mxu2 %vm771_vm6, %v10566_v2  ;;  %v2509_v24 = vshrl.u32 %v2432_v1, 16  ;;  %v2512_v15 = vshll.u32 %v2432_v1, 16  ;;  %v2249_v19 = vld [vmem:[#allocation2 + $0x44] sm:$0x1] }
 0x23c   : > { %v2675_v31 = vsel %vm12315_vm12, %v10616_v39, %v2674_v38  ;;  %v2520_v43 = vrot.slane %v2518_v3, 5  ;;  %v2559_v55 = vunpack.c.l.b16 %v2507_v17  ;;  %v3063_v40 = vld [vmem:[#allocation2 + $0x10] sm:$0xe]  ;;  %v3062_v17 = vld [vmem:[#allocation2 + $0x8] sm:$0xe] }
 0x23d   : > { %v2179_v4 = vor.u32 %v2177_v56, %v2176_v21  ;;  %v2180_v46 = vrot.slane %v2176_v21, 4  ;;  %v2116_v52 = vmax.f32 %v2108_v58, 0.0  ;;  %v2694_v61 = vunpack.c.l.b16 %v2675_v31 }
 0x23e   : > { %v2511_v54 = vrot.slane %v2509_v24, 4  ;;  %v2514_v48 = vrot.slane %v2512_v15, 5 }
 0x23f   : > { %v2241_v5 = vsel %vm12184_vm4, %v2179_v4, %v2240_v29  ;;  %v2244_v32 = vsel %vm12194_vm5, %v2180_v46, %v2243_v41  ;;  %v2124_v7 = vpack.c.bf16 %v2116_v52, %v2116_v52  ;;  %v2699_v26 = vpack.c.b16 %v2694_v61, %v2693_v59  ;;  %v2435_v16 = vld [vmem:[#allocation2 + $0x34] sm:$0x1]  ;;  %v11450_v46 = vld [vmem:[#allocation9] sm:$0xff] }
 0x240   : > { %2245 = vst [vmem:[#allocation2 + $0x3c] sm:$0x1] %v2244_v32  ;;  %v2515_v9 = vor.u32 %v2514_v48, %v2511_v54  ;;  %v2634_v20 = vld [vmem:[#allocation2 + $0x30] sm:$0xe]  ;;  %v2678_v18 = vrot.slane %v2435_v16, 5  ;;  %v2532_v29 = vshll.u32 %v2435_v16, 16  ;;  %2400 = vmatpush.bf16.msra.mxu3 %v11450_v46 }
 0x241   : > { %2242 = vst [vmem:[#allocation2 + $0x38] sm:$0xf] %v2241_v5  ;;  %v2182_v60 = vshrl.u32 %v2124_v7, 16  ;;  %10633 = vmatmul.msk.bf16.gmra.mxu1 %vm771_vm6, %v2699_v26  ;;  %v2356_v12 = vunpack.c.l.b16 %v2124_v7  ;;  %v2185_v13 = vshll.u32 %v2124_v7, 16  ;;  %v2434_v37 = vld [vmem:[#allocation2 + $0x30] sm:$0xf] }
 0x242   : > { %v2516_v50 = vrot.slane %v2515_v9, 4  ;;  %v2523_v63 = vshrl.u32 %v2434_v37, 16  ;;  %v2526_v42 = vshll.u32 %v2434_v37, 16  ;;  %v10617_v14 = vrot.slane %v2634_v20, 9  ;;  %v10569_v38 = vld [vmem:[#allocation2 + $0x30] sm:$0xf] }
 0x243   : > { %v2184_v45 = vrot.slane %v2182_v60, 7  ;;  %v2360_v57 = vpack.c.b16 %v2356_v12, %v2355_v11  ;;  %v2534_v3 = vrot.slane %v2532_v29, 5  ;;  %v11462_v60 = vld [vmem:[#allocation2 + $0xc] sm:$0xf0]  ;;  %v10641_v11 = vld [vmem:[#allocation2 + $0x8] sm:$0xf] }
 0x244   : > { %v2521_v34 = vsel %vm12301_vm9, %v2516_v50, %v2520_v43  ;;  %v2525_v10 = vrot.slane %v2523_v63, 4  ;;  %v2528_v39 = vrot.slane %v2526_v42, 5  ;;  %v2679_v21 = vsel %vm12315_vm12, %v10617_v14, %v2678_v18  ;;  %v12789_v20 = vld [vmem:[#allocation2 + $0x14] sm:$0x1]  ;;  %v11472_v50 = vld [vmem:[#allocation2 + $0x14] sm:$0xf0] }
 0x245   : > { %v2187_v51 = vor.u32 %v2185_v13, %v2184_v45  ;;  %v2188_v35 = vrot.slane %v2184_v45, 4  ;;  %v2560_v2 = vunpack.c.l.b16 %v2521_v34  ;;  %2367 = vrot.lane.b32.xlu1 %v2360_v57, %s11943_s26  ;;  %v2695_v36 = vunpack.c.l.b16 %v2679_v21  ;;  %v12792_v13 = vld [vmem:[#allocation2 + $0xc] sm:$0x1]  ;;  %v10713_v45 = vld [vmem:[#allocation2 + $0x10] sm:$0xf]  ;;  %s10185_s26 = scalar_lea.hbm %s15383_s11, %s11564_s23 }
 0x246   : > { %v2529_v58 = vor.u32 %v2528_v39, %v2525_v10  ;;  %v10642_v12 = vor.u32 %v11462_v60, %v10641_v11  ;;  %v10684_v43 = vrot.slane %v3063_v40, 9  ;;  %v3092_v37 = vrot.slane %v12789_v20, 5  ;;  %v11463_v18 = vld [vmem:[#allocation2 + $0x1c] sm:$0xf0]  ;;  %v12805_v39 = vld [vmem:[#allocation2 + $0x1c] sm:$0x1] }
 0x247   : > { %v2247_v49 = vsel %vm12184_vm4, %v2187_v51, %v2246_v23  ;;  %v2250_v56 = vsel %vm12194_vm5, %v2188_v35, %v2249_v19  ;;  %v2565_v28 = vpack.c.b16 %v2560_v2, %v2559_v55  ;;  %v2437_v1 = vld [vmem:[#allocation2 + $0x3c] sm:$0x1]  ;;  %v10683_v57 = vrot.slane %v3062_v17, 9  ;;  %v10645_v35 = vld [vmem:[#allocation2 + $0x18] sm:$0xf] }
 0x248   : > { %2251 = vst [vmem:[#allocation2 + $0x44] sm:$0x1] %v2250_v56  ;;  %v11455_v27 = vld [vmem:[#allocation2 + $0x34] sm:$0xf0]  ;;  %v2682_v53 = vrot.slane %v2437_v1, 5  ;;  %v2530_v4 = vrot.slane %v2529_v58, 4  ;;  %v10714_v42 = vor.u32 %v11472_v50, %v10713_v45  ;;  %v3093_v23 = vsel %vm12315_vm12, %v10684_v43, %v3092_v37 }
 0x249   : > { %v2635_v62 = vld [vmem:[#allocation2 + $0x38] sm:$0xe]  ;;  %2248 = vst [vmem:[#allocation2 + $0x40] sm:$0xf] %v2247_v49  ;;  %10609 = vmatmul.msk.bf16.gmra.mxu0 %vm771_vm6, %v2565_v28  ;;  %v10570_v24 = vor.u32 %v11455_v27, %v10569_v38  ;;  %v2546_v54 = vshll.u32 %v2437_v1, 16  ;;  %v3088_v63 = vrot.slane %v12792_v13, 5  ;;  %v3124_v34 = vunpack.c.l.b16 %v3093_v23 }
 0x24a   : > { %v10618_v15 = vrot.slane %v2635_v62, 9  ;;  %v2436_v30 = vld [vmem:[#allocation2 + $0x38] sm:$0xf]  ;;  %v2535_v5 = vsel %vm12301_vm9, %v2530_v4, %v2534_v3  ;;  %v10646_v55 = vor.u32 %v11463_v18, %v10645_v35  ;;  %v12802_v2 = vld [vmem:[#allocation2 + $0x24] sm:$0x1]  ;;  %v3096_v62 = vrot.slane %v12805_v39, 5 }
 0x24b   : > { %v2537_v41 = vshrl.u32 %v2436_v30, 16  ;;  %v2540_v31 = vshll.u32 %v2436_v30, 16  ;;  %10582 = vmatmul.msk.bf16.gmra.mxu2 %vm771_vm6, %v10570_v24  ;;  %v2548_v7 = vrot.slane %v2546_v54, 5  ;;  %v2561_v8 = vunpack.c.l.b16 %v2535_v5  ;;  %v3065_v10 = vld [vmem:[#allocation2 + $0x20] sm:$0xe] }
 0x24c   : > { %v2683_v59 = vsel %vm12315_vm12, %v10618_v15, %v2682_v53  ;;  %v3089_v19 = vsel %vm12315_vm12, %v10683_v57, %v3088_v63  ;;  %v3064_v49 = vld [vmem:[#allocation2 + $0x18] sm:$0xe]  ;;  %v11473_v56 = vld [vmem:[#allocation2 + $0x24] sm:$0xf0]  ;;  %v10686_v28 = vrot.slane %v3065_v10, 9  ;;  %v3100_v38 = vrot.slane %v12802_v2, 5 }
 0x24d   : > { %v2696_v52 = vunpack.c.l.b16 %v2683_v59  ;;  %v2539_v61 = vrot.slane %v2537_v41, 4  ;;  %v2542_v6 = vrot.slane %v2540_v31, 5  ;;  %v3123_v14 = vunpack.c.l.b16 %v3089_v19  ;;  %v10717_v1 = vld [vmem:[#allocation2 + $0x20] sm:$0xf]  ;;  %v11479_v15 = vld [vmem:[%s15377_s5 + $0x78] sm:$0xff] }
 0x24e   : > { %v10685_v27 = vrot.slane %v3064_v49, 9  ;;  %v10718_v58 = vor.u32 %v11473_v56, %v10717_v1  ;;  %v3101_v24 = vsel %vm12315_vm12, %v10686_v28, %v3100_v38  ;;  %3465 = vmatpush.bf16.msrb.mxu2 %v11479_v15  ;;  %v11464_v41 = vld [vmem:[#allocation2 + $0x2c] sm:$0xf0]  ;;  %v10649_v59 = vld [vmem:[#allocation2 + $0x28] sm:$0xf] }
 0x24f   : > { %v2700_v48 = vpack.c.b16 %v2696_v52, %v2695_v36  ;;  %v2543_v47 = vor.u32 %v2542_v6, %v2539_v61  ;;  %v3131_v51 = vpack.c.b16 %v3124_v34, %v3123_v14  ;;  %v3126_v30 = vunpack.c.l.b16 %v3101_v24  ;;  %v12818_v36 = vld [vmem:[#allocation2 + $0x34] sm:$0x1]  ;;  %v3067_v46 = vld [vmem:[#allocation2 + $0x30] sm:$0xe]  ;;  %v11469_v52 = vld [vmem:[%s15377_s5 + $0x48] sm:$0xff] }
 0x250   : > { %v3097_v53 = vsel %vm12315_vm12, %v10685_v27, %v3096_v62  ;;  %v10650_v4 = vor.u32 %v11464_v41, %v10649_v59  ;;  %v11478_v61 = vld [vmem:[%s15377_s5 + $0x70] sm:$0xff]  ;;  %v12828_v6 = vld [vmem:[#allocation2 + $0x2c] sm:$0x1]  ;;  %v3066_v54 = vld [vmem:[#allocation2 + $0x28] sm:$0xe]  ;;  %3031 = vmatpush.bf16.msrb.mxu3 %v11469_v52  ;;  %v10688_v3 = vrot.slane %v3067_v46, 9 }
 0x251   : > { %v2544_v32 = vrot.slane %v2543_v47, 4  ;;  %10634 = vmatmul.msk.bf16.gmra.mxu1 %vm771_vm6, %v2700_v48  ;;  %v3125_v29 = vunpack.c.l.b16 %v3097_v53  ;;  %v11474_v48 = vld [vmem:[#allocation2 + $0x34] sm:$0xf0]  ;;  %v3108_v47 = vrot.slane %v12818_v36, 5  ;;  %v10721_v5 = vld [vmem:[#allocation2 + $0x30] sm:$0xf] }
 0x252   : > { %3466 = vmatpush.bf16.msrb.mxu2 %v11478_v61  ;;  %v3290_v60 = vld [vmem:[#allocation2 + $0x10] sm:$0xf]  ;;  %v11465_v45 = vld [vmem:[#allocation2 + $0x3c] sm:$0xf0]  ;;  %v10653_v23 = vld [vmem:[#allocation2 + $0x38] sm:$0xf] }
 0x253   : > { %v2549_v26 = vsel %vm12301_vm9, %v2544_v32, %v2548_v7  ;;  %v3132_v31 = vpack.c.b16 %v3126_v30, %v3125_v29  ;;  %v10687_v32 = vrot.slane %v3066_v54, 9  ;;  %v3104_v7 = vrot.slane %v12828_v6, 5  ;;  %v12839_v18 = vld [vmem:[#allocation2 + $0x44] sm:$0x1]  ;;  %v12841_v35 = vld [vmem:[#allocation2 + $0x1c] sm:$0x1] }
 0x254   : > { %v2562_v9 = vunpack.c.l.b16 %v2549_v26  ;;  %v3307_v50 = vshrl.u32 %v3290_v60, 16  ;;  %v3310_v43 = vshll.u32 %v3290_v60, 16  ;;  %v10654_v14 = vor.u32 %v11465_v45, %v10653_v23  ;;  %v3068_v10 = vld [vmem:[#allocation2 + $0x38] sm:$0xe]  ;;  %v11475_v56 = vld [vmem:[#allocation2 + $0x44] sm:$0xf0] }
 0x255   : > { %v3105_v11 = vsel %vm12315_vm12, %v10687_v32, %v3104_v7  ;;  %v12846_v28 = vld [vmem:[#allocation2 + $0x14] sm:$0x1]  ;;  %v10725_v38 = vld [vmem:[#allocation2 + $0x40] sm:$0xf]  ;;  %v3116_v27 = vrot.slane %v12839_v18, 5 }
 0x256   : > { %v2566_v16 = vpack.c.b16 %v2562_v9, %v2561_v8  ;;  %v10722_v8 = vor.u32 %v11474_v48, %v10721_v5  ;;  %v3292_v9 = vld [vmem:[#allocation2 + $0x18] sm:$0xf]  ;;  %v3127_v37 = vunpack.c.l.b16 %v3105_v11  ;;  %v3309_v19 = vrot.slane %v3307_v50, 4  ;;  %v3296_v29 = vld [vmem:[#allocation2 + $0x28] sm:$0xf]  ;;  %v11468_v11 = vld [vmem:[%s15377_s5 + $0x40] sm:$0xff] }
 0x257   : > { %v3324_v40 = vshll.u32 %v3292_v9, 16  ;;  %v3312_v34 = vrot.slane %v3310_v43, 5  ;;  %v3316_v15 = vshll.u32 %v12846_v28, 16  ;;  %v10726_v30 = vor.u32 %v11475_v56, %v10725_v38  ;;  %v3294_v46 = vld [vmem:[#allocation2 + $0x20] sm:$0xf]  ;;  %3032 = vmatpush.bf16.msrb.mxu3 %v11468_v11 }
 0x258   : > { %v3349_v54 = vshrl.u32 %v3296_v29, 16  ;;  %v3352_v48 = vshll.u32 %v3296_v29, 16  ;;  %v3335_v5 = vshrl.u32 %v3294_v46, 16  ;;  %v3338_v32 = vshll.u32 %v3294_v46, 16  ;;  %v12865_v50 = vld [vmem:[#allocation2 + $0x2c] sm:$0x1] }
 0x259   : > { %10610 = vmatmul.msk.bf16.gmra.mxu0 %vm771_vm6, %v2566_v16  ;;  %v3109_v16 = vsel %vm12315_vm12, %v10688_v3, %v3108_v47  ;;  %v3326_v63 = vrot.slane %v3324_v40, 5  ;;  %v3313_v62 = vor.u32 %v3312_v34, %v3309_v19  ;;  %v3318_v52 = vrot.slane %v3316_v15, 5  ;;  %v3300_v23 = vld [vmem:[#allocation2 + $0x38] sm:$0xf] }
 0x25a   : > { %v3128_v17 = vunpack.c.l.b16 %v3109_v16  ;;  %v3340_v40 = vrot.slane %v3338_v32, 5  ;;  %v3302_v32 = vld [vmem:[#allocation2 + $0x40] sm:$0xf] }
 0x25b   : > { %10663 = vmatmul.msk.bf16.vlgmr.msra.gmra.mxu2 %vm771_vm6, %v10642_v12  ;;  %v3321_v12 = vshrl.u32 %v3292_v9, 16  ;;  %v3354_v9 = vrot.slane %v3352_v48, 5  ;;  %v3391_v11 = vshrl.u32 %v3302_v32, 16 }
 0x25d   : > { %v3323_v57 = vrot.slane %v3321_v12, 4  ;;  %v3337_v12 = vrot.slane %v3335_v5, 4 }
 0x25f   : > { %v3327_v49 = vor.u32 %v3326_v63, %v3323_v57  ;;  %v3341_v45 = vor.u32 %v3340_v40, %v3337_v12  ;;  %v3358_v57 = vshll.u32 %v12865_v50, 16  ;;  %v3394_v12 = vshll.u32 %v3302_v32, 16 }
 0x261   : > { %10735 = vmatmul.msk.bf16.vlgmr.msra.gmra.mxu1 %vm771_vm6, %v10714_v42  ;;  %v3133_v42 = vpack.c.b16 %v3128_v17, %v3127_v37  ;;  %v3328_v53 = vrot.slane %v3327_v49, 4  ;;  %v12868_v37 = vld [vmem:[#allocation2 + $0x24] sm:$0x1]  ;;  %v3342_v19 = vrot.slane %v3341_v45, 4  ;;  %v3360_v34 = vrot.slane %v3358_v57, 5 }
 0x262   : > { %v3344_v63 = vshll.u32 %v12868_v37, 16 }
 0x264   : > { %v3346_v49 = vrot.slane %v3344_v63, 5 }
 0x266   : > { %v3347_v38 = vsel %vm12301_vm9, %v3342_v19, %v3346_v49  ;;  %v3393_v19 = vrot.slane %v3391_v11, 4 }
 0x267   : > { %v3425_v15 = vunpack.c.l.b16 %v3347_v38  ;;  %v11481_v38 = vld [vmem:[%s15377_s5 + $0x88] sm:$0xff] }
 0x269   : > { %10703 = vmatmul.msk.bf16.vlgmr.msra.gmra.mxu0 %vm771_vm6, %v3131_v51  ;;  %v3069_v51 = vld [vmem:[#allocation2 + $0x40] sm:$0xe] }
 0x26a   : > { %v10690_v1 = vrot.slane %v3069_v51, 9  ;;  %v3377_v51 = vshrl.u32 %v3300_v23, 16 }
 0x26b   : > { %10664 = vmatmul.msk.bf16.gmra.mxu2 %vm771_vm6, %v10646_v55  ;;  %v12843_v55 = vld [vmem:[#allocation2 + $0x3c] sm:$0x1] }
 0x26c   : > { %v3112_v24 = vrot.slane %v12843_v55, 5  ;;  %v3117_v41 = vsel %vm12315_vm12, %v10690_v1, %v3116_v27 }
 0x26d   : > { %v3130_v3 = vunpack.c.l.b16 %v3117_v41 }
 0x26f   : > { %v2362_v21 = vpop.permute.xlu2 %2361 }
 0x270   : > { %10591 = vmatmul.msk.bf16.vlgmr.msra.gmra.mxu3 %vm771_vm6, %v2362_v21  ;;  %v3330_v21 = vshll.u32 %v12841_v35, 16 }
 0x271   : > { %10736 = vmatmul.msk.bf16.gmra.mxu1 %vm771_vm6, %v10718_v58  ;;  %v10689_v58 = vrot.slane %v3068_v10, 9  ;;  %v3380_v10 = vshll.u32 %v3300_v23, 16  ;;  %3599 = vmatpush.bf16.msra.mxu3 %v11481_v38 }
 0x272   : > { %v3332_v59 = vrot.slane %v3330_v21, 5  ;;  %v3379_v21 = vrot.slane %v3377_v51, 4 }
 0x274   : > { %v3333_v61 = vsel %vm12301_vm9, %v3328_v53, %v3332_v59  ;;  %v12876_v53 = vld [vmem:[#allocation2 + $0x3c] sm:$0x1]  ;;  %v12879_v59 = vld [vmem:[#allocation2 + $0x34] sm:$0x1] }
 0x279   : > { %10704 = vmatmul.msk.bf16.gmra.mxu0 %vm771_vm6, %v3132_v31  ;;  %v3314_v31 = vrot.slane %v3313_v62, 4 }
 0x27b   : > { %10665 = vmatmul.msk.bf16.gmra.mxu2 %vm771_vm6, %v10650_v4  ;;  %v3113_v4 = vsel %vm12315_vm12, %v10689_v58, %v3112_v24  ;;  %v3319_v47 = vsel %vm12301_vm9, %v3314_v31, %v3318_v52  ;;  %v3382_v58 = vrot.slane %v3380_v10, 5  ;;  %v2858_v52 = vld [vmem:[#allocation2 + $0x10] sm:$0xf] }
 0x27c   : > { %v3129_v7 = vunpack.c.l.b16 %v3113_v4  ;;  %v3423_v60 = vunpack.c.l.b16 %v3319_v47  ;;  %v3386_v4 = vshll.u32 %v12876_v53, 16  ;;  %v2887_v47 = vshrl.u32 %v2858_v52, 16 }
 0x27d   : > { %v3383_v31 = vor.u32 %v3382_v58, %v3379_v21  ;;  %v2890_v5 = vshll.u32 %v2858_v52, 16  ;;  %v12897_v21 = vld [vmem:[#allocation2 + $0x44] sm:$0x1]  ;;  %v12899_v58 = vld [vmem:[#allocation2 + $0x4c] sm:$0x1] }
 0x27e   : > { %v3134_v16 = vpack.c.b16 %v3130_v3, %v3129_v7  ;;  %v3388_v48 = vrot.slane %v3386_v4, 5  ;;  %v12884_v3 = vld [vmem:[#allocation2 + $0x8] sm:$0xf]  ;;  %v2862_v4 = vld [vmem:[#allocation2 + $0x20] sm:$0xf] }
 0x27f   : > { %v2364_v26 = vpop.permute.xlu2 %2363  ;;  %v3304_v7 = vld [vmem:[#allocation2 + $0x48] sm:$0xf]  ;;  %v2892_v45 = vrot.slane %v2890_v5, 5  ;;  %v2915_v32 = vshrl.u32 %v2862_v4, 16 }
 0x280   : > { %10592 = vmatmul.msk.bf16.gmra.mxu3 %vm771_vm6, %v2364_v26  ;;  %v3424_v26 = vunpack.c.l.b16 %v3333_v61  ;;  %v3372_v61 = vshll.u32 %v12879_v59, 16  ;;  %v3405_v40 = vshrl.u32 %v3304_v7, 16 }
 0x281   : > { %10737 = vmatmul.msk.bf16.gmra.mxu1 %vm771_vm6, %v10722_v8  ;;  %v3351_v8 = vrot.slane %v3349_v54, 4  ;;  %v3384_v54 = vrot.slane %v3383_v31, 4  ;;  %v3400_v31 = vshll.u32 %v12897_v21, 16 }
 0x282   : > { %v3431_v17 = vpack.c.b16 %v3424_v26, %v3423_v60  ;;  %v2876_v60 = vshll.u32 %v12884_v3, 16 }
 0x283   : > { %v3355_v43 = vor.u32 %v3354_v9, %v3351_v8  ;;  %v3374_v8 = vrot.slane %v3372_v61, 5  ;;  %v3389_v9 = vsel %vm12301_vm9, %v3384_v54, %v3388_v48  ;;  %v2860_v48 = vld [vmem:[#allocation2 + $0x18] sm:$0xf] }
 0x284   : > { %v3428_v63 = vunpack.c.l.b16 %v3389_v9  ;;  %v2878_v23 = vrot.slane %v2876_v60, 5  ;;  %v2904_v9 = vshll.u32 %v2860_v48, 16 }
 0x289   : > { %10705 = vmatmul.msk.bf16.gmra.mxu0 %vm771_vm6, %v3133_v42  ;;  %v3356_v42 = vrot.slane %v3355_v43, 4  ;;  %v2889_v43 = vrot.slane %v2887_v47, 4 }
 0x28b   : > { %10666 = vmatmul.msk.bf16.gmra.mxu2 %vm771_vm6, %v10654_v14  ;;  %v3298_v14 = vld [vmem:[#allocation2 + $0x30] sm:$0xf]  ;;  %v3361_v56 = vsel %vm12301_vm9, %v3356_v42, %v3360_v34  ;;  %v3396_v34 = vrot.slane %v3394_v12, 5  ;;  %v2917_v12 = vrot.slane %v2915_v32, 4  ;;  %v2938_v32 = vshll.u32 %v12828_v6, 16 }
 0x28c   : > { %v3363_v1 = vshrl.u32 %v3298_v14, 16  ;;  %v3366_v27 = vshll.u32 %v3298_v14, 16  ;;  %v3426_v62 = vunpack.c.l.b16 %v3361_v56  ;;  %v3407_v14 = vrot.slane %v3405_v40, 4 }
 0x28d   : > { %v2893_v56 = vor.u32 %v2892_v45, %v2889_v43 }
 0x28e   : > { %v3368_v29 = vrot.slane %v3366_v27, 5  ;;  %v3432_v41 = vpack.c.b16 %v3426_v62, %v3425_v15  ;;  %v2896_v62 = vshll.u32 %v12789_v20, 16 }
 0x290   : > { %v2898_v52 = vrot.slane %v2896_v62, 5 }
 0x291   : > { %10738 = vmatmul.msk.bf16.gmra.mxu1 %vm771_vm6, %v10726_v30  ;;  %v3365_v30 = vrot.slane %v3363_v1, 4 }
 0x293   : > { %v3369_v46 = vor.u32 %v3368_v29, %v3365_v30  ;;  %v3414_v30 = vshll.u32 %v12899_v58, 16  ;;  %v2882_v29 = vshll.u32 %v12792_v13, 16 }
 0x295   : > { %v3370_v26 = vrot.slane %v3369_v46, 4  ;;  %v3416_v54 = vrot.slane %v3414_v30, 5  ;;  %v2884_v47 = vrot.slane %v2882_v29, 5 }
 0x297   : > { %v3375_v57 = vsel %vm12301_vm9, %v3370_v26, %v3374_v8  ;;  %v3402_v26 = vrot.slane %v3400_v31, 5  ;;  %v2901_v8 = vshrl.u32 %v2860_v48, 16  ;;  %v11480_v48 = vld [vmem:[%s15377_s5 + $0x80] sm:$0xff] }
 0x298   : > { %v3427_v49 = vunpack.c.l.b16 %v3375_v57  ;;  %3600 = vmatpush.bf16.msra.mxu3 %v11480_v48 }
 0x299   : > { %10706 = vmatmul.msk.bf16.gmra.mxu0 %vm771_vm6, %v3134_v16  ;;  %v2873_v16 = vshrl.u32 %v12884_v3, 16  ;;  %v2903_v57 = vrot.slane %v2901_v8, 4 }
 0x29a   : > { %v3433_v1 = vpack.c.b16 %v3428_v63, %v3427_v49  ;;  %v2906_v63 = vrot.slane %v2904_v9, 5  ;;  %v2866_v49 = vld [vmem:[#allocation2 + $0x30] sm:$0xf] }
 0x29b   : > { %10751 = vmatmul.msk.bf16.vlgmr.msrb.gmra.mxu2 %vm771_vm6, %v3431_v17  ;;  %v3408_v17 = vshll.u32 %v3304_v7, 16  ;;  %v2875_v42 = vrot.slane %v2873_v16, 4  ;;  %v2918_v7 = vshll.u32 %v2862_v4, 16 }
 0x29d   : > { %v3410_v51 = vrot.slane %v3408_v17, 5  ;;  %v2879_v27 = vor.u32 %v2878_v23, %v2875_v42  ;;  %v2920_v40 = vrot.slane %v2918_v7, 5 }
 0x29f   : > { %v3411_v15 = vor.u32 %v3410_v51, %v3407_v14  ;;  %v2880_v46 = vrot.slane %v2879_v27, 4  ;;  %v2921_v23 = vor.u32 %v2920_v40, %v2917_v12  ;;  %v2924_v14 = vshll.u32 %v12802_v2, 16 }
 0x2a0   : > { %v2910_v51 = vshll.u32 %v12805_v39, 16 }
 0x2a1   : > { %v3412_v61 = vrot.slane %v3411_v15, 4  ;;  %v2885_v13 = vsel %vm12301_vm9, %v2880_v46, %v2884_v47  ;;  %v2926_v38 = vrot.slane %v2924_v14, 5  ;;  %v2946_v15 = vshll.u32 %v2866_v49, 16 }
 0x2a2   : > { %v2989_v17 = vunpack.c.l.b16 %v2885_v13  ;;  %v2912_v27 = vrot.slane %v2910_v51, 5  ;;  %v2870_v13 = vld [vmem:[#allocation2 + $0x40] sm:$0xf] }
 0x2a3   : > { %v3417_v11 = vsel %vm12301_vm9, %v3412_v61, %v3416_v54  ;;  %v2948_v4 = vrot.slane %v2946_v15, 5  ;;  %v2971_v12 = vshrl.u32 %v2870_v13, 16  ;;  %v2974_v40 = vshll.u32 %v2870_v13, 16 }
 0x2a4   : > { %v3430_v45 = vunpack.c.l.b16 %v3417_v11 }
 0x2a5   : > { %v2973_v6 = vrot.slane %v2971_v12, 4 }
 0x2a7   : > { %v2366_v24 = vpop.permute.xlu0 %2365 }
 0x2a8   : > { %10593 = vmatmul.msk.bf16.gmra.mxu3 %vm771_vm6, %v2366_v24  ;;  %v3397_v24 = vor.u32 %v3396_v34, %v3393_v19  ;;  %v2907_v34 = vor.u32 %v2906_v63, %v2903_v57  ;;  %v2976_v57 = vrot.slane %v2974_v40, 5 }
 0x2aa   : > { %v3398_v20 = vrot.slane %v3397_v24, 4  ;;  %v2943_v24 = vshrl.u32 %v2866_v49, 16  ;;  %v2977_v14 = vor.u32 %v2976_v57, %v2973_v6  ;;  %v2966_v49 = vshll.u32 %v12843_v55, 16  ;;  %v3496_v55 = vld [vmem:[#allocation2 + $0x10] sm:$0xe] }
 0x2ab   : > { %10752 = vmatmul.msk.bf16.gmra.mxu2 %vm771_vm6, %v3432_v41  ;;  %v2894_v41 = vrot.slane %v2893_v56, 4  ;;  %v2908_v56 = vrot.slane %v2907_v34, 4  ;;  %v3500_v6 = vld [vmem:[#allocation2 + $0x30] sm:$0xe] }
 0x2ac   : > { %v3403_v60 = vsel %vm12301_vm9, %v3398_v20, %v3402_v26  ;;  %v2945_v39 = vrot.slane %v2943_v24, 4 }
 0x2ad   : > { %v2899_v5 = vsel %vm12301_vm9, %v2894_v41, %v2898_v52  ;;  %v3429_v43 = vunpack.c.l.b16 %v3403_v60  ;;  %v2913_v30 = vsel %vm12301_vm9, %v2908_v56, %v2912_v27  ;;  %v12921_v41 = vpop.f32.mrf.mxu2  ;;  %v2940_v60 = vrot.slane %v2938_v32, 5 }
 0x2ae   : > { %v2990_v16 = vunpack.c.l.b16 %v2899_v5  ;;  %v2991_v46 = vunpack.c.l.b16 %v2913_v30  ;;  %v2949_v54 = vor.u32 %v2948_v4, %v2945_v39  ;;  %v2952_v5 = vshll.u32 %v12818_v36, 16 }
 0x2af   : > { %v3434_v19 = vpack.c.b16 %v3430_v45, %v3429_v43  ;;  %v2978_v56 = vrot.slane %v2977_v14, 4  ;;  %v2968_v27 = vrot.slane %v2966_v49, 5  ;;  %v3526_v4 = vrot.slane %v12841_v35, 5  ;;  %v3498_v35 = vld [vmem:[#allocation2 + $0x20] sm:$0xe] }
 0x2b0   : > { %v2997_v42 = vpack.c.b16 %v2990_v16, %v2989_v17  ;;  %v2950_v7 = vrot.slane %v2949_v54, 4  ;;  %v2954_v9 = vrot.slane %v2952_v5, 5  ;;  %v2868_v16 = vld [vmem:[#allocation2 + $0x38] sm:$0xf] }
 0x2b1   : > { %v2957_v36 = vshrl.u32 %v2868_v16, 16  ;;  %v2960_v43 = vshll.u32 %v2868_v16, 16 }
 0x2b2   : > { %v2955_v11 = vsel %vm12301_vm9, %v2950_v7, %v2954_v9  ;;  %v3499_v7 = vld [vmem:[#allocation2 + $0x28] sm:$0xe]  ;;  %v3530_v9 = vrot.slane %v12868_v37, 5 }
 0x2b3   : > { %v2994_v45 = vunpack.c.l.b16 %v2955_v11  ;;  %v10758_v13 = vrot.slane %v3499_v7, 9 }
 0x2b5   : > { %v12929_v26 = vpop.f32.mrf.mxu2 }
 0x2b7   : > { %v2368_v10 = vpop.permute.xlu1 %2367 }
 0x2b8   : > { %10594 = vmatmul.msk.bf16.gmra.mxu3 %vm771_vm6, %v2368_v10  ;;  %v2922_v10 = vrot.slane %v2921_v23, 4  ;;  %v2962_v23 = vrot.slane %v2960_v43, 5 }
 0x2ba   : > { %v2927_v62 = vsel %vm12301_vm9, %v2922_v10, %v2926_v38  ;;  %v2980_v10 = vshll.u32 %v12839_v18, 16  ;;  %v3497_v18 = vld [vmem:[#allocation2 + $0x18] sm:$0xe] }
 0x2bb   : > { %10753 = vmatmul.msk.bf16.gmra.mxu2 %vm771_vm6, %v3433_v1  ;;  %v2864_v1 = vld [vmem:[#allocation2 + $0x28] sm:$0xf]  ;;  %v2992_v31 = vunpack.c.l.b16 %v2927_v62  ;;  %v10756_v39 = vrot.slane %v3497_v18, 9 }
 0x2bc   : > { %v2929_v29 = vshrl.u32 %v2864_v1, 16  ;;  %v2932_v2 = vshll.u32 %v2864_v1, 16  ;;  %v2982_v1 = vrot.slane %v2980_v10, 5 }
 0x2bd   : > { %v2998_v61 = vpack.c.b16 %v2992_v31, %v2991_v46  ;;  %v10755_v46 = vrot.slane %v3496_v55, 9  ;;  %v3550_v55 = vrot.slane %v12899_v58, 5 }
 0x2be   : > { %v2931_v52 = vrot.slane %v2929_v29, 4  ;;  %v2934_v20 = vrot.slane %v2932_v2, 5  ;;  %v2983_v62 = vsel %vm12301_vm9, %v2978_v56, %v2982_v1 }
 0x2bf   : > { %v2996_v30 = vunpack.c.l.b16 %v2983_v62 }
 0x2c0   : > { %v2935_v47 = vor.u32 %v2934_v20, %v2931_v52  ;;  %v3522_v52 = vrot.slane %v12846_v28, 5  ;;  %v3527_v20 = vsel %vm12315_vm12, %v10756_v39, %v3526_v4  ;;  %v3534_v28 = vrot.slane %v12865_v50, 5  ;;  %v3501_v50 = vld [vmem:[#allocation2 + $0x38] sm:$0xe] }
 0x2c1   : > { %v3558_v54 = vunpack.c.l.b16 %v3527_v20  ;;  %v10760_v57 = vrot.slane %v3501_v50, 9 }
 0x2c2   : > { %v2936_v8 = vrot.slane %v2935_v47, 4  ;;  %v3535_v11 = vsel %vm12315_vm12, %v10758_v13, %v3534_v28 }
 0x2c3   : > { %v3560_v40 = vunpack.c.l.b16 %v3535_v11 }
 0x2c4   : > { %v2941_v17 = vsel %vm12301_vm9, %v2936_v8, %v2940_v60  ;;  %v10757_v8 = vrot.slane %v3498_v35, 9 }
 0x2c5   : > { %v2993_v63 = vunpack.c.l.b16 %v2941_v17  ;;  %v12970_v17 = vpop.f32.mrf.mxu0 }
 0x2c6   : > { %v3531_v12 = vsel %vm12315_vm12, %v10757_v8, %v3530_v9 }
 0x2c7   : > { %v2999_v34 = vpack.c.b16 %v2994_v45, %v2993_v63  ;;  %v3542_v63 = vrot.slane %v12876_v53, 5 }
 0x2c8   : > { %10679 = vmatmul.msk.bf16.vlgmr.msrb.gmra.mxu3 %vm771_vm6, %v2997_v42  ;;  %v2959_v42 = vrot.slane %v2957_v36, 4  ;;  %v3559_v36 = vunpack.c.l.b16 %v3531_v12 }
 0x2ca   : > { %v2963_v51 = vor.u32 %v2962_v23, %v2959_v42  ;;  %v3566_v43 = vpack.c.b16 %v3560_v40, %v3559_v36  ;;  %v12978_v42 = vpop.f32.mrf.mxu1  ;;  %v10759_v23 = vrot.slane %v3500_v6, 9 }
 0x2cb   : > { %10754 = vmatmul.msk.bf16.gmra.mxu2 %vm771_vm6, %v3434_v19  ;;  %v12935_v19 = vpop.f32.mrf.mxu2 }
 0x2cc   : > { %v2964_v38 = vrot.slane %v2963_v51, 4  ;;  %v3543_v51 = vsel %vm12315_vm12, %v10760_v57, %v3542_v63 }
 0x2cd   : > { %v12981_v14 = vpop.f32.mrf.mxu0  ;;  %v3562_v56 = vunpack.c.l.b16 %v3543_v51  ;;  %v11491_v51 = vld [vmem:[#allocation10 + $0x10] sm:$0xff] }
 0x2ce   : > { %v2969_v15 = vsel %vm12301_vm9, %v2964_v38, %v2968_v27  ;;  %4239 = vmatpush.bf16.msrb.mxu3 %v11491_v51 }
 0x2cf   : > { %v2995_v29 = vunpack.c.l.b16 %v2969_v15  ;;  %v3503_v15 = vld [vmem:[#allocation2 + $0x48] sm:$0xe] }
 0x2d0   : > { %v10762_v18 = vrot.slane %v3503_v15, 9 }
 0x2d1   : > { %v3000_v2 = vpack.c.b16 %v2996_v30, %v2995_v29 }
 0x2d2   : > { %v12991_v53 = vpop.f32.mrf.mxu1 }
 0x2d3   : > { %v12942_v24 = vpop.f32.mrf.mxu2 }
 0x2d5   : > { %v12993_v62 = vpop.f32.mrf.mxu0 }
 0x2d8   : > { %10680 = vmatmul.msk.bf16.gmra.mxu3 %vm771_vm6, %v2998_v61  ;;  %v3523_v61 = vsel %vm12315_vm12, %v10755_v46, %v3522_v52  ;;  %v3551_v46 = vsel %vm12315_vm12, %v10762_v18, %v3550_v55 }
 0x2d9   : > { %v3557_v47 = vunpack.c.l.b16 %v3523_v61 }
 0x2da   : > { %v13004_v52 = vpop.f32.mrf.mxu1 }
 0x2db   : > { %v12947_v31 = vpop.f32.mrf.mxu2  ;;  %v3565_v32 = vpack.c.b16 %v3558_v54, %v3557_v47  ;;  %v3564_v54 = vunpack.c.l.b16 %v3551_v46 }
 0x2dd   : > { %v13006_v20 = vpop.f32.mrf.mxu0 }
 0x2e2   : > { %v13011_v58 = vpop.f32.mrf.mxu1 }
 0x2e3   : > { %v12955_v48 = vpop.f32.mrf.mxu2 }
 0x2e5   : > { %v2610_v35 = vpop.f32.mrf.mxu0 }
 0x2e8   : > { %10681 = vmatmul.msk.bf16.gmra.mxu3 %vm771_vm6, %v2999_v34  ;;  %v3538_v34 = vrot.slane %v12879_v59, 5  ;;  %v3502_v59 = vld [vmem:[#allocation2 + $0x40] sm:$0xe] }
 0x2e9   : > { %v10761_v29 = vrot.slane %v3502_v59, 9 }
 0x2ea   : > { %v3539_v10 = vsel %vm12315_vm12, %v10759_v23, %v3538_v34  ;;  %v13019_v8 = vpop.f32.mrf.mxu1  ;;  %v11490_v34 = vld [vmem:[#allocation10 + $0x8] sm:$0xff] }
 0x2eb   : > { %v12962_v16 = vpop.f32.mrf.mxu2  ;;  %v3561_v1 = vunpack.c.l.b16 %v3539_v10  ;;  %4113 = vmatpush.bf16.msra.mxu2 %v11490_v34 }
 0x2ed   : > { %v3567_v27 = vpack.c.b16 %v3562_v56, %v3561_v1  ;;  %v2612_v9 = vpop.f32.mrf.mxu0 }
 0x2f2   : > { %v13023_v40 = vpop.f32.mrf.mxu1 }
 0x2f3   : > { %v12957_v5 = vpop.f32.mrf.mxu3  ;;  %v12972_v45 = vpop.f32.mrf.mxu2 }
 0x2f5   : > { %v13025_v36 = vpop.f32.mrf.mxu0 }
 0x2f8   : > { %10682 = vmatmul.msk.bf16.gmra.mxu3 %vm771_vm6, %v3000_v2  ;;  %v3546_v2 = vrot.slane %v12897_v21, 5 }
 0x2fa   : > { %v3547_v4 = vsel %vm12315_vm12, %v10761_v29, %v3546_v2  ;;  %v13029_v6 = vpop.f32.mrf.mxu1  ;;  %v2403_v2 = vadd.f32 %v12957_v5, %v12921_v41 }
 0x2fb   : > { %v12964_v60 = vpop.f32.mrf.mxu3  ;;  %v12987_v49 = vpop.f32.mrf.mxu2  ;;  %v3563_v61 = vunpack.c.l.b16 %v3547_v4 }
 0x2fc   : > { %v2620_v4 = vadd.f32 %v12970_v17, %v2403_v2 }
 0x2fd   : > { %v3568_v21 = vpack.c.b16 %v3564_v54, %v3563_v61  ;;  %v13031_v57 = vpop.f32.mrf.mxu0  ;;  %v2405_v54 = vadd.f32 %v12964_v60, %v12929_v26 }
 0x2ff   : > { %v2621_v51 = vadd.f32 %v12981_v14, %v2405_v54 }
 0x301   : > { %v2755_v17 = vadd.f32 %v12991_v53, %v2621_v51 }
 0x302   : > { %v13035_v10 = vpop.f32.mrf.mxu1 }
 0x303   : > { %v12975_v37 = vpop.f32.mrf.mxu3  ;;  %v2830_v39 = vpop.f32.mrf.mxu2  ;;  %15413 = vst [vmem:[#allocation20_spill] sm:$0xff] %v13035_v10 }
 0x304   : > { %v2408_v5 = vadd.f32 %v12975_v37, %v12935_v19 }
 0x305   : > { %v3168_v1 = vpop.f32.mrf.mxu0 }
 0x306   : > { %v2622_v60 = vadd.f32 %v12993_v62, %v2408_v5 }
 0x308   : > { %10775 = vmatmul.msk.bf16.vlgmr.msra.gmra.mxu3 %vm771_vm6, %v3565_v32  ;;  %v2756_v53 = vadd.f32 %v13004_v52, %v2622_v60 }
 0x30a   : > { %v3262_v15 = vpop.f32.mrf.mxu1 }
 0x30b   : > { %v12989_v38 = vpop.f32.mrf.mxu3  ;;  %v13008_v32 = vpop.f32.mrf.mxu2 }
 0x30d   : > { %v3170_v29 = vpop.f32.mrf.mxu0 }
 0x312   : > { %v3264_v46 = vpop.f32.mrf.mxu1 }
 0x313   : > { %v13015_v13 = vpop.f32.mrf.mxu2 }
 0x315   : > { %v3173_v61 = vpop.f32.mrf.mxu0 }
 0x318   : > { %10776 = vmatmul.msk.bf16.gmra.mxu3 %vm771_vm6, %v3566_v43 }
 0x31a   : > { %v3267_v41 = vpop.f32.mrf.mxu1 }
 0x31b   : > { %v13021_v11 = vpop.f32.mrf.mxu2 }
 0x31d   : > { %v13056_v2 = vpop.f32.mrf.mxu0 }
 0x323   : > { %v13027_v50 = vpop.f32.mrf.mxu2 }
 0x328   : > { %10777 = vmatmul.msk.bf16.gmra.mxu3 %vm771_vm6, %v3567_v27 }
 0x32b   : > { %v12996_v30 = vpop.f32.mrf.mxu3  ;;  %v13033_v23 = vpop.f32.mrf.mxu2 }
 0x32c   : > { %v2413_v19 = vadd.f32 %v12996_v30, %v12947_v31  ;;  %v11668_v30 = vld [vmem:[%s12152_s13] sm:$0xff] }
 0x333   : > { %v2414_v47 = vpop.f32.mrf.mxu3  ;;  %v13039_v27 = vpop.f32.mrf.mxu2 }
 0x334   : > { %15414 = vst [vmem:[#allocation21_spill] sm:$0xff] %v13039_v27  ;;  %v2415_v37 = vadd.f32 %v2414_v47, %v12955_v48 }
 0x338   : > { %10778 = vmatmul.msk.bf16.gmra.mxu3 %vm771_vm6, %v3568_v21  ;;  %v2754_v21 = vadd.f32 %v12978_v42, %v2620_v4  ;;  %v2849_v42 = vadd.f32 %v2830_v39, %v2755_v17  ;;  %v11489_v39 = vld [vmem:[#allocation10] sm:$0xff] }
 0x339   : > { %3835 = vmatpush.bf16.msrb.mxu0 %v11489_v39 }
 0x33a   : > { %v2848_v27 = vadd.f32 %v12987_v49, %v2754_v21  ;;  %v2410_v49 = vadd.f32 %v12989_v38, %v12942_v24  ;;  %v2850_v24 = vadd.f32 %v13008_v32, %v2756_v53 }
 0x33b   : > { %v13013_v7 = vpop.f32.mrf.mxu3  ;;  %v3468_v18 = vpop.f32.mrf.mxu2 }
 0x33c   : > { %v2418_v31 = vadd.f32 %v13013_v7, %v12962_v16 }
 0x33e   : > { %v2626_v32 = vadd.f32 %v13025_v36, %v2418_v31 }
 0x343   : > { %v13017_v28 = vpop.f32.mrf.mxu3  ;;  %v3470_v0 = vpop.f32.mrf.mxu2 }
 0x34b   : > { %v3034_v12 = vpop.f32.mrf.mxu3  ;;  %v13061_v4 = vpop.f32.mrf.mxu2 }
 0x34c   : > { %v3054_v10 = vadd.f32 %v3034_v12, %v2848_v27  ;;  %v13069_v12 = vpop.f32.mrf.mxu1 }
 0x34e   : > { %v3188_v22 = vadd.f32 %v3168_v1, %v3054_v10  ;;  %v2623_v1 = vadd.f32 %v13006_v20, %v2410_v49 }
 0x350   : > { %v3282_v54 = vadd.f32 %v3262_v15, %v3188_v22  ;;  %v2625_v22 = vadd.f32 %v2612_v9, %v2415_v37  ;;  %v3178_v15 = vpop.f32.mrf.mxu0 }
 0x352   : > { %v3488_v62 = vadd.f32 %v3468_v18, %v3282_v54  ;;  %v2759_v20 = vadd.f32 %v13023_v40, %v2625_v22  ;;  %v11669_v54 = vld [vmem:[%s12152_s13 + $0x8] sm:$0xff] }
 0x353   : > { %v3036_v43 = vpop.f32.mrf.mxu3 }
 0x354   : > { %v3055_v14 = vadd.f32 %v3036_v43, %v2849_v42  ;;  %v2624_v43 = vadd.f32 %v2610_v35, %v2413_v19  ;;  %v13079_v35 = vpop.f32.mrf.mxu2  ;;  %v2420_v19 = vadd.f32 %v13017_v28, %v12972_v45 }
 0x356   : > { %v3189_v10 = vadd.f32 %v3170_v29, %v3055_v14  ;;  %v2757_v29 = vadd.f32 %v13011_v58, %v2623_v1  ;;  %v2758_v18 = vadd.f32 %v13019_v8, %v2624_v43  ;;  %v3945_v43 = vld [vmem:[#allocation2] sm:$0xf] }
 0x358   : > { %v3283_v47 = vadd.f32 %v3264_v46, %v3189_v10  ;;  %v2851_v16 = vadd.f32 %v13015_v13, %v2757_v29  ;;  %v2852_v7 = vadd.f32 %v13021_v11, %v2758_v18  ;;  %v13085_v46 = vpop.f32.mrf.mxu1  ;;  %v3180_v42 = vpop.f32.mrf.mxu0 }
 0x35a   : > { %v3489_v5 = vadd.f32 %v3470_v0, %v3283_v47  ;;  %v2760_v0 = vadd.f32 %v13029_v6, %v2626_v32  ;;  %v4143_v6 = vld [vmem:[#allocation2] sm:$0xe]  ;;  %v11670_v32 = vld [vmem:[%s12152_s13 + $0x10] sm:$0xff] }
 0x35b   : > { %v3039_v63 = vpop.f32.mrf.mxu3 }
 0x35c   : > { %v3056_v48 = vadd.f32 %v3039_v63, %v2850_v24  ;;  %v2853_v63 = vadd.f32 %v13027_v50, %v2759_v20  ;;  %v3728_v50 = vld [vmem:[#allocation2 + $0xc] sm:$0x1]  ;;  %v13102_v39 = vpop.f32.mrf.mxu2 }
 0x35e   : > { %v3190_v21 = vadd.f32 %v3173_v61, %v3056_v48 }
 0x360   : > { %v3284_v49 = vadd.f32 %v3267_v41, %v3190_v21  ;;  %v2854_v41 = vadd.f32 %v13033_v23, %v2760_v0  ;;  %v3274_v29 = vpop.f32.mrf.mxu1 }
 0x363   : > { %v13037_v56 = vpop.f32.mrf.mxu3 }
 0x364   : > { %v3057_v60 = vadd.f32 %v13037_v56, %v2851_v16  ;;  %v10781_v16 = vld [vmem:[#allocation2] sm:$0xf] }
 0x366   : > { %v3191_v53 = vadd.f32 %v13056_v2, %v3057_v60  ;;  %v3962_v2 = vshrl.u32 %v3945_v43, 16 }
 0x368   : > { %v3964_v47 = vrot.slane %v3962_v2, 4 }
 0x36b   : > { %v13041_v59 = vpop.f32.mrf.mxu3 }
 0x36c   : > { %v3058_v36 = vadd.f32 %v13041_v59, %v2852_v7 }
 0x36e   : > { %v3192_v10 = vadd.f32 %v3178_v15, %v3058_v36  ;;  %v3965_v15 = vshll.u32 %v3945_v43, 16 }
 0x370   : > { %v3286_v0 = vadd.f32 %v13085_v46, %v3192_v10 }
 0x373   : > { %v3046_v55 = vpop.f32.mrf.mxu3 }
 0x374   : > { %v3059_v61 = vadd.f32 %v3046_v55, %v2853_v63  ;;  %v13098_v55 = vld [vmem:[#allocation2 + $0x4] sm:$0x1]  ;;  %v3183_v63 = vpop.f32.mrf.mxu0 }
 0x375   : > { %v4169_v24 = vrot.slane %v13098_v55, 5  ;;  %v3971_v7 = vshll.u32 %v13098_v55, 16 }
 0x37b   : > { %v13049_v34 = vpop.f32.mrf.mxu3 }
 0x383   : > { %v13058_v26 = vpop.f32.mrf.mxu3 }
 0x38b   : > { %v3602_v27 = vpop.f32.mrf.mxu3 }
 0x38c   : > { %v3622_v38 = vadd.f32 %v3602_v27, %v3488_v62  ;;  %v3193_v62 = vadd.f32 %v3180_v42, %v3059_v61  ;;  %v10827_v27 = vrot.slane %v4143_v6, 9 }
 0x38e   : > { %v3630_v52 = vadd.f32 %v11668_v30, %v3622_v38  ;;  %v3060_v30 = vadd.f32 %v13049_v34, %v2854_v41  ;;  %v4170_v34 = vsel %vm12315_vm12, %v10827_v27, %v4169_v24  ;;  %v3287_v42 = vadd.f32 %v3274_v29, %v3193_v62  ;;  %v3737_v27 = vld [vmem:[#allocation2 + $0x18] sm:$0xf]  ;;  %v3740_v24 = vld [vmem:[#allocation2 + $0x1c] sm:$0x1] }
 0x38f   : > { %v3492_v62 = vadd.f32 %v13102_v39, %v3286_v0  ;;  %v3746_v0 = vld [vmem:[#allocation2 + $0x24] sm:$0x1] }
 0x390   : > { %v3638_v9 = vpack.c.bf16 %v3630_v52, %v3630_v52  ;;  %v3285_v52 = vadd.f32 %v13069_v12, %v3191_v53 }
 0x392   : > { %v3647_v51 = vshrl.u32 %v3638_v9, 16  ;;  %v3650_v40 = vshll.u32 %v3638_v9, 16  ;;  %v3865_v28 = vunpack.c.l.b16 %v3638_v9  ;;  %v3731_v9 = vld [vmem:[#allocation2 + $0x10] sm:$0xf]  ;;  %v3491_v60 = vadd.f32 %v13079_v35, %v3285_v52  ;;  %v3480_v35 = vpop.f32.mrf.mxu2 }
 0x393   : > { %v3604_v58 = vpop.f32.mrf.mxu3 }
 0x394   : > { %v3649_v8 = vrot.slane %v3647_v51, 7  ;;  %v3623_v17 = vadd.f32 %v3604_v58, %v3489_v5  ;;  %v13111_v51 = vadd.f32 %v13031_v57, %v2420_v19  ;;  %v3734_v5 = vld [vmem:[#allocation2 + $0x14] sm:$0x1] }
 0x396   : > { %v3652_v14 = vor.u32 %v3650_v40, %v3649_v8  ;;  %v3653_v13 = vrot.slane %v3649_v8, 4  ;;  %v3631_v11 = vadd.f32 %v11669_v54, %v3623_v17  ;;  %v3194_v17 = vadd.f32 %v3183_v63, %v3060_v30 }
 0x398   : > { %v3726_v37 = vsel %vm12184_vm4, %v3652_v14, %v12884_v3  ;;  %v3729_v56 = vsel %vm12194_vm5, %v3653_v13, %v3728_v50  ;;  %v3639_v59 = vpack.c.bf16 %v3631_v11, %v3631_v11  ;;  %v3490_v3 = vadd.f32 %v13061_v4, %v3284_v49 }
 0x399   : > { %3730 = vst [vmem:[#allocation2 + $0xc] sm:$0x1] %v3729_v56  ;;  %v3967_v4 = vrot.slane %v3965_v15, 5  ;;  %v4202_v11 = vunpack.c.l.b16 %v4170_v34 }
 0x39a   : > { %3727 = vst [vmem:[#allocation2 + $0x8] sm:$0xf] %v3726_v37  ;;  %v3655_v45 = vshrl.u32 %v3639_v59, 16  ;;  %v3866_v1 = vunpack.c.l.b16 %v3639_v59  ;;  %v3658_v31 = vshll.u32 %v3639_v59, 16  ;;  %v3973_v59 = vrot.slane %v3971_v7, 5 }
 0x39b   : > { %v3607_v22 = vpop.f32.mrf.mxu3  ;;  %v3968_v12 = vor.u32 %v3967_v4, %v3964_v47 }
 0x39c   : > { %v3657_v38 = vrot.slane %v3655_v45, 7  ;;  %v3624_v23 = vadd.f32 %v3607_v22, %v3490_v3  ;;  %v3873_v48 = vpack.c.b16 %v3866_v1, %v3865_v28  ;;  %v13130_v45 = vadd.f32 %v3480_v35, %v3287_v42  ;;  %v11671_v1 = vld [vmem:[%s12152_s13 + $0x18] sm:$0xff] }
 0x39d   : > { %v3969_v56 = vrot.slane %v3968_v12, 4  ;;  %v5121_v12 = vld [vmem:[%s12127_s12] sm:$0xff] }
 0x39e   : > { %v3660_v18 = vor.u32 %v3658_v31, %v3657_v38  ;;  %v3661_v20 = vrot.slane %v3657_v38, 4  ;;  %v3632_v21 = vadd.f32 %v11670_v32, %v3624_v23  ;;  %3877 = vrot.lane.b32.xlu2 %v3873_v48, %s11944_s22  ;;  %v3277_v48 = vpop.f32.mrf.mxu1 }
 0x39f   : > { %v3974_v15 = vsel %vm12301_vm9, %v3969_v56, %v3973_v59  ;;  %v13142_v32 = vadd.f32 %v3277_v48, %v3194_v17 }
 0x3a0   : > { %v3732_v58 = vsel %vm12184_vm4, %v3660_v18, %v3731_v9  ;;  %v3735_v8 = vsel %vm12194_vm5, %v3661_v20, %v3734_v5  ;;  %v13120_v40 = vpack.c.bf16 %v3632_v21, %v3632_v21  ;;  %v3948_v57 = vld [vmem:[#allocation2 + $0xc] sm:$0x1]  ;;  %v4076_v5 = vunpack.c.l.b16 %v3974_v15 }
 0x3a1   : > { %3733 = vst [vmem:[#allocation2 + $0x10] sm:$0xf] %v3732_v58  ;;  %v11485_v36 = vld [vmem:[#allocation2 + $0x4] sm:$0xf0]  ;;  %v4173_v19 = vrot.slane %v3948_v57, 5  ;;  %v3985_v41 = vshll.u32 %v3948_v57, 16 }
 0x3a2   : > { %v4144_v61 = vld [vmem:[#allocation2 + $0x8] sm:$0xe]  ;;  %3736 = vst [vmem:[#allocation2 + $0x14] sm:$0x1] %v3735_v8  ;;  %v3663_v14 = vshrl.u32 %v13120_v40, 16  ;;  %v10782_v13 = vor.u32 %v11485_v36, %v10781_v16  ;;  %v3666_v49 = vshll.u32 %v13120_v40, 16  ;;  %v3867_v23 = vunpack.c.l.b16 %v13120_v40 }
 0x3a3   : > { %v10828_v54 = vrot.slane %v4144_v61, 9  ;;  %v3609_v50 = vpop.f32.mrf.mxu3  ;;  %v3947_v37 = vld [vmem:[#allocation2 + $0x8] sm:$0xf]  ;;  %v3987_v18 = vrot.slane %v3985_v41, 5  ;;  %v5122_v8 = vld [vmem:[%s12127_s12 + $0x8] sm:$0xff]  ;;  %v5153_v36 = vpack.c.bf16 %v5121_v12, %v5121_v12 }
 0x3a4   : > { %v3665_v55 = vrot.slane %v3663_v14, 7  ;;  %v3625_v6 = vadd.f32 %v3609_v50, %v3491_v60  ;;  %10799 = vmatmul.msk.bf16.vlgmr.msrb.gmra.mxu0 %vm3815_vm13, %v10782_v13  ;;  %v3976_v46 = vshrl.u32 %v3947_v37, 16  ;;  %v3979_v53 = vshll.u32 %v3947_v37, 16  ;;  %v3743_v61 = vld [vmem:[#allocation2 + $0x20] sm:$0xf] }
 0x3a5   : > { %v4174_v10 = vsel %vm12315_vm12, %v10828_v54, %v4173_v19  ;;  %v15416_v60 = vmov 0   ;;  %v5154_v13 = vpack.c.bf16 %v5122_v8, %v5122_v8  ;;  %v5188_v56 = vshrl.u32 %v5153_v36, 16  ;;  %v11673_v8 = vld [vmem:[%s12152_s13 + $0x28] sm:$0xff] }
 0x3a6   : > { %v3668_v3 = vor.u32 %v3666_v49, %v3665_v55  ;;  %v3669_v28 = vrot.slane %v3665_v55, 4  ;;  %v3633_v43 = vadd.f32 %v11671_v1, %v3625_v6  ;;  %v4203_v22 = vunpack.c.l.b16 %v4174_v10  ;;  %521 = vst.msk [vmem:[#allocation3 + $0xc] sm:$0xf] %vm516_vm14, %v15416_v60  ;;  %v11672_v49 = vld [vmem:[%s12152_s13 + $0x20] sm:$0xff] }
 0x3a7   : > { %v3978_v38 = vrot.slane %v3976_v46, 4  ;;  %v3981_v31 = vrot.slane %v3979_v53, 5  ;;  %522 = vst.msk [vmem:[#allocation3 + $0x10] sm:$0xf] %vm516_vm14, %v15416_v60  ;;  %v5191_v59 = vshll.u32 %v5153_v36, 16  ;;  %v5196_v35 = vshrl.u32 %v5154_v13, 16 }
 0x3a8   : > { %v3738_v39 = vsel %vm12184_vm4, %v3668_v3, %v3737_v27  ;;  %v3741_v30 = vsel %vm12194_vm5, %v3669_v28, %v3740_v24  ;;  %v3641_v52 = vpack.c.bf16 %v3633_v43, %v3633_v43  ;;  %v4210_v47 = vpack.c.b16 %v4203_v22, %v4202_v11  ;;  %v4145_v4 = vld [vmem:[#allocation2 + $0x10] sm:$0xe]  ;;  %523 = vst.msk [vmem:[#allocation3 + $0x14] sm:$0x1] %vm519_vm15, %v15416_v60 }
 0x3a9   : > { %3739 = vst [vmem:[#allocation2 + $0x18] sm:$0xf] %v3738_v39  ;;  %v3982_v29 = vor.u32 %v3981_v31, %v3978_v38  ;;  %v13140_v20 = vld [vmem:[#allocation2 + $0x14] sm:$0x1]  ;;  %v10829_v9 = vrot.slane %v4145_v4, 9  ;;  %v5199_v55 = vshll.u32 %v5154_v13, 16  ;;  %v5915_v22 = vunpack.c.l.b16 %v5153_v36 }
 0x3aa   : > { %3742 = vst [vmem:[#allocation2 + $0x1c] sm:$0x1] %v3741_v30  ;;  %v3671_v21 = vshrl.u32 %v3641_v52, 16  ;;  %10839 = vmatmul.msk.bf16.vlgmr.msrb.gmra.mxu3 %vm3815_vm13, %v4210_v47  ;;  %v3868_v16 = vunpack.c.l.b16 %v3641_v52  ;;  %v4177_v34 = vrot.slane %v13140_v20, 5  ;;  %v3674_v7 = vshll.u32 %v3641_v52, 16 }
 0x3ab   : > { %v3612_v63 = vpop.f32.mrf.mxu3  ;;  %v3983_v58 = vrot.slane %v3982_v29, 4  ;;  %v10785_v37 = vld [vmem:[#allocation2 + $0x10] sm:$0xf]  ;;  %517 = vst.msk [vmem:[#allocation3] sm:$0xf] %vm516_vm14, %v15416_v60  ;;  %v5190_v43 = vrot.slane %v5188_v56, 7  ;;  %v5916_v4 = vunpack.c.l.b16 %v5154_v13 }
 0x3ac   : > { %v3673_v40 = vrot.slane %v3671_v21, 7  ;;  %v3626_v57 = vadd.f32 %v3612_v63, %v3492_v62  ;;  %v3874_v17 = vpack.c.b16 %v3868_v16, %v3867_v23  ;;  %v13154_v14 = vsel %vm12315_vm12, %v10829_v9, %v4177_v34  ;;  %518 = vst.msk [vmem:[#allocation3 + $0x4] sm:$0xf] %vm516_vm14, %v15416_v60  ;;  %v3752_v36 = vld [vmem:[#allocation2 + $0x2c] sm:$0x1] }
 0x3ad   : > { %v3988_v42 = vsel %vm12301_vm9, %v3983_v58, %v3987_v18  ;;  %v4204_v15 = vunpack.c.l.b16 %v13154_v14  ;;  %v5198_v38 = vrot.slane %v5196_v35, 7  ;;  %v5193_v30 = vor.u32 %v5191_v59, %v5190_v43  ;;  %v5510_v47 = vld [vmem:[#allocation3 + $0xc] sm:$0xf]  ;;  %520 = vst.msk [vmem:[#allocation3 + $0x8] sm:$0x1] %vm519_vm15, %v15416_v60 }
 0x3ae   : > { %v3676_v54 = vor.u32 %v3674_v7, %v3673_v40  ;;  %v3677_v11 = vrot.slane %v3673_v40, 4  ;;  %v3634_v50 = vadd.f32 %v11672_v49, %v3626_v57  ;;  %v4077_v19 = vunpack.c.l.b16 %v3988_v42  ;;  %3879 = vrot.lane.b32.xlu0 %v3874_v17, %s11944_s22  ;;  %524 = vst.msk [vmem:[#allocation3 + $0x18] sm:$0xf] %vm516_vm14, %v15416_v60  ;;  %v3749_v17 = vld [vmem:[#allocation2 + $0x28] sm:$0xf] }
 0x3af   : > { %v5194_v52 = vrot.slane %v5190_v43, 4  ;;  %v5201_v21 = vor.u32 %v5199_v55, %v5198_v38  ;;  %v5203_v34 = vrot.slane %v5198_v38, 4  ;;  %v5516_v12 = vld [vmem:[#allocation3 + $0x14] sm:$0x1]  ;;  %v5947_v7 = vpack.c.b16 %v5916_v4, %v5915_v22  ;;  %525 = vst.msk [vmem:[#allocation3 + $0x1c] sm:$0xf] %vm516_vm14, %v15416_v60 }
 0x3b0   : > { %v3744_v6 = vsel %vm12184_vm4, %v3676_v54, %v3743_v61  ;;  %v3747_v46 = vsel %vm12194_vm5, %v3677_v11, %v3746_v0  ;;  %v13168_v53 = vpack.c.bf16 %v3634_v50, %v3634_v50  ;;  %v4084_v10 = vpack.c.b16 %v4077_v19, %v4076_v5  ;;  %v11486_v62 = vld [vmem:[#allocation2 + $0x14] sm:$0xf0]  ;;  %v3483_v54 = vpop.f32.mrf.mxu2  ;;  %v15423_v11 = vld [vmem:[#allocation20_spill] sm:$0xff]  ;;  %526 = vst.msk [vmem:[#allocation3 + $0x20] sm:$0x1] %vm519_vm15, %v15416_v60 }
 0x3b1   : > { %v4146_v41 = vld [vmem:[#allocation2 + $0x18] sm:$0xe]  ;;  %3745 = vst [vmem:[#allocation2 + $0x20] sm:$0xf] %v3744_v6  ;;  %v10786_v3 = vor.u32 %v11486_v62, %v10785_v37  ;;  %v13172_v28 = vld [vmem:[#allocation2 + $0x1c] sm:$0x1]  ;;  %v5202_v57 = vsel %vm13187_vm7, %v5194_v52, %v5201_v21  ;;  %v5517_v0 = vsel %vm13199_vm2, %v5203_v34, %v5516_v12  ;;  %5963 = vrot.lane.b32.xlu1 %v5947_v7, %s11944_s22 }
 0x3b2   : > { %v10830_v1 = vrot.slane %v4146_v41, 9  ;;  %3748 = vst [vmem:[#allocation2 + $0x24] sm:$0x1] %v3747_v46  ;;  %v3679_v27 = vshrl.u32 %v13168_v53, 16  ;;  %10823 = vmatmul.msk.bf16.vlgmr.msra.gmra.mxu2 %vm3815_vm13, %v4084_v10  ;;  %v4181_v24 = vrot.slane %v13172_v28, 5  ;;  %v3682_v23 = vshll.u32 %v13168_v53, 16 }
 0x3b3   : > { %v3614_v48 = vpop.f32.mrf.mxu3  ;;  %5513 = vst.msk [vmem:[#allocation3 + $0x10] sm:$0xf] %vm516_vm14, %v5202_v57  ;;  %v2761_v49 = vadd.f32 %v15423_v11, %v13111_v51  ;;  %v3494_v19 = vadd.f32 %v3483_v54, %v13142_v32  ;;  %v15424_v51 = vld [vmem:[#allocation21_spill] sm:$0xff]  ;;  %v11674_v10 = vld [vmem:[%s12152_s13 + $0x30] sm:$0xff]  ;;  %v3761_v52 = vld [vmem:[#allocation2 + $0x38] sm:$0xf] }
 0x3b4   : > { %v3681_v29 = vrot.slane %v3679_v27, 7  ;;  %v3627_v18 = vadd.f32 %v3614_v48, %v13130_v45  ;;  %10800 = vmatmul.msk.bf16.gmra.mxu0 %vm3815_vm13, %v10786_v3  ;;  %v4182_v9 = vsel %vm12315_vm12, %v10830_v1, %v4181_v24  ;;  %v5511_v45 = vsel %vm13180_vm1, %v5193_v30, %v5510_v47  ;;  %5518 = vst [vmem:[#allocation3 + $0x14] sm:$0x1] %v5517_v0  ;;  %v3755_v41 = vld [vmem:[#allocation2 + $0x30] sm:$0xf]  ;;  %v3185_v27 = vpop.f32.mrf.mxu0  ;;  %v11675_v54 = vld [vmem:[%s12152_s13 + $0x38] sm:$0xff] }
 0x3b5   : > { %v4205_v16 = vunpack.c.l.b16 %v4182_v9  ;;  %5512 = vst [vmem:[#allocation3 + $0xc] sm:$0xf] %v5511_v45  ;;  %v2855_v55 = vadd.f32 %v15424_v51, %v2761_v49  ;;  %v3758_v3 = vld [vmem:[#allocation2 + $0x34] sm:$0x1]  ;;  %v3764_v47 = vld [vmem:[#allocation2 + $0x3c] sm:$0x1] }
 0x3b6   : > { %v3684_v63 = vor.u32 %v3682_v23, %v3681_v29  ;;  %v3685_v58 = vrot.slane %v3681_v29, 4  ;;  %v3635_v40 = vadd.f32 %v11673_v8, %v3627_v18  ;;  %527 = vst.msk [vmem:[#allocation3 + $0x24] sm:$0xf] %vm516_vm14, %v15416_v60  ;;  %v3279_v23 = vpop.f32.mrf.mxu1  ;;  %v3949_v34 = vld [vmem:[#allocation2 + $0x10] sm:$0xf]  ;;  %v3999_v45 = vshll.u32 %v13140_v20, 16 }
 0x3b7   : > { %v4211_v61 = vpack.c.b16 %v4205_v16, %v4204_v15  ;;  %528 = vst.msk [vmem:[#allocation3 + $0x28] sm:$0xf] %vm516_vm14, %v15416_v60  ;;  %v3061_v62 = vadd.f32 %v13058_v26, %v2855_v55  ;;  %v11498_v16 = vld [vmem:[#allocation10 + $0x28] sm:$0xff]  ;;  %v3993_v8 = vshll.u32 %v3949_v34, 16  ;;  %v5123_v11 = vld [vmem:[%s12127_s12 + $0x10] sm:$0xff] }
 0x3b8   : > { %v3750_v42 = vsel %vm12184_vm4, %v3684_v63, %v3749_v17  ;;  %v3753_v14 = vsel %vm12194_vm5, %v3685_v58, %v3752_v36  ;;  %v13220_v13 = vpack.c.bf16 %v3635_v40, %v3635_v40  ;;  %529 = vst.msk [vmem:[#allocation3 + $0x2c] sm:$0x1] %vm519_vm15, %v15416_v60  ;;  %v3485_v9 = vpop.f32.mrf.mxu2  ;;  %v3951_v63 = vld [vmem:[#allocation2 + $0x18] sm:$0xf]  ;;  %v3990_v58 = vshrl.u32 %v3949_v34, 16  ;;  %4649 = vmatpush.bf16.msrb.mxu2 %v11498_v16 }
 0x3b9   : > { %3751 = vst [vmem:[#allocation2 + $0x28] sm:$0xf] %v3750_v42  ;;  %v3195_v24 = vadd.f32 %v3185_v27, %v3061_v62  ;;  %v3869_v40 = vunpack.c.l.b16 %v13168_v53  ;;  %v4001_v17 = vrot.slane %v3999_v45, 5  ;;  %v4004_v20 = vshrl.u32 %v3951_v63, 16 }
 0x3ba   : > { %3754 = vst [vmem:[#allocation2 + $0x2c] sm:$0x1] %v3753_v14  ;;  %v3687_v50 = vshrl.u32 %v13220_v13, 16  ;;  %10840 = vmatmul.msk.bf16.gmra.mxu3 %vm3815_vm13, %v4211_v61  ;;  %v3690_v59 = vshll.u32 %v13220_v13, 16  ;;  %v3870_v12 = vunpack.c.l.b16 %v13220_v13  ;;  %v4007_v36 = vshll.u32 %v3951_v63, 16  ;;  %v11503_v13 = vld [vmem:[#allocation10 + $0x30] sm:$0xff] }
 0x3bb   : > { %v3617_v37 = vpop.f32.mrf.mxu3  ;;  %530 = vst.msk [vmem:[#allocation3 + $0x30] sm:$0xf] %vm516_vm14, %v15416_v60  ;;  %v3289_v4 = vadd.f32 %v3279_v23, %v3195_v24  ;;  %v4013_v61 = vshll.u32 %v13172_v28, 16  ;;  %v3992_v0 = vrot.slane %v3990_v58, 4  ;;  %v3995_v42 = vrot.slane %v3993_v8, 5  ;;  %4735 = vmatpush.bf16.msra.mxu3 %v11503_v13 }
 0x3bc   : > { %v3689_v56 = vrot.slane %v3687_v50, 7  ;;  %v3628_v35 = vadd.f32 %v3617_v37, %v3494_v19  ;;  %531 = vst.msk [vmem:[#allocation3 + $0x34] sm:$0xf] %vm516_vm14, %v15416_v60  ;;  %v3875_v14 = vpack.c.b16 %v3870_v12, %v3869_v40  ;;  %v4006_v49 = vrot.slane %v4004_v20, 4  ;;  %v5124_v37 = vld [vmem:[%s12127_s12 + $0x18] sm:$0xff] }
 0x3bd   : > { %532 = vst.msk [vmem:[#allocation3 + $0x38] sm:$0x1] %vm519_vm15, %v15416_v60  ;;  %v3495_v21 = vadd.f32 %v3485_v9, %v3289_v4  ;;  %v4009_v50 = vrot.slane %v4007_v36, 5  ;;  %v4015_v19 = vrot.slane %v4013_v61, 5  ;;  %v3996_v28 = vor.u32 %v3995_v42, %v3992_v0 }
 0x3be   : > { %v3692_v6 = vor.u32 %v3690_v59, %v3689_v56  ;;  %v3693_v46 = vrot.slane %v3689_v56, 4  ;;  %v3636_v32 = vadd.f32 %v11674_v10, %v3628_v35  ;;  %533 = vst.msk [vmem:[#allocation3 + $0x3c] sm:$0xf] %vm516_vm14, %v15416_v60  ;;  %3881 = vrot.lane.b32.xlu2 %v3875_v14, %s11944_s22  ;;  %v10789_v59 = vld [vmem:[#allocation2 + $0x20] sm:$0xf]  ;;  %v13291_v51 = vpack.c.bf16 %v5123_v11, %v5123_v11 }
 0x3bf   : > { %534 = vst.msk [vmem:[#allocation3 + $0x40] sm:$0xf] %vm516_vm14, %v15416_v60  ;;  %v4010_v55 = vor.u32 %v4009_v50, %v4006_v49 }
 0x3c0   : > { %v3756_v1 = vsel %vm12184_vm4, %v3692_v6, %v3755_v41  ;;  %v3759_v43 = vsel %vm12194_vm5, %v3693_v46, %v3758_v3  ;;  %v13245_v22 = vpack.c.bf16 %v3636_v32, %v3636_v32  ;;  %535 = vst.msk [vmem:[#allocation3 + $0x44] sm:$0x1] %vm519_vm15, %v15416_v60  ;;  %v11487_v35 = vld [vmem:[#allocation2 + $0x24] sm:$0xf0]  ;;  %v13295_v46 = vld [vmem:[#allocation2 + $0x24] sm:$0x1]  ;;  %v13303_v3 = vpack.c.bf16 %v5124_v37, %v5124_v37 }
 0x3c1   : > { %3757 = vst [vmem:[#allocation2 + $0x30] sm:$0xf] %v3756_v1  ;;  %v10790_v6 = vor.u32 %v11487_v35, %v10789_v59  ;;  %v13297_v10 = vld [vmem:[#allocation2 + $0x2c] sm:$0x1]  ;;  %v3997_v32 = vrot.slane %v3996_v28, 4  ;;  %v4185_v41 = vrot.slane %v13295_v46, 5 }
 0x3c2   : > { %3760 = vst [vmem:[#allocation2 + $0x34] sm:$0x1] %v3759_v43  ;;  %v3695_v26 = vshrl.u32 %v13245_v22, 16  ;;  %v3698_v38 = vshll.u32 %v13245_v22, 16  ;;  %v4011_v1 = vrot.slane %v4010_v55, 4  ;;  %v4189_v27 = vrot.slane %v13297_v10, 5 }
 0x3c3   : > { %536 = vst.msk [vmem:[#allocation3 + $0x48] sm:$0xf] %vm516_vm14, %v15416_v60  ;;  %v3619_v7 = vpop.f32.mrf.mxu3  ;;  %v4147_v43 = vld [vmem:[#allocation2 + $0x20] sm:$0xe]  ;;  %v4148_v24 = vld [vmem:[#allocation2 + $0x28] sm:$0xe]  ;;  %v3871_v16 = vunpack.c.l.b16 %v13245_v22 }
 0x3c4   : > { %v3697_v15 = vrot.slane %v3695_v26, 7  ;;  %537 = vst.msk [vmem:[#allocation3 + $0x4c] sm:$0xf] %vm516_vm14, %v15416_v60  ;;  %v3629_v57 = vadd.f32 %v3619_v7, %v3495_v21  ;;  %10801 = vmatmul.msk.bf16.gmra.mxu0 %vm3815_vm13, %v10790_v6  ;;  %v4002_v26 = vsel %vm12301_vm9, %v3997_v32, %v4001_v17  ;;  %v4016_v23 = vsel %vm12301_vm9, %v4011_v1, %v4015_v19  ;;  %v3953_v21 = vld [vmem:[#allocation2 + $0x20] sm:$0xf]  ;;  %v11484_v35 = vld [vmem:[%s15380_s8 + $0x10] sm:$0xff] }
 0x3c5   : > { %538 = vst.msk [vmem:[#allocation3 + $0x50] sm:$0x1] %vm519_vm15, %v15416_v60  ;;  %v4079_v4 = vunpack.c.l.b16 %v4016_v23  ;;  %v3955_v63 = vld [vmem:[#allocation2 + $0x28] sm:$0xf]  ;;  %v5213_v40 = vshrl.u32 %v13303_v3, 16  ;;  %v4018_v20 = vshrl.u32 %v3953_v21, 16  ;;  %3921 = vmatpush.bf16.msrb.mxu1 %v11484_v35 }
 0x3c6   : > { %v3700_v48 = vor.u32 %v3698_v38, %v3697_v15  ;;  %v3701_v30 = vrot.slane %v3697_v15, 4  ;;  %539 = vst.msk [vmem:[#allocation3 + $0x54] sm:$0xf] %vm516_vm14, %v15416_v60  ;;  %v3637_v53 = vadd.f32 %v11675_v54, %v3629_v57  ;;  %v10831_v15 = vrot.slane %v4147_v43, 9  ;;  %v11496_v54 = vld [vmem:[#allocation10 + $0x18] sm:$0xff] }
 0x3c7   : > { %540 = vst.msk [vmem:[#allocation3 + $0x58] sm:$0xf] %vm516_vm14, %v15416_v60  ;;  %v5917_v38 = vunpack.c.l.b16 %v13291_v51  ;;  %v4021_v36 = vshll.u32 %v3953_v21, 16  ;;  %v5208_v42 = vshll.u32 %v13291_v51, 16  ;;  %v4027_v14 = vshll.u32 %v13295_v46, 16  ;;  %4325 = vmatpush.bf16.msra.mxu0 %v11496_v54 }
 0x3c8   : > { %v3762_v29 = vsel %vm12184_vm4, %v3700_v48, %v3761_v52  ;;  %v3765_v18 = vsel %vm12194_vm5, %v3701_v30, %v3764_v47  ;;  %541 = vst.msk [vmem:[#allocation3 + $0x5c] sm:$0x1] %vm519_vm15, %v15416_v60  ;;  %v13289_v56 = vpack.c.bf16 %v3637_v53, %v3637_v53  ;;  %v10832_v30 = vrot.slane %v4148_v24, 9  ;;  %v10793_v19 = vld [vmem:[#allocation2 + $0x30] sm:$0xf] }
 0x3c9   : > { %3763 = vst [vmem:[#allocation2 + $0x38] sm:$0xf] %v3762_v29  ;;  %v5205_v52 = vshrl.u32 %v13291_v51, 16  ;;  %v4078_v47 = vunpack.c.l.b16 %v4002_v26  ;;  %v4186_v29 = vsel %vm12315_vm12, %v10831_v15, %v4185_v41  ;;  %v4032_v13 = vshrl.u32 %v3955_v63, 16  ;;  %v13358_v37 = vld [vmem:[#allocation2 + $0x40] sm:$0xf] }
 0x3ca   : > { %3766 = vst [vmem:[#allocation2 + $0x3c] sm:$0x1] %v3765_v18  ;;  %v3703_v62 = vshrl.u32 %v13289_v56, 16  ;;  %v5918_v18 = vunpack.c.l.b16 %v13303_v3  ;;  %v4190_v9 = vsel %vm12315_vm12, %v10832_v30, %v4189_v27  ;;  %v3706_v45 = vshll.u32 %v13289_v56, 16  ;;  %v13368_v51 = vld [vmem:[#allocation3 + $0x18] sm:$0xf] }
 0x3cb   : > { %542 = vst.msk [vmem:[#allocation3 + $0x60] sm:$0xf] %vm516_vm14, %v15416_v60  ;;  %v4085_v34 = vpack.c.b16 %v4079_v4, %v4078_v47  ;;  %v4206_v12 = vunpack.c.l.b16 %v4186_v29  ;;  %v4207_v7 = vunpack.c.l.b16 %v4190_v9  ;;  %v13337_v8 = vrot.slane %v5205_v52, 7  ;;  %v4149_v43 = vld [vmem:[#allocation2 + $0x30] sm:$0xe] }
 0x3cc   : > { %543 = vst.msk [vmem:[#allocation3 + $0x64] sm:$0xf] %vm516_vm14, %v15416_v60  ;;  %v13318_v48 = vrot.slane %v3703_v62, 7  ;;  %v3872_v22 = vunpack.c.l.b16 %v13289_v56  ;;  %v5948_v17 = vpack.c.b16 %v5918_v18, %v5917_v38  ;;  %v5216_v53 = vshll.u32 %v13303_v3, 16  ;;  %v13370_v62 = vld [vmem:[#allocation2 + $0x34] sm:$0x1] }
 0x3cd   : > { %544 = vst.msk [vmem:[#allocation3 + $0x68] sm:$0x1] %vm519_vm15, %v15416_v60  ;;  %10824 = vmatmul.msk.bf16.gmra.mxu2 %vm3815_vm13, %v4085_v34  ;;  %v4212_v57 = vpack.c.b16 %v4207_v7, %v4206_v12  ;;  %v4020_v11 = vrot.slane %v4018_v20, 4  ;;  %v4023_v49 = vrot.slane %v4021_v36, 5  ;;  %v4035_v50 = vshll.u32 %v3955_v63, 16 }
 0x3ce   : > { %545 = vst.msk [vmem:[#allocation3 + $0x6c] sm:$0xf] %vm516_vm14, %v15416_v60  ;;  %v3709_v58 = vrot.slane %v13318_v48, 4  ;;  %v13347_v0 = vor.u32 %v3706_v45, %v13318_v48  ;;  %5965 = vrot.lane.b32.xlu0 %v5948_v17, %s11944_s22  ;;  %v13360_v28 = vrot.slane %v5213_v40, 7  ;;  %v4034_v56 = vrot.slane %v4032_v13, 4  ;;  %v5127_v40 = vld [vmem:[%s12127_s12 + $0x30] sm:$0xff] }
 0x3cf   : > { %546 = vst.msk [vmem:[#allocation3 + $0x70] sm:$0xf] %vm516_vm14, %v15416_v60  ;;  %10841 = vmatmul.msk.bf16.gmra.mxu3 %vm3815_vm13, %v4212_v57  ;;  %v4041_v59 = vshll.u32 %v13297_v10, 16  ;;  %v4024_v55 = vor.u32 %v4023_v49, %v4020_v11  ;;  %v4029_v6 = vrot.slane %v4027_v14, 5  ;;  %v4037_v46 = vrot.slane %v4035_v50, 5 }
 0x3d0   : > { %547 = vst.msk [vmem:[#allocation3 + $0x74] sm:$0x1] %vm519_vm15, %v15416_v60  ;;  %v11488_v61 = vld [vmem:[#allocation2 + $0x34] sm:$0xf0]  ;;  %v3876_v32 = vpack.c.b16 %v3872_v22, %v3871_v16  ;;  %v3770_v10 = vld [vmem:[#allocation2 + $0x44] sm:$0x1]  ;;  %v13375_v41 = vor.u32 %v5208_v42, %v13337_v8  ;;  %v3768_v27 = vsel %vm12184_vm4, %v13347_v0, %v13358_v37  ;;  %v5218_v12 = vor.u32 %v5216_v53, %v13360_v28 }
 0x3d1   : > { %548 = vst.msk [vmem:[#allocation3 + $0x78] sm:$0xf] %vm516_vm14, %v15416_v60  ;;  %v10794_v3 = vor.u32 %v11488_v61, %v10793_v19  ;;  %v13377_v1 = vld [vmem:[#allocation2 + $0x3c] sm:$0x1]  ;;  %v4025_v26 = vrot.slane %v4024_v55, 4  ;;  %v4038_v24 = vor.u32 %v4037_v46, %v4034_v56  ;;  %v10833_v38 = vrot.slane %v4149_v43, 9 }
 0x3d2   : > { %549 = vst.msk [vmem:[#allocation3 + $0x7c] sm:$0xf] %vm516_vm14, %v15416_v60  ;;  %3883 = vrot.lane.b32.xlu1 %v3876_v32, %s11944_s22  ;;  %v4150_v15 = vld [vmem:[#allocation2 + $0x38] sm:$0xe]  ;;  %v5211_v23 = vrot.slane %v13337_v8, 4  ;;  %v4193_v48 = vrot.slane %v13370_v62, 5  ;;  %v3771_v47 = vsel %vm12194_vm5, %v3709_v58, %v3770_v10  ;;  %v5520_v21 = vsel %vm13180_vm1, %v13375_v41, %v13368_v51 }
 0x3d3   : > { %550 = vst.msk [vmem:[#allocation3 + $0x80] sm:$0x1] %vm519_vm15, %v15416_v60  ;;  %v10834_v30 = vrot.slane %v4150_v15, 9  ;;  %v4197_v52 = vrot.slane %v13377_v1, 5  ;;  %v4030_v4 = vsel %vm12301_vm9, %v4025_v26, %v4029_v6  ;;  %v4039_v29 = vrot.slane %v4038_v24, 4  ;;  %v5128_v22 = vld [vmem:[%s12127_s12 + $0x38] sm:$0xff] }
 0x3d4   : > { %551 = vst.msk [vmem:[#allocation3 + $0x84] sm:$0xf] %vm516_vm14, %v15416_v60  ;;  %v4043_v18 = vrot.slane %v4041_v59, 5  ;;  %v3957_v9 = vld [vmem:[#allocation2 + $0x30] sm:$0xf]  ;;  %10802 = vmatmul.msk.bf16.gmra.mxu0 %vm3815_vm13, %v10794_v3  ;;  %v4194_v33 = vsel %vm12315_vm12, %v10833_v38, %v4193_v48  ;;  %v4080_v57 = vunpack.c.l.b16 %v4030_v4  ;;  %v4069_v13 = vshll.u32 %v13377_v1, 16 }
 0x3d5   : > { %552 = vst.msk [vmem:[#allocation3 + $0x88] sm:$0xf] %vm516_vm14, %v15416_v60  ;;  %v4198_v16 = vsel %vm12315_vm12, %v10834_v30, %v4197_v52  ;;  %v3959_v34 = vld [vmem:[#allocation2 + $0x38] sm:$0xf]  ;;  %v4046_v45 = vshrl.u32 %v3957_v9, 16  ;;  %v4049_v58 = vshll.u32 %v3957_v9, 16  ;;  %v4208_v61 = vunpack.c.l.b16 %v4194_v33 }
 0x3d6   : > { %553 = vst.msk [vmem:[#allocation3 + $0x8c] sm:$0x1] %vm519_vm15, %v15416_v60  ;;  %v4044_v7 = vsel %vm12301_vm9, %v4039_v29, %v4043_v18  ;;  %v4209_v63 = vunpack.c.l.b16 %v4198_v16  ;;  %v4060_v36 = vshrl.u32 %v3959_v34, 16  ;;  %v4063_v14 = vshll.u32 %v3959_v34, 16  ;;  %v5523_v35 = vld [vmem:[#allocation3 + $0x20] sm:$0x1] }
 0x3d7   : > { %554 = vst.msk [vmem:[#allocation3 + $0x90] sm:$0xf] %vm516_vm14, %v15416_v60  ;;  %v4081_v17 = vunpack.c.l.b16 %v4044_v7  ;;  %v4048_v20 = vrot.slane %v4046_v45, 4  ;;  %v4051_v42 = vrot.slane %v4049_v58, 5  ;;  %v5159_v11 = vpack.c.bf16 %v5127_v40, %v5127_v40  ;;  %v5533_v38 = vld [vmem:[#allocation3 + $0x30] sm:$0xf] }
 0x3d8   : > { %555 = vst.msk [vmem:[#allocation3 + $0x94] sm:$0xf] %vm516_vm14, %v15416_v60  ;;  %v4062_v53 = vrot.slane %v4060_v36, 4  ;;  %v5160_v49 = vpack.c.bf16 %v5128_v22, %v5128_v22  ;;  %v5220_v50 = vrot.slane %v13360_v28, 4  ;;  %v4213_v19 = vpack.c.b16 %v4209_v63, %v4208_v61  ;;  %v5537_v8 = vld [vmem:[#allocation3 + $0x38] sm:$0x1] }
 0x3d9   : > { %556 = vst.msk [vmem:[#allocation3 + $0x98] sm:$0x1] %vm519_vm15, %v15416_v60  ;;  %v4086_v54 = vpack.c.b16 %v4081_v17, %v4080_v57  ;;  %v4052_v56 = vor.u32 %v4051_v42, %v4048_v20  ;;  %v4065_v59 = vrot.slane %v4063_v14, 5  ;;  %v5239_v51 = vshrl.u32 %v5159_v11, 16  ;;  %v11483_v37 = vld [vmem:[%s15380_s8 + $0x8] sm:$0xff]  ;;  %v5126_v34 = vld [vmem:[%s12127_s12 + $0x28] sm:$0xff] }
 0x3da   : > { %557 = vst.msk [vmem:[#allocation3 + $0x9c] sm:$0xf] %vm516_vm14, %v15416_v60  ;;  %v5242_v55 = vshll.u32 %v5159_v11, 16  ;;  %v5921_v6 = vunpack.c.l.b16 %v5159_v11  ;;  %v5922_v46 = vunpack.c.l.b16 %v5160_v49  ;;  %v4055_v32 = vshll.u32 %v13370_v62, 16  ;;  %v10845_v29 = vld [vmem:[#allocation2 + $0x8] sm:$0xf]  ;;  %3922 = vmatpush.bf16.msrb.mxu1 %v11483_v37 }
 0x3db   : > { %558 = vst.msk [vmem:[#allocation3 + $0xa0] sm:$0xf] %vm516_vm14, %v15416_v60  ;;  %v4066_v10 = vor.u32 %v4065_v59, %v4062_v53  ;;  %v4071_v28 = vrot.slane %v4069_v13, 5  ;;  %v5247_v41 = vshrl.u32 %v5160_v49, 16  ;;  %v4053_v3 = vrot.slane %v4052_v56, 4  ;;  %v11523_v13 = vld [vmem:[#allocation12] sm:$0xff] }
 0x3dc   : > { %559 = vst.msk [vmem:[#allocation3 + $0xa4] sm:$0x1] %vm519_vm15, %v15416_v60  ;;  %v5241_v1 = vrot.slane %v5239_v51, 7  ;;  %v5250_v43 = vshll.u32 %v5160_v49, 16  ;;  %v5950_v26 = vpack.c.b16 %v5922_v46, %v5921_v6  ;;  %v5219_v24 = vsel %vm13187_vm7, %v5211_v23, %v5218_v12  ;;  %v11482_v12 = vld [vmem:[%s15380_s8] sm:$0xff]  ;;  %v5129_v49 = vld [vmem:[%s12127_s12 + $0x40] sm:$0xff]  ;;  %5801 = vmatpush.bf16.msra.mxu2 %v11523_v13 }
 0x3dd   : > { %560 = vst.msk [vmem:[#allocation3 + $0xa8] sm:$0xf] %vm516_vm14, %v15416_v60  ;;  %10825 = vmatmul.msk.bf16.gmra.mxu2 %vm3815_vm13, %v4086_v54  ;;  %v4067_v15 = vrot.slane %v4066_v10, 4  ;;  %v5249_v62 = vrot.slane %v5247_v41, 7  ;;  %v4057_v23 = vrot.slane %v4055_v32, 5  ;;  %v5158_v58 = vpack.c.bf16 %v5126_v34, %v5126_v34 }
 0x3de   : > { %561 = vst.msk [vmem:[#allocation3 + $0xac] sm:$0xf] %vm516_vm14, %v15416_v60  ;;  %v5244_v48 = vor.u32 %v5242_v55, %v5241_v1  ;;  %v5245_v30 = vrot.slane %v5241_v1, 4  ;;  %5969 = vrot.lane.b32.xlu0 %v5950_v26, %s11944_s22  ;;  %v10893_v7 = vld [vmem:[#allocation2 + $0x10] sm:$0xf]  ;;  %3923 = vmatpush.bf16.msrb.mxu1 %v11482_v12  ;;  %vm9931_vm4 = vcmask 523264  }
 0x3df   : > { %562 = vst.msk [vmem:[#allocation3 + $0xb0] sm:$0x1] %vm519_vm15, %v15416_v60  ;;  %10842 = vmatmul.msk.bf16.gmra.mxu3 %vm3815_vm13, %v4213_v19  ;;  %v4072_v52 = vsel %vm12301_vm9, %v4067_v15, %v4071_v28  ;;  %v5252_v25 = vor.u32 %v5250_v43, %v5249_v62  ;;  %v5254_v4 = vrot.slane %v5249_v62, 4  ;;  %v11499_v63 = vld [vmem:[#allocation2 + $0x14] sm:$0xf0]  ;;  %v5230_v61 = vshrl.u32 %v5158_v58, 16 }
 0x3e0   : > { %563 = vst.msk [vmem:[#allocation3 + $0xb4] sm:$0xf] %vm516_vm14, %v15416_v60  ;;  %v5534_v0 = vsel %vm13180_vm1, %v5244_v48, %v5533_v38  ;;  %v4083_v33 = vunpack.c.l.b16 %v4072_v52  ;;  %v13467_v22 = vld [vmem:[#allocation2 + $0x14] sm:$0x1]  ;;  %v4554_v36 = vld [vmem:[#allocation2 + $0x10] sm:$0xe]  ;;  %v5920_v14 = vunpack.c.l.b16 %v5158_v58  ;;  %v10894_v53 = vor.u32 %v11499_v63, %v10893_v7 }
 0x3e1   : > { %564 = vst.msk [vmem:[#allocation3 + $0xb8] sm:$0xf] %vm516_vm14, %v15416_v60  ;;  %v5253_v18 = vsel %vm13187_vm7, %v5245_v30, %v5252_v25  ;;  %v5538_v9 = vsel %vm13199_vm2, %v5254_v4, %v5537_v8  ;;  %v5233_v42 = vshll.u32 %v5158_v58, 16  ;;  %v5232_v19 = vrot.slane %v5230_v61, 7  ;;  %v5526_v56 = vld [vmem:[#allocation3 + $0x24] sm:$0xf] }
 0x3e2   : > { %565 = vst.msk [vmem:[#allocation3 + $0xbc] sm:$0x1] %vm519_vm15, %v15416_v60  ;;  %v10876_v55 = vrot.slane %v4554_v36, 9  ;;  %v4583_v6 = vrot.slane %v13467_v22, 5  ;;  %v5530_v10 = vld [vmem:[#allocation3 + $0x2c] sm:$0x1] }
 0x3e3   : > { %566 = vst.msk [vmem:[#allocation3 + $0xc0] sm:$0xf] %vm516_vm14, %v15416_v60  ;;  %v13472_v41 = vld [vmem:[#allocation2 + $0xc] sm:$0x1]  ;;  %v5237_v1 = vrot.slane %v5232_v19, 4  ;;  %v11506_v52 = vld [vmem:[%s15382_s10] sm:$0xff] }
 0x3e4   : > { %567 = vst.msk [vmem:[#allocation3 + $0xc4] sm:$0xf] %vm516_vm14, %v15416_v60  ;;  %v5540_v4 = vld [vmem:[#allocation3 + $0x3c] sm:$0xf]  ;;  %6056 = vmatpush.bf16.msrb.mxu3 %v11506_v52  ;;  %v13496_v12 = vld [vmem:[#allocation2 + $0x24] sm:$0x1] }
 0x3e5   : > { %568 = vst.msk [vmem:[#allocation3 + $0xc8] sm:$0x1] %vm519_vm15, %v15416_v60  ;;  %v5531_v30 = vsel %vm13199_vm2, %v5237_v1, %v5530_v10  ;;  %v4555_v58 = vld [vmem:[#allocation2 + $0x18] sm:$0xe]  ;;  %v4765_v61 = vld [vmem:[#allocation2 + $0x10] sm:$0xf] }
 0x3e6   : > { %569 = vst.msk [vmem:[#allocation3 + $0xcc] sm:$0xf] %vm516_vm14, %v15416_v60  ;;  %v10897_v10 = vld [vmem:[#allocation2 + $0x20] sm:$0xf] }
 0x3e7   : > { %570 = vst.msk [vmem:[#allocation3 + $0xd0] sm:$0xf] %vm516_vm14, %v15416_v60 }
 0x3e8   : > { %571 = vst.msk [vmem:[#allocation3 + $0xd4] sm:$0x1] %vm519_vm15, %v15416_v60  ;;  %v5524_v60 = vsel %vm13199_vm2, %v5220_v50, %v5523_v35  ;;  %v5130_v50 = vld [vmem:[%s12127_s12 + $0x48] sm:$0xff]  ;;  %v5161_v35 = vpack.c.bf16 %v5129_v49, %v5129_v49  ;;  %v13508_v49 = vld [vmem:[#allocation2 + $0x2c] sm:$0x1] }
 0x3e9   : > { %3772 = vst [vmem:[#allocation2 + $0x44] sm:$0x1] %v3771_v47  ;;  %v11492_v47 = vld [vmem:[#allocation2 + $0xc] sm:$0xf0]  ;;  %v5162_v51 = vpack.c.bf16 %v5130_v50, %v5130_v50  ;;  %v13510_v50 = vld [vmem:[#allocation2 + $0x34] sm:$0x1] }
 0x3ea   : > { %3769 = vst [vmem:[#allocation2 + $0x40] sm:$0xf] %v3768_v27  ;;  %v4058_v27 = vsel %vm12301_vm9, %v4053_v3, %v4057_v23  ;;  %v10846_v16 = vor.u32 %v11492_v47, %v10845_v29  ;;  %v5235_v3 = vor.u32 %v5233_v42, %v5232_v19  ;;  %v5256_v43 = vshrl.u32 %v5161_v35, 16  ;;  %v5544_v29 = vld [vmem:[#allocation3 + $0x44] sm:$0x1] }
 0x3eb   : > { %5521 = vst [vmem:[#allocation3 + $0x18] sm:$0xf] %v5520_v21  ;;  %v5125_v21 = vld [vmem:[%s12127_s12 + $0x20] sm:$0xff]  ;;  %v4082_v40 = vunpack.c.l.b16 %v4058_v27  ;;  %v5259_v26 = vshll.u32 %v5161_v35, 16  ;;  %v5264_v62 = vshrl.u32 %v5162_v51, 16  ;;  %v5267_v38 = vshll.u32 %v5162_v51, 16 }
 0x3ec   : > { %5522 = vst.msk [vmem:[#allocation3 + $0x1c] sm:$0xf] %vm516_vm14, %v5219_v24  ;;  %v5157_v45 = vpack.c.bf16 %v5125_v21, %v5125_v21  ;;  %10863 = vmatmul.msk.bf16.vlgmr.msra.gmra.mxu0 %vm3815_vm13, %v10846_v16  ;;  %v4553_v24 = vld [vmem:[#allocation2 + $0x8] sm:$0xe]  ;;  %v5258_v8 = vrot.slane %v5256_v43, 7  ;;  %v5924_v23 = vunpack.c.l.b16 %v5162_v51  ;;  %v4579_v47 = vrot.slane %v13472_v41, 5 }
 0x3ed   : > { %5525 = vst [vmem:[#allocation3 + $0x20] sm:$0x1] %v5524_v60  ;;  %v4087_v54 = vpack.c.b16 %v4083_v33, %v4082_v40  ;;  %v5923_v60 = vunpack.c.l.b16 %v5161_v35  ;;  %v5266_v25 = vrot.slane %v5264_v62, 7  ;;  %v4584_v33 = vsel %vm12315_vm12, %v10876_v55, %v4583_v6  ;;  %v11493_v16 = vld [vmem:[#allocation2 + $0x1c] sm:$0xf0] }
 0x3ee   : > { %5535 = vst [vmem:[#allocation3 + $0x30] sm:$0xf] %v5534_v0  ;;  %v5222_v57 = vshrl.u32 %v5157_v45, 16  ;;  %v5225_v17 = vshll.u32 %v5157_v45, 16  ;;  %v5919_v20 = vunpack.c.l.b16 %v5157_v45  ;;  %v10875_v0 = vrot.slane %v4553_v24, 9 }
 0x3ef   : > { %5536 = vst.msk [vmem:[#allocation3 + $0x34] sm:$0xf] %vm516_vm14, %v5253_v18  ;;  %10826 = vmatmul.msk.bf16.gmra.mxu2 %vm3815_vm13, %v4087_v54  ;;  %10911 = vmatmul.msk.bf16.vlgmr.msra.gmra.mxu3 %vm3815_vm13, %v10894_v53  ;;  %v5261_v37 = vor.u32 %v5259_v26, %v5258_v8  ;;  %v5262_v27 = vrot.slane %v5258_v8, 4  ;;  %v5951_v18 = vpack.c.b16 %v5924_v23, %v5923_v60  ;;  %v5271_v21 = vrot.slane %v5266_v25, 4  ;;  %v13494_v45 = vld [vmem:[#allocation2 + $0x1c] sm:$0x1] }
 0x3f0   : > { %5539 = vst [vmem:[#allocation3 + $0x38] sm:$0x1] %v5538_v9  ;;  %v5224_v11 = vrot.slane %v5222_v57, 7  ;;  %v5949_v59 = vpack.c.b16 %v5920_v14, %v5919_v20  ;;  %v5269_v9 = vor.u32 %v5267_v38, %v5266_v25  ;;  %v4556_v40 = vld [vmem:[#allocation2 + $0x20] sm:$0xe]  ;;  %v4580_v57 = vsel %vm12315_vm12, %v10875_v0, %v4579_v47 }
 0x3f1   : > { %5532 = vst [vmem:[#allocation3 + $0x2c] sm:$0x1] %v5531_v30  ;;  %v5541_v34 = vsel %vm13180_vm1, %v5261_v37, %v5540_v4  ;;  %5971 = vrot.lane.b32.xlu1 %v5951_v18, %s11944_s22  ;;  %v5545_v63 = vsel %vm13199_vm2, %v5271_v21, %v5544_v29  ;;  %v4613_v20 = vunpack.c.l.b16 %v4584_v33  ;;  %v4767_v42 = vld [vmem:[#allocation2 + $0x18] sm:$0xf]  ;;  %v10877_v14 = vrot.slane %v4555_v58, 9  ;;  %v5133_v58 = vld [vmem:[%s12127_s12 + $0x60] sm:$0xff] }
 0x3f2   : > { %v5227_v46 = vor.u32 %v5225_v17, %v5224_v11  ;;  %v5228_v32 = vrot.slane %v5224_v11, 4  ;;  %5967 = vrot.lane.b32.xlu2 %v5949_v59, %s11944_s22  ;;  %v5270_v7 = vsel %vm13187_vm7, %v5262_v27, %v5269_v9  ;;  %5542 = vst [vmem:[#allocation3 + $0x3c] sm:$0xf] %v5541_v34  ;;  %v10849_v17 = vld [vmem:[#allocation2 + $0x18] sm:$0xf]  ;;  %v4587_v13 = vrot.slane %v13494_v45, 5 }
 0x3f3   : > { %5543 = vst.msk [vmem:[#allocation3 + $0x40] sm:$0xf] %vm516_vm14, %v5270_v7  ;;  %v10850_v36 = vor.u32 %v11493_v16, %v10849_v17  ;;  %v10878_v54 = vrot.slane %v4556_v40, 9  ;;  %v4591_v53 = vrot.slane %v13496_v12, 5  ;;  %v4612_v11 = vunpack.c.l.b16 %v4580_v57  ;;  %v4557_v19 = vld [vmem:[#allocation2 + $0x28] sm:$0xe] }
 0x3f4   : > { %v5527_v15 = vsel %vm13180_vm1, %v5227_v46, %v5526_v56  ;;  %v5236_v48 = vsel %vm13187_vm7, %v5228_v32, %v5235_v3  ;;  %5546 = vst [vmem:[#allocation3 + $0x44] sm:$0x1] %v5545_v63  ;;  %v4558_v56 = vld [vmem:[#allocation2 + $0x30] sm:$0xe]  ;;  %v4782_v59 = vshrl.u32 %v4765_v61, 16  ;;  %v4785_v35 = vshll.u32 %v4765_v61, 16 }
 0x3f5   : > { %5528 = vst [vmem:[#allocation3 + $0x24] sm:$0xf] %v5527_v15  ;;  %v4796_v51 = vshrl.u32 %v4767_v42, 16  ;;  %v4799_v55 = vshll.u32 %v4767_v42, 16  ;;  %v4620_v6 = vpack.c.b16 %v4613_v20, %v4612_v11  ;;  %v13512_v46 = vld [vmem:[#allocation2 + $0x14] sm:$0x1]  ;;  %v13518_v3 = vsel %vm12315_vm12, %v10877_v14, %v4587_v13 }
 0x3f6   : > { %5529 = vst.msk [vmem:[#allocation3 + $0x28] sm:$0xf] %vm516_vm14, %v5236_v48  ;;  %v13514_v32 = vld [vmem:[#allocation2 + $0x1c] sm:$0x1]  ;;  %v13522_v1 = vsel %vm12315_vm12, %v10878_v54, %v4591_v53  ;;  %v13524_v43 = vld [vmem:[#allocation2 + $0x2c] sm:$0xf0]  ;;  %v4614_v37 = vunpack.c.l.b16 %v13518_v3  ;;  %v5165_v61 = vpack.c.bf16 %v5133_v58, %v5133_v58 }
 0x3f7   : > { %v4798_v26 = vrot.slane %v4796_v51, 4  ;;  %v4801_v24 = vrot.slane %v4799_v55, 5  ;;  %v13526_v15 = vld [vmem:[#allocation2 + $0x34] sm:$0xf0]  ;;  %v10879_v62 = vrot.slane %v4557_v19, 9  ;;  %v4595_v38 = vrot.slane %v13508_v49, 5 }
 0x3f8   : > { %v3878_v28 = vpop.permute.xlu2 %3877  ;;  %v10880_v60 = vrot.slane %v4558_v56, 9  ;;  %v4599_v48 = vrot.slane %v13510_v50, 5  ;;  %v13530_v30 = vld [vmem:[#allocation2 + $0x3c] sm:$0x1]  ;;  %v4784_v8 = vrot.slane %v4782_v59, 4  ;;  %v4787_v23 = vrot.slane %v4785_v35, 5 }
 0x3f9   : > { %10815 = vmatmul.msk.bf16.vlgmr.msrb.gmra.mxu1 %vm3903_vm3, %v3878_v28  ;;  %v11500_v28 = vld [vmem:[#allocation2 + $0x24] sm:$0xf0]  ;;  %v4791_v52 = vshll.u32 %v13512_v46, 16  ;;  %v4805_v47 = vshll.u32 %v13514_v32, 16  ;;  %v4559_v0 = vld [vmem:[#allocation2 + $0x38] sm:$0xe]  ;;  %v4615_v27 = vunpack.c.l.b16 %v13522_v1  ;;  %v4802_v9 = vor.u32 %v4801_v24, %v4798_v26 }
 0x3fa   : > { %v10898_v25 = vor.u32 %v11500_v28, %v10897_v10  ;;  %v10853_v4 = vld [vmem:[#allocation2 + $0x28] sm:$0xf]  ;;  %v13538_v18 = vld [vmem:[#allocation2 + $0x30] sm:$0xf]  ;;  %v4769_v21 = vld [vmem:[#allocation2 + $0x20] sm:$0xf]  ;;  %v13544_v16 = vsel %vm12315_vm12, %v10879_v62, %v4595_v38  ;;  %v13548_v34 = vsel %vm12315_vm12, %v10880_v60, %v4599_v48  ;;  %v4788_v17 = vor.u32 %v4787_v23, %v4784_v8 }
 0x3fb   : > { %v10854_v29 = vor.u32 %v13524_v43, %v10853_v4  ;;  %v10902_v33 = vor.u32 %v13526_v15, %v13538_v18  ;;  %v4603_v7 = vrot.slane %v13530_v30, 5  ;;  %v4771_v63 = vld [vmem:[#allocation2 + $0x28] sm:$0xf]  ;;  %v5134_v40 = vld [vmem:[%s12127_s12 + $0x68] sm:$0xff]  ;;  %v10881_v57 = vrot.slane %v4559_v0, 9 }
 0x3fc   : > { %10864 = vmatmul.msk.bf16.gmra.mxu0 %vm3815_vm13, %v10850_v36  ;;  %v4793_v20 = vrot.slane %v4791_v52, 5  ;;  %v4807_v36 = vrot.slane %v4805_v47, 5  ;;  %v5166_v42 = vpack.c.bf16 %v5134_v40, %v5134_v40  ;;  %v4810_v14 = vshrl.u32 %v4769_v21, 16  ;;  %v13556_v11 = vld [vmem:[#allocation2 + $0x44] sm:$0x1] }
 0x3fd   : > { %v4813_v13 = vshll.u32 %v4769_v21, 16  ;;  %v4616_v54 = vunpack.c.l.b16 %v13544_v16  ;;  %v4617_v53 = vunpack.c.l.b16 %v13548_v34  ;;  %v4560_v19 = vld [vmem:[#allocation2 + $0x40] sm:$0xe]  ;;  %v4803_v56 = vrot.slane %v4802_v9, 4  ;;  %v13558_v26 = vld [vmem:[#allocation2 + $0x24] sm:$0x1] }
 0x3fe   : > { %v4824_v59 = vshrl.u32 %v4771_v63, 16  ;;  %v5290_v35 = vshrl.u32 %v5165_v61, 16  ;;  %v5293_v51 = vshll.u32 %v5165_v61, 16  ;;  %v5298_v55 = vshrl.u32 %v5166_v42, 16  ;;  %v13561_v8 = vld [vmem:[#allocation2 + $0x2c] sm:$0x1] }
 0x3ff   : > { %10887 = vmatmul.msk.bf16.vlgmr.msrb.gmra.mxu2 %vm3815_vm13, %v4620_v6  ;;  %10912 = vmatmul.msk.bf16.gmra.mxu3 %vm3815_vm13, %v10898_v25  ;;  %v5301_v6 = vshll.u32 %v5166_v42, 16  ;;  %v5927_v10 = vunpack.c.l.b16 %v5165_v61  ;;  %v5928_v28 = vunpack.c.l.b16 %v5166_v42  ;;  %v4789_v43 = vrot.slane %v4788_v17, 4  ;;  %v5554_v23 = vld [vmem:[#allocation3 + $0x54] sm:$0xf]  ;;  %v5558_v52 = vld [vmem:[#allocation3 + $0x5c] sm:$0x1] }
 0x400   : > { %v4827_v24 = vshll.u32 %v4771_v63, 16  ;;  %v5292_v62 = vrot.slane %v5290_v35, 7  ;;  %v5300_v38 = vrot.slane %v5298_v55, 7  ;;  %v10882_v60 = vrot.slane %v4560_v19, 9  ;;  %v13575_v61 = vld [vmem:[#allocation2 + $0x3c] sm:$0xf0] }
 0x401   : > { %v4607_v48 = vrot.slane %v13556_v11, 5  ;;  %v5953_v47 = vpack.c.b16 %v5928_v28, %v5927_v10  ;;  %v4808_v25 = vsel %vm12301_vm9, %v4803_v56, %v4807_v36  ;;  %v4812_v4 = vrot.slane %v4810_v14, 4  ;;  %v4355_v36 = vld [vmem:[#allocation2 + $0x8] sm:$0xf]  ;;  %v13613_v1 = vld [vmem:[#allocation2 + $0x30] sm:$0xf] }
 0x402   : > { %v4815_v0 = vrot.slane %v4813_v13, 5  ;;  %v5295_v9 = vor.u32 %v5293_v51, %v5292_v62  ;;  %v5296_v21 = vrot.slane %v5292_v62, 4  ;;  %v5303_v16 = vor.u32 %v5301_v6, %v5300_v38  ;;  %v13579_v42 = vld [vmem:[#allocation2 + $0x44] sm:$0xf0]  ;;  %v13603_v6 = vld [vmem:[#allocation2 + $0x38] sm:$0xf] }
 0x403   : > { %v5305_v34 = vrot.slane %v5300_v38, 4  ;;  %5975 = vrot.lane.b32.xlu0 %v5953_v47, %s11944_s22  ;;  %v13569_v63 = vsel %vm12315_vm12, %v10881_v57, %v4603_v7  ;;  %v4794_v58 = vsel %vm12301_vm9, %v4789_v43, %v4793_v20  ;;  %v4819_v40 = vshll.u32 %v13558_v26, 16  ;;  %v11504_v38 = vld [vmem:[#allocation10 + $0x38] sm:$0xff] }
 0x404   : > { %v4833_v17 = vshll.u32 %v13561_v8, 16  ;;  %v5304_v14 = vsel %vm13187_vm7, %v5296_v21, %v5303_v16  ;;  %v5555_v7 = vsel %vm13180_vm1, %v5295_v9, %v5554_v23  ;;  %v13587_v20 = vunpack.c.l.b16 %v4808_v25  ;;  %4933 = vmatpush.bf16.msrb.mxu0 %v11504_v38 }
 0x405   : > { %v5559_v57 = vsel %vm13199_vm2, %v5305_v34, %v5558_v52  ;;  %5556 = vst [vmem:[#allocation3 + $0x54] sm:$0xf] %v5555_v7  ;;  %v13591_v13 = vsel %vm12315_vm12, %v10882_v60, %v4607_v48  ;;  %v4816_v19 = vor.u32 %v4815_v0, %v4812_v4  ;;  %v13593_v56 = vrot.slane %v4824_v59, 4  ;;  %v11497_v60 = vld [vmem:[#allocation10 + $0x20] sm:$0xff]  ;;  %v5131_v48 = vld [vmem:[%s12127_s12 + $0x50] sm:$0xff]  ;;  %v5132_v4 = vld [vmem:[%s12127_s12 + $0x58] sm:$0xff] }
 0x406   : > { %v13595_v35 = vrot.slane %v4827_v24, 5  ;;  %v4621_v51 = vpack.c.b16 %v4615_v27, %v4614_v37  ;;  %v13601_v55 = vpack.c.b16 %v4617_v53, %v4616_v54  ;;  %5557 = vst.msk [vmem:[#allocation3 + $0x58] sm:$0xf] %vm516_vm14, %v5304_v14  ;;  %v13606_v10 = vunpack.c.l.b16 %v4794_v58  ;;  %v13620_v24 = vld [vmem:[#allocation2 + $0x10] sm:$0xf]  ;;  %v5135_v58 = vld [vmem:[%s12127_s12 + $0x70] sm:$0xff]  ;;  %4523 = vmatpush.bf16.msra.mxu1 %v11497_v60 }
 0x407   : > { %v4372_v28 = vshrl.u32 %v4355_v36, 16  ;;  %v10858_v59 = vor.u32 %v13575_v61, %v13603_v6  ;;  %5560 = vst [vmem:[#allocation3 + $0x5c] sm:$0x1] %v5559_v57  ;;  %v4375_v37 = vshll.u32 %v4355_v36, 16  ;;  %v13618_v53 = vrot.slane %v4819_v40, 5  ;;  %v5136_v40 = vld [vmem:[%s12127_s12 + $0x78] sm:$0xff] }
 0x408   : > { %v13626_v23 = vrot.slane %v4816_v19, 4  ;;  %v4830_v52 = vor.u32 %v13595_v35, %v13593_v56  ;;  %v13630_v47 = vrot.slane %v4833_v17, 5  ;;  %v5163_v0 = vpack.c.bf16 %v5131_v48, %v5131_v48  ;;  %v13661_v6 = vld [vmem:[#allocation2 + $0x38] sm:$0xf] }
 0x409   : > { %v13622_v62 = vrot.slane %v4372_v28, 4  ;;  %v4377_v25 = vrot.slane %v4375_v37, 5  ;;  %v4381_v16 = vshll.u32 %v13472_v41, 16  ;;  %v5164_v34 = vpack.c.bf16 %v5132_v4, %v5132_v4 }
 0x40a   : > { %v4386_v36 = vshrl.u32 %v13620_v24, 16  ;;  %v4389_v14 = vshll.u32 %v13620_v24, 16  ;;  %v5273_v7 = vshrl.u32 %v5163_v0, 16  ;;  %v5276_v57 = vshll.u32 %v5163_v0, 16 }
 0x40b   : > { %v4378_v17 = vor.u32 %v4377_v25, %v13622_v62  ;;  %v5925_v19 = vunpack.c.l.b16 %v5163_v0  ;;  %v5167_v41 = vpack.c.bf16 %v5135_v58, %v5135_v58  ;;  %v5284_v28 = vshll.u32 %v5164_v34, 16  ;;  %v5547_v25 = vld [vmem:[#allocation3 + $0x48] sm:$0xf]  ;;  %v5551_v0 = vld [vmem:[#allocation3 + $0x50] sm:$0x1] }
 0x40c   : > { %10865 = vmatmul.msk.bf16.gmra.mxu0 %vm3815_vm13, %v10854_v29  ;;  %v13577_v29 = vld [vmem:[#allocation2 + $0x40] sm:$0xf]  ;;  %v5926_v15 = vunpack.c.l.b16 %v5164_v34  ;;  %v5168_v18 = vpack.c.bf16 %v5136_v40, %v5136_v40  ;;  %v5275_v37 = vrot.slane %v5273_v7, 7  ;;  %v5561_v7 = vld [vmem:[#allocation3 + $0x60] sm:$0xf]  ;;  %v4388_v9 = vrot.slane %v4386_v36, 4 }
 0x40d   : > { %v5307_v38 = vshrl.u32 %v5167_v41, 16  ;;  %v5310_v48 = vshll.u32 %v5167_v41, 16  ;;  %v5929_v4 = vunpack.c.l.b16 %v5167_v41  ;;  %v15426_v35 = vshll.u32 %v13613_v1, 16 }
 0x40e   : > { %v5952_v27 = vpack.c.b16 %v5926_v15, %v5925_v19  ;;  %v5315_v24 = vshrl.u32 %v5168_v18, 16  ;;  %v5318_v60 = vshll.u32 %v5168_v18, 16  ;;  %v5278_v3 = vor.u32 %v5276_v57, %v5275_v37 }
 0x40f   : > { %10888 = vmatmul.msk.bf16.gmra.mxu2 %vm3815_vm13, %v4621_v51  ;;  %10913 = vmatmul.msk.bf16.gmra.mxu3 %vm3815_vm13, %v10902_v33  ;;  %v5281_v51 = vshrl.u32 %v5164_v34, 16  ;;  %v5279_v54 = vrot.slane %v5275_v37, 4  ;;  %v5309_v58 = vrot.slane %v5307_v38, 7  ;;  %v5930_v43 = vunpack.c.l.b16 %v5168_v18 }
 0x410   : > { %5973 = vrot.lane.b32.xlu2 %v5952_v27, %s11944_s22  ;;  %v5317_v40 = vrot.slane %v5315_v24, 7  ;;  %v5548_v19 = vsel %vm13180_vm1, %v5278_v3, %v5547_v25  ;;  %v4391_v3 = vrot.slane %v4389_v14, 5  ;;  %v13670_v37 = vrot.slane %v4830_v52, 4 }
 0x411   : > { %v5283_v62 = vrot.slane %v5281_v51, 7  ;;  %v5312_v57 = vor.u32 %v5310_v48, %v5309_v58  ;;  %v5313_v41 = vrot.slane %v5309_v58, 4  ;;  %v5565_v51 = vld [vmem:[#allocation3 + $0x68] sm:$0x1]  ;;  %v5954_v15 = vpack.c.b16 %v5930_v43, %v5929_v4  ;;  %5549 = vst [vmem:[#allocation3 + $0x48] sm:$0xf] %v5548_v19 }
 0x412   : > { %v5320_v36 = vor.u32 %v5318_v60, %v5317_v40  ;;  %v5322_v18 = vrot.slane %v5317_v40, 4  ;;  %v4383_v43 = vrot.slane %v4381_v16, 5  ;;  %v4395_v38 = vshll.u32 %v13467_v22, 16  ;;  %v4361_v48 = vld [vmem:[#allocation2 + $0x20] sm:$0xf]  ;;  %v11542_v40 = vld [vmem:[#allocation12 + $0x18] sm:$0xff] }
 0x413   : > { %v5286_v21 = vor.u32 %v5284_v28, %v5283_v62  ;;  %v5288_v34 = vrot.slane %v5283_v62, 4  ;;  %v5562_v61 = vsel %vm13180_vm1, %v5312_v57, %v5561_v7  ;;  %5977 = vrot.lane.b32.xlu1 %v5954_v15, %s11944_s22  ;;  %v4363_v62 = vld [vmem:[#allocation2 + $0x28] sm:$0xf]  ;;  %v15425_v24 = vshrl.u32 %v13613_v1, 16  ;;  %v4365_v1 = vld [vmem:[#allocation2 + $0x30] sm:$0xf]  ;;  %7374 = vmatpush.bf16.msrb.mxu2 %v11542_v40 }
 0x414   : > { %5563 = vst [vmem:[#allocation3 + $0x60] sm:$0xf] %v5562_v61  ;;  %v13684_v22 = vrot.slane %v15426_v35, 5  ;;  %v4397_v52 = vrot.slane %v4395_v38, 5  ;;  %v4409_v60 = vshll.u32 %v13494_v45, 16  ;;  %v4852_v7 = vshrl.u32 %v13661_v6, 16 }
 0x415   : > { %v5287_v28 = vsel %vm13187_vm7, %v5279_v54, %v5286_v21  ;;  %v5552_v27 = vsel %vm13199_vm2, %v5288_v34, %v5551_v0  ;;  %v5321_v54 = vsel %vm13187_vm7, %v5313_v41, %v5320_v36  ;;  %v5566_v21 = vsel %vm13199_vm2, %v5322_v18, %v5565_v51 }
 0x416   : > { %5550 = vst.msk [vmem:[#allocation3 + $0x4c] sm:$0xf] %vm516_vm14, %v5287_v28  ;;  %v13680_v56 = vrot.slane %v15425_v24, 4  ;;  %v4414_v34 = vshrl.u32 %v4361_v48, 16  ;;  %v4417_v57 = vshll.u32 %v4361_v48, 16  ;;  %v4428_v41 = vshrl.u32 %v4363_v62, 16 }
 0x417   : > { %5553 = vst [vmem:[#allocation3 + $0x50] sm:$0x1] %v5552_v27  ;;  %v4431_v28 = vshll.u32 %v4363_v62, 16  ;;  %v15427_v27 = vor.u32 %v13579_v42, %v13577_v29  ;;  %v4423_v18 = vshll.u32 %v13496_v12, 16  ;;  %v4437_v38 = vshll.u32 %v13508_v49, 16 }
 0x418   : > { %5564 = vst.msk [vmem:[#allocation3 + $0x64] sm:$0xf] %vm516_vm14, %v5321_v54  ;;  %v4416_v15 = vrot.slane %v4414_v34, 4  ;;  %v4419_v36 = vrot.slane %v4417_v57, 5  ;;  %v4445_v29 = vshll.u32 %v4365_v1, 16  ;;  %v3882_v48 = vpop.permute.xlu2 %3881  ;;  %v4451_v12 = vshll.u32 %v13510_v50, 16 }
 0x419   : > { %5567 = vst [vmem:[#allocation3 + $0x68] sm:$0x1] %v5566_v21  ;;  %v4367_v42 = vld [vmem:[#allocation2 + $0x38] sm:$0xf]  ;;  %v4425_v24 = vrot.slane %v4423_v18, 5  ;;  %v4836_v49 = vsel %vm12301_vm9, %v13670_v37, %v13630_v47  ;;  %v4854_v50 = vrot.slane %v4852_v7, 4  ;;  %v15428_v57 = vpack.c.b16 %v13587_v20, %v13606_v10 }
 0x41a   : > { %v4420_v21 = vor.u32 %v4419_v36, %v4416_v15  ;;  %v4447_v35 = vrot.slane %v4445_v29, 5  ;;  %v4439_v34 = vrot.slane %v4437_v38, 5  ;;  %v15429_v36 = vunpack.c.l.b16 %v13569_v63  ;;  %v6156_v39 = vld [vmem:[#allocation3 + $0x48] sm:$0xf] }
 0x41b   : > { %v15430_v20 = vunpack.c.l.b16 %v13591_v13  ;;  %v4844_v18 = vor.u32 %v13684_v22, %v13680_v56  ;;  %v4989_v13 = vrot.slane %v13512_v46, 5  ;;  %v4899_v56 = vunpack.c.l.b16 %v4836_v49 }
 0x41c   : > { %10866 = vmatmul.msk.bf16.gmra.mxu0 %vm3815_vm13, %v10858_v59  ;;  %v4379_v59 = vrot.slane %v4378_v17, 4  ;;  %v4392_v17 = vor.u32 %v4391_v3, %v4388_v9  ;;  %v4442_v3 = vshrl.u32 %v4365_v1, 16  ;;  %v4421_v62 = vrot.slane %v4420_v21, 4 }
 0x41d   : > { %v4623_v10 = vpack.c.b16 %v15430_v20, %v15429_v36  ;;  %v4997_v20 = vrot.slane %v13558_v26, 5 }
 0x41e   : > { %v4384_v16 = vsel %vm12301_vm9, %v4379_v59, %v4383_v43  ;;  %v4393_v9 = vrot.slane %v4392_v17, 4  ;;  %v4411_v59 = vrot.slane %v4409_v60, 5  ;;  %v4433_v43 = vrot.slane %v4431_v28, 5 }
 0x41f   : > { %10889 = vmatmul.msk.bf16.gmra.mxu2 %vm3815_vm13, %v13601_v55  ;;  %v13690_v19 = vunpack.c.l.b16 %v4384_v16  ;;  %10914 = vmatmul.msk.bf16.gmra.mxu3 %vm3815_vm13, %v15427_v27  ;;  %v4855_v16 = vshll.u32 %v13661_v6, 16  ;;  %v4456_v60 = vshrl.u32 %v4367_v42, 16  ;;  %v4459_v6 = vshll.u32 %v4367_v42, 16 }
 0x420   : > { %v3880_v33 = vpop.permute.xlu0 %3879  ;;  %v4398_v51 = vsel %vm12301_vm9, %v4393_v9, %v4397_v52 }
 0x421   : > { %10816 = vmatmul.msk.bf16.gmra.mxu1 %vm3903_vm3, %v3880_v33  ;;  %v4359_v33 = vld [vmem:[#allocation2 + $0x18] sm:$0xf]  ;;  %v13675_v25 = vpop.f32.mrf.mxu0  ;;  %v13698_v55 = vunpack.c.l.b16 %v4398_v51  ;;  %v4857_v1 = vrot.slane %v4855_v16, 5  ;;  %v4963_v51 = vld [vmem:[#allocation2 + $0x10] sm:$0xe]  ;;  %v4458_v28 = vrot.slane %v4456_v60, 4 }
 0x422   : > { %v4400_v14 = vshrl.u32 %v4359_v33, 16  ;;  %v4403_v4 = vshll.u32 %v4359_v33, 16  ;;  %v4430_v33 = vrot.slane %v4428_v41, 4  ;;  %v4453_v41 = vrot.slane %v4451_v12, 5 }
 0x423   : > { %v4494_v54 = vpack.c.b16 %v13698_v55, %v13690_v19  ;;  %v4461_v27 = vrot.slane %v4459_v6, 5  ;;  %v4858_v22 = vor.u32 %v4857_v1, %v4854_v50  ;;  %v13755_v12 = vrot.slane %v4844_v18, 4  ;;  %v4965_v6 = vld [vmem:[#allocation2 + $0x20] sm:$0xe]  ;;  %v4966_v50 = vld [vmem:[#allocation2 + $0x28] sm:$0xe] }
 0x424   : > { %v4402_v0 = vrot.slane %v4400_v14, 4  ;;  %v4405_v58 = vrot.slane %v4403_v4, 5  ;;  %v4434_v17 = vor.u32 %v4433_v43, %v4430_v33  ;;  %v4444_v14 = vrot.slane %v4442_v3, 4  ;;  %v13774_v1 = vld [vmem:[#allocation2 + $0x40] sm:$0xf] }
 0x425   : > { %v4822_v43 = vsel %vm12301_vm9, %v13626_v23, %v13618_v53  ;;  %v10923_v3 = vrot.slane %v4963_v51, 9  ;;  %v4462_v16 = vor.u32 %v4461_v27, %v4458_v28  ;;  %v4993_v53 = vrot.slane %v13514_v32, 5  ;;  %v5964_v23 = vpop.permute.xlu1 %5963  ;;  %v4967_v28 = vld [vmem:[#allocation2 + $0x30] sm:$0xe] }
 0x426   : > { %v4406_v45 = vor.u32 %v4405_v58, %v4402_v0  ;;  %v4435_v52 = vrot.slane %v4434_v17, 4  ;;  %v13715_v0 = vld [vmem:[#allocation2 + $0x34] sm:$0x1]  ;;  %v4426_v58 = vsel %vm12301_vm9, %v4421_v62, %v4425_v24  ;;  %v4448_v40 = vor.u32 %v4447_v35, %v4444_v14 }
 0x427   : > { %v13725_v37 = vunpack.c.l.b16 %v4426_v58  ;;  %v4847_v33 = vshll.u32 %v13715_v0, 16  ;;  %v4898_v14 = vunpack.c.l.b16 %v4822_v43  ;;  %v4465_v24 = vshll.u32 %v13530_v30, 16 }
 0x428   : > { %v4407_v61 = vrot.slane %v4406_v45, 4  ;;  %v13727_v45 = vld [vmem:[#allocation2 + $0x3c] sm:$0x1]  ;;  %v4440_v7 = vsel %vm12301_vm9, %v4435_v52, %v4439_v34  ;;  %v4449_v15 = vrot.slane %v4448_v40, 4  ;;  %v4990_v49 = vsel %vm12315_vm12, %v10923_v3, %v4989_v13 }
 0x429   : > { %v13713_v9 = vpop.f32.mrf.mxu0  ;;  %v4861_v38 = vshll.u32 %v13727_v45, 16  ;;  %v13750_v29 = vunpack.c.l.b16 %v4440_v7  ;;  %v13757_v46 = vrot.slane %v4847_v33, 5  ;;  %v4905_v52 = vpack.c.b16 %v4899_v56, %v4898_v14 }
 0x42a   : > { %v4412_v4 = vsel %vm12301_vm9, %v4407_v61, %v4411_v59  ;;  %v4964_v59 = vld [vmem:[#allocation2 + $0x18] sm:$0xe]  ;;  %v4454_v63 = vsel %vm12301_vm9, %v4449_v15, %v4453_v41  ;;  %v13765_v32 = vrot.slane %v4858_v22, 4  ;;  %v4463_v40 = vrot.slane %v4462_v16, 4 }
 0x42b   : > { %v13723_v47 = vunpack.c.l.b16 %v4412_v4  ;;  %v13752_v42 = vunpack.c.l.b16 %v4454_v63  ;;  %v10924_v17 = vrot.slane %v4964_v59, 9  ;;  %v11543_v4 = vld [vmem:[#allocation12 + $0x20] sm:$0xff]  ;;  %v13770_v34 = vrot.slane %v4861_v38, 5  ;;  %v4968_v63 = vld [vmem:[#allocation2 + $0x38] sm:$0xe] }
 0x42c   : > { %10919 = vmatmul.msk.bf16.vlgmr.msrb.gmra.mxu0 %vm3815_vm13, %v15428_v57  ;;  %8032 = vmatpush.bf16.msra.mxu3 %v11543_v4  ;;  %v4479_v51 = vshll.u32 %v13556_v11, 16  ;;  %v5022_v7 = vunpack.c.l.b16 %v4990_v49  ;;  %v4467_v27 = vrot.slane %v4465_v24, 5  ;;  %v10925_v36 = vrot.slane %v4965_v6, 9  ;;  %v13785_v11 = vld [vmem:[#allocation2 + $0x44] sm:$0x1] }
 0x42d   : > { %v4495_v61 = vpack.c.b16 %v13725_v37, %v13723_v47  ;;  %v13747_v21 = vpop.f32.mrf.mxu3  ;;  %v4496_v62 = vpack.c.b16 %v13752_v42, %v13750_v29  ;;  %v4994_v30 = vsel %vm12315_vm12, %v10924_v17, %v4993_v53  ;;  %v4864_v18 = vsel %vm12301_vm9, %v13765_v32, %v13770_v34  ;;  %v4969_v4 = vld [vmem:[#allocation2 + $0x40] sm:$0xe]  ;;  %v13799_v24 = vld [vmem:[#allocation2 + $0x4c] sm:$0x1]  ;;  %v4970_v32 = vld [vmem:[#allocation2 + $0x48] sm:$0xe] }
 0x42e   : > { %v5023_v15 = vunpack.c.l.b16 %v4994_v30  ;;  %v5001_v43 = vrot.slane %v13561_v8, 5  ;;  %v4866_v3 = vshrl.u32 %v13774_v1, 16  ;;  %v4468_v13 = vsel %vm12301_vm9, %v4463_v40, %v4467_v27  ;;  %v5139_v40 = vld [vmem:[%s12127_s12 + $0x90] sm:$0xff]  ;;  %v5148_v29 = vld [vmem:[%s12127_s12 + $0xd8] sm:$0xff] }
 0x42f   : > { %10890 = vmatmul.msk.bf16.gmra.mxu2 %vm3815_vm13, %v4623_v10  ;;  %11027 = vmatmul.msk.bf16.vlgmr.msrb.gmra.mxu3 %vm3815_vm13, %v5964_v23  ;;  %v10926_v10 = vrot.slane %v4966_v50, 9  ;;  %v4998_v26 = vsel %vm12315_vm12, %v10925_v36, %v4997_v20  ;;  %v10927_v56 = vrot.slane %v4967_v28, 9  ;;  %v5005_v53 = vrot.slane %v13715_v0, 5  ;;  %v4779_v0 = vld [vmem:[#allocation2 + $0x48] sm:$0xf]  ;;  %v11511_v42 = vld [vmem:[#allocation3 + $0x30] sm:$0xff] }
 0x430   : > { %v13782_v59 = vpack.c.b16 %v5023_v15, %v5022_v7  ;;  %v5024_v8 = vunpack.c.l.b16 %v4998_v26  ;;  %v10928_v23 = vrot.slane %v4968_v63, 9  ;;  %v5009_v14 = vrot.slane %v13727_v45, 5  ;;  %v11507_v15 = vld [vmem:[#allocation3] sm:$0xff] }
 0x431   : > { %10817 = vmatmul.msk.bf16.gmra.mxu1 %vm3903_vm3, %v3882_v48  ;;  %v4369_v48 = vld [vmem:[#allocation2 + $0x40] sm:$0xf]  ;;  %v13767_v58 = vpop.f32.mrf.mxu0  ;;  %v5002_v16 = vsel %vm12315_vm12, %v10926_v10, %v5001_v43  ;;  %v13803_v49 = vunpack.c.l.b16 %v4468_v13  ;;  %v5013_v6 = vrot.slane %v13785_v11, 5  ;;  %v5006_v45 = vsel %vm12315_vm12, %v10927_v56, %v5005_v53 }
 0x432   : > { %v4470_v35 = vshrl.u32 %v4369_v48, 16  ;;  %v4473_v60 = vshll.u32 %v4369_v48, 16  ;;  %v4481_v48 = vrot.slane %v4479_v51, 5  ;;  %v5025_v17 = vunpack.c.l.b16 %v5002_v16 }
 0x433   : > { %v5026_v30 = vunpack.c.l.b16 %v5006_v45  ;;  %v10930_v7 = vrot.slane %v4970_v32, 9  ;;  %v5171_v27 = vpack.c.bf16 %v5139_v40, %v5139_v40  ;;  %v5017_v10 = vrot.slane %v13799_v24, 5 }
 0x434   : > { %v4472_v57 = vrot.slane %v4470_v35, 4  ;;  %v4475_v41 = vrot.slane %v4473_v60, 5  ;;  %v10929_v60 = vrot.slane %v4969_v4, 9  ;;  %v13808_v34 = vpack.c.b16 %v5025_v17, %v5024_v8 }
 0x435   : > { %v13792_v22 = vpop.f32.mrf.mxu3  ;;  %v4880_v43 = vshrl.u32 %v4779_v0, 16  ;;  %v4883_v63 = vshll.u32 %v4779_v0, 16  ;;  %v5341_v26 = vshrl.u32 %v5171_v27, 16  ;;  %v5344_v56 = vshll.u32 %v5171_v27, 16  ;;  %v13826_v16 = vpop.f32.mrf.mxu2  ;;  %v5579_v0 = vld [vmem:[#allocation3 + $0x80] sm:$0x1] }
 0x436   : > { %v4476_v33 = vor.u32 %v4475_v41, %v4472_v57  ;;  %v5140_v57 = vld [vmem:[%s12127_s12 + $0x98] sm:$0xff]  ;;  %v5014_v51 = vsel %vm12315_vm12, %v10929_v60, %v5013_v6  ;;  %v5933_v8 = vunpack.c.l.b16 %v5171_v27  ;;  %v5018_v53 = vsel %vm12315_vm12, %v10930_v7, %v5017_v10  ;;  %v5575_v6 = vld [vmem:[#allocation3 + $0x78] sm:$0xf]  ;;  %v5138_v27 = vld [vmem:[%s12127_s12 + $0x88] sm:$0xff] }
 0x437   : > { %v5172_v36 = vpack.c.bf16 %v5140_v57, %v5140_v57  ;;  %v4901_v60 = vunpack.c.l.b16 %v4864_v18 }
 0x438   : > { %v4477_v38 = vrot.slane %v4476_v33, 4  ;;  %v4869_v33 = vshll.u32 %v13774_v1, 16  ;;  %v4850_v1 = vsel %vm12301_vm9, %v13755_v12, %v13757_v46  ;;  %v4882_v12 = vrot.slane %v4880_v43, 4 }
 0x439   : > { %v13818_v28 = vpop.f32.mrf.mxu0  ;;  %v5934_v17 = vunpack.c.l.b16 %v5172_v36  ;;  %v4900_v7 = vunpack.c.l.b16 %v4850_v1  ;;  %v4885_v46 = vrot.slane %v4883_v63, 5  ;;  %v5170_v43 = vpack.c.bf16 %v5138_v27, %v5138_v27  ;;  %v5142_v27 = vld [vmem:[%s12127_s12 + $0xa8] sm:$0xff] }
 0x43a   : > { %v4482_v35 = vsel %vm12301_vm9, %v4477_v38, %v4481_v48  ;;  %v5349_v38 = vshrl.u32 %v5172_v36, 16  ;;  %v5352_v48 = vshll.u32 %v5172_v36, 16  ;;  %v4871_v40 = vrot.slane %v4869_v33, 5 }
 0x43b   : > { %v13806_v50 = vunpack.c.l.b16 %v4482_v35  ;;  %v5029_v35 = vunpack.c.l.b16 %v5018_v53  ;;  %v5956_v45 = vpack.c.b16 %v5934_v17, %v5933_v8  ;;  %v4889_v53 = vshll.u32 %v13799_v24, 16 }
 0x43c   : > { %10920 = vmatmul.msk.bf16.gmra.mxu0 %vm3815_vm13, %v4905_v52  ;;  %v5010_v52 = vsel %vm12315_vm12, %v10928_v23, %v5009_v14  ;;  %v5028_v23 = vunpack.c.l.b16 %v5014_v51  ;;  %v5343_v14 = vrot.slane %v5341_v26, 7  ;;  %v5351_v4 = vrot.slane %v5349_v38, 7 }
 0x43d   : > { %v5027_v41 = vunpack.c.l.b16 %v5010_v52  ;;  %v13835_v32 = vpop.f32.mrf.mxu3  ;;  %v4868_v52 = vrot.slane %v4866_v3, 4  ;;  %5981 = vrot.lane.b32.xlu0 %v5956_v45, %s11944_s22  ;;  %v5335_v1 = vshll.u32 %v5170_v43, 16 }
 0x43e   : > { %v5346_v57 = vor.u32 %v5344_v56, %v5343_v14  ;;  %v5356_v51 = vrot.slane %v5351_v4, 4  ;;  %v13840_v36 = vpack.c.b16 %v5029_v35, %v5028_v23  ;;  %v4906_v56 = vpack.c.b16 %v4901_v60, %v4900_v7  ;;  %v13853_v60 = vpop.f32.mrf.mxu2 }
 0x43f   : > { %v13824_v13 = vpack.c.b16 %v5027_v41, %v5026_v30  ;;  %11007 = vmatmul.msk.bf16.vlgmr.msra.gmra.mxu2 %vm3815_vm13, %v11507_v15  ;;  %v5347_v30 = vrot.slane %v5343_v14, 4  ;;  %v5354_v41 = vor.u32 %v5352_v48, %v5351_v4  ;;  %v5137_v15 = vld [vmem:[%s12127_s12 + $0x80] sm:$0xff]  ;;  %v4872_v38 = vor.u32 %v4871_v40, %v4868_v52  ;;  %v5568_v52 = vld [vmem:[#allocation3 + $0x6c] sm:$0xf] }
 0x440   : > { %v5966_v10 = vpop.permute.xlu0 %5965  ;;  %v5576_v3 = vsel %vm13180_vm1, %v5346_v57, %v5575_v6  ;;  %v5580_v33 = vsel %vm13199_vm2, %v5356_v51, %v5579_v0  ;;  %v5169_v26 = vpack.c.bf16 %v5137_v15, %v5137_v15  ;;  %v5332_v23 = vshrl.u32 %v5170_v43, 16  ;;  %v5141_v15 = vld [vmem:[%s12127_s12 + $0xa0] sm:$0xff] }
 0x441   : > { %v5355_v18 = vsel %vm13187_vm7, %v5347_v30, %v5354_v41  ;;  %11028 = vmatmul.msk.bf16.gmra.mxu3 %vm3815_vm13, %v5966_v10  ;;  %5577 = vst [vmem:[#allocation3 + $0x78] sm:$0xf] %v5576_v3  ;;  %v13849_v63 = vpop.f32.mrf.mxu0  ;;  %v5932_v14 = vunpack.c.l.b16 %v5170_v43  ;;  %v4886_v35 = vor.u32 %v4885_v46, %v4882_v12  ;;  %v4875_v0 = vshll.u32 %v13785_v11, 16  ;;  %v5572_v30 = vld [vmem:[#allocation3 + $0x74] sm:$0x1]  ;;  %v11508_v10 = vld [vmem:[#allocation3 + $0xc] sm:$0xff] }
 0x442   : > { %5578 = vst.msk [vmem:[#allocation3 + $0x7c] sm:$0xf] %vm516_vm14, %v5355_v18  ;;  %v5324_v48 = vshrl.u32 %v5169_v26, 16  ;;  %v5327_v8 = vshll.u32 %v5169_v26, 16  ;;  %v5931_v17 = vunpack.c.l.b16 %v5169_v26  ;;  %v5334_v45 = vrot.slane %v5332_v23, 7 }
 0x443   : > { %5581 = vst [vmem:[#allocation3 + $0x80] sm:$0x1] %v5580_v33  ;;  %v4873_v51 = vrot.slane %v4872_v38, 4  ;;  %v4891_v7 = vrot.slane %v4889_v53, 5  ;;  %v4887_v18 = vrot.slane %v4886_v35, 4  ;;  %v5173_v3 = vpack.c.bf16 %v5141_v15, %v5141_v15 }
 0x444   : > { %v3884_v4 = vpop.permute.xlu1 %3883  ;;  %v5326_v6 = vrot.slane %v5324_v48, 7  ;;  %v5955_v40 = vpack.c.b16 %v5932_v14, %v5931_v17  ;;  %v5337_v12 = vor.u32 %v5335_v1, %v5334_v45  ;;  %v5339_v46 = vrot.slane %v5334_v45, 4  ;;  %v5582_v45 = vld [vmem:[#allocation3 + $0x84] sm:$0xf] }
 0x445   : > { %10818 = vmatmul.msk.bf16.gmra.mxu1 %vm3903_vm3, %v3884_v4  ;;  %v13858_v41 = vpop.f32.mrf.mxu3  ;;  %v5174_v33 = vpack.c.bf16 %v5142_v27, %v5142_v27  ;;  %v4877_v26 = vrot.slane %v4875_v0, 5  ;;  %v5358_v48 = vshrl.u32 %v5173_v3, 16  ;;  %v5935_v23 = vunpack.c.l.b16 %v5173_v3  ;;  %v11524_v0 = vld [vmem:[#allocation12 + $0x8] sm:$0xff] }
 0x446   : > { %v5329_v24 = vor.u32 %v5327_v8, %v5326_v6  ;;  %v5330_v57 = vrot.slane %v5326_v6, 4  ;;  %5979 = vrot.lane.b32.xlu2 %v5955_v40, %s11944_s22  ;;  %v5573_v43 = vsel %vm13199_vm2, %v5339_v46, %v5572_v30  ;;  %v5361_v8 = vshll.u32 %v5173_v3, 16  ;;  %6682 = vmatpush.bf16.msra.mxu0 %v11524_v0 }
 0x447   : > { %v5366_v17 = vshrl.u32 %v5174_v33, 16  ;;  %v5369_v53 = vshll.u32 %v5174_v33, 16  ;;  %5574 = vst [vmem:[#allocation3 + $0x74] sm:$0x1] %v5573_v43  ;;  %v5936_v1 = vunpack.c.l.b16 %v5174_v33  ;;  %v4878_v14 = vsel %vm12301_vm9, %v4873_v51, %v4877_v26  ;;  %v11505_v51 = vld [vmem:[#allocation10 + $0x40] sm:$0xff] }
 0x448   : > { %v5569_v11 = vsel %vm13180_vm1, %v5329_v24, %v5568_v52  ;;  %v4892_v4 = vsel %vm12301_vm9, %v4887_v18, %v4891_v7  ;;  %v5360_v35 = vrot.slane %v5358_v48, 7  ;;  %v5586_v52 = vld [vmem:[#allocation3 + $0x8c] sm:$0x1]  ;;  %v4902_v27 = vunpack.c.l.b16 %v4878_v14  ;;  %v6138_v7 = vld [vmem:[#allocation3] sm:$0xf]  ;;  %5059 = vmatpush.bf16.msrb.mxu1 %v11505_v51 }
 0x449   : > { %5570 = vst [vmem:[#allocation3 + $0x6c] sm:$0xf] %v5569_v11  ;;  %v13869_v38 = vpop.f32.mrf.mxu0  ;;  %v5368_v6 = vrot.slane %v5366_v17, 7  ;;  %v5957_v40 = vpack.c.b16 %v5936_v1, %v5935_v23  ;;  %v6139_v18 = vld [vmem:[#allocation3 + $0x4] sm:$0xf]  ;;  %v6190_v48 = vshll.u32 %v6138_v7, 16 }
 0x44a   : > { %v5364_v30 = vrot.slane %v5360_v35, 4  ;;  %v6140_v26 = vld [vmem:[#allocation3 + $0x8] sm:$0x1]  ;;  %v6200_v17 = vshrl.u32 %v6139_v18, 16 }
 0x44b   : > { %v5373_v46 = vrot.slane %v5368_v6, 4  ;;  %5983 = vrot.lane.b32.xlu1 %v5957_v40, %s11944_s22  ;;  %v6206_v1 = vshll.u32 %v6140_v26, 16 }
 0x44c   : > { %10921 = vmatmul.msk.bf16.gmra.mxu0 %vm3815_vm13, %v4906_v56  ;;  %v5338_v56 = vsel %vm13187_vm7, %v5330_v57, %v5337_v12  ;;  %v5968_v24 = vpop.permute.xlu2 %5967  ;;  %v5363_v57 = vor.u32 %v5361_v8, %v5360_v35  ;;  %v5371_v12 = vor.u32 %v5369_v53, %v5368_v6  ;;  %v6196_v8 = vshll.u32 %v6139_v18, 16  ;;  %v6142_v18 = vld [vmem:[#allocation3 + $0x10] sm:$0xf] }
 0x44d   : > { %5571 = vst.msk [vmem:[#allocation3 + $0x70] sm:$0xf] %vm516_vm14, %v5338_v56  ;;  %v5587_v33 = vsel %vm13199_vm2, %v5373_v46, %v5586_v52  ;;  %v6187_v56 = vshrl.u32 %v6138_v7, 16  ;;  %v6202_v6 = vrot.slane %v6200_v17, 4  ;;  %v6208_v40 = vrot.slane %v6206_v1, 5 }
 0x44e   : > { %v5372_v11 = vsel %vm13187_vm7, %v5364_v30, %v5371_v12  ;;  %v5583_v3 = vsel %vm13180_vm1, %v5363_v57, %v5582_v45  ;;  %5588 = vst [vmem:[#allocation3 + $0x8c] sm:$0x1] %v5587_v33  ;;  %v6198_v35 = vrot.slane %v6196_v8, 5  ;;  %v11509_v12 = vld [vmem:[#allocation3 + $0x18] sm:$0xff]  ;;  %v6141_v7 = vld [vmem:[#allocation3 + $0xc] sm:$0xf] }
 0x44f   : > { %11008 = vmatmul.msk.bf16.gmra.mxu2 %vm3815_vm13, %v11508_v10  ;;  %v4903_v10 = vunpack.c.l.b16 %v4892_v4  ;;  %5584 = vst [vmem:[#allocation3 + $0x84] sm:$0xf] %v5583_v3  ;;  %v6189_v23 = vrot.slane %v6187_v56, 4  ;;  %v6192_v4 = vrot.slane %v6190_v48, 5  ;;  %v6211_v3 = vshrl.u32 %v6141_v7, 16 }
 0x450   : > { %v13877_v15 = vpop.f32.mrf.mxu2  ;;  %5585 = vst.msk [vmem:[#allocation3 + $0x88] sm:$0xf] %vm516_vm14, %v5372_v11  ;;  %v6203_v52 = vor.u32 %v6202_v6, %v6198_v35  ;;  %v6143_v11 = vld [vmem:[#allocation3 + $0x14] sm:$0x1]  ;;  %v6214_v33 = vshll.u32 %v6141_v7, 16  ;;  %v6220_v26 = vshll.u32 %v6142_v18, 16 }
 0x451   : > { %11029 = vmatmul.msk.bf16.gmra.mxu3 %vm3815_vm13, %v5968_v24  ;;  %v13889_v53 = vpop.f32.mrf.mxu0  ;;  %v4907_v14 = vpack.c.b16 %v4903_v10, %v4902_v27  ;;  %v6193_v45 = vor.u32 %v6192_v4, %v6189_v23  ;;  %v6224_v56 = vshrl.u32 %v6142_v18, 16  ;;  %v6230_v17 = vshll.u32 %v6143_v11, 16 }
 0x452   : > { %v13886_v43 = vpop.f32.mrf.mxu3  ;;  %v6204_v30 = vrot.slane %v6203_v52, 4  ;;  %v6213_v1 = vrot.slane %v6211_v3, 4  ;;  %v6222_v4 = vrot.slane %v6220_v26, 5 }
 0x453   : > { %v6194_v57 = vrot.slane %v6193_v45, 4  ;;  %v6232_v52 = vrot.slane %v6230_v17, 5 }
 0x454   : > { %v6209_v55 = vsel %vm12301_vm9, %v6204_v30, %v6208_v40 }
 0x455   : > { %10871 = vmatmul.msk.bf16.vlgmr.msra.gmra.mxu1 %vm3815_vm13, %v4494_v54  ;;  %v6199_v19 = vsel %vm12301_vm9, %v6194_v57, %v6198_v35  ;;  %v6574_v10 = vunpack.c.l.b16 %v6209_v55  ;;  %v6226_v35 = vrot.slane %v6224_v56, 4  ;;  %v5146_v55 = vld [vmem:[%s12127_s12 + $0xc8] sm:$0xff] }
 0x456   : > { %11571 = vmatpush.bf16.msra.mxu1 %v11524_v0  ;;  %v6573_v54 = vunpack.c.l.b16 %v6199_v19  ;;  %v5970_v0 = vpop.permute.xlu0 %5969  ;;  %v5145_v19 = vld [vmem:[%s12127_s12 + $0xc0] sm:$0xff] }
 0x457   : > { %v6227_v45 = vor.u32 %v6226_v35, %v6222_v4  ;;  %v5596_v35 = vld [vmem:[#allocation3 + $0x9c] sm:$0xf] }
 0x458   : > { %v13897_v24 = vpop.f32.mrf.mxu2  ;;  %v6605_v8 = vpack.c.b16 %v6574_v10, %v6573_v54  ;;  %v11510_v54 = vld [vmem:[#allocation3 + $0x24] sm:$0xff] }
 0x459   : > { %v13901_v27 = vpop.f32.mrf.mxu0  ;;  %v6228_v57 = vrot.slane %v6227_v45, 4 }
 0x45a   : > { %v13899_v46 = vpop.f32.mrf.mxu3  ;;  %15431 = vst [vmem:[#allocation19_spill] sm:$0xff] %v13901_v27 }
 0x45b   : > { %v6233_v37 = vsel %vm12301_vm9, %v6228_v57, %v6232_v52 }
 0x45c   : > { %10922 = vmatmul.msk.bf16.gmra.mxu0 %vm3815_vm13, %v4907_v14  ;;  %v6216_v14 = vrot.slane %v6214_v33, 5 }
 0x45e   : > { %v6217_v6 = vor.u32 %v6216_v14, %v6213_v1  ;;  %v6576_v1 = vunpack.c.l.b16 %v6233_v37 }
 0x45f   : > { %11009 = vmatmul.msk.bf16.gmra.mxu2 %vm3815_vm13, %v11509_v12 }
 0x460   : > { %v13908_v51 = vpop.f32.mrf.mxu2  ;;  %v6218_v40 = vrot.slane %v6217_v6, 4 }
 0x461   : > { %11030 = vmatmul.msk.bf16.gmra.mxu3 %vm3815_vm13, %v5970_v0  ;;  %v5177_v0 = vpack.c.bf16 %v5145_v19, %v5145_v19 }
 0x462   : > { %v13910_v48 = vpop.f32.mrf.mxu3  ;;  %v6223_v47 = vsel %vm12301_vm9, %v6218_v40, %v6222_v4  ;;  %v5600_v40 = vld [vmem:[#allocation3 + $0xa4] sm:$0x1] }
 0x463   : > { %v5392_v3 = vshrl.u32 %v5177_v0, 16  ;;  %v5395_v33 = vshll.u32 %v5177_v0, 16  ;;  %v5939_v26 = vunpack.c.l.b16 %v5177_v0  ;;  %v6575_v17 = vunpack.c.l.b16 %v6223_v47  ;;  %v5972_v45 = vpop.permute.xlu1 %5971  ;;  %v6146_v47 = vld [vmem:[#allocation3 + $0x20] sm:$0x1] }
 0x465   : > { %10872 = vmatmul.msk.bf16.gmra.mxu1 %vm3815_vm13, %v4495_v61  ;;  %v5178_v61 = vpack.c.bf16 %v5146_v55, %v5146_v55  ;;  %v5394_v14 = vrot.slane %v5392_v3, 7  ;;  %v6144_v55 = vld [vmem:[#allocation3 + $0x18] sm:$0xf]  ;;  %v5143_v3 = vld [vmem:[%s12127_s12 + $0xb0] sm:$0xff] }
 0x466   : > { %v6235_v37 = vshrl.u32 %v6144_v55, 16 }
 0x467   : > { %v5400_v56 = vshrl.u32 %v5178_v61, 16  ;;  %v5397_v52 = vor.u32 %v5395_v33, %v5394_v14 }
 0x468   : > { %v13920_v30 = vpop.f32.mrf.mxu2 }
 0x469   : > { %v13913_v23 = vpop.f32.mrf.mxu0  ;;  %v5402_v4 = vrot.slane %v5400_v56, 7  ;;  %v5597_v0 = vsel %vm13180_vm1, %v5397_v52, %v5596_v35  ;;  %v6254_v35 = vshll.u32 %v6146_v47, 16 }
 0x46a   : > { %v13925_v7 = vpop.f32.mrf.mxu3  ;;  %5598 = vst [vmem:[#allocation3 + $0x9c] sm:$0xf] %v5597_v0 }
 0x46b   : > { %15432 = vst [vmem:[#allocation20_spill] sm:$0xff] %v13925_v7  ;;  %v5407_v19 = vrot.slane %v5402_v4, 4 }
 0x46c   : > { %11047 = vmatmul.msk.bf16.vlgmr.msra.gmra.mxu0 %vm3815_vm13, %v6605_v8  ;;  %v5940_v8 = vunpack.c.l.b16 %v5178_v61 }
 0x46e   : > { %v5959_v6 = vpack.c.b16 %v5940_v8, %v5939_v26  ;;  %v5144_v26 = vld [vmem:[%s12127_s12 + $0xb8] sm:$0xff] }
 0x46f   : > { %11010 = vmatmul.msk.bf16.gmra.mxu2 %vm3815_vm13, %v11510_v54  ;;  %v6145_v54 = vld [vmem:[#allocation3 + $0x1c] sm:$0xf] }
 0x470   : > { %5987 = vrot.lane.b32.xlu0 %v5959_v6, %s11944_s22  ;;  %v6244_v8 = vshll.u32 %v6145_v54, 16 }
 0x471   : > { %v13931_v18 = vpop.f32.mrf.mxu0  ;;  %11031 = vmatmul.msk.bf16.gmra.mxu3 %vm3815_vm13, %v5972_v45  ;;  %v5175_v45 = vpack.c.bf16 %v5143_v3, %v5143_v3 }
 0x472   : > { %v13937_v57 = vpop.f32.mrf.mxu2  ;;  %v13944_v33 = vpop.f32.mrf.mxu3  ;;  %v6246_v6 = vrot.slane %v6244_v8, 5  ;;  %v5147_v8 = vld [vmem:[%s12127_s12 + $0xd0] sm:$0xff] }
 0x475   : > { %10873 = vmatmul.msk.bf16.gmra.mxu1 %vm3815_vm13, %v4496_v62 }
 0x476   : > { %v3925_v12 = vpop.f32.mrf.mxu1 }
 0x477   : > { %v3926_v10 = vadd.f32 %v3925_v12, %v13675_v25  ;;  %v5403_v25 = vshll.u32 %v5178_v61, 16  ;;  %v6238_v61 = vshll.u32 %v6144_v55, 16  ;;  %v5176_v55 = vpack.c.bf16 %v5144_v26, %v5144_v26 }
 0x479   : > { %v13934_v11 = vadd.f32 %v13826_v16, %v3926_v10  ;;  %v5398_v16 = vrot.slane %v5394_v14, 4  ;;  %v5405_v12 = vor.u32 %v5403_v25, %v5402_v4  ;;  %v6606_v10 = vpack.c.b16 %v6576_v1, %v6575_v17  ;;  %v13951_v1 = vpop.f32.mrf.mxu0 }
 0x47a   : > { %v5601_v25 = vsel %vm13199_vm2, %v5407_v19, %v5600_v40  ;;  %v6248_v17 = vshrl.u32 %v6145_v54, 16  ;;  %v6237_v14 = vrot.slane %v6235_v37, 4  ;;  %v6240_v4 = vrot.slane %v6238_v61, 5  ;;  %v13959_v3 = vpop.f32.mrf.mxu2 }
 0x47b   : > { %v5406_v56 = vsel %vm13187_vm7, %v5398_v16, %v5405_v12  ;;  %5602 = vst [vmem:[#allocation3 + $0xa4] sm:$0x1] %v5601_v25  ;;  %v6256_v16 = vrot.slane %v6254_v35, 5  ;;  %v5375_v12 = vshrl.u32 %v5175_v45, 16  ;;  %v5378_v19 = vshll.u32 %v5175_v45, 16  ;;  %v13965_v35 = vpop.f32.mrf.mxu3 }
 0x47c   : > { %5599 = vst.msk [vmem:[#allocation3 + $0xa0] sm:$0xf] %vm516_vm14, %v5406_v56  ;;  %v6250_v52 = vrot.slane %v6248_v17, 4  ;;  %v6241_v20 = vor.u32 %v6240_v4, %v6237_v14  ;;  %11048 = vmatmul.msk.bf16.gmra.mxu0 %vm3815_vm13, %v6606_v10  ;;  %v5383_v54 = vshrl.u32 %v5176_v55, 16  ;;  %v5386_v47 = vshll.u32 %v5176_v55, 16 }
 0x47d   : > { %v5937_v37 = vunpack.c.l.b16 %v5175_v45  ;;  %v5938_v61 = vunpack.c.l.b16 %v5176_v55  ;;  %15433 = vst [vmem:[#allocation21_spill] sm:$0xff] %v13959_v3  ;;  %v5377_v56 = vrot.slane %v5375_v12, 7  ;;  %v5589_v10 = vld [vmem:[#allocation3 + $0x90] sm:$0xf]  ;;  %v5179_v14 = vpack.c.bf16 %v5147_v8, %v5147_v8 }
 0x47e   : > { %v6251_v40 = vor.u32 %v6250_v52, %v6246_v6  ;;  %v6242_v0 = vrot.slane %v6241_v20, 4  ;;  %v5385_v25 = vrot.slane %v5383_v54, 7  ;;  %v5180_v4 = vpack.c.bf16 %v5148_v29, %v5148_v29  ;;  %15434 = vst [vmem:[#allocation22_spill] sm:$0xff] %v13965_v35  ;;  %v6147_v35 = vld [vmem:[#allocation3 + $0x24] sm:$0xf] }
 0x47f   : > { %v5958_v17 = vpack.c.b16 %v5938_v61, %v5937_v37  ;;  %v5380_v45 = vor.u32 %v5378_v19, %v5377_v56  ;;  %v5381_v55 = vrot.slane %v5377_v56, 4  ;;  %v5412_v37 = vshll.u32 %v5179_v14, 16  ;;  %11011 = vmatmul.msk.bf16.gmra.mxu2 %vm3815_vm13, %v11511_v42  ;;  %v5603_v56 = vld [vmem:[#allocation3 + $0xa8] sm:$0xf] }
 0x480   : > { %v6252_v26 = vrot.slane %v6251_v40, 4  ;;  %v6247_v62 = vsel %vm12301_vm9, %v6242_v0, %v6246_v6  ;;  %v5593_v40 = vld [vmem:[#allocation3 + $0x98] sm:$0x1]  ;;  %v5388_v7 = vor.u32 %v5386_v47, %v5385_v25  ;;  %v5390_v3 = vrot.slane %v5385_v25, 4 }
 0x481   : > { %v6577_v52 = vunpack.c.l.b16 %v6247_v62  ;;  %v13969_v12 = vpop.f32.mrf.mxu0  ;;  %5985 = vrot.lane.b32.xlu2 %v5958_v17, %s11944_s22  ;;  %v5409_v6 = vshrl.u32 %v5179_v14, 16  ;;  %v5590_v0 = vsel %vm13180_vm1, %v5380_v45, %v5589_v10  ;;  %v5417_v61 = vshrl.u32 %v5180_v4, 16  ;;  %v5974_v62 = vpop.permute.xlu2 %5973 }
 0x482   : > { %v6257_v20 = vsel %vm12301_vm9, %v6252_v26, %v6256_v16  ;;  %v5420_v8 = vshll.u32 %v5180_v4, 16  ;;  %v5389_v16 = vsel %vm13187_vm7, %v5381_v55, %v5388_v7  ;;  %5591 = vst [vmem:[#allocation3 + $0x90] sm:$0xf] %v5590_v0  ;;  %v5594_v19 = vsel %vm13199_vm2, %v5390_v3, %v5593_v40  ;;  %v13980_v42 = vpop.f32.mrf.mxu2  ;;  %v6148_v3 = vld [vmem:[#allocation3 + $0x28] sm:$0xf]  ;;  %11032 = vmatmul.msk.bf16.gmra.mxu3 %vm3815_vm13, %v5974_v62 }
 0x483   : > { %v6578_v54 = vunpack.c.l.b16 %v6257_v20  ;;  %v5411_v47 = vrot.slane %v5409_v6, 7  ;;  %5592 = vst.msk [vmem:[#allocation3 + $0x94] sm:$0xf] %vm516_vm14, %v5389_v16  ;;  %v5419_v26 = vrot.slane %v5417_v61, 7  ;;  %v5941_v25 = vunpack.c.l.b16 %v5179_v14  ;;  %v5607_v20 = vld [vmem:[#allocation3 + $0xb0] sm:$0x1]  ;;  %v13984_v16 = vpop.f32.mrf.mxu3 }
 0x484   : > { %v5942_v29 = vunpack.c.l.b16 %v5180_v4  ;;  %5595 = vst [vmem:[#allocation3 + $0x98] sm:$0x1] %v5594_v19  ;;  %v6149_v6 = vld [vmem:[#allocation3 + $0x2c] sm:$0x1]  ;;  %v6259_v61 = vshrl.u32 %v6147_v35, 16  ;;  %v6262_v14 = vshll.u32 %v6147_v35, 16 }
 0x485   : > { %v5414_v10 = vor.u32 %v5412_v37, %v5411_v47  ;;  %v5415_v17 = vrot.slane %v5411_v47, 4  ;;  %v6607_v45 = vpack.c.b16 %v6578_v54, %v6577_v52  ;;  %v5422_v7 = vor.u32 %v5420_v8, %v5419_v26  ;;  %15435 = vst [vmem:[#allocation23_spill] sm:$0xff] %v13984_v16 }
 0x486   : > { %v5424_v55 = vrot.slane %v5419_v26, 4  ;;  %v5960_v0 = vpack.c.b16 %v5942_v29, %v5941_v25  ;;  %v6268_v4 = vshll.u32 %v6148_v3, 16  ;;  %v6272_v54 = vshrl.u32 %v6148_v3, 16 }
 0x487   : > { %v5604_v40 = vsel %vm13180_vm1, %v5414_v10, %v5603_v56  ;;  %v5423_v37 = vsel %vm13187_vm7, %v5415_v17, %v5422_v7  ;;  %v6261_v35 = vrot.slane %v6259_v61, 4  ;;  %v6264_v19 = vrot.slane %v6262_v14, 5  ;;  %v14002_v7 = vpop.f32.mrf.mxu1  ;;  %v5976_v61 = vpop.permute.xlu0 %5975 }
 0x488   : > { %5605 = vst [vmem:[#allocation3 + $0xa8] sm:$0xf] %v5604_v40  ;;  %v5608_v52 = vsel %vm13199_vm2, %v5424_v55, %v5607_v20  ;;  %5989 = vrot.lane.b32.xlu1 %v5960_v0, %s11944_s22  ;;  %v6270_v47 = vrot.slane %v6268_v4, 5  ;;  %v6278_v26 = vshll.u32 %v6149_v6, 16  ;;  %v6274_v56 = vrot.slane %v6272_v54, 4  ;;  %v11512_v0 = vld [vmem:[#allocation3 + $0x3c] sm:$0xff] }
 0x489   : > { %v13992_v8 = vpop.f32.mrf.mxu0  ;;  %5606 = vst.msk [vmem:[#allocation3 + $0xac] sm:$0xf] %vm516_vm14, %v5423_v37  ;;  %v6265_v25 = vor.u32 %v6264_v19, %v6261_v35  ;;  %v15436_v29 = vpack.c.b16 %v13806_v50, %v13803_v49  ;;  %v6150_v37 = vld [vmem:[#allocation3 + $0x30] sm:$0xf]  ;;  %v6152_v54 = vld [vmem:[#allocation3 + $0x38] sm:$0x1] }
 0x48a   : > { %5609 = vst [vmem:[#allocation3 + $0xb0] sm:$0x1] %v5608_v52  ;;  %v6275_v62 = vor.u32 %v6274_v56, %v6270_v47  ;;  %v6280_v17 = vrot.slane %v6278_v26, 5  ;;  %v14000_v20 = vpop.f32.mrf.mxu2  ;;  %v6151_v52 = vld [vmem:[#allocation3 + $0x34] sm:$0xf]  ;;  %v6283_v19 = vshrl.u32 %v6150_v37, 16 }
 0x48b   : > { %10874 = vmatmul.msk.bf16.gmra.mxu1 %vm3815_vm13, %v15436_v29  ;;  %v6266_v10 = vrot.slane %v6265_v25, 4  ;;  %15437 = vst [vmem:[#allocation24_spill] sm:$0xff] %v14000_v20  ;;  %v14004_v3 = vpop.f32.mrf.mxu3  ;;  %v6286_v26 = vshll.u32 %v6150_v37, 16  ;;  %v6292_v56 = vshll.u32 %v6151_v52, 16  ;;  %v6296_v29 = vshrl.u32 %v6151_v52, 16 }
 0x48c   : > { %11049 = vmatmul.msk.bf16.gmra.mxu0 %vm3815_vm13, %v6607_v45  ;;  %v6276_v55 = vrot.slane %v6275_v62, 4  ;;  %15438 = vst [vmem:[#allocation25_spill] sm:$0xff] %v14004_v3  ;;  %v6302_v62 = vshll.u32 %v6152_v54, 16  ;;  %v5151_v54 = vld [vmem:[%s12127_s12 + $0xf0] sm:$0xff] }
 0x48d   : > { %v6271_v49 = vsel %vm12301_vm9, %v6266_v10, %v6270_v47 }
 0x48e   : > { %v6281_v50 = vsel %vm12301_vm9, %v6276_v55, %v6280_v17  ;;  %v6579_v45 = vunpack.c.l.b16 %v6271_v49  ;;  %v6285_v55 = vrot.slane %v6283_v19, 4  ;;  %v6298_v49 = vrot.slane %v6296_v29, 4  ;;  %v11513_v19 = vld [vmem:[#allocation3 + $0x48] sm:$0xff] }
 0x48f   : > { %11012 = vmatmul.msk.bf16.gmra.mxu2 %vm3815_vm13, %v11512_v0  ;;  %v6580_v6 = vunpack.c.l.b16 %v6281_v50  ;;  %v6288_v0 = vrot.slane %v6286_v26, 5  ;;  %v5183_v26 = vpack.c.bf16 %v5151_v54, %v5151_v54 }
 0x491   : > { %v14006_v40 = vpop.f32.mrf.mxu0  ;;  %v6608_v25 = vpack.c.b16 %v6580_v6, %v6579_v45  ;;  %v6289_v50 = vor.u32 %v6288_v0, %v6285_v55  ;;  %v6304_v6 = vrot.slane %v6302_v62, 5  ;;  %v5443_v55 = vshrl.u32 %v5183_v26, 16 }
 0x492   : > { %v14013_v14 = vpop.f32.mrf.mxu2  ;;  %11033 = vmatmul.msk.bf16.gmra.mxu3 %vm3815_vm13, %v5976_v61  ;;  %v5446_v0 = vshll.u32 %v5183_v26, 16 }
 0x493   : > { %15439 = vst [vmem:[#allocation26_spill] sm:$0xff] %v14013_v14  ;;  %v14016_v47 = vpop.f32.mrf.mxu3  ;;  %v6290_v61 = vrot.slane %v6289_v50, 4 }
 0x494   : > { %15440 = vst [vmem:[#allocation27_spill] sm:$0xff] %v14016_v47  ;;  %v5445_v47 = vrot.slane %v5443_v55, 7  ;;  %v6155_v55 = vld [vmem:[#allocation3 + $0x44] sm:$0x1] }
 0x496   : > { %v5448_v14 = vor.u32 %v5446_v0, %v5445_v47 }
 0x499   : > { %v14019_v10 = vpop.f32.mrf.mxu0 }
 0x49b   : > { %10935 = vmatmul.msk.bf16.vlgmr.msrb.gmra.mxu1 %vm3815_vm13, %v13782_v59  ;;  %v14033_v29 = vpop.f32.mrf.mxu3 }
 0x49c   : > { %11050 = vmatmul.msk.bf16.gmra.mxu0 %vm3815_vm13, %v6608_v25  ;;  %15442 = vst [vmem:[#allocation29_spill] sm:$0xff] %v14033_v29  ;;  %v5617_v29 = vld [vmem:[#allocation3 + $0xc0] sm:$0xf] }
 0x49e   : > { %v3930_v4 = vpop.f32.mrf.mxu1 }
 0x49f   : > { %v3931_v35 = vadd.f32 %v3930_v4, %v13767_v58  ;;  %v6294_v58 = vrot.slane %v6292_v56, 5  ;;  %v14027_v4 = vpop.f32.mrf.mxu2  ;;  %11013 = vmatmul.msk.bf16.gmra.mxu2 %vm3815_vm13, %v11513_v19 }
 0x4a0   : > { %15441 = vst [vmem:[#allocation28_spill] sm:$0xff] %v14027_v4 }
 0x4a1   : > { %v14022_v17 = vadd.f32 %v13877_v15, %v3931_v35  ;;  %v6299_v45 = vor.u32 %v6298_v49, %v6294_v58  ;;  %v11544_v15 = vld [vmem:[#allocation12 + $0x28] sm:$0xff]  ;;  %v5152_v35 = vld [vmem:[%s12127_s12 + $0xf8] sm:$0xff]  ;;  %v6295_v59 = vsel %vm12301_vm9, %v6290_v61, %v6294_v58  ;;  %v14039_v62 = vpop.f32.mrf.mxu0  ;;  %v5978_v61 = vpop.permute.xlu1 %5977 }
 0x4a2   : > { %v5184_v56 = vpack.c.bf16 %v5152_v35, %v5152_v35  ;;  %8434 = vmatpush.bf16.msrb.mxu0 %v11544_v15  ;;  %15443 = vst [vmem:[#allocation30_spill] sm:$0xff] %v14039_v62  ;;  %v6581_v54 = vunpack.c.l.b16 %v6295_v59  ;;  %11034 = vmatmul.msk.bf16.gmra.mxu3 %vm3815_vm13, %v5978_v61  ;;  %v5614_v62 = vld [vmem:[#allocation3 + $0xbc] sm:$0x1] }
 0x4a3   : > { %v6300_v37 = vrot.slane %v6299_v45, 4  ;;  %v5945_v45 = vunpack.c.l.b16 %v5183_v26 }
 0x4a4   : > { %v5451_v49 = vshrl.u32 %v5184_v56, 16  ;;  %v5454_v50 = vshll.u32 %v5184_v56, 16  ;;  %v5946_v16 = vunpack.c.l.b16 %v5184_v56  ;;  %v5618_v56 = vsel %vm13180_vm1, %v5448_v14, %v5617_v29  ;;  %v5150_v14 = vld [vmem:[%s12127_s12 + $0xe8] sm:$0xff] }
 0x4a5   : > { %v6305_v25 = vsel %vm12301_vm9, %v6300_v37, %v6304_v6  ;;  %v5449_v6 = vrot.slane %v5445_v47, 4  ;;  %v5621_v37 = vld [vmem:[#allocation3 + $0xc8] sm:$0x1]  ;;  %v14048_v47 = vpop.f32.mrf.mxu3  ;;  %5619 = vst [vmem:[#allocation3 + $0xc0] sm:$0xf] %v5618_v56 }
 0x4a6   : > { %v14029_v52 = vpop.f32.mrf.mxu1  ;;  %v6582_v35 = vunpack.c.l.b16 %v6305_v25  ;;  %v5453_v3 = vrot.slane %v5451_v49, 7  ;;  %v5962_v58 = vpack.c.b16 %v5946_v16, %v5945_v45  ;;  %v6153_v16 = vld [vmem:[#allocation3 + $0x3c] sm:$0xf]  ;;  %v6154_v25 = vld [vmem:[#allocation3 + $0x40] sm:$0xf]  ;;  %15445 = vst [vmem:[#allocation32_spill] sm:$0xff] %v14048_v47 }
 0x4a7   : > { %v14042_v15 = vpop.f32.mrf.mxu2  ;;  %v6307_v49 = vshrl.u32 %v6153_v16, 16  ;;  %v5149_v45 = vld [vmem:[%s12127_s12 + $0xe0] sm:$0xff] }
 0x4a8   : > { %15444 = vst [vmem:[#allocation31_spill] sm:$0xff] %v14042_v15  ;;  %v5456_v20 = vor.u32 %v5454_v50, %v5453_v3  ;;  %v5458_v4 = vrot.slane %v5453_v3, 4  ;;  %5993 = vrot.lane.b32.xlu0 %v5962_v58, %s11944_s22  ;;  %v6609_v19 = vpack.c.b16 %v6582_v35, %v6581_v54  ;;  %v6310_v50 = vshll.u32 %v6153_v16, 16 }
 0x4a9   : > { %v14057_v29 = vpop.f32.mrf.mxu0  ;;  %v6316_v54 = vshll.u32 %v6154_v25, 16  ;;  %v6320_v35 = vshrl.u32 %v6154_v25, 16  ;;  %v6326_v58 = vshll.u32 %v6155_v55, 16 }
 0x4aa   : > { %v5457_v3 = vsel %vm13187_vm7, %v5449_v6, %v5456_v20  ;;  %v5622_v0 = vsel %vm13199_vm2, %v5458_v4, %v5621_v37  ;;  %v6309_v20 = vrot.slane %v6307_v49, 4  ;;  %v6312_v61 = vrot.slane %v6310_v50, 5 }
 0x4ab   : > { %5620 = vst.msk [vmem:[#allocation3 + $0xc4] sm:$0xf] %vm516_vm14, %v5457_v3  ;;  %v5181_v6 = vpack.c.bf16 %v5149_v45, %v5149_v45  ;;  %v6318_v4 = vrot.slane %v6316_v54, 5  ;;  %v6322_v37 = vrot.slane %v6320_v35, 4  ;;  %v6328_v56 = vrot.slane %v6326_v58, 5  ;;  %10936 = vmatmul.msk.bf16.gmra.mxu1 %vm3815_vm13, %v13808_v34  ;;  %v11514_v54 = vld [vmem:[#allocation3 + $0x54] sm:$0xff] }
 0x4ac   : > { %5623 = vst [vmem:[#allocation3 + $0xc8] sm:$0x1] %v5622_v0  ;;  %11051 = vmatmul.msk.bf16.gmra.mxu0 %vm3815_vm13, %v6609_v19  ;;  %v6313_v16 = vor.u32 %v6312_v61, %v6309_v20  ;;  %v5610_v58 = vld [vmem:[#allocation3 + $0xb4] sm:$0xf] }
 0x4ad   : > { %v5426_v3 = vshrl.u32 %v5181_v6, 16  ;;  %v6323_v47 = vor.u32 %v6322_v37, %v6318_v4  ;;  %v5943_v55 = vunpack.c.l.b16 %v5181_v6  ;;  %v14068_v34 = vpop.f32.mrf.mxu3 }
 0x4ae   : > { %v3935_v26 = vpop.f32.mrf.mxu1  ;;  %v6314_v50 = vrot.slane %v6313_v16, 4  ;;  %15447 = vst [vmem:[#allocation34_spill] sm:$0xff] %v14068_v34 }
 0x4af   : > { %v3936_v59 = vadd.f32 %v3935_v26, %v13849_v63  ;;  %v5182_v26 = vpack.c.bf16 %v5150_v14, %v5150_v14  ;;  %v14066_v49 = vpop.f32.mrf.mxu2  ;;  %v5428_v45 = vrot.slane %v5426_v3, 7  ;;  %v6324_v35 = vrot.slane %v6323_v47, 4  ;;  %11014 = vmatmul.msk.bf16.gmra.mxu2 %vm3815_vm13, %v11514_v54 }
 0x4b0   : > { %15446 = vst [vmem:[#allocation33_spill] sm:$0xff] %v14066_v49  ;;  %v6319_v19 = vsel %vm12301_vm9, %v6314_v50, %v6318_v4  ;;  %v6331_v50 = vshrl.u32 %v6156_v39, 16 }
 0x4b1   : > { %v14061_v63 = vadd.f32 %v13908_v51, %v3936_v59  ;;  %v5429_v51 = vshll.u32 %v5181_v6, 16  ;;  %v5434_v59 = vshrl.u32 %v5182_v26, 16  ;;  %v5437_v25 = vshll.u32 %v5182_v26, 16  ;;  %v14072_v6 = vpop.f32.mrf.mxu0 }
 0x4b2   : > { %v5944_v0 = vunpack.c.l.b16 %v5182_v26  ;;  %v5432_v61 = vrot.slane %v5428_v45, 4  ;;  %15448 = vst [vmem:[#allocation35_spill] sm:$0xff] %v14072_v6  ;;  %v6329_v26 = vsel %vm12301_vm9, %v6324_v35, %v6328_v56  ;;  %v6583_v4 = vunpack.c.l.b16 %v6319_v19  ;;  %v5980_v56 = vpop.permute.xlu2 %5979  ;;  %v6161_v6 = vld [vmem:[#allocation3 + $0x5c] sm:$0x1] }
 0x4b3   : > { %v5436_v14 = vrot.slane %v5434_v59, 7  ;;  %v5431_v20 = vor.u32 %v5429_v51, %v5428_v45  ;;  %v6584_v51 = vunpack.c.l.b16 %v6329_v26  ;;  %11035 = vmatmul.msk.bf16.gmra.mxu3 %vm3815_vm13, %v5980_v56  ;;  %v6334_v45 = vshll.u32 %v6156_v39, 16 }
 0x4b4   : > { %v5961_v15 = vpack.c.b16 %v5944_v0, %v5943_v55  ;;  %v6157_v55 = vld [vmem:[#allocation3 + $0x4c] sm:$0xf]  ;;  %v6158_v0 = vld [vmem:[#allocation3 + $0x50] sm:$0x1] }
 0x4b5   : > { %v5439_v37 = vor.u32 %v5437_v25, %v5436_v14  ;;  %v5441_v16 = vrot.slane %v5436_v14, 4  ;;  %v5611_v3 = vsel %vm13180_vm1, %v5431_v20, %v5610_v58  ;;  %v6058_v31 = vpop.f32.mrf.mxu3  ;;  %v6340_v14 = vshll.u32 %v6157_v55, 16 }
 0x4b6   : > { %5991 = vrot.lane.b32.xlu2 %v5961_v15, %s11944_s22  ;;  %5612 = vst [vmem:[#allocation3 + $0xb4] sm:$0xf] %v5611_v3  ;;  %v6610_v15 = vpack.c.b16 %v6584_v51, %v6583_v4  ;;  %v6344_v54 = vshrl.u32 %v6157_v55, 16  ;;  %v6350_v5 = vshll.u32 %v6158_v0, 16  ;;  %v6336_v58 = vrot.slane %v6334_v45, 5  ;;  %v11515_v4 = vld [vmem:[#allocation3 + $0x60] sm:$0xff]  ;;  %v14095_v51 = vpop.f32.mrf.mxu1  ;;  %v5982_v0 = vpop.permute.xlu0 %5981 }
 0x4b7   : > { %v5440_v47 = vsel %vm13187_vm7, %v5432_v61, %v5439_v37  ;;  %v5615_v59 = vsel %vm13199_vm2, %v5441_v16, %v5614_v62  ;;  %v14085_v25 = vpop.f32.mrf.mxu2  ;;  %v6333_v62 = vrot.slane %v6331_v50, 4  ;;  %v6342_v19 = vrot.slane %v6340_v14, 5  ;;  %v6168_v45 = vld [vmem:[#allocation3 + $0x78] sm:$0xf]  ;;  %v6169_v14 = vld [vmem:[#allocation3 + $0x7c] sm:$0xf] }
 0x4b8   : > { %5613 = vst.msk [vmem:[#allocation3 + $0xb8] sm:$0xf] %vm516_vm14, %v5440_v47  ;;  %v6346_v20 = vrot.slane %v6344_v54, 4  ;;  %v6352_v26 = vrot.slane %v6350_v5, 5  ;;  %v6170_v54 = vld [vmem:[#allocation3 + $0x80] sm:$0x1] }
 0x4b9   : > { %5616 = vst [vmem:[#allocation3 + $0xbc] sm:$0x1] %v5615_v59  ;;  %v14088_v35 = vpop.f32.mrf.mxu0  ;;  %v6337_v61 = vor.u32 %v6336_v58, %v6333_v62  ;;  %v6427_v62 = vshrl.u32 %v6168_v45, 16  ;;  %v6430_v58 = vshll.u32 %v6168_v45, 16  ;;  %s10188_s22 = sshll.u32 %s10185_s26, 4  ;;  %s10189_s22 = int_to_ptr.hbm [resolvable:$true] %s10188_s22 }
 0x4ba   : > { %15449 = vst [vmem:[#allocation36_spill] sm:$0xff] %v14085_v25  ;;  %v6347_v37 = vor.u32 %v6346_v20, %v6342_v19  ;;  %v6436_v20 = vshll.u32 %v6169_v14, 16  ;;  %s11872_s13 = sshra.s32 %s10189_s22, 4  ;;  %s11873_s13 = int_to_ptr.hbm [resolvable:$true] %s11872_s13 }
 0x4bb   : > { %15450 = vst [vmem:[#allocation37_spill] sm:$0xff] %v14088_v35  ;;  %10937 = vmatmul.msk.bf16.gmra.mxu1 %vm3815_vm13, %v13824_v13  ;;  %v6338_v47 = vrot.slane %v6337_v61, 4  ;;  %v6159_v61 = vld [vmem:[#allocation3 + $0x54] sm:$0xf]  ;;  %s11874_s27 = scalar_lea.hbm %s11873_s13, 256  ;;  %p11879_p2 = scmp.lt.s32.totalorder %s11873_s13, %s15383_s11 }
 0x4bc   : > { %11052 = vmatmul.msk.bf16.gmra.mxu0 %vm3815_vm13, %v6610_v15  ;;  %v6348_v3 = vrot.slane %v6347_v37, 4  ;;  %v6440_v37 = vshrl.u32 %v6169_v14, 16  ;;  %v6438_v35 = vrot.slane %v6436_v20, 5  ;;  %v6374_v14 = vshll.u32 %v6161_v6, 16  ;;  %p11875_p1 = scmp.ne.s32.totalorder %s11873_s13, %s11874_s27  ;;  %p11880_p9 = scmp.lt.s32.totalorder %s11878_s4, %s11874_s27 }
 0x4bd   : > { %v6060_v56 = vpop.f32.mrf.mxu3  ;;  %v6343_v39 = vsel %vm12301_vm9, %v6338_v47, %v6342_v19  ;;  %v6160_v47 = vld [vmem:[#allocation3 + $0x58] sm:$0xf] }
 0x4be   : > { %v6353_v13 = vsel %vm12301_vm9, %v6348_v3, %v6352_v26  ;;  %v6585_v15 = vunpack.c.l.b16 %v6343_v39  ;;  %v6446_v26 = vshll.u32 %v6170_v54, 16  ;;  %v6429_v39 = vrot.slane %v6427_v62, 4  ;;  %p11876_p4 = pnand %p11875_p1, %p12091_p3  ;;  %p11881_p10 = por %p11880_p9, %p11879_p2 }
 0x4bf   : > { %v14093_v16 = vpop.f32.mrf.mxu2  ;;  %11015 = vmatmul.msk.bf16.gmra.mxu2 %vm3815_vm13, %v11515_v4  ;;  %v6586_v55 = vunpack.c.l.b16 %v6353_v13  ;;  %v6432_v13 = vrot.slane %v6430_v58, 5  ;;  %v6364_v25 = vshll.u32 %v6160_v47, 16 }
 0x4c0   : > { %15451 = vst [vmem:[#allocation38_spill] sm:$0xff] %v14093_v16  ;;  %v6448_v62 = vrot.slane %v6446_v26, 5  ;;  %p11877_p11 = pneg %p11876_p4 }
 0x4c1   : > { %v14097_v59 = vpop.f32.mrf.mxu0  ;;  %v6611_v19 = vpack.c.b16 %v6586_v55, %v6585_v15  ;;  %v6433_v34 = vor.u32 %v6432_v13, %v6429_v39  ;;  %v6366_v58 = vrot.slane %v6364_v25, 5  ;;  %v11516_v39 = vld [vmem:[#allocation3 + $0x6c] sm:$0xff] }
 0x4c2   : > { %15452 = vst [vmem:[#allocation39_spill] sm:$0xff] %v14097_v59  ;;  %v14107_v3 = vpop.f32.mrf.mxu1  ;;  %v6358_v59 = vshll.u32 %v6159_v61, 16  ;;  %p11882_p12 = pnand %p11881_p10, %p11877_p11 }
 0x4c3   : > { %11036 = vmatmul.msk.bf16.gmra.mxu3 %vm3815_vm13, %v5982_v0  ;;  %v6368_v0 = vshrl.u32 %v6160_v47, 16  ;;  %v6434_v54 = vrot.slane %v6433_v34, 4  ;;  %v6376_v47 = vrot.slane %v6374_v14, 5  ;;  %v6173_v14 = vld [vmem:[#allocation3 + $0x8c] sm:$0x1] }
 0x4c4   : > { %v6360_v55 = vrot.slane %v6358_v59, 5  ;;  %v4261_v59 = vadd.f32 %v13747_v21, %v13934_v11  ;;  %v6171_v21 = vld [vmem:[#allocation3 + $0x84] sm:$0xf]  ;;  %v6172_v11 = vld [vmem:[#allocation3 + $0x88] sm:$0xf] }
 0x4c5   : > { %v6063_v45 = vpop.f32.mrf.mxu3  ;;  %v6370_v20 = vrot.slane %v6368_v0, 4  ;;  %v6439_v6 = vsel %vm12301_vm9, %v6434_v54, %v6438_v35 }
 0x4c7   : > { %v5803_v50 = vpop.f32.mrf.mxu2  ;;  %v6371_v13 = vor.u32 %v6370_v20, %v6366_v58  ;;  %v6460_v20 = vshll.u32 %v6172_v11, 16 }
 0x4c8   : > { %v14104_v5 = vadd.f32 %v6058_v31, %v5803_v50  ;;  %v6355_v31 = vshrl.u32 %v6159_v61, 16  ;;  %v6442_v50 = vrot.slane %v6440_v37, 4 }
 0x4c9   : > { %v14109_v4 = vpop.f32.mrf.mxu0  ;;  %v6372_v25 = vrot.slane %v6371_v13, 4 }
 0x4ca   : > { %15453 = vst [vmem:[#allocation40_spill] sm:$0xff] %v14109_v4  ;;  %v6357_v49 = vrot.slane %v6355_v31, 4  ;;  %v6443_v15 = vor.u32 %v6442_v50, %v6438_v35  ;;  %v14116_v27 = vpop.f32.mrf.mxu1  ;;  %v6593_v35 = vunpack.c.l.b16 %v6439_v6 }
 0x4cb   : > { %10938 = vmatmul.msk.bf16.gmra.mxu1 %vm3815_vm13, %v13840_v36  ;;  %v6377_v26 = vsel %vm12301_vm9, %v6372_v25, %v6376_v47  ;;  %v6464_v47 = vshrl.u32 %v6172_v11, 16 }
 0x4cc   : > { %11053 = vmatmul.msk.bf16.gmra.mxu0 %vm3815_vm13, %v6611_v19  ;;  %v6444_v37 = vrot.slane %v6443_v15, 4  ;;  %v6361_v61 = vor.u32 %v6360_v55, %v6357_v49  ;;  %v3928_v49 = vadd.f32 %v14002_v7, %v13713_v9  ;;  %v6588_v0 = vunpack.c.l.b16 %v6377_v26  ;;  %v5984_v15 = vpop.permute.xlu1 %5983 }
 0x4cd   : > { %v6065_v19 = vpop.f32.mrf.mxu3  ;;  %v4347_v7 = vadd.f32 %v13913_v23, %v4261_v59  ;;  %v6466_v26 = vrot.slane %v6464_v47, 4 }
 0x4ce   : > { %v6362_v31 = vrot.slane %v6361_v61, 4  ;;  %v6449_v34 = vsel %vm12301_vm9, %v6444_v37, %v6448_v62  ;;  %v4136_v55 = vadd.f32 %v13853_v60, %v3928_v49  ;;  %v6451_v62 = vshrl.u32 %v6171_v21, 16  ;;  %v11525_v37 = vld [vmem:[#allocation12 + $0x10] sm:$0xff]  ;;  %v6162_v61 = vld [vmem:[#allocation3 + $0x60] sm:$0xf] }
 0x4cf   : > { %v5805_v4 = vpop.f32.mrf.mxu2  ;;  %11016 = vmatmul.msk.bf16.gmra.mxu2 %vm3815_vm13, %v11516_v39  ;;  %v6163_v60 = vld [vmem:[#allocation3 + $0x64] sm:$0xf]  ;;  %v6462_v49 = vrot.slane %v6460_v20, 5  ;;  %7084 = vmatpush.bf16.msrb.mxu1 %v11525_v37  ;;  %v6379_v59 = vshrl.u32 %v6162_v61, 16 }
 0x4d0   : > { %v14114_v16 = vadd.f32 %v6060_v56, %v5805_v4  ;;  %v6367_v56 = vsel %vm12301_vm9, %v6362_v31, %v6366_v58  ;;  %v6594_v4 = vunpack.c.l.b16 %v6449_v34  ;;  %v6454_v58 = vshll.u32 %v6171_v21, 16 }
 0x4d1   : > { %v14118_v36 = vpop.f32.mrf.mxu0  ;;  %v6587_v50 = vunpack.c.l.b16 %v6367_v56  ;;  %v6470_v31 = vshll.u32 %v6173_v14, 16  ;;  %v6453_v23 = vrot.slane %v6451_v62, 4  ;;  %v6467_v11 = vor.u32 %v6466_v26, %v6462_v49 }
 0x4d2   : > { %15454 = vst [vmem:[#allocation41_spill] sm:$0xff] %v14114_v16  ;;  %v6615_v39 = vpack.c.b16 %v6594_v4, %v6593_v35  ;;  %v4525_v6 = vpop.f32.mrf.mxu1  ;;  %v6456_v25 = vrot.slane %v6454_v58, 5  ;;  %v6381_v35 = vrot.slane %v6379_v59, 4  ;;  %v6388_v4 = vshll.u32 %v6163_v60, 16 }
 0x4d3   : > { %11037 = vmatmul.msk.bf16.gmra.mxu3 %vm3815_vm13, %v5984_v15  ;;  %v6612_v13 = vpack.c.b16 %v6588_v0, %v6587_v50  ;;  %v14140_v56 = vadd.f32 %v4525_v6, %v4347_v7  ;;  %v6392_v50 = vshrl.u32 %v6163_v60, 16  ;;  %v4262_v0 = vadd.f32 %v13792_v22, %v4136_v55 }
 0x4d4   : > { %v6457_v15 = vor.u32 %v6456_v25, %v6453_v23  ;;  %v6472_v20 = vrot.slane %v6470_v31, 5  ;;  %v6390_v7 = vrot.slane %v6388_v4, 5  ;;  %v11517_v25 = vld [vmem:[#allocation3 + $0x78] sm:$0xff] }
 0x4d5   : > { %v6068_v21 = vpop.f32.mrf.mxu3  ;;  %v6394_v37 = vrot.slane %v6392_v50, 4 }
 0x4d6   : > { %v6458_v58 = vrot.slane %v6457_v15, 4 }
 0x4d7   : > { %v5808_v9 = vpop.f32.mrf.mxu2  ;;  %v6395_v60 = vor.u32 %v6394_v37, %v6390_v7  ;;  %v6165_v37 = vld [vmem:[#allocation3 + $0x6c] sm:$0xf] }
 0x4d8   : > { %v14135_v54 = vadd.f32 %v6063_v45, %v5808_v9  ;;  %v6164_v45 = vld [vmem:[#allocation3 + $0x68] sm:$0x1]  ;;  %v6382_v9 = vshll.u32 %v6162_v61, 16  ;;  %v6468_v61 = vrot.slane %v6467_v11, 4  ;;  %v6463_v55 = vsel %vm12301_vm9, %v6458_v58, %v6462_v49 }
 0x4d9   : > { %v14138_v34 = vpop.f32.mrf.mxu0  ;;  %v6398_v62 = vshll.u32 %v6164_v45, 16  ;;  %v6396_v45 = vrot.slane %v6395_v60, 4  ;;  %v6166_v60 = vld [vmem:[#allocation3 + $0x70] sm:$0xf] }
 0x4da   : > { %v6384_v14 = vrot.slane %v6382_v9, 5  ;;  %v4527_v16 = vpop.f32.mrf.mxu1  ;;  %v6473_v31 = vsel %vm12301_vm9, %v6468_v61, %v6472_v20  ;;  %v4263_v9 = vadd.f32 %v13835_v32, %v14022_v17  ;;  %v6174_v32 = vld [vmem:[#allocation3 + $0x90] sm:$0xf]  ;;  %v6175_v17 = vld [vmem:[#allocation3 + $0x94] sm:$0xf] }
 0x4db   : > { %11057 = vmatmul.msk.bf16.vlgmr.msra.gmra.mxu1 %vm3815_vm13, %v6615_v39  ;;  %v6400_v59 = vrot.slane %v6398_v62, 5  ;;  %v4348_v39 = vadd.f32 %v13931_v18, %v4262_v0  ;;  %v6596_v4 = vunpack.c.l.b16 %v6473_v31  ;;  %v5986_v11 = vpop.permute.xlu2 %5985  ;;  %v6475_v58 = vshrl.u32 %v6174_v32, 16 }
 0x4dc   : > { %11054 = vmatmul.msk.bf16.gmra.mxu0 %vm3815_vm13, %v6612_v13  ;;  %v6385_v6 = vor.u32 %v6384_v14, %v6381_v35  ;;  %v6595_v35 = vunpack.c.l.b16 %v6463_v55  ;;  %v6176_v14 = vld [vmem:[#allocation3 + $0x98] sm:$0x1]  ;;  %v6478_v20 = vshll.u32 %v6174_v32, 16  ;;  %v6167_v55 = vld [vmem:[#allocation3 + $0x74] sm:$0x1]  ;;  %v6403_v31 = vshrl.u32 %v6165_v37, 16 }
 0x4dd   : > { %v14156_v26 = vadd.f32 %v4527_v16, %v4348_v39  ;;  %v6070_v15 = vpop.f32.mrf.mxu3  ;;  %v6401_v49 = vsel %vm12301_vm9, %v6396_v45, %v6400_v59  ;;  %v4349_v16 = vadd.f32 %v13951_v1, %v4263_v9  ;;  %v6477_v39 = vrot.slane %v6475_v58, 4 }
 0x4de   : > { %v6386_v13 = vrot.slane %v6385_v6, 4  ;;  %v6590_v0 = vunpack.c.l.b16 %v6401_v49  ;;  %v6488_v6 = vshrl.u32 %v6175_v17, 16  ;;  %v6480_v1 = vrot.slane %v6478_v20, 5 }
 0x4df   : > { %v5810_v47 = vpop.f32.mrf.mxu2  ;;  %11017 = vmatmul.msk.bf16.gmra.mxu2 %vm3815_vm13, %v11517_v25  ;;  %v6494_v25 = vshll.u32 %v6176_v14, 16  ;;  %v6405_v49 = vrot.slane %v6403_v31, 4 }
 0x4e0   : > { %v14145_v23 = vadd.f32 %v6065_v19, %v5810_v47  ;;  %v3933_v19 = vadd.f32 %v14029_v52, %v13818_v28  ;;  %v6391_v18 = vsel %vm12301_vm9, %v6386_v13, %v6390_v7  ;;  %v6484_v7 = vshll.u32 %v6175_v17, 16 }
 0x4e1   : > { %v14148_v22 = vpop.f32.mrf.mxu0  ;;  %v6589_v50 = vunpack.c.l.b16 %v6391_v18  ;;  %v6616_v47 = vpack.c.b16 %v6596_v4, %v6595_v35  ;;  %v6481_v18 = vor.u32 %v6480_v1, %v6477_v39  ;;  %v6406_v35 = vshll.u32 %v6165_v37, 16  ;;  %v11518_v37 = vld [vmem:[#allocation3 + $0x84] sm:$0xff] }
 0x4e2   : > { %v4138_v28 = vadd.f32 %v13897_v24, %v3933_v19  ;;  %v4530_v24 = vpop.f32.mrf.mxu1  ;;  %v6486_v13 = vrot.slane %v6484_v7, 5  ;;  %v6490_v19 = vrot.slane %v6488_v6, 4  ;;  %v6412_v4 = vshll.u32 %v6166_v60, 16 }
 0x4e3   : > { %11038 = vmatmul.msk.bf16.gmra.mxu3 %vm3815_vm13, %v5986_v11  ;;  %v6613_v61 = vpack.c.b16 %v6590_v0, %v6589_v50  ;;  %v6416_v11 = vshrl.u32 %v6166_v60, 16  ;;  %v6496_v32 = vrot.slane %v6494_v25, 5  ;;  %v6408_v17 = vrot.slane %v6406_v35, 5  ;;  %v5988_v35 = vpop.permute.xlu0 %5987 }
 0x4e4   : > { %v4264_v50 = vadd.f32 %v13858_v41, %v4138_v28  ;;  %v6491_v0 = vor.u32 %v6490_v19, %v6486_v13 }
 0x4e5   : > { %v6073_v9 = vpop.f32.mrf.mxu3  ;;  %v6418_v20 = vrot.slane %v6416_v11, 4  ;;  %v6409_v6 = vor.u32 %v6408_v17, %v6405_v49  ;;  %v6179_v11 = vld [vmem:[#allocation3 + $0xa4] sm:$0x1] }
 0x4e6   : > { %v6492_v58 = vrot.slane %v6491_v0, 4  ;;  %v6178_v0 = vld [vmem:[#allocation3 + $0xa0] sm:$0xf] }
 0x4e7   : > { %v5813_v52 = vpop.f32.mrf.mxu2  ;;  %v6410_v60 = vrot.slane %v6409_v6, 4  ;;  %v6518_v6 = vshll.u32 %v6179_v11, 16  ;;  %v6182_v11 = vld [vmem:[#allocation3 + $0xb0] sm:$0x1] }
 0x4e8   : > { %v14167_v62 = vadd.f32 %v6068_v21, %v5813_v52  ;;  %v14170_v21 = vadd.f32 %v4530_v24, %v4349_v16  ;;  %v6422_v52 = vshll.u32 %v6167_v55, 16  ;;  %v6482_v16 = vrot.slane %v6481_v18, 4 }
 0x4e9   : > { %v6684_v59 = vpop.f32.mrf.mxu0  ;;  %v6497_v25 = vsel %vm12301_vm9, %v6492_v58, %v6496_v32  ;;  %v4265_v55 = vadd.f32 %v13886_v43, %v14061_v63 }
 0x4ea   : > { %v14173_v45 = vadd.f32 %v6684_v59, %v14104_v5  ;;  %v6414_v5 = vrot.slane %v6412_v4, 5  ;;  %v4532_v59 = vpop.f32.mrf.mxu1  ;;  %v6487_v28 = vsel %vm12301_vm9, %v6482_v16, %v6486_v13  ;;  %v6598_v19 = vunpack.c.l.b16 %v6497_v25 }
 0x4eb   : > { %11058 = vmatmul.msk.bf16.gmra.mxu1 %vm3815_vm13, %v6616_v47  ;;  %v4350_v47 = vadd.f32 %v13969_v12, %v4264_v50  ;;  %v6597_v13 = vunpack.c.l.b16 %v6487_v28  ;;  %v6177_v50 = vld [vmem:[#allocation3 + $0x9c] sm:$0xf]  ;;  %v4351_v43 = vadd.f32 %v13992_v8, %v4265_v55  ;;  %v3941_v28 = vadd.f32 %v14107_v3, %v13889_v53 }
 0x4ec   : > { %11055 = vmatmul.msk.bf16.gmra.mxu0 %vm3815_vm13, %v6613_v61  ;;  %v6419_v24 = vor.u32 %v6418_v20, %v6414_v5  ;;  %v6424_v61 = vrot.slane %v6422_v52, 5  ;;  %v6415_v31 = vsel %vm12301_vm9, %v6410_v60, %v6414_v5  ;;  %v6499_v63 = vshrl.u32 %v6177_v50, 16 }
 0x4ed   : > { %v14189_v39 = vadd.f32 %v4532_v59, %v4350_v47  ;;  %v6075_v12 = vpop.f32.mrf.mxu3  ;;  %v6591_v49 = vunpack.c.l.b16 %v6415_v31  ;;  %v6502_v16 = vshll.u32 %v6177_v50, 16  ;;  %v6617_v32 = vpack.c.b16 %v6598_v19, %v6597_v13  ;;  %v11519_v13 = vld [vmem:[#allocation3 + $0x90] sm:$0xff]  ;;  %v6180_v50 = vld [vmem:[#allocation3 + $0xa8] sm:$0xf] }
 0x4ee   : > { %v6420_v1 = vrot.slane %v6419_v24, 4  ;;  %v6508_v5 = vshll.u32 %v6178_v0, 16  ;;  %v4141_v19 = vadd.f32 %v13937_v57, %v3941_v28 }
 0x4ef   : > { %v5815_v14 = vpop.f32.mrf.mxu2  ;;  %11018 = vmatmul.msk.bf16.gmra.mxu2 %vm3815_vm13, %v11518_v37  ;;  %v6501_v37 = vrot.slane %v6499_v63, 4  ;;  %v6523_v63 = vshrl.u32 %v6180_v50, 16 }
 0x4f0   : > { %v14178_v7 = vadd.f32 %v6070_v15, %v5815_v14  ;;  %v3938_v15 = vadd.f32 %v14095_v51, %v13869_v38  ;;  %v6425_v18 = vsel %vm12301_vm9, %v6420_v1, %v6424_v61  ;;  %v6512_v14 = vshrl.u32 %v6178_v0, 16  ;;  %v6181_v0 = vld [vmem:[#allocation3 + $0xac] sm:$0xf] }
 0x4f1   : > { %v14181_v41 = vpop.f32.mrf.mxu0  ;;  %v6592_v38 = vunpack.c.l.b16 %v6425_v18  ;;  %v6510_v24 = vrot.slane %v6508_v5, 5  ;;  %v6520_v1 = vrot.slane %v6518_v6, 5  ;;  %v6542_v6 = vshll.u32 %v6182_v11, 16 }
 0x4f2   : > { %v4140_v51 = vadd.f32 %v13920_v30, %v3938_v15  ;;  %v4535_v58 = vpop.f32.mrf.mxu1  ;;  %v6504_v30 = vrot.slane %v6502_v16, 5  ;;  %v6514_v8 = vrot.slane %v6512_v14, 4  ;;  %v6526_v16 = vshll.u32 %v6180_v50, 16 }
 0x4f3   : > { %11039 = vmatmul.msk.bf16.gmra.mxu3 %vm3815_vm13, %v5988_v35  ;;  %v6614_v17 = vpack.c.b16 %v6592_v38, %v6591_v49  ;;  %v14203_v47 = vadd.f32 %v4535_v58, %v4351_v43  ;;  %v4267_v38 = vadd.f32 %v13910_v48, %v4141_v19  ;;  %v6536_v14 = vshrl.u32 %v6181_v0, 16 }
 0x4f4   : > { %v6505_v59 = vor.u32 %v6504_v30, %v6501_v37  ;;  %v4266_v25 = vadd.f32 %v13899_v46, %v4140_v51  ;;  %v6515_v60 = vor.u32 %v6514_v8, %v6510_v24  ;;  %v6528_v37 = vrot.slane %v6526_v16, 5 }
 0x4f5   : > { %v6078_v61 = vpop.f32.mrf.mxu3 }
 0x4f6   : > { %v6506_v15 = vrot.slane %v6505_v59, 4  ;;  %v6516_v31 = vrot.slane %v6515_v60, 4  ;;  %v4352_v18 = vadd.f32 %v14006_v40, %v4266_v25  ;;  %v6544_v60 = vrot.slane %v6542_v6, 5 }
 0x4f7   : > { %v5818_v4 = vpop.f32.mrf.mxu2 }
 0x4f8   : > { %v14199_v52 = vadd.f32 %v6073_v9, %v5818_v4  ;;  %v6511_v3 = vsel %vm12301_vm9, %v6506_v15, %v6510_v24  ;;  %v6521_v46 = vsel %vm12301_vm9, %v6516_v31, %v6520_v1  ;;  %v11520_v31 = vld [vmem:[#allocation3 + $0x9c] sm:$0xff] }
 0x4f9   : > { %v6689_v20 = vpop.f32.mrf.mxu0  ;;  %v6599_v51 = vunpack.c.l.b16 %v6511_v3  ;;  %v6600_v57 = vunpack.c.l.b16 %v6521_v46 }
 0x4fa   : > { %v14206_v9 = vadd.f32 %v6689_v20, %v14135_v54  ;;  %v4537_v49 = vpop.f32.mrf.mxu1  ;;  %v5990_v4 = vpop.permute.xlu1 %5989  ;;  %v6525_v20 = vrot.slane %v6523_v63, 4 }
 0x4fb   : > { %11059 = vmatmul.msk.bf16.gmra.mxu1 %vm3815_vm13, %v6617_v32  ;;  %v14223_v35 = vadd.f32 %v4537_v49, %v4352_v18  ;;  %v6532_v32 = vshll.u32 %v6181_v0, 16  ;;  %v6618_v5 = vpack.c.b16 %v6600_v57, %v6599_v51 }
 0x4fc   : > { %11056 = vmatmul.msk.bf16.gmra.mxu0 %vm3815_vm13, %v6614_v17  ;;  %v4353_v17 = vadd.f32 %v14019_v10, %v4267_v38  ;;  %v6529_v28 = vor.u32 %v6528_v37, %v6525_v20 }
 0x4fd   : > { %v6534_v30 = vrot.slane %v6532_v32, 5 }
 0x4fe   : > { %v6530_v25 = vrot.slane %v6529_v28, 4 }
 0x4ff   : > { %v5820_v55 = vpop.f32.mrf.mxu2  ;;  %11019 = vmatmul.msk.bf16.gmra.mxu2 %vm3815_vm13, %v11519_v13  ;;  %v4671_v13 = vadd.f32 %v13980_v42, %v14140_v56  ;;  %v6183_v42 = vld [vmem:[#allocation3 + $0xb4] sm:$0xf]  ;;  %v6184_v56 = vld [vmem:[#allocation3 + $0xb8] sm:$0xf] }
 0x500   : > { %v14213_v54 = vadd.f32 %v6075_v12, %v5820_v55  ;;  %v6080_v12 = vpop.f32.mrf.mxu3  ;;  %v6535_v18 = vsel %vm12301_vm9, %v6530_v25, %v6534_v30  ;;  %v6547_v50 = vshrl.u32 %v6183_v42, 16  ;;  %v6550_v0 = vshll.u32 %v6183_v42, 16 }
 0x501   : > { %v14217_v53 = vpop.f32.mrf.mxu0  ;;  %v4757_v46 = vadd.f32 %v13944_v33, %v4671_v13  ;;  %v6556_v11 = vshll.u32 %v6184_v56, 16  ;;  %v6560_v32 = vshrl.u32 %v6184_v56, 16 }
 0x503   : > { %11040 = vmatmul.msk.bf16.gmra.mxu3 %vm3815_vm13, %v5990_v4  ;;  %v6185_v4 = vld [vmem:[#allocation3 + $0xbc] sm:$0x1]  ;;  %v4955_v63 = vadd.f32 %v14057_v29, %v4757_v46 }
 0x507   : > { %v5823_v40 = vpop.f32.mrf.mxu2 }
 0x508   : > { %v14227_v43 = vadd.f32 %v6078_v61, %v5823_v40  ;;  %v4540_v58 = vpop.f32.mrf.mxu1  ;;  %v6538_v61 = vrot.slane %v6536_v14, 4  ;;  %v6083_v59 = vpop.f32.mrf.mxu3  ;;  %v6549_v14 = vrot.slane %v6547_v50, 4 }
 0x509   : > { %v6694_v48 = vpop.f32.mrf.mxu0  ;;  %v14231_v24 = vadd.f32 %v4540_v58, %v4353_v17  ;;  %v6566_v17 = vshll.u32 %v6185_v4, 16  ;;  %v6552_v58 = vrot.slane %v6550_v0, 5 }
 0x50a   : > { %v14234_v8 = vadd.f32 %v6694_v48, %v14167_v62  ;;  %v6539_v10 = vor.u32 %v6538_v61, %v6534_v30  ;;  %v6558_v48 = vrot.slane %v6556_v11, 5  ;;  %v6562_v30 = vrot.slane %v6560_v32, 4 }
 0x50b   : > { %11060 = vmatmul.msk.bf16.gmra.mxu1 %vm3815_vm13, %v6618_v5  ;;  %v6553_v61 = vor.u32 %v6552_v58, %v6549_v14 }
 0x50c   : > { %v6540_v1 = vrot.slane %v6539_v10, 4  ;;  %v6563_v29 = vor.u32 %v6562_v30, %v6558_v48  ;;  %v6796_v30 = vld [vmem:[#allocation3] sm:$0xe] }
 0x50d   : > { %v6554_v28 = vrot.slane %v6553_v61, 4  ;;  %v11676_v61 = vld [vmem:[#allocation3 + $0x4] sm:$0xf] }
 0x50e   : > { %v6545_v49 = vsel %vm12301_vm9, %v6540_v1, %v6544_v60  ;;  %v6564_v25 = vrot.slane %v6563_v29, 4  ;;  %v6862_v29 = vrot.slane %v11676_v61, 5 }
 0x50f   : > { %v5825_v15 = vpop.f32.mrf.mxu2  ;;  %11020 = vmatmul.msk.bf16.gmra.mxu2 %vm3815_vm13, %v11520_v31  ;;  %v6602_v38 = vunpack.c.l.b16 %v6545_v49  ;;  %v6559_v1 = vsel %vm12301_vm9, %v6554_v28, %v6558_v48 }
 0x510   : > { %v14237_v55 = vadd.f32 %v6080_v12, %v5825_v15  ;;  %v14241_v19 = vpop.f32.mrf.mxu1  ;;  %v6085_v3 = vpop.f32.mrf.mxu3  ;;  %v6601_v12 = vunpack.c.l.b16 %v6535_v18  ;;  %v11521_v15 = vld [vmem:[#allocation3 + $0xa8] sm:$0xff]  ;;  %v6603_v49 = vunpack.c.l.b16 %v6559_v1 }
 0x511   : > { %v14243_v62 = vpop.f32.mrf.mxu0  ;;  %v5992_v51 = vpop.permute.xlu2 %5991 }
 0x512   : > { %v6619_v16 = vpack.c.b16 %v6602_v38, %v6601_v12  ;;  %v7488_v12 = vld [vmem:[#allocation3 + $0xc] sm:$0xf]  ;;  %v7489_v38 = vld [vmem:[#allocation3 + $0x10] sm:$0xf] }
 0x513   : > { %11041 = vmatmul.msk.bf16.gmra.mxu3 %vm3815_vm13, %v5992_v51  ;;  %v7537_v51 = vshrl.u32 %v7488_v12, 16  ;;  %v7546_v42 = vshll.u32 %v7489_v38, 16  ;;  %v7550_v56 = vshrl.u32 %v7489_v38, 16 }
 0x515   : > { %v7539_v11 = vrot.slane %v7537_v51, 4  ;;  %v7552_v32 = vrot.slane %v7550_v56, 4 }
 0x517   : > { %v5828_v57 = vpop.f32.mrf.mxu2 }
 0x518   : > { %v14251_v40 = vadd.f32 %v6083_v59, %v5828_v57  ;;  %v5061_v33 = vpop.f32.mrf.mxu1  ;;  %v6088_v6 = vpop.f32.mrf.mxu3  ;;  %v6568_v59 = vrot.slane %v6566_v17, 5  ;;  %v7540_v57 = vshll.u32 %v7488_v12, 16 }
 0x519   : > { %v6699_v5 = vpop.f32.mrf.mxu0  ;;  %v14255_v20 = vadd.f32 %v5061_v33, %v4955_v63 }
 0x51a   : > { %v14258_v37 = vadd.f32 %v6699_v5, %v14199_v52  ;;  %v6569_v52 = vsel %vm12301_vm9, %v6564_v25, %v6568_v59  ;;  %v5994_v4 = vpop.permute.xlu0 %5993  ;;  %v7542_v63 = vrot.slane %v7540_v57, 5  ;;  %v8146_v5 = vld [vmem:[#allocation3 + $0xc] sm:$0xe]  ;;  %v8212_v25 = vrot.slane %v7489_v38, 5 }
 0x51b   : > { %11061 = vmatmul.msk.bf16.gmra.mxu1 %vm3815_vm13, %v6619_v16  ;;  %v6604_v46 = vunpack.c.l.b16 %v6569_v52  ;;  %v7548_v16 = vrot.slane %v7546_v42, 5  ;;  %v6864_v42 = vrot.slane %v6862_v29, 4 }
 0x51c   : > { %v7543_v14 = vor.u32 %v7542_v63, %v7539_v11  ;;  %v11522_v11 = vld [vmem:[#allocation3 + $0xb4] sm:$0xff] }
 0x51d   : > { %v6620_v33 = vpack.c.b16 %v6604_v46, %v6603_v49  ;;  %v7553_v58 = vor.u32 %v7552_v32, %v7548_v16  ;;  %v11063_v49 = vrot.slane %v6796_v30, 9  ;;  %v11677_v46 = vld [vmem:[#allocation3 + $0x8] sm:$0x1] }
 0x51e   : > { %v6865_v12 = vrot.slane %v11677_v46, 5 }
 0x51f   : > { %v5830_v10 = vpop.f32.mrf.mxu2  ;;  %11021 = vmatmul.msk.bf16.gmra.mxu2 %vm3815_vm13, %v11521_v15  ;;  %v7554_v1 = vrot.slane %v7553_v58, 4 }
 0x520   : > { %v14261_v60 = vadd.f32 %v6085_v3, %v5830_v10  ;;  %v14267_v31 = vpop.f32.mrf.mxu1  ;;  %v6090_v18 = vpop.f32.mrf.mxu3  ;;  %v7490_v3 = vld [vmem:[#allocation3 + $0x14] sm:$0x1]  ;;  %v11203_v10 = vrot.slane %v8146_v5, 9 }
 0x521   : > { %v14269_v13 = vpop.f32.mrf.mxu0  ;;  %v7556_v50 = vshll.u32 %v7490_v3, 16  ;;  %v8215_v56 = vrot.slane %v7490_v3, 5 }
 0x522   : > { %15455 = vst [vmem:[#allocation42_spill] sm:$0xff] %v14261_v60  ;;  %v8213_v51 = vsel %vm12315_vm12, %v11203_v10, %v8212_v25 }
 0x523   : > { %11042 = vmatmul.msk.bf16.gmra.mxu3 %vm3815_vm13, %v5994_v4  ;;  %v7558_v48 = vrot.slane %v7556_v50, 5  ;;  %v8325_v50 = vunpack.c.l.b16 %v8213_v51 }
 0x525   : > { %v7559_v38 = vsel %vm12301_vm9, %v7554_v1, %v7558_v48  ;;  %v7492_v1 = vld [vmem:[#allocation3 + $0x1c] sm:$0xf] }
 0x526   : > { %v7924_v32 = vunpack.c.l.b16 %v7559_v38  ;;  %v7574_v51 = vshrl.u32 %v7492_v1, 16 }
 0x527   : > { %v5833_v0 = vpop.f32.mrf.mxu2 }
 0x528   : > { %v14272_v17 = vadd.f32 %v6088_v6, %v5833_v0  ;;  %v14275_v59 = vpop.f32.mrf.mxu1  ;;  %v7544_v6 = vrot.slane %v7543_v14, 4  ;;  %v6093_v52 = vpop.f32.mrf.mxu3  ;;  %v6866_v14 = vsel %vm12315_vm12, %v6864_v42, %v6865_v12  ;;  %v7570_v12 = vshll.u32 %v7492_v1, 16 }
 0x529   : > { %v6704_v28 = vpop.f32.mrf.mxu0  ;;  %v6976_v10 = vunpack.c.l.b16 %v6866_v14 }
 0x52a   : > { %v14278_v15 = vadd.f32 %v6704_v28, %v14227_v43  ;;  %v7549_v57 = vsel %vm12301_vm9, %v7544_v6, %v7548_v16  ;;  %v8214_v43 = vrot.slane %v8212_v25, 4  ;;  %v6863_v16 = vsel %vm12315_vm12, %v11063_v49, %v6862_v29  ;;  %v11563_v25 = vld [vmem:[#allocation12 + $0x40] sm:$0xff]  ;;  %v7491_v6 = vld [vmem:[#allocation3 + $0x18] sm:$0xf] }
 0x52b   : > { %11062 = vmatmul.msk.bf16.gmra.mxu1 %vm3815_vm13, %v6620_v33  ;;  %v7923_v63 = vunpack.c.l.b16 %v7549_v57  ;;  %v11562_v33 = vld [vmem:[#allocation12 + $0x38] sm:$0xff]  ;;  %v6975_v28 = vunpack.c.l.b16 %v6863_v16  ;;  %v7493_v29 = vld [vmem:[#allocation3 + $0x20] sm:$0x1]  ;;  %v7561_v49 = vshrl.u32 %v7491_v6, 16  ;;  %v7564_v46 = vshll.u32 %v7491_v6, 16  ;;  %v15457_v57 = vld [vmem:[#allocation19_spill] sm:$0xff]  ;;  %9785 = vmatpush.bf16.msrb.mxu3 %v11563_v25 }
 0x52c   : > { %v8216_v5 = vsel %vm12315_vm12, %v8214_v43, %v8215_v56  ;;  %9383 = vmatpush.bf16.msra.mxu2 %v11562_v33  ;;  %v3943_v38 = vadd.f32 %v14116_v27, %v15457_v57  ;;  %v7580_v42 = vshll.u32 %v7493_v29, 16  ;;  %v8147_v33 = vld [vmem:[#allocation3 + $0x18] sm:$0xe]  ;;  %v11678_v6 = vld [vmem:[#allocation3 + $0x10] sm:$0xf] }
 0x52d   : > { %v8326_v58 = vunpack.c.l.b16 %v8216_v5  ;;  %v7955_v61 = vpack.c.b16 %v7924_v32, %v7923_v63  ;;  %v7563_v56 = vrot.slane %v7561_v49, 4  ;;  %v7007_v32 = vpack.c.b16 %v6976_v10, %v6975_v28  ;;  %v11561_v5 = vld [vmem:[#allocation12 + $0x30] sm:$0xff]  ;;  %v15458_v25 = vld [vmem:[#allocation21_spill] sm:$0xff] }
 0x52e   : > { %v6869_v27 = vrot.slane %v11678_v6, 5  ;;  %v4142_v57 = vadd.f32 %v15458_v25, %v3943_v38  ;;  %8725 = vmatpush.bf16.msra.mxu1 %v11561_v5  ;;  %v11526_v6 = vld [vmem:[#allocation3 + $0xc] sm:$0xff] }
 0x52f   : > { %v5835_v4 = vpop.f32.mrf.mxu2  ;;  %11022 = vmatmul.msk.bf16.gmra.mxu2 %vm3815_vm13, %v11522_v11  ;;  %v7576_v11 = vrot.slane %v7574_v51, 4 }
 0x530   : > { %v14287_v0 = vadd.f32 %v6090_v18, %v5835_v4  ;;  %v14295_v48 = vpop.f32.mrf.mxu1  ;;  %v8357_v18 = vpack.c.b16 %v8326_v58, %v8325_v50  ;;  %v6095_v30 = vpop.f32.mrf.mxu3  ;;  %v7566_v4 = vrot.slane %v7564_v46, 5  ;;  %v7572_v50 = vrot.slane %v7570_v12, 5 }
 0x531   : > { %v14297_v3 = vpop.f32.mrf.mxu0  ;;  %v7582_v58 = vrot.slane %v7580_v42, 5  ;;  %v11204_v46 = vrot.slane %v8147_v33, 9  ;;  %v8222_v33 = vrot.slane %v7493_v29, 5 }
 0x532   : > { %15456 = vst [vmem:[#allocation43_spill] sm:$0xff] %v14287_v0  ;;  %11223 = vmatmul.msk.bf16.vlgmr.msrb.gmra.mxu0 %vm3815_vm13, %v8357_v18  ;;  %v7567_v16 = vor.u32 %v7566_v4, %v7563_v56  ;;  %v7577_v14 = vor.u32 %v7576_v11, %v7572_v50  ;;  %v6797_v18 = vld [vmem:[#allocation3 + $0xc] sm:$0xe]  ;;  %v6871_v4 = vrot.slane %v6869_v27, 4  ;;  %v15459_v11 = vld [vmem:[#allocation20_spill] sm:$0xff] }
 0x533   : > { %11187 = vmatmul.msk.bf16.vlgmr.msra.gmra.mxu3 %vm3815_vm13, %v7955_v61  ;;  %v11064_v51 = vrot.slane %v6797_v18, 9  ;;  %v4268_v5 = vadd.f32 %v15459_v11, %v4142_v57 }
 0x534   : > { %v7568_v10 = vrot.slane %v7567_v16, 4  ;;  %v7578_v12 = vrot.slane %v7577_v14, 4 }
 0x536   : > { %v7573_v38 = vsel %vm12301_vm9, %v7568_v10, %v7572_v50  ;;  %v6870_v50 = vsel %vm12315_vm12, %v11064_v51, %v6869_v27  ;;  %v7494_v27 = vld [vmem:[#allocation3 + $0x24] sm:$0xf]  ;;  %v7495_v51 = vld [vmem:[#allocation3 + $0x28] sm:$0xf] }
 0x537   : > { %v5838_v43 = vpop.f32.mrf.mxu2  ;;  %v7925_v25 = vunpack.c.l.b16 %v7573_v38  ;;  %v6977_v38 = vunpack.c.l.b16 %v6870_v50  ;;  %v7594_v11 = vshll.u32 %v7495_v51, 16 }
 0x538   : > { %v14303_v63 = vadd.f32 %v6093_v52, %v5838_v43  ;;  %v14307_v0 = vpop.f32.mrf.mxu1  ;;  %v8219_v52 = vrot.slane %v7492_v1, 5  ;;  %v6098_v61 = vpop.f32.mrf.mxu3  ;;  %v11679_v43 = vld [vmem:[#allocation3 + $0x14] sm:$0x1]  ;;  %v7583_v1 = vsel %vm12301_vm9, %v7578_v12, %v7582_v58 }
 0x539   : > { %v6709_v49 = vpop.f32.mrf.mxu0  ;;  %v6872_v42 = vrot.slane %v11679_v43, 5 }
 0x53a   : > { %v14310_v28 = vadd.f32 %v6709_v49, %v14251_v40  ;;  %v8220_v56 = vsel %vm12315_vm12, %v11204_v46, %v8219_v52  ;;  %v8221_v40 = vrot.slane %v8219_v52, 4  ;;  %v7926_v49 = vunpack.c.l.b16 %v7583_v1  ;;  %v15461_v52 = vld [vmem:[#allocation30_spill] sm:$0xff] }
 0x53b   : > { %11083 = vmatmul.msk.bf16.vlgmr.msrb.gmra.mxu1 %vm3815_vm13, %v7007_v32  ;;  %v8327_v14 = vunpack.c.l.b16 %v8220_v56  ;;  %v6873_v58 = vsel %vm12315_vm12, %v6871_v4, %v6872_v42  ;;  %v4354_v57 = vadd.f32 %v15461_v52, %v4268_v5  ;;  %v7585_v42 = vshrl.u32 %v7494_v27, 16 }
 0x53c   : > { %v8223_v32 = vsel %vm12315_vm12, %v8221_v40, %v8222_v33  ;;  %v7956_v56 = vpack.c.b16 %v7926_v49, %v7925_v25  ;;  %v6978_v1 = vunpack.c.l.b16 %v6873_v58  ;;  %v7496_v40 = vld [vmem:[#allocation3 + $0x2c] sm:$0x1]  ;;  %v7588_v4 = vshll.u32 %v7494_v27, 16  ;;  %v8148_v58 = vld [vmem:[#allocation3 + $0x24] sm:$0xe] }
 0x53d   : > { %v8328_v46 = vunpack.c.l.b16 %v8223_v32  ;;  %v4552_v12 = vadd.f32 %v14241_v19, %v4354_v57  ;;  %v7598_v5 = vshrl.u32 %v7495_v51, 16  ;;  %v7604_v33 = vshll.u32 %v7496_v40, 16  ;;  %v6798_v27 = vld [vmem:[#allocation3 + $0x18] sm:$0xe] }
 0x53e   : > { %v7590_v32 = vrot.slane %v7588_v4, 5  ;;  %v7596_v19 = vrot.slane %v7594_v11, 5  ;;  %v7008_v49 = vpack.c.b16 %v6978_v1, %v6977_v38  ;;  %v11205_v60 = vrot.slane %v8148_v58, 9  ;;  %v15465_v11 = vld [vmem:[#allocation36_spill] sm:$0xff]  ;;  %v15466_v1 = vld [vmem:[#allocation33_spill] sm:$0xff] }
 0x53f   : > { %v5840_v16 = vpop.f32.mrf.mxu2  ;;  %11167 = vmatmul.msk.bf16.vlgmr.msrb.gmra.mxu2 %vm3815_vm13, %v11526_v6  ;;  %v15463_v6 = vld [vmem:[#allocation38_spill] sm:$0xff]  ;;  %v7606_v50 = vrot.slane %v7604_v33, 5  ;;  %v8229_v38 = vrot.slane %v7496_v40, 5  ;;  %v4676_v33 = vadd.f32 %v15466_v1, %v14223_v35  ;;  %v15472_v1 = vld [vmem:[#allocation29_spill] sm:$0xff] }
 0x540   : > { %v14320_v18 = vadd.f32 %v6095_v30, %v5840_v16  ;;  %v14329_v29 = vpop.f32.mrf.mxu1  ;;  %v8358_v30 = vpack.c.b16 %v8328_v46, %v8327_v14  ;;  %v6100_v43 = vpop.f32.mrf.mxu3  ;;  %v7587_v14 = vrot.slane %v7585_v42, 4  ;;  %v7600_v46 = vrot.slane %v7598_v5, 4  ;;  %v15464_v42 = vld [vmem:[#allocation28_spill] sm:$0xff]  ;;  %v11681_v40 = vld [vmem:[#allocation3 + $0x20] sm:$0x1] }
 0x541   : > { %v14331_v10 = vpop.f32.mrf.mxu0  ;;  %v4678_v52 = vadd.f32 %v15463_v6, %v4552_v12  ;;  %v4674_v4 = vadd.f32 %v15464_v42, %v14189_v39  ;;  %v4677_v5 = vadd.f32 %v15465_v11, %v14231_v24  ;;  %v11065_v39 = vrot.slane %v6798_v27, 9 }
 0x542   : > { %15460 = vst [vmem:[#allocation19_spill] sm:$0xff] %v14320_v18  ;;  %11224 = vmatmul.msk.bf16.gmra.mxu0 %vm3815_vm13, %v8358_v30  ;;  %v7591_v57 = vor.u32 %v7590_v32, %v7587_v14  ;;  %v7601_v30 = vor.u32 %v7600_v46, %v7596_v19  ;;  %v11680_v18 = vld [vmem:[#allocation3 + $0x1c] sm:$0xf]  ;;  %v15467_v46 = vld [vmem:[#allocation34_spill] sm:$0xff] }
 0x543   : > { %15462 = vst [vmem:[#allocation21_spill] sm:$0xff] %v14331_v10  ;;  %11188 = vmatmul.msk.bf16.gmra.mxu3 %vm3815_vm13, %v7956_v56  ;;  %v6876_v10 = vrot.slane %v11680_v18, 5  ;;  %v4764_v6 = vadd.f32 %v15467_v46, %v4678_v52  ;;  %v15469_v52 = vld [vmem:[#allocation32_spill] sm:$0xff] }
 0x544   : > { %v7592_v14 = vrot.slane %v7591_v57, 4  ;;  %v7602_v32 = vrot.slane %v7601_v30, 4  ;;  %v6879_v57 = vrot.slane %v11681_v40, 5  ;;  %v15468_v30 = vld [vmem:[#allocation31_spill] sm:$0xff]  ;;  %v4763_v27 = vadd.f32 %v15469_v52, %v4677_v5  ;;  %v11527_v40 = vld [vmem:[#allocation3 + $0x18] sm:$0xff] }
 0x545   : > { %v4675_v42 = vadd.f32 %v15468_v30, %v14203_v47  ;;  %v4962_v5 = vadd.f32 %v14148_v22, %v4764_v6 }
 0x546   : > { %v7607_v35 = vsel %vm12301_vm9, %v7602_v32, %v7606_v50  ;;  %v4762_v50 = vadd.f32 %v15472_v1, %v4676_v33  ;;  %v4961_v33 = vadd.f32 %v14138_v34, %v4763_v27  ;;  %v7497_v34 = vld [vmem:[#allocation3 + $0x30] sm:$0xf]  ;;  %v7498_v27 = vld [vmem:[#allocation3 + $0x34] sm:$0xf]  ;;  %v7499_v1 = vld [vmem:[#allocation3 + $0x38] sm:$0x1] }
 0x547   : > { %v5843_v16 = vpop.f32.mrf.mxu2  ;;  %v7928_v30 = vunpack.c.l.b16 %v7607_v35 }
 0x548   : > { %v14337_v25 = vadd.f32 %v6098_v61, %v5843_v16  ;;  %v5076_v12 = vpop.f32.mrf.mxu1  ;;  %v8226_v16 = vrot.slane %v7495_v51, 5  ;;  %v14349_v18 = vpop.f32.mrf.mxu3  ;;  %v7597_v51 = vsel %vm12301_vm9, %v7592_v14, %v7596_v19  ;;  %v15471_v19 = vld [vmem:[#allocation26_spill] sm:$0xff]  ;;  %v4960_v6 = vadd.f32 %v14118_v36, %v4762_v50  ;;  %v15478_v36 = vld [vmem:[#allocation40_spill] sm:$0xff] }
 0x549   : > { %v6714_v61 = vpop.f32.mrf.mxu0  ;;  %v7927_v47 = vunpack.c.l.b16 %v7597_v51  ;;  %v15475_v51 = vld [vmem:[#allocation22_spill] sm:$0xff] }
 0x54a   : > { %v14347_v56 = vadd.f32 %v6714_v61, %v14272_v17  ;;  %v8227_v24 = vsel %vm12315_vm12, %v11205_v60, %v8226_v16  ;;  %v8228_v58 = vrot.slane %v8226_v16, 4  ;;  %v6878_v17 = vrot.slane %v6876_v10, 4 }
 0x54b   : > { %11084 = vmatmul.msk.bf16.gmra.mxu1 %vm3815_vm13, %v7008_v49  ;;  %v8329_v11 = vunpack.c.l.b16 %v8227_v24  ;;  %v15470_v49 = vld [vmem:[#allocation24_spill] sm:$0xff]  ;;  %v4673_v16 = vadd.f32 %v15471_v19, %v14170_v21  ;;  %v15473_v24 = vld [vmem:[#allocation25_spill] sm:$0xff]  ;;  %v15474_v21 = vld [vmem:[#allocation27_spill] sm:$0xff] }
 0x54c   : > { %v8230_v60 = vsel %vm12315_vm12, %v8228_v58, %v8229_v38  ;;  %v4672_v61 = vadd.f32 %v15470_v49, %v14156_v26  ;;  %v6877_v38 = vsel %vm12315_vm12, %v11065_v39, %v6876_v10  ;;  %v6880_v26 = vsel %vm12315_vm12, %v6878_v17, %v6879_v57  ;;  %v15476_v19 = vld [vmem:[#allocation23_spill] sm:$0xff] }
 0x54d   : > { %v8330_v32 = vunpack.c.l.b16 %v8230_v60  ;;  %v4760_v58 = vadd.f32 %v15473_v24, %v4674_v4  ;;  %v4761_v52 = vadd.f32 %v15474_v21, %v4675_v42  ;;  %v4759_v22 = vadd.f32 %v15476_v19, %v4673_v16  ;;  %v15477_v16 = vld [vmem:[#allocation39_spill] sm:$0xff] }
 0x54e   : > { %v4758_v35 = vadd.f32 %v15475_v51, %v4672_v61  ;;  %v5087_v39 = vadd.f32 %v5076_v12, %v4961_v33  ;;  %v7957_v4 = vpack.c.b16 %v7928_v30, %v7927_v47  ;;  %v6979_v57 = vunpack.c.l.b16 %v6877_v38  ;;  %v8149_v51 = vld [vmem:[#allocation3 + $0x30] sm:$0xe]  ;;  %v11682_v19 = vld [vmem:[#allocation3 + $0x28] sm:$0xf] }
 0x54f   : > { %v5845_v14 = vpop.f32.mrf.mxu2  ;;  %v8359_v49 = vpack.c.b16 %v8330_v32, %v8329_v11  ;;  %11168 = vmatmul.msk.bf16.gmra.mxu2 %vm3815_vm13, %v11527_v40  ;;  %v6980_v42 = vunpack.c.l.b16 %v6880_v26  ;;  %v7609_v11 = vshrl.u32 %v7497_v34, 16  ;;  %v7618_v61 = vshll.u32 %v7498_v27, 16 }
 0x550   : > { %v14369_v46 = vadd.f32 %v6100_v43, %v5845_v14  ;;  %v5078_v60 = vpop.f32.mrf.mxu1  ;;  %v14385_v17 = vpop.f32.mrf.mxu3  ;;  %v7612_v14 = vshll.u32 %v7497_v34, 16  ;;  %v7622_v32 = vshrl.u32 %v7498_v27, 16  ;;  %v4958_v24 = vadd.f32 %v15477_v16, %v4760_v58 }
 0x551   : > { %v14379_v43 = vpop.f32.mrf.mxu0  ;;  %v5088_v10 = vadd.f32 %v5078_v60, %v4962_v5  ;;  %v4959_v50 = vadd.f32 %v15478_v36, %v4761_v52  ;;  %v5086_v12 = vadd.f32 %v14329_v29, %v4960_v6  ;;  %v7628_v40 = vshll.u32 %v7499_v1, 16 }
 0x552   : > { %11225 = vmatmul.msk.bf16.gmra.mxu0 %vm3815_vm13, %v8359_v49  ;;  %v7611_v30 = vrot.slane %v7609_v11, 4  ;;  %v7614_v5 = vrot.slane %v7612_v14, 5  ;;  %v7620_v38 = vrot.slane %v7618_v61, 5  ;;  %v7624_v26 = vrot.slane %v7622_v32, 4  ;;  %v6799_v49 = vld [vmem:[#allocation3 + $0x24] sm:$0xe] }
 0x553   : > { %10036 = vmatpush.msra.mxu0 %v5088_v10  ;;  %v5085_v21 = vadd.f32 %v14307_v0, %v4959_v50  ;;  %v7009_v60 = vpack.c.b16 %v6980_v42, %v6979_v57  ;;  %v7630_v58 = vrot.slane %v7628_v40, 5  ;;  %11189 = vmatmul.msk.bf16.gmra.mxu3 %vm3815_vm13, %v7957_v4  ;;  %v6883_v6 = vrot.slane %v11682_v19, 5  ;;  %v15480_v11 = vld [vmem:[#allocation37_spill] sm:$0xff] }
 0x554   : > { %v7615_v29 = vor.u32 %v7614_v5, %v7611_v30  ;;  %v7625_v52 = vor.u32 %v7624_v26, %v7620_v38  ;;  %v11206_v10 = vrot.slane %v8149_v51, 9  ;;  %v4957_v14 = vadd.f32 %v15480_v11, %v4759_v22  ;;  %v7502_v11 = vld [vmem:[#allocation3 + $0x44] sm:$0x1] }
 0x555   : > { %10037 = vmatpush.msra.mxu0 %v5087_v39  ;;  %v15479_v39 = vld [vmem:[#allocation35_spill] sm:$0xff]  ;;  %v8233_v61 = vrot.slane %v7498_v27, 5  ;;  %v8236_v57 = vrot.slane %v7499_v1, 5  ;;  %v5084_v42 = vadd.f32 %v14295_v48, %v4958_v24  ;;  %v6885_v27 = vrot.slane %v6883_v6, 4 }
 0x556   : > { %v4956_v34 = vadd.f32 %v15479_v39, %v4758_v35  ;;  %v7616_v32 = vrot.slane %v7615_v29, 4  ;;  %v7626_v16 = vrot.slane %v7625_v52, 4  ;;  %v5083_v36 = vadd.f32 %v14275_v59, %v4957_v14  ;;  %v11683_v1 = vld [vmem:[#allocation3 + $0x2c] sm:$0x1]  ;;  %v7500_v39 = vld [vmem:[#allocation3 + $0x3c] sm:$0xf] }
 0x557   : > { %v5848_v47 = vpop.f32.mrf.mxu2  ;;  %10038 = vmatpush.msra.mxu0 %v5086_v12  ;;  %v11066_v12 = vrot.slane %v6799_v49, 9  ;;  %v8234_v35 = vsel %vm12315_vm12, %v11206_v10, %v8233_v61  ;;  %v8235_v22 = vrot.slane %v8233_v61, 4  ;;  %v6886_v24 = vrot.slane %v11683_v1, 5  ;;  %v6800_v1 = vld [vmem:[#allocation3 + $0x30] sm:$0xe] }
 0x558   : > { %v14393_v33 = vadd.f32 %v14349_v18, %v5848_v47  ;;  %v14398_v0 = vpop.f32.mrf.mxu1  ;;  %v6108_v50 = vpop.f32.mrf.mxu3  ;;  %v7621_v48 = vsel %vm12301_vm9, %v7616_v32, %v7620_v38  ;;  %v8331_v40 = vunpack.c.l.b16 %v8234_v35  ;;  %v5082_v47 = vadd.f32 %v14267_v31, %v4956_v34  ;;  %v7501_v34 = vld [vmem:[#allocation3 + $0x40] sm:$0xf] }
 0x559   : > { %v6719_v18 = vpop.f32.mrf.mxu0  ;;  %10039 = vmatpush.msra.mxu0 %v5085_v21  ;;  %v8237_v59 = vsel %vm12315_vm12, %v8235_v22, %v8236_v57  ;;  %v11528_v21 = vld [vmem:[#allocation3 + $0x24] sm:$0xff]  ;;  %v7929_v38 = vunpack.c.l.b16 %v7621_v48  ;;  %v6887_v51 = vsel %vm12315_vm12, %v6885_v27, %v6886_v24  ;;  %v7636_v14 = vshll.u32 %v7500_v39, 16  ;;  %v8150_v48 = vld [vmem:[#allocation3 + $0x3c] sm:$0xe]  ;;  %v11684_v24 = vld [vmem:[#allocation3 + $0x34] sm:$0xf] }
 0x55a   : > { %v14402_v4 = vadd.f32 %v6719_v18, %v14303_v63  ;;  %v7631_v63 = vsel %vm12301_vm9, %v7626_v16, %v7630_v58  ;;  %v8332_v5 = vunpack.c.l.b16 %v8237_v59  ;;  %v6884_v58 = vsel %vm12315_vm12, %v11066_v12, %v6883_v6 }
 0x55b   : > { %11085 = vmatmul.msk.bf16.gmra.mxu1 %vm3815_vm13, %v7009_v60  ;;  %10040 = vmatpush.msra.mxu0 %v5084_v42  ;;  %v7930_v60 = vunpack.c.l.b16 %v7631_v63  ;;  %v6981_v19 = vunpack.c.l.b16 %v6884_v58  ;;  %v6982_v10 = vunpack.c.l.b16 %v6887_v51  ;;  %v7633_v6 = vshrl.u32 %v7500_v39, 16 }
 0x55c   : > { %v8360_v31 = vpack.c.b16 %v8332_v5, %v8331_v40  ;;  %v7642_v18 = vshll.u32 %v7501_v34, 16  ;;  %v7646_v61 = vshrl.u32 %v7501_v34, 16  ;;  %v7652_v57 = vshll.u32 %v7502_v11, 16 }
 0x55d   : > { %10041 = vmatpush.msra.mxu0 %v5083_v36  ;;  %v7958_v49 = vpack.c.b16 %v7930_v60, %v7929_v38  ;;  %v7635_v32 = vrot.slane %v7633_v6, 4  ;;  %v7638_v16 = vrot.slane %v7636_v14, 5  ;;  %v7010_v35 = vpack.c.b16 %v6982_v10, %v6981_v19 }
 0x55e   : > { %v7648_v36 = vrot.slane %v7646_v61, 4  ;;  %v7654_v22 = vrot.slane %v7652_v57, 5  ;;  %v6890_v59 = vrot.slane %v11684_v24, 5  ;;  %v11207_v40 = vrot.slane %v8150_v48, 9  ;;  %v11529_v57 = vld [vmem:[#allocation3 + $0x30] sm:$0xff] }
 0x55f   : > { %v5850_v30 = vpop.f32.mrf.mxu2  ;;  %10042 = vmatpush.msra.mxu0 %v5082_v47  ;;  %11169 = vmatmul.msk.bf16.gmra.mxu2 %vm3815_vm13, %v11528_v21  ;;  %v7639_v63 = vor.u32 %v7638_v16, %v7635_v32  ;;  %v8240_v5 = vrot.slane %v7501_v34, 5  ;;  %v8243_v21 = vrot.slane %v7502_v11, 5  ;;  %v11067_v51 = vrot.slane %v6800_v1, 9  ;;  %v11685_v34 = vld [vmem:[#allocation3 + $0x38] sm:$0x1] }
 0x560   : > { %v14416_v26 = vadd.f32 %v14385_v17, %v5850_v30  ;;  %v14422_v29 = vpop.f32.mrf.mxu1  ;;  %v6110_v17 = vpop.f32.mrf.mxu3  ;;  %v6892_v39 = vrot.slane %v6890_v59, 4  ;;  %v7503_v1 = vld [vmem:[#allocation3 + $0x48] sm:$0xf]  ;;  %v7504_v24 = vld [vmem:[#allocation3 + $0x4c] sm:$0xf] }
 0x561   : > { %v14424_v52 = vpop.f32.mrf.mxu0  ;;  %10043 = vmatpush.msra.mxu0 %v14255_v20  ;;  %v7644_v20 = vrot.slane %v7642_v18, 5  ;;  %v6891_v16 = vsel %vm12315_vm12, %v11067_v51, %v6890_v59  ;;  %v7666_v59 = vshll.u32 %v7504_v24, 16 }
 0x562   : > { %11226 = vmatmul.msk.bf16.gmra.mxu0 %vm3815_vm13, %v8360_v31  ;;  %v8241_v31 = vsel %vm12315_vm12, %v11207_v40, %v8240_v5  ;;  %v7505_v40 = vld [vmem:[#allocation3 + $0x50] sm:$0x1] }
 0x563   : > { %11190 = vmatmul.msk.bf16.gmra.mxu3 %vm3815_vm13, %v7958_v49  ;;  %v7649_v27 = vor.u32 %v7648_v36, %v7644_v20  ;;  %v8242_v49 = vrot.slane %v8240_v5, 4  ;;  %v8333_v6 = vunpack.c.l.b16 %v8241_v31  ;;  %v7660_v5 = vshll.u32 %v7503_v1, 16 }
 0x565   : > { %v7650_v60 = vrot.slane %v7649_v27, 4  ;;  %v8244_v11 = vsel %vm12315_vm12, %v8242_v49, %v8243_v21  ;;  %v7670_v21 = vshrl.u32 %v7504_v24, 16  ;;  %v7662_v31 = vrot.slane %v7660_v5, 5 }
 0x566   : > { %v8334_v18 = vunpack.c.l.b16 %v8244_v11  ;;  %v7668_v49 = vrot.slane %v7666_v59, 5 }
 0x567   : > { %v5853_v42 = vpop.f32.mrf.mxu2  ;;  %v7655_v10 = vsel %vm12301_vm9, %v7650_v60, %v7654_v22 }
 0x568   : > { %v14429_v12 = vadd.f32 %v6108_v50, %v5853_v42  ;;  %v14432_v47 = vpop.f32.mrf.mxu1  ;;  %v7640_v50 = vrot.slane %v7639_v63, 4  ;;  %v6113_v58 = vpop.f32.mrf.mxu3  ;;  %v7932_v32 = vunpack.c.l.b16 %v7655_v10  ;;  %v8361_v22 = vpack.c.b16 %v8334_v18, %v8333_v6  ;;  %v11686_v18 = vld [vmem:[#allocation3 + $0x40] sm:$0xf] }
 0x569   : > { %15481 = vst [vmem:[#allocation20_spill] sm:$0xff] %v14432_v47  ;;  %v6724_v30 = vpop.f32.mrf.mxu0 }
 0x56a   : > { %v14435_v38 = vadd.f32 %v6724_v30, %v14337_v25  ;;  %v7645_v19 = vsel %vm12301_vm9, %v7640_v50, %v7644_v20  ;;  %v6893_v25 = vrot.slane %v11685_v34, 5  ;;  %v7657_v30 = vshrl.u32 %v7503_v1, 16 }
 0x56b   : > { %11086 = vmatmul.msk.bf16.gmra.mxu1 %vm3815_vm13, %v7010_v35  ;;  %v7931_v42 = vunpack.c.l.b16 %v7645_v19  ;;  %v7676_v50 = vshll.u32 %v7505_v40, 16  ;;  %v7672_v19 = vrot.slane %v7670_v21, 4  ;;  %v11687_v21 = vld [vmem:[#allocation3 + $0x44] sm:$0x1] }
 0x56c   : > { %v6894_v20 = vsel %vm12315_vm12, %v6892_v39, %v6893_v25  ;;  %v7659_v51 = vrot.slane %v7657_v30, 4  ;;  %v8151_v25 = vld [vmem:[#allocation3 + $0x48] sm:$0xe] }
 0x56d   : > { %v7959_v63 = vpack.c.b16 %v7932_v32, %v7931_v42  ;;  %v6984_v27 = vunpack.c.l.b16 %v6894_v20  ;;  %v7678_v34 = vrot.slane %v7676_v50, 5  ;;  %v7673_v6 = vor.u32 %v7672_v19, %v7668_v49 }
 0x56e   : > { %v7663_v11 = vor.u32 %v7662_v31, %v7659_v51  ;;  %v11208_v42 = vrot.slane %v8151_v25, 9  ;;  %v8247_v20 = vrot.slane %v7504_v24, 5  ;;  %v11530_v25 = vld [vmem:[#allocation3 + $0x3c] sm:$0xff] }
 0x56f   : > { %v5855_v14 = vpop.f32.mrf.mxu2  ;;  %11170 = vmatmul.msk.bf16.gmra.mxu2 %vm3815_vm13, %v11529_v57  ;;  %v6897_v57 = vrot.slane %v11686_v18, 5 }
 0x570   : > { %v14446_v61 = vadd.f32 %v6110_v17, %v5855_v14  ;;  %v14452_v36 = vpop.f32.mrf.mxu1  ;;  %v6115_v48 = vpop.f32.mrf.mxu3  ;;  %v6983_v17 = vunpack.c.l.b16 %v6891_v16  ;;  %v6801_v14 = vld [vmem:[#allocation3 + $0x3c] sm:$0xe]  ;;  %v8249_v5 = vrot.slane %v8247_v20, 4 }
 0x571   : > { %15482 = vst [vmem:[#allocation30_spill] sm:$0xff] %v14452_v36  ;;  %v14454_v35 = vpop.f32.mrf.mxu0  ;;  %v11068_v30 = vrot.slane %v6801_v14, 9 }
 0x572   : > { %11227 = vmatmul.msk.bf16.gmra.mxu0 %vm3815_vm13, %v8361_v22  ;;  %v7011_v39 = vpack.c.b16 %v6984_v27, %v6983_v17  ;;  %v8250_v22 = vrot.slane %v7505_v40, 5  ;;  %v7674_v17 = vrot.slane %v7673_v6, 4  ;;  %v6899_v40 = vrot.slane %v6897_v57, 4 }
 0x573   : > { %11191 = vmatmul.msk.bf16.gmra.mxu3 %vm3815_vm13, %v7959_v63  ;;  %v8248_v63 = vsel %vm12315_vm12, %v11208_v42, %v8247_v20 }
 0x574   : > { %v7679_v24 = vsel %vm12301_vm9, %v7674_v17, %v7678_v34  ;;  %v8251_v50 = vsel %vm12315_vm12, %v8249_v5, %v8250_v22  ;;  %v7507_v22 = vld [vmem:[#allocation3 + $0x58] sm:$0xf] }
 0x575   : > { %v8336_v31 = vunpack.c.l.b16 %v8251_v50  ;;  %v7690_v5 = vshll.u32 %v7507_v22, 16 }
 0x577   : > { %v5858_v60 = vpop.f32.mrf.mxu2 }
 0x578   : > { %v14458_v10 = vadd.f32 %v6113_v58, %v5858_v60  ;;  %v14461_v32 = vpop.f32.mrf.mxu1  ;;  %v7664_v58 = vrot.slane %v7663_v11, 4  ;;  %v6118_v27 = vpop.f32.mrf.mxu3  ;;  %v8335_v60 = vunpack.c.l.b16 %v8248_v63 }
 0x579   : > { %15484 = vst [vmem:[#allocation28_spill] sm:$0xff] %v14461_v32  ;;  %v6729_v16 = vpop.f32.mrf.mxu0 }
 0x57a   : > { %15483 = vst [vmem:[#allocation38_spill] sm:$0xff] %v14458_v10  ;;  %v14464_v1 = vadd.f32 %v6729_v16, %v14393_v33  ;;  %v7669_v59 = vsel %vm12301_vm9, %v7664_v58, %v7668_v49  ;;  %v6900_v33 = vrot.slane %v11687_v21, 5  ;;  %v6898_v49 = vsel %vm12315_vm12, %v11068_v30, %v6897_v57  ;;  %v7508_v58 = vld [vmem:[#allocation3 + $0x5c] sm:$0x1] }
 0x57b   : > { %11087 = vmatmul.msk.bf16.gmra.mxu1 %vm3815_vm13, %v7011_v39  ;;  %v7933_v11 = vunpack.c.l.b16 %v7669_v59  ;;  %v7934_v39 = vunpack.c.l.b16 %v7679_v24  ;;  %v8362_v14 = vpack.c.b16 %v8336_v31, %v8335_v60  ;;  %v6985_v16 = vunpack.c.l.b16 %v6898_v49  ;;  %v8152_v31 = vld [vmem:[#allocation3 + $0x54] sm:$0xe]  ;;  %v11688_v49 = vld [vmem:[#allocation3 + $0x4c] sm:$0xf] }
 0x57c   : > { %v6901_v34 = vsel %vm12315_vm12, %v6899_v40, %v6900_v33  ;;  %v7694_v59 = vshrl.u32 %v7507_v22, 16  ;;  %v7700_v57 = vshll.u32 %v7508_v58, 16  ;;  %v7692_v21 = vrot.slane %v7690_v5, 5 }
 0x57d   : > { %v7960_v42 = vpack.c.b16 %v7934_v39, %v7933_v11  ;;  %v6986_v20 = vunpack.c.l.b16 %v6901_v34  ;;  %v6802_v39 = vld [vmem:[#allocation3 + $0x48] sm:$0xe]  ;;  %v6904_v34 = vrot.slane %v11688_v49, 5 }
 0x57e   : > { %v7696_v33 = vrot.slane %v7694_v59, 4 }
 0x57f   : > { %v5860_v51 = vpop.f32.mrf.mxu2  ;;  %11171 = vmatmul.msk.bf16.gmra.mxu2 %vm3815_vm13, %v11530_v25  ;;  %v7012_v60 = vpack.c.b16 %v6986_v20, %v6985_v16 }
 0x580   : > { %v14475_v19 = vadd.f32 %v6115_v48, %v5860_v51  ;;  %v14481_v6 = vpop.f32.mrf.mxu1  ;;  %v6120_v18 = vpop.f32.mrf.mxu3  ;;  %v7506_v48 = vld [vmem:[#allocation3 + $0x54] sm:$0xf]  ;;  %v7702_v51 = vrot.slane %v7700_v57, 5  ;;  %v7697_v11 = vor.u32 %v7696_v33, %v7692_v21 }
 0x581   : > { %15486 = vst [vmem:[#allocation33_spill] sm:$0xff] %v14481_v6  ;;  %v7681_v17 = vshrl.u32 %v7506_v48, 16  ;;  %v7684_v63 = vshll.u32 %v7506_v48, 16  ;;  %v11209_v48 = vrot.slane %v8152_v31, 9  ;;  %v8254_v6 = vrot.slane %v7507_v22, 5 }
 0x582   : > { %15485 = vst [vmem:[#allocation36_spill] sm:$0xff] %v14475_v19  ;;  %11228 = vmatmul.msk.bf16.gmra.mxu0 %vm3815_vm13, %v8362_v14  ;;  %v7698_v5 = vrot.slane %v7697_v11, 4 }
 0x583   : > { %v7683_v24 = vrot.slane %v7681_v17, 4  ;;  %v7686_v40 = vrot.slane %v7684_v63, 5  ;;  %11192 = vmatmul.msk.bf16.gmra.mxu3 %vm3815_vm13, %v7960_v42  ;;  %v8257_v17 = vrot.slane %v7508_v58, 5  ;;  %v8255_v16 = vsel %vm12315_vm12, %v11209_v48, %v8254_v6 }
 0x584   : > { %v8256_v20 = vrot.slane %v8254_v6, 4  ;;  %v7703_v57 = vsel %vm12301_vm9, %v7698_v5, %v7702_v51  ;;  %v11531_v6 = vld [vmem:[#allocation3 + $0x48] sm:$0xff] }
 0x585   : > { %v7687_v25 = vor.u32 %v7686_v40, %v7683_v24  ;;  %v11689_v24 = vld [vmem:[#allocation3 + $0x50] sm:$0x1]  ;;  %v8337_v40 = vunpack.c.l.b16 %v8255_v16  ;;  %v7510_v16 = vld [vmem:[#allocation3 + $0x64] sm:$0xf] }
 0x586   : > { %v6907_v22 = vrot.slane %v11689_v24, 5  ;;  %v8258_v58 = vsel %vm12315_vm12, %v8256_v20, %v8257_v17  ;;  %v7511_v20 = vld [vmem:[#allocation3 + $0x68] sm:$0x1]  ;;  %v7714_v24 = vshll.u32 %v7510_v16, 16  ;;  %v8261_v32 = vrot.slane %v7510_v16, 5 }
 0x587   : > { %v5863_v30 = vpop.f32.mrf.mxu2  ;;  %v7688_v63 = vrot.slane %v7687_v25, 4  ;;  %v8338_v31 = vunpack.c.l.b16 %v8258_v58  ;;  %v7718_v58 = vshrl.u32 %v7510_v16, 16 }
 0x588   : > { %v14485_v50 = vadd.f32 %v6118_v27, %v5863_v30  ;;  %v14488_v14 = vpop.f32.mrf.mxu1  ;;  %v6123_v59 = vpop.f32.mrf.mxu3  ;;  %v11069_v27 = vrot.slane %v6802_v39, 9  ;;  %v6906_v30 = vrot.slane %v6904_v34, 4 }
 0x589   : > { %15488 = vst [vmem:[#allocation31_spill] sm:$0xff] %v14488_v14  ;;  %v7693_v42 = vsel %vm12301_vm9, %v7688_v63, %v7692_v21  ;;  %v8363_v49 = vpack.c.b16 %v8338_v31, %v8337_v40  ;;  %v7716_v40 = vrot.slane %v7714_v24, 5 }
 0x58a   : > { %15487 = vst [vmem:[#allocation34_spill] sm:$0xff] %v14485_v50  ;;  %v7935_v11 = vunpack.c.l.b16 %v7693_v42  ;;  %v6905_v21 = vsel %vm12315_vm12, %v11069_v27, %v6904_v34  ;;  %v6908_v51 = vsel %vm12315_vm12, %v6906_v30, %v6907_v22  ;;  %v7724_v34 = vshll.u32 %v7511_v20, 16 }
 0x58b   : > { %11088 = vmatmul.msk.bf16.gmra.mxu1 %vm3815_vm13, %v7012_v60  ;;  %v7936_v60 = vunpack.c.l.b16 %v7703_v57  ;;  %v6987_v63 = vunpack.c.l.b16 %v6905_v21  ;;  %v6988_v5 = vunpack.c.l.b16 %v6908_v51 }
 0x58d   : > { %v7961_v17 = vpack.c.b16 %v7936_v60, %v7935_v11  ;;  %v7726_v11 = vrot.slane %v7724_v34, 5  ;;  %v8153_v60 = vld [vmem:[#allocation3 + $0x60] sm:$0xe] }
 0x58f   : > { %v5865_v33 = vpop.f32.mrf.mxu2  ;;  %11172 = vmatmul.msk.bf16.gmra.mxu2 %vm3815_vm13, %v11531_v6  ;;  %v7013_v6 = vpack.c.b16 %v6988_v5, %v6987_v63  ;;  %v8263_v5 = vrot.slane %v8261_v32, 4 }
 0x590   : > { %v14499_v25 = vadd.f32 %v6120_v18, %v5865_v33  ;;  %v14505_v39 = vpop.f32.mrf.mxu1  ;;  %v6125_v48 = vpop.f32.mrf.mxu3  ;;  %v7509_v18 = vld [vmem:[#allocation3 + $0x60] sm:$0xf]  ;;  %v7720_v33 = vrot.slane %v7718_v58, 4 }
 0x591   : > { %15490 = vst [vmem:[#allocation24_spill] sm:$0xff] %v14505_v39  ;;  %v7705_v42 = vshrl.u32 %v7509_v18, 16  ;;  %v7708_v57 = vshll.u32 %v7509_v18, 16  ;;  %v6803_v18 = vld [vmem:[#allocation3 + $0x54] sm:$0xe] }
 0x592   : > { %15489 = vst [vmem:[#allocation32_spill] sm:$0xff] %v14499_v25  ;;  %11229 = vmatmul.msk.bf16.gmra.mxu0 %vm3815_vm13, %v8363_v49  ;;  %v7721_v51 = vor.u32 %v7720_v33, %v7716_v40  ;;  %v11690_v39 = vld [vmem:[#allocation3 + $0x58] sm:$0xf]  ;;  %v11210_v25 = vrot.slane %v8153_v60, 9 }
 0x593   : > { %v7707_v30 = vrot.slane %v7705_v42, 4  ;;  %v7710_v22 = vrot.slane %v7708_v57, 5  ;;  %11193 = vmatmul.msk.bf16.gmra.mxu3 %vm3815_vm13, %v7961_v17  ;;  %v6911_v14 = vrot.slane %v11690_v39, 5  ;;  %v8264_v42 = vrot.slane %v7511_v20, 5 }
 0x594   : > { %v7722_v24 = vrot.slane %v7721_v51, 4  ;;  %v8262_v63 = vsel %vm12315_vm12, %v11210_v25, %v8261_v32  ;;  %v11532_v32 = vld [vmem:[#allocation3 + $0x54] sm:$0xff] }
 0x595   : > { %v7711_v21 = vor.u32 %v7710_v22, %v7707_v30  ;;  %v6913_v34 = vrot.slane %v6911_v14, 4  ;;  %v8265_v20 = vsel %vm12315_vm12, %v8263_v5, %v8264_v42  ;;  %v8339_v30 = vunpack.c.l.b16 %v8262_v63  ;;  %v7513_v63 = vld [vmem:[#allocation3 + $0x70] sm:$0xf]  ;;  %v7514_v5 = vld [vmem:[#allocation3 + $0x74] sm:$0x1] }
 0x596   : > { %v7727_v39 = vsel %vm12301_vm9, %v7722_v24, %v7726_v11  ;;  %v8340_v33 = vunpack.c.l.b16 %v8265_v20  ;;  %v7742_v20 = vshrl.u32 %v7513_v63, 16 }
 0x597   : > { %v5868_v27 = vpop.f32.mrf.mxu2  ;;  %v7712_v57 = vrot.slane %v7711_v21, 4 }
 0x598   : > { %v14509_v31 = vadd.f32 %v6123_v59, %v5868_v27  ;;  %v14512_v49 = vpop.f32.mrf.mxu1  ;;  %v6128_v58 = vpop.f32.mrf.mxu3  ;;  %v11070_v59 = vrot.slane %v6803_v18, 9  ;;  %v11691_v27 = vld [vmem:[#allocation3 + $0x5c] sm:$0x1]  ;;  %v8364_v51 = vpack.c.b16 %v8340_v33, %v8339_v30 }
 0x599   : > { %15492 = vst [vmem:[#allocation29_spill] sm:$0xff] %v14512_v49  ;;  %v7717_v17 = vsel %vm12301_vm9, %v7712_v57, %v7716_v40  ;;  %v6914_v16 = vrot.slane %v11691_v27, 5  ;;  %v7738_v27 = vshll.u32 %v7513_v63, 16  ;;  %v14536_v49 = vpop.f32.mrf.mxu0 }
 0x59a   : > { %15491 = vst [vmem:[#allocation26_spill] sm:$0xff] %v14509_v31  ;;  %v7937_v25 = vunpack.c.l.b16 %v7717_v17  ;;  %v6912_v40 = vsel %vm12315_vm12, %v11070_v59, %v6911_v14  ;;  %v7748_v14 = vshll.u32 %v7514_v5, 16 }
 0x59b   : > { %11089 = vmatmul.msk.bf16.gmra.mxu1 %vm3815_vm13, %v7013_v6  ;;  %v7938_v6 = vunpack.c.l.b16 %v7727_v39  ;;  %v6915_v11 = vsel %vm12315_vm12, %v6913_v34, %v6914_v16  ;;  %v6989_v57 = vunpack.c.l.b16 %v6912_v40  ;;  %v7740_v30 = vrot.slane %v7738_v27, 5 }
 0x59c   : > { %v6990_v24 = vunpack.c.l.b16 %v6915_v11  ;;  %v7750_v40 = vrot.slane %v7748_v14, 5  ;;  %v6804_v11 = vld [vmem:[#allocation3 + $0x60] sm:$0xe] }
 0x59d   : > { %v7962_v42 = vpack.c.b16 %v7938_v6, %v7937_v25  ;;  %v11071_v27 = vrot.slane %v6804_v11, 9 }
 0x59f   : > { %v5870_v22 = vpop.f32.mrf.mxu2  ;;  %11173 = vmatmul.msk.bf16.gmra.mxu2 %vm3815_vm13, %v11532_v32  ;;  %v7014_v32 = vpack.c.b16 %v6990_v24, %v6989_v57  ;;  %v8268_v57 = vrot.slane %v7513_v63, 5  ;;  %v8271_v24 = vrot.slane %v7514_v5, 5  ;;  %v11533_v63 = vld [vmem:[#allocation3 + $0x60] sm:$0xff] }
 0x5a0   : > { %v14523_v60 = vadd.f32 %v6125_v48, %v5870_v22  ;;  %v14529_v21 = vpop.f32.mrf.mxu1  ;;  %v6130_v18 = vpop.f32.mrf.mxu3  ;;  %v7512_v48 = vld [vmem:[#allocation3 + $0x6c] sm:$0xf]  ;;  %v7744_v22 = vrot.slane %v7742_v20, 4  ;;  %v11693_v20 = vld [vmem:[#allocation3 + $0x68] sm:$0x1] }
 0x5a1   : > { %15494 = vst [vmem:[#allocation27_spill] sm:$0xff] %v14529_v21  ;;  %v7729_v17 = vshrl.u32 %v7512_v48, 16  ;;  %v7732_v39 = vshll.u32 %v7512_v48, 16  ;;  %v11692_v48 = vld [vmem:[#allocation3 + $0x64] sm:$0xf] }
 0x5a2   : > { %15493 = vst [vmem:[#allocation25_spill] sm:$0xff] %v14523_v60  ;;  %11230 = vmatmul.msk.bf16.gmra.mxu0 %vm3815_vm13, %v8364_v51  ;;  %v7745_v6 = vor.u32 %v7744_v22, %v7740_v30  ;;  %v6918_v21 = vrot.slane %v11692_v48, 5  ;;  %v8270_v22 = vrot.slane %v8268_v57, 4 }
 0x5a3   : > { %v7731_v34 = vrot.slane %v7729_v17, 4  ;;  %v7734_v16 = vrot.slane %v7732_v39, 5  ;;  %11194 = vmatmul.msk.bf16.gmra.mxu3 %vm3815_vm13, %v7962_v42 }
 0x5a4   : > { %v7746_v17 = vrot.slane %v7745_v6, 4 }
 0x5a5   : > { %v7735_v25 = vor.u32 %v7734_v16, %v7731_v34  ;;  %v6920_v34 = vrot.slane %v6918_v21, 4 }
 0x5a6   : > { %v7751_v14 = vsel %vm12301_vm9, %v7746_v17, %v7750_v40 }
 0x5a7   : > { %v5873_v59 = vpop.f32.mrf.mxu2  ;;  %v7736_v60 = vrot.slane %v7735_v25, 4  ;;  %v7940_v5 = vunpack.c.l.b16 %v7751_v14 }
 0x5a8   : > { %v14533_v33 = vadd.f32 %v6128_v58, %v5873_v59  ;;  %v14538_v51 = vpop.f32.mrf.mxu1  ;;  %v6133_v39 = vpop.f32.mrf.mxu3  ;;  %v6921_v58 = vrot.slane %v11693_v20, 5  ;;  %v8154_v59 = vld [vmem:[#allocation3 + $0x6c] sm:$0xe] }
 0x5a9   : > { %15496 = vst [vmem:[#allocation23_spill] sm:$0xff] %v14538_v51  ;;  %v7741_v42 = vsel %vm12301_vm9, %v7736_v60, %v7740_v30  ;;  %v11211_v16 = vrot.slane %v8154_v59, 9  ;;  %v6919_v60 = vsel %vm12315_vm12, %v11071_v27, %v6918_v21 }
 0x5aa   : > { %15495 = vst [vmem:[#allocation22_spill] sm:$0xff] %v14533_v33  ;;  %v7939_v6 = vunpack.c.l.b16 %v7741_v42  ;;  %v6922_v30 = vsel %vm12315_vm12, %v6920_v34, %v6921_v58  ;;  %v6991_v14 = vunpack.c.l.b16 %v6919_v60 }
 0x5ab   : > { %11090 = vmatmul.msk.bf16.gmra.mxu1 %vm3815_vm13, %v7014_v32  ;;  %v8269_v11 = vsel %vm12315_vm12, %v11211_v16, %v8268_v57  ;;  %v8272_v32 = vsel %vm12315_vm12, %v8270_v22, %v8271_v24  ;;  %v6992_v16 = vunpack.c.l.b16 %v6922_v30  ;;  %v7515_v24 = vld [vmem:[#allocation3 + $0x78] sm:$0xf]  ;;  %v7516_v22 = vld [vmem:[#allocation3 + $0x7c] sm:$0xf] }
 0x5ac   : > { %v8341_v20 = vunpack.c.l.b16 %v8269_v11  ;;  %v8342_v40 = vunpack.c.l.b16 %v8272_v32  ;;  %v7963_v42 = vpack.c.b16 %v7940_v5, %v7939_v6  ;;  %v7753_v11 = vshrl.u32 %v7515_v24, 16  ;;  %v11694_v6 = vld [vmem:[#allocation3 + $0x70] sm:$0xf] }
 0x5ad   : > { %v7756_v21 = vshll.u32 %v7515_v24, 16  ;;  %v7762_v27 = vshll.u32 %v7516_v22, 16  ;;  %v7766_v51 = vshrl.u32 %v7516_v22, 16  ;;  %v6925_v5 = vrot.slane %v11694_v6, 5 }
 0x5ae   : > { %v8365_v57 = vpack.c.b16 %v8342_v40, %v8341_v20  ;;  %v7755_v32 = vrot.slane %v7753_v11, 4  ;;  %v7015_v60 = vpack.c.b16 %v6992_v16, %v6991_v14  ;;  %v8275_v6 = vrot.slane %v7516_v22, 5  ;;  %v11534_v22 = vld [vmem:[#allocation3 + $0x6c] sm:$0xff] }
 0x5af   : > { %v5875_v25 = vpop.f32.mrf.mxu2  ;;  %v14557_v59 = vpop.f32.mrf.mxu0  ;;  %11174 = vmatmul.msk.bf16.gmra.mxu2 %vm3815_vm13, %v11533_v63  ;;  %v7764_v20 = vrot.slane %v7762_v27, 5  ;;  %v7768_v40 = vrot.slane %v7766_v51, 4  ;;  %v6927_v51 = vrot.slane %v6925_v5, 4 }
 0x5b0   : > { %v14547_v48 = vadd.f32 %v6130_v18, %v5875_v25  ;;  %v14555_v17 = vpop.f32.mrf.mxu1  ;;  %v6135_v18 = vpop.f32.mrf.mxu3  ;;  %v7517_v25 = vld [vmem:[#allocation3 + $0x80] sm:$0x1] }
 0x5b1   : > { %15498 = vst [vmem:[#allocation40_spill] sm:$0xff] %v14555_v17  ;;  %v7772_v58 = vshll.u32 %v7517_v25, 16  ;;  %v7758_v17 = vrot.slane %v7756_v21, 5  ;;  %v8278_v36 = vrot.slane %v7517_v25, 5 }
 0x5b2   : > { %15497 = vst [vmem:[#allocation39_spill] sm:$0xff] %v14547_v48  ;;  %11231 = vmatmul.msk.bf16.gmra.mxu0 %vm3815_vm13, %v8365_v57  ;;  %v7769_v48 = vor.u32 %v7768_v40, %v7764_v20  ;;  %v6805_v57 = vld [vmem:[#allocation3 + $0x6c] sm:$0xe] }
 0x5b3   : > { %11195 = vmatmul.msk.bf16.gmra.mxu3 %vm3815_vm13, %v7963_v42  ;;  %v7759_v30 = vor.u32 %v7758_v17, %v7755_v32  ;;  %v7774_v24 = vrot.slane %v7772_v58, 5  ;;  %v11072_v14 = vrot.slane %v6805_v57, 9 }
 0x5b4   : > { %v7770_v21 = vrot.slane %v7769_v48, 4 }
 0x5b5   : > { %v7760_v11 = vrot.slane %v7759_v30, 4 }
 0x5b6   : > { %v7775_v42 = vsel %vm12301_vm9, %v7770_v21, %v7774_v24 }
 0x5b7   : > { %v5878_v34 = vpop.f32.mrf.mxu2  ;;  %v14564_v31 = vpop.f32.mrf.mxu0  ;;  %v7765_v17 = vsel %vm12301_vm9, %v7760_v11, %v7764_v20  ;;  %v7942_v25 = vunpack.c.l.b16 %v7775_v42  ;;  %v15501_v20 = vld [vmem:[#allocation41_spill] sm:$0xff] }
 0x5b8   : > { %v14561_v63 = vadd.f32 %v6133_v39, %v5878_v34  ;;  %v7086_v33 = vpop.f32.mrf.mxu1  ;;  %v8034_v27 = vpop.f32.mrf.mxu3  ;;  %v11695_v39 = vld [vmem:[#allocation3 + $0x74] sm:$0x1]  ;;  %v7941_v48 = vunpack.c.l.b16 %v7765_v17  ;;  %v6765_v30 = vadd.f32 %v14181_v41, %v15501_v20  ;;  %v7519_v41 = vld [vmem:[#allocation3 + $0x88] sm:$0xf] }
 0x5b9   : > { %v7166_v50 = vadd.f32 %v7086_v33, %v14173_v45  ;;  %v6928_v34 = vrot.slane %v11695_v39, 5  ;;  %v8277_v45 = vrot.slane %v8275_v6, 4 }
 0x5ba   : > { %15499 = vst [vmem:[#allocation35_spill] sm:$0xff] %v14561_v63  ;;  %v8155_v63 = vld [vmem:[#allocation3 + $0x78] sm:$0xe] }
 0x5bb   : > { %11091 = vmatmul.msk.bf16.gmra.mxu1 %vm3815_vm13, %v7015_v60  ;;  %v11212_v16 = vrot.slane %v8155_v63, 9  ;;  %v8279_v40 = vsel %vm12315_vm12, %v8277_v45, %v8278_v36  ;;  %v6926_v63 = vsel %vm12315_vm12, %v11072_v14, %v6925_v5  ;;  %v6929_v24 = vsel %vm12315_vm12, %v6927_v51, %v6928_v34  ;;  %v7520_v45 = vld [vmem:[#allocation3 + $0x8c] sm:$0x1]  ;;  %v11696_v34 = vld [vmem:[#allocation3 + $0x7c] sm:$0xf] }
 0x5bc   : > { %v8344_v57 = vunpack.c.l.b16 %v8279_v40  ;;  %v7964_v36 = vpack.c.b16 %v7942_v25, %v7941_v48  ;;  %v6993_v17 = vunpack.c.l.b16 %v6926_v63  ;;  %v6994_v42 = vunpack.c.l.b16 %v6929_v24 }
 0x5bd   : > { %v8276_v58 = vsel %vm12315_vm12, %v11212_v16, %v8275_v6  ;;  %v7518_v16 = vld [vmem:[#allocation3 + $0x84] sm:$0xf]  ;;  %v7786_v14 = vshll.u32 %v7519_v41, 16  ;;  %v7796_v51 = vshll.u32 %v7520_v45, 16  ;;  %v6932_v40 = vrot.slane %v11696_v34, 5 }
 0x5be   : > { %v8343_v60 = vunpack.c.l.b16 %v8276_v58  ;;  %v7780_v5 = vshll.u32 %v7518_v16, 16  ;;  %v7790_v58 = vshrl.u32 %v7519_v41, 16  ;;  %v7016_v25 = vpack.c.b16 %v6994_v42, %v6993_v17  ;;  %v8156_v17 = vld [vmem:[#allocation3 + $0x84] sm:$0xe] }
 0x5bf   : > { %v5880_v33 = vpop.f32.mrf.mxu2  ;;  %v14584_v21 = vpop.f32.mrf.mxu0  ;;  %11175 = vmatmul.msk.bf16.gmra.mxu2 %vm3815_vm13, %v11534_v22  ;;  %v7788_v22 = vrot.slane %v7786_v14, 5  ;;  %v11697_v14 = vld [vmem:[#allocation3 + $0x80] sm:$0x1]  ;;  %v8282_v42 = vrot.slane %v7519_v41, 5 }
 0x5c0   : > { %v14574_v32 = vadd.f32 %v6135_v18, %v5880_v33  ;;  %v7088_v11 = vpop.f32.mrf.mxu1  ;;  %v8366_v39 = vpack.c.b16 %v8344_v57, %v8343_v60  ;;  %v8036_v6 = vpop.f32.mrf.mxu3  ;;  %v7777_v33 = vshrl.u32 %v7518_v16, 16  ;;  %v7792_v57 = vrot.slane %v7790_v58, 4 }
 0x5c1   : > { %v7167_v18 = vadd.f32 %v7088_v11, %v6765_v30  ;;  %v7782_v30 = vrot.slane %v7780_v5, 5  ;;  %v7798_v11 = vrot.slane %v7796_v51, 5  ;;  %v8285_v58 = vrot.slane %v7520_v45, 5 }
 0x5c2   : > { %15500 = vst [vmem:[#allocation37_spill] sm:$0xff] %v14574_v32  ;;  %11232 = vmatmul.msk.bf16.gmra.mxu0 %vm3815_vm13, %v8366_v39  ;;  %v7779_v60 = vrot.slane %v7777_v33, 4  ;;  %v7793_v24 = vor.u32 %v7792_v57, %v7788_v22  ;;  %v6806_v39 = vld [vmem:[#allocation3 + $0x78] sm:$0xe]  ;;  %v6934_v33 = vrot.slane %v6932_v40, 4  ;;  %v11213_v51 = vrot.slane %v8156_v17, 9 }
 0x5c3   : > { %11196 = vmatmul.msk.bf16.gmra.mxu3 %vm3815_vm13, %v7964_v36  ;;  %v6935_v36 = vrot.slane %v11697_v14, 5 }
 0x5c4   : > { %v7783_v63 = vor.u32 %v7782_v30, %v7779_v60  ;;  %v7794_v10 = vrot.slane %v7793_v24, 4  ;;  %v8283_v30 = vsel %vm12315_vm12, %v11213_v51, %v8282_v42  ;;  %v11698_v51 = vld [vmem:[#allocation3 + $0x88] sm:$0xf] }
 0x5c6   : > { %v7784_v34 = vrot.slane %v7783_v63, 4  ;;  %v6936_v63 = vsel %vm12315_vm12, %v6934_v33, %v6935_v36 }
 0x5c7   : > { %v7376_v20 = vpop.f32.mrf.mxu2  ;;  %v14589_v19 = vpop.f32.mrf.mxu0 }
 0x5c8   : > { %v7456_v48 = vadd.f32 %v7376_v20, %v7166_v50  ;;  %v7091_v32 = vpop.f32.mrf.mxu1  ;;  %v8039_v50 = vpop.f32.mrf.mxu3  ;;  %v8284_v20 = vrot.slane %v8282_v42, 4  ;;  %v6996_v42 = vunpack.c.l.b16 %v6936_v63 }
 0x5c9   : > { %v7168_v47 = vadd.f32 %v7091_v32, %v14206_v9  ;;  %v7799_v9 = vsel %vm12301_vm9, %v7794_v10, %v7798_v11  ;;  %v11073_v32 = vrot.slane %v6806_v39, 9 }
 0x5ca   : > { %v8114_v16 = vadd.f32 %v8034_v27, %v7456_v48  ;;  %v7789_v27 = vsel %vm12301_vm9, %v7784_v34, %v7788_v22  ;;  %v11535_v48 = vld [vmem:[#allocation3 + $0x78] sm:$0xff]  ;;  %v7944_v41 = vunpack.c.l.b16 %v7799_v9  ;;  %v8286_v45 = vsel %vm12315_vm12, %v8284_v20, %v8285_v58  ;;  %v7522_v58 = vld [vmem:[#allocation3 + $0x94] sm:$0xf] }
 0x5cb   : > { %11092 = vmatmul.msk.bf16.gmra.mxu1 %vm3815_vm13, %v7016_v25  ;;  %v8345_v25 = vunpack.c.l.b16 %v8283_v30  ;;  %v6767_v22 = vadd.f32 %v14217_v53, %v14145_v23  ;;  %v6933_v10 = vsel %vm12315_vm12, %v11073_v32, %v6932_v40  ;;  %v8346_v24 = vunpack.c.l.b16 %v8286_v45  ;;  %v7521_v40 = vld [vmem:[#allocation3 + $0x90] sm:$0xf] }
 0x5cc   : > { %v14593_v5 = vadd.f32 %v14557_v59, %v8114_v16  ;;  %v7943_v59 = vunpack.c.l.b16 %v7789_v27  ;;  %v6995_v53 = vunpack.c.l.b16 %v6933_v10  ;;  %v7523_v27 = vld [vmem:[#allocation3 + $0x98] sm:$0x1]  ;;  %v7801_v33 = vshrl.u32 %v7521_v40, 16 }
 0x5cd   : > { %v8367_v34 = vpack.c.b16 %v8346_v24, %v8345_v25  ;;  %v7804_v36 = vshll.u32 %v7521_v40, 16  ;;  %v7814_v9 = vshrl.u32 %v7522_v58, 16  ;;  %v7820_v32 = vshll.u32 %v7523_v27, 16  ;;  %v6807_v24 = vld [vmem:[#allocation3 + $0x84] sm:$0xe] }
 0x5ce   : > { %v7965_v23 = vpack.c.b16 %v7944_v41, %v7943_v59  ;;  %v6939_v20 = vrot.slane %v11698_v51, 5  ;;  %v7017_v41 = vpack.c.b16 %v6996_v42, %v6995_v53  ;;  %v8157_v53 = vld [vmem:[#allocation3 + $0x90] sm:$0xe]  ;;  %v8289_v42 = vrot.slane %v7522_v58, 5 }
 0x5cf   : > { %v7378_v60 = vpop.f32.mrf.mxu2  ;;  %11176 = vmatmul.msk.bf16.gmra.mxu2 %vm3815_vm13, %v11535_v48  ;;  %v7806_v30 = vrot.slane %v7804_v36, 5  ;;  %v7816_v48 = vrot.slane %v7814_v9, 4  ;;  %v8292_v9 = vrot.slane %v7523_v27, 5  ;;  %v11214_v51 = vrot.slane %v8157_v53, 9 }
 0x5d0   : > { %v7457_v57 = vadd.f32 %v7378_v60, %v7167_v18  ;;  %v7093_v16 = vpop.f32.mrf.mxu1  ;;  %v14610_v18 = vpop.f32.mrf.mxu0  ;;  %v7803_v60 = vrot.slane %v7801_v33, 4  ;;  %v6941_v33 = vrot.slane %v6939_v20, 4 }
 0x5d1   : > { %v7169_v39 = vadd.f32 %v7093_v16, %v6767_v22  ;;  %v8041_v17 = vpop.f32.mrf.mxu3  ;;  %v7822_v22 = vrot.slane %v7820_v32, 5  ;;  %v11074_v32 = vrot.slane %v6807_v24, 9 }
 0x5d2   : > { %v8115_v11 = vadd.f32 %v8036_v6, %v7457_v57  ;;  %v7810_v6 = vshll.u32 %v7522_v58, 16  ;;  %11233 = vmatmul.msk.bf16.gmra.mxu0 %vm3815_vm13, %v8367_v34  ;;  %v7807_v45 = vor.u32 %v7806_v30, %v7803_v60  ;;  %v8290_v30 = vsel %vm12315_vm12, %v11214_v51, %v8289_v42 }
 0x5d3   : > { %11197 = vmatmul.msk.bf16.gmra.mxu3 %vm3815_vm13, %v7965_v23 }
 0x5d4   : > { %v14613_v14 = vadd.f32 %v14564_v31, %v8115_v11  ;;  %v7812_v57 = vrot.slane %v7810_v6, 5  ;;  %v7808_v34 = vrot.slane %v7807_v45, 4  ;;  %v11699_v6 = vld [vmem:[#allocation3 + $0x8c] sm:$0x1]  ;;  %v6940_v45 = vsel %vm12315_vm12, %v11074_v32, %v6939_v20  ;;  %v7524_v20 = vld [vmem:[#allocation3 + $0x9c] sm:$0xf] }
 0x5d5   : > { %v6942_v23 = vrot.slane %v11699_v6, 5  ;;  %v11700_v32 = vld [vmem:[#allocation3 + $0x94] sm:$0xf] }
 0x5d6   : > { %v7817_v25 = vor.u32 %v7816_v48, %v7812_v57  ;;  %v6946_v51 = vrot.slane %v11700_v32, 5 }
 0x5d7   : > { %v7381_v31 = vpop.f32.mrf.mxu2 }
 0x5d8   : > { %v7458_v59 = vadd.f32 %v7381_v31, %v7168_v47  ;;  %v7096_v63 = vpop.f32.mrf.mxu1  ;;  %v14619_v16 = vpop.f32.mrf.mxu0  ;;  %v7818_v40 = vrot.slane %v7817_v25, 4  ;;  %v8291_v31 = vrot.slane %v8289_v42, 4  ;;  %v6943_v25 = vsel %vm12315_vm12, %v6941_v33, %v6942_v23  ;;  %v7525_v42 = vld [vmem:[#allocation3 + $0xa0] sm:$0xf] }
 0x5d9   : > { %v7170_v11 = vadd.f32 %v7096_v63, %v14234_v8  ;;  %v8044_v47 = vpop.f32.mrf.mxu3  ;;  %v6998_v53 = vunpack.c.l.b16 %v6943_v25  ;;  %v7825_v33 = vshrl.u32 %v7524_v20, 16  ;;  %v7828_v23 = vshll.u32 %v7524_v20, 16  ;;  %v6808_v25 = vld [vmem:[#allocation3 + $0x90] sm:$0xe] }
 0x5da   : > { %v8116_v10 = vadd.f32 %v8039_v50, %v7458_v59  ;;  %v7813_v50 = vsel %vm12301_vm9, %v7808_v34, %v7812_v57  ;;  %v7823_v8 = vsel %vm12301_vm9, %v7818_v40, %v7822_v22  ;;  %v11536_v59 = vld [vmem:[#allocation3 + $0x84] sm:$0xff]  ;;  %v8293_v27 = vsel %vm12315_vm12, %v8291_v31, %v8292_v9 }
 0x5db   : > { %11093 = vmatmul.msk.bf16.gmra.mxu1 %vm3815_vm13, %v7017_v41  ;;  %v7946_v58 = vunpack.c.l.b16 %v7823_v8  ;;  %v8347_v41 = vunpack.c.l.b16 %v8290_v30  ;;  %v6769_v57 = vadd.f32 %v14243_v62, %v14178_v7  ;;  %v8348_v22 = vunpack.c.l.b16 %v8293_v27  ;;  %v7526_v9 = vld [vmem:[#allocation3 + $0xa4] sm:$0x1] }
 0x5dc   : > { %v14622_v36 = vadd.f32 %v14584_v21, %v8116_v10  ;;  %v7945_v21 = vunpack.c.l.b16 %v7813_v50  ;;  %v6997_v62 = vunpack.c.l.b16 %v6940_v45  ;;  %v7838_v50 = vshrl.u32 %v7525_v42, 16 }
 0x5dd   : > { %v8368_v34 = vpack.c.b16 %v8348_v22, %v8347_v41  ;;  %v7844_v8 = vshll.u32 %v7526_v9, 16  ;;  %v7827_v31 = vrot.slane %v7825_v33, 4  ;;  %v6948_v20 = vrot.slane %v6946_v51, 4 }
 0x5de   : > { %v7966_v7 = vpack.c.b16 %v7946_v58, %v7945_v21 }
 0x5df   : > { %v7383_v60 = vpop.f32.mrf.mxu2  ;;  %11177 = vmatmul.msk.bf16.gmra.mxu2 %vm3815_vm13, %v11536_v59  ;;  %v7018_v59 = vpack.c.b16 %v6998_v53, %v6997_v62  ;;  %v7846_v41 = vrot.slane %v7844_v8, 5  ;;  %v8158_v62 = vld [vmem:[#allocation3 + $0x9c] sm:$0xe]  ;;  %v8296_v53 = vrot.slane %v7525_v42, 5 }
 0x5e0   : > { %v7459_v48 = vadd.f32 %v7383_v60, %v7169_v39  ;;  %v7098_v63 = vpop.f32.mrf.mxu1  ;;  %v14639_v39 = vpop.f32.mrf.mxu0  ;;  %v7830_v60 = vrot.slane %v7828_v23, 5  ;;  %v11701_v23 = vld [vmem:[#allocation3 + $0x98] sm:$0x1]  ;;  %v11215_v8 = vrot.slane %v8158_v62, 9  ;;  %v7528_v62 = vld [vmem:[#allocation3 + $0xac] sm:$0xf] }
 0x5e1   : > { %v7171_v24 = vadd.f32 %v7098_v63, %v6769_v57  ;;  %v8046_v6 = vpop.f32.mrf.mxu3  ;;  %v8298_v32 = vrot.slane %v8296_v53, 4 }
 0x5e2   : > { %v8117_v10 = vadd.f32 %v8041_v17, %v7459_v48  ;;  %v7834_v17 = vshll.u32 %v7525_v42, 16  ;;  %11234 = vmatmul.msk.bf16.gmra.mxu0 %vm3815_vm13, %v8368_v34  ;;  %v7840_v48 = vrot.slane %v7838_v50, 4  ;;  %v7831_v58 = vor.u32 %v7830_v60, %v7827_v31 }
 0x5e3   : > { %11198 = vmatmul.msk.bf16.gmra.mxu3 %vm3815_vm13, %v7966_v7  ;;  %v6949_v7 = vrot.slane %v11701_v23, 5  ;;  %v11075_v50 = vrot.slane %v6808_v25, 9  ;;  %v8297_v31 = vsel %vm12315_vm12, %v11215_v8, %v8296_v53  ;;  %v7529_v53 = vld [vmem:[#allocation3 + $0xb0] sm:$0x1] }
 0x5e4   : > { %v14642_v40 = vadd.f32 %v14589_v19, %v8117_v10  ;;  %v7836_v30 = vrot.slane %v7834_v17, 5  ;;  %v7832_v63 = vrot.slane %v7831_v58, 4  ;;  %v8299_v17 = vrot.slane %v7526_v9, 5 }
 0x5e5   : > { %v6950_v58 = vsel %vm12315_vm12, %v6948_v20, %v6949_v7 }
 0x5e6   : > { %v7841_v27 = vor.u32 %v7840_v48, %v7836_v30  ;;  %v11537_v48 = vld [vmem:[#allocation3 + $0x90] sm:$0xff]  ;;  %v8300_v9 = vsel %vm12315_vm12, %v8298_v32, %v8299_v17  ;;  %v7000_v23 = vunpack.c.l.b16 %v6950_v58  ;;  %v7862_v17 = vshrl.u32 %v7528_v62, 16 }
 0x5e7   : > { %v7386_v19 = vpop.f32.mrf.mxu2 }
 0x5e8   : > { %v7460_v21 = vadd.f32 %v7386_v19, %v7170_v11  ;;  %v7101_v45 = vpop.f32.mrf.mxu1  ;;  %v14648_v10 = vpop.f32.mrf.mxu0  ;;  %v7842_v34 = vrot.slane %v7841_v27, 4  ;;  %v8350_v27 = vunpack.c.l.b16 %v8300_v9 }
 0x5e9   : > { %v7172_v22 = vadd.f32 %v7101_v45, %v14258_v37  ;;  %v8049_v11 = vpop.f32.mrf.mxu3 }
 0x5ea   : > { %v8118_v57 = vadd.f32 %v8044_v47, %v7460_v21  ;;  %v7837_v47 = vsel %vm12301_vm9, %v7832_v63, %v7836_v30  ;;  %v7847_v37 = vsel %vm12301_vm9, %v7842_v34, %v7846_v41  ;;  %v8349_v21 = vunpack.c.l.b16 %v8297_v31 }
 0x5eb   : > { %11094 = vmatmul.msk.bf16.gmra.mxu1 %vm3815_vm13, %v7018_v59  ;;  %v7948_v42 = vunpack.c.l.b16 %v7847_v37  ;;  %v6771_v30 = vadd.f32 %v14269_v13, %v14213_v54  ;;  %v6947_v59 = vsel %vm12315_vm12, %v11075_v50, %v6946_v51  ;;  %v7527_v51 = vld [vmem:[#allocation3 + $0xa8] sm:$0xf]  ;;  %v11702_v37 = vld [vmem:[#allocation3 + $0xa0] sm:$0xf]  ;;  %v7864_v31 = vrot.slane %v7862_v17, 4 }
 0x5ec   : > { %v14651_v33 = vadd.f32 %v14610_v18, %v8118_v57  ;;  %v7947_v18 = vunpack.c.l.b16 %v7837_v47  ;;  %v8369_v25 = vpack.c.b16 %v8350_v27, %v8349_v21  ;;  %v6999_v13 = vunpack.c.l.b16 %v6947_v59  ;;  %v6809_v59 = vld [vmem:[#allocation3 + $0x9c] sm:$0xe] }
 0x5ed   : > { %v7849_v20 = vshrl.u32 %v7527_v51, 16  ;;  %v7852_v7 = vshll.u32 %v7527_v51, 16  ;;  %v7868_v47 = vshll.u32 %v7529_v53, 16  ;;  %v6953_v50 = vrot.slane %v11702_v37, 5 }
 0x5ee   : > { %v7967_v54 = vpack.c.b16 %v7948_v42, %v7947_v18 }
 0x5ef   : > { %v7388_v19 = vpop.f32.mrf.mxu2  ;;  %11178 = vmatmul.msk.bf16.gmra.mxu2 %vm3815_vm13, %v11537_v48  ;;  %v7851_v8 = vrot.slane %v7849_v20, 4  ;;  %v7854_v32 = vrot.slane %v7852_v7, 5  ;;  %v7870_v9 = vrot.slane %v7868_v47, 5  ;;  %v11703_v20 = vld [vmem:[#allocation3 + $0xa4] sm:$0x1]  ;;  %v8306_v7 = vrot.slane %v7529_v53, 5 }
 0x5f0   : > { %v7461_v60 = vadd.f32 %v7388_v19, %v7171_v24  ;;  %v7103_v57 = vpop.f32.mrf.mxu1  ;;  %v14668_v24 = vpop.f32.mrf.mxu0 }
 0x5f1   : > { %v7173_v45 = vadd.f32 %v7103_v57, %v6771_v30  ;;  %v8051_v34 = vpop.f32.mrf.mxu3  ;;  %v7855_v48 = vor.u32 %v7854_v32, %v7851_v8  ;;  %v11538_v32 = vld [vmem:[#allocation3 + $0x9c] sm:$0xff] }
 0x5f2   : > { %v8119_v41 = vadd.f32 %v8046_v6, %v7461_v60  ;;  %v7858_v6 = vshll.u32 %v7528_v62, 16  ;;  %11235 = vmatmul.msk.bf16.gmra.mxu0 %vm3815_vm13, %v8369_v25  ;;  %v7019_v60 = vpack.c.b16 %v7000_v23, %v6999_v13  ;;  %v6955_v25 = vrot.slane %v6953_v50, 4  ;;  %v8159_v13 = vld [vmem:[#allocation3 + $0xa8] sm:$0xe] }
 0x5f3   : > { %11199 = vmatmul.msk.bf16.gmra.mxu3 %vm3815_vm13, %v7967_v54  ;;  %v6956_v54 = vrot.slane %v11703_v20, 5  ;;  %v8303_v23 = vrot.slane %v7528_v62, 5  ;;  %v11216_v17 = vrot.slane %v8159_v13, 9  ;;  %v7531_v20 = vld [vmem:[#allocation3 + $0xb8] sm:$0xf] }
 0x5f4   : > { %v14671_v63 = vadd.f32 %v14619_v16, %v8119_v41  ;;  %v7860_v19 = vrot.slane %v7858_v6, 5  ;;  %v7856_v41 = vrot.slane %v7855_v48, 4  ;;  %v11076_v6 = vrot.slane %v6809_v59, 9  ;;  %v7532_v13 = vld [vmem:[#allocation3 + $0xbc] sm:$0x1] }
 0x5f5   : > { %v8305_v47 = vrot.slane %v8303_v23, 4 }
 0x5f6   : > { %v7865_v42 = vor.u32 %v7864_v31, %v7860_v19 }
 0x5f7   : > { %v7391_v16 = vpop.f32.mrf.mxu2  ;;  %v8307_v53 = vsel %vm12315_vm12, %v8305_v47, %v8306_v7  ;;  %v7892_v7 = vshll.u32 %v7532_v13, 16 }
 0x5f8   : > { %v7462_v18 = vadd.f32 %v7391_v16, %v7172_v22  ;;  %v7106_v30 = vpop.f32.mrf.mxu1  ;;  %v14677_v27 = vpop.f32.mrf.mxu0  ;;  %v7866_v57 = vrot.slane %v7865_v42, 4  ;;  %v8304_v16 = vsel %vm12315_vm12, %v11216_v17, %v8303_v23  ;;  %v8352_v48 = vunpack.c.l.b16 %v8307_v53 }
 0x5f9   : > { %v7174_v58 = vadd.f32 %v7106_v30, %v14278_v15  ;;  %v8054_v22 = vpop.f32.mrf.mxu3  ;;  %v8351_v31 = vunpack.c.l.b16 %v8304_v16  ;;  %v7886_v23 = vshrl.u32 %v7531_v20, 16 }
 0x5fa   : > { %v8120_v21 = vadd.f32 %v8049_v11, %v7462_v18  ;;  %v7861_v11 = vsel %vm12301_vm9, %v7856_v41, %v7860_v19  ;;  %v7871_v15 = vsel %vm12301_vm9, %v7866_v57, %v7870_v9  ;;  %v6773_v19 = vadd.f32 %v14297_v3, %v14237_v55 }
 0x5fb   : > { %11095 = vmatmul.msk.bf16.gmra.mxu1 %vm3815_vm13, %v7019_v60  ;;  %v7950_v62 = vunpack.c.l.b16 %v7871_v15  ;;  %v6954_v18 = vsel %vm12315_vm12, %v11076_v6, %v6953_v50  ;;  %v6957_v60 = vsel %vm12315_vm12, %v6955_v25, %v6956_v54  ;;  %v8370_v30 = vpack.c.b16 %v8352_v48, %v8351_v31  ;;  %v7530_v50 = vld [vmem:[#allocation3 + $0xb4] sm:$0xf] }
 0x5fc   : > { %v14680_v51 = vadd.f32 %v14639_v39, %v8120_v21  ;;  %v7949_v39 = vunpack.c.l.b16 %v7861_v11  ;;  %v7001_v3 = vunpack.c.l.b16 %v6954_v18  ;;  %v7002_v57 = vunpack.c.l.b16 %v6957_v60  ;;  %v11704_v11 = vld [vmem:[#allocation3 + $0xac] sm:$0xf] }
 0x5fd   : > { %v7873_v25 = vshrl.u32 %v7530_v50, 16  ;;  %v7876_v54 = vshll.u32 %v7530_v50, 16  ;;  %v6960_v15 = vrot.slane %v11704_v11, 5  ;;  %v11705_v50 = vld [vmem:[#allocation3 + $0xb0] sm:$0x1] }
 0x5fe   : > { %v7968_v55 = vpack.c.b16 %v7950_v62, %v7949_v39  ;;  %v7020_v16 = vpack.c.b16 %v7002_v57, %v7001_v3  ;;  %v7894_v62 = vrot.slane %v7892_v7, 5  ;;  %v8160_v3 = vld [vmem:[#allocation3 + $0xb4] sm:$0xe]  ;;  %v8310_v57 = vrot.slane %v7531_v20, 5 }
 0x5ff   : > { %v7393_v37 = vpop.f32.mrf.mxu2  ;;  %11179 = vmatmul.msk.bf16.gmra.mxu2 %vm3815_vm13, %v11538_v32  ;;  %v7875_v6 = vrot.slane %v7873_v25, 4  ;;  %v7878_v17 = vrot.slane %v7876_v54, 5  ;;  %v8313_v25 = vrot.slane %v7532_v13, 5 }
 0x600   : > { %v7463_v8 = vadd.f32 %v7393_v37, %v7173_v45  ;;  %v7108_v9 = vpop.f32.mrf.mxu1  ;;  %v14697_v45 = vpop.f32.mrf.mxu0  ;;  %v7888_v37 = vrot.slane %v7886_v23, 4  ;;  %v8312_v23 = vrot.slane %v8310_v57, 4 }
 0x601   : > { %v7175_v21 = vadd.f32 %v7108_v9, %v6773_v19  ;;  %v8056_v41 = vpop.f32.mrf.mxu3  ;;  %v6810_v19 = vld [vmem:[#allocation3 + $0xa8] sm:$0xe]  ;;  %v6962_v9 = vrot.slane %v6960_v15, 4 }
 0x602   : > { %v8121_v42 = vadd.f32 %v8051_v34, %v7463_v8  ;;  %v7882_v34 = vshll.u32 %v7531_v20, 16  ;;  %11236 = vmatmul.msk.bf16.gmra.mxu0 %vm3815_vm13, %v8370_v30  ;;  %v7879_v8 = vor.u32 %v7878_v17, %v7875_v6  ;;  %v11077_v54 = vrot.slane %v6810_v19, 9  ;;  %v11539_v6 = vld [vmem:[#allocation3 + $0xa8] sm:$0xff] }
 0x603   : > { %11200 = vmatmul.msk.bf16.gmra.mxu3 %vm3815_vm13, %v7968_v55  ;;  %v6963_v55 = vrot.slane %v11705_v50, 5  ;;  %v8314_v13 = vsel %vm12315_vm12, %v8312_v23, %v8313_v25  ;;  %v7534_v25 = vld [vmem:[#allocation3 + $0xc4] sm:$0xf] }
 0x604   : > { %v14700_v59 = vadd.f32 %v14648_v10, %v8121_v42  ;;  %v7884_v47 = vrot.slane %v7882_v34, 5  ;;  %v7880_v48 = vrot.slane %v7879_v8, 4  ;;  %v11217_v34 = vrot.slane %v8160_v3, 9 }
 0x605   : > { %v6964_v8 = vsel %vm12315_vm12, %v6962_v9, %v6963_v55 }
 0x606   : > { %v7889_v32 = vor.u32 %v7888_v37, %v7884_v47  ;;  %v8311_v11 = vsel %vm12315_vm12, %v11217_v34, %v8310_v57  ;;  %v15502_v37 = vld [vmem:[#allocation42_spill] sm:$0xff]  ;;  %v7004_v57 = vunpack.c.l.b16 %v6964_v8  ;;  %v11706_v34 = vld [vmem:[#allocation3 + $0xb8] sm:$0xf] }
 0x607   : > { %v7396_v10 = vpop.f32.mrf.mxu2  ;;  %v8353_v17 = vunpack.c.l.b16 %v8311_v11  ;;  %v6967_v23 = vrot.slane %v11706_v34, 5  ;;  %v15504_v34 = vld [vmem:[#allocation43_spill] sm:$0xff] }
 0x608   : > { %v7464_v39 = vadd.f32 %v7396_v10, %v7174_v58  ;;  %v7111_v31 = vpop.f32.mrf.mxu1  ;;  %v14706_v60 = vpop.f32.mrf.mxu0  ;;  %v7890_v42 = vrot.slane %v7889_v32, 4  ;;  %v8354_v32 = vunpack.c.l.b16 %v8314_v13 }
 0x609   : > { %v7176_v18 = vadd.f32 %v7111_v31, %v14310_v28  ;;  %v8059_v58 = vpop.f32.mrf.mxu3 }
 0x60a   : > { %v8122_v53 = vadd.f32 %v8054_v22, %v7464_v39  ;;  %v7885_v22 = vsel %vm12301_vm9, %v7880_v48, %v7884_v47  ;;  %v7895_v28 = vsel %vm12301_vm9, %v7890_v42, %v7894_v62  ;;  %v15503_v47 = vld [vmem:[#allocation21_spill] sm:$0xff]  ;;  %v8371_v19 = vpack.c.b16 %v8354_v32, %v8353_v17 }
 0x60b   : > { %11096 = vmatmul.msk.bf16.gmra.mxu1 %vm3815_vm13, %v7020_v16  ;;  %v7952_v20 = vunpack.c.l.b16 %v7895_v28  ;;  %v6775_v39 = vadd.f32 %v15503_v47, %v15502_v37  ;;  %v6961_v16 = vsel %vm12315_vm12, %v11077_v54, %v6960_v15  ;;  %v7533_v15 = vld [vmem:[#allocation3 + $0xc0] sm:$0xf]  ;;  %v7910_v28 = vshrl.u32 %v7534_v25, 16 }
 0x60c   : > { %v14709_v30 = vadd.f32 %v14668_v24, %v8122_v53  ;;  %v7951_v24 = vunpack.c.l.b16 %v7885_v22  ;;  %v7003_v3 = vunpack.c.l.b16 %v6961_v16  ;;  %v7535_v22 = vld [vmem:[#allocation3 + $0xc8] sm:$0x1]  ;;  %v7897_v9 = vshrl.u32 %v7533_v15, 16  ;;  %v6811_v16 = vld [vmem:[#allocation3 + $0xb4] sm:$0xe] }
 0x60d   : > { %v7900_v55 = vshll.u32 %v7533_v15, 16  ;;  %v7916_v54 = vshll.u32 %v7535_v22, 16 }
 0x60e   : > { %v7969_v50 = vpack.c.b16 %v7952_v20, %v7951_v24  ;;  %v7021_v20 = vpack.c.b16 %v7004_v57, %v7003_v3  ;;  %v8161_v3 = vld [vmem:[#allocation3 + $0xc0] sm:$0xe]  ;;  %v8317_v57 = vrot.slane %v7534_v25, 5 }
 0x60f   : > { %v7398_v7 = vpop.f32.mrf.mxu2  ;;  %11180 = vmatmul.msk.bf16.gmra.mxu2 %vm3815_vm13, %v11539_v6  ;;  %v7902_v11 = vrot.slane %v7900_v55, 5  ;;  %v7912_v6 = vrot.slane %v7910_v28, 4  ;;  %v8320_v55 = vrot.slane %v7535_v22, 5  ;;  %v11540_v22 = vld [vmem:[#allocation3 + $0xb4] sm:$0xff] }
 0x610   : > { %v7465_v10 = vadd.f32 %v7398_v7, %v7175_v21  ;;  %v7113_v53 = vpop.f32.mrf.mxu1  ;;  %v14726_v21 = vpop.f32.mrf.mxu0  ;;  %v7899_v7 = vrot.slane %v7897_v9, 4  ;;  %v11707_v9 = vld [vmem:[#allocation3 + $0xbc] sm:$0x1] }
 0x611   : > { %v7177_v31 = vadd.f32 %v7113_v53, %v6775_v39  ;;  %v8061_v42 = vpop.f32.mrf.mxu3  ;;  %v7918_v39 = vrot.slane %v7916_v54, 5  ;;  %v8319_v54 = vrot.slane %v8317_v57, 4 }
 0x612   : > { %v8123_v62 = vadd.f32 %v8056_v41, %v7465_v10  ;;  %v7906_v41 = vshll.u32 %v7534_v25, 16  ;;  %11237 = vmatmul.msk.bf16.gmra.mxu0 %vm3815_vm13, %v8371_v19  ;;  %v7903_v13 = vor.u32 %v7902_v11, %v7899_v7  ;;  %v6969_v19 = vrot.slane %v6967_v23, 4 }
 0x613   : > { %11201 = vmatmul.msk.bf16.gmra.mxu3 %vm3815_vm13, %v7969_v50  ;;  %v6970_v50 = vrot.slane %v11707_v9, 5  ;;  %v8840_v9 = vld [vmem:[#allocation3 + $0x1c] sm:$0xf] }
 0x614   : > { %v14729_v48 = vadd.f32 %v14677_v27, %v8123_v62  ;;  %v7908_v10 = vrot.slane %v7906_v41, 5  ;;  %v7904_v62 = vrot.slane %v7903_v13, 4  ;;  %v11218_v41 = vrot.slane %v8161_v3, 9 }
 0x615   : > { %v6971_v11 = vsel %vm12315_vm12, %v6969_v19, %v6970_v50  ;;  %v9563_v3 = vrot.slane %v8840_v9, 5 }
 0x616   : > { %v7913_v17 = vor.u32 %v7912_v6, %v7908_v10  ;;  %v8318_v7 = vsel %vm12315_vm12, %v11218_v41, %v8317_v57  ;;  %v8321_v6 = vsel %vm12315_vm12, %v8319_v54, %v8320_v55  ;;  %v7006_v19 = vunpack.c.l.b16 %v6971_v11  ;;  %v8841_v57 = vld [vmem:[#allocation3 + $0x20] sm:$0x1]  ;;  %v9497_v55 = vld [vmem:[#allocation3 + $0x18] sm:$0xe] }
 0x617   : > { %v7401_v27 = vpop.f32.mrf.mxu2  ;;  %v8901_v54 = vshrl.u32 %v8840_v9, 16 }
 0x618   : > { %v7466_v24 = vadd.f32 %v7401_v27, %v7176_v18  ;;  %v7116_v47 = vpop.f32.mrf.mxu1  ;;  %v14735_v32 = vpop.f32.mrf.mxu0  ;;  %v7914_v53 = vrot.slane %v7913_v17, 4  ;;  %v8356_v17 = vunpack.c.l.b16 %v8321_v6 }
 0x619   : > { %v7178_v8 = vadd.f32 %v7116_v47, %v14347_v56  ;;  %v8064_v18 = vpop.f32.mrf.mxu3  ;;  %v7909_v56 = vsel %vm12301_vm9, %v7904_v62, %v7908_v10  ;;  %v8355_v10 = vunpack.c.l.b16 %v8318_v7  ;;  %v9565_v7 = vrot.slane %v9563_v3, 4 }
 0x61a   : > { %v8124_v37 = vadd.f32 %v8059_v58, %v7466_v24  ;;  %v11078_v58 = vrot.slane %v6811_v16, 9  ;;  %v7919_v28 = vsel %vm12301_vm9, %v7914_v53, %v7918_v39  ;;  %v7953_v24 = vunpack.c.l.b16 %v7909_v56 }
 0x61b   : > { %11097 = vmatmul.msk.bf16.gmra.mxu1 %vm3815_vm13, %v7021_v20  ;;  %v7954_v20 = vunpack.c.l.b16 %v7919_v28  ;;  %v8897_v28 = vshll.u32 %v8840_v9, 16 }
 0x61c   : > { %v14738_v15 = vadd.f32 %v14697_v45, %v8124_v37  ;;  %v6777_v45 = vadd.f32 %v14379_v43, %v15504_v34  ;;  %v6968_v13 = vsel %vm12315_vm12, %v11078_v58, %v6967_v23  ;;  %v8839_v23 = vld [vmem:[#allocation3 + $0x18] sm:$0xf] }
 0x61d   : > { %v7005_v53 = vunpack.c.l.b16 %v6968_v13  ;;  %v7970_v50 = vpack.c.b16 %v7954_v20, %v7953_v24  ;;  %v8891_v56 = vshll.u32 %v8839_v23, 16  ;;  %v8899_v20 = vrot.slane %v8897_v28, 5 }
 0x61e   : > { %v8903_v13 = vrot.slane %v8901_v54, 4 }
 0x61f   : > { %v7403_v27 = vpop.f32.mrf.mxu2  ;;  %11181 = vmatmul.msk.bf16.gmra.mxu2 %vm3815_vm13, %v11540_v22  ;;  %v7022_v41 = vpack.c.b16 %v7006_v19, %v7005_v53  ;;  %v8893_v24 = vrot.slane %v8891_v56, 5  ;;  %v8907_v53 = vshll.u32 %v8841_v57, 16 }
 0x620   : > { %v7467_v25 = vadd.f32 %v7403_v27, %v7177_v31  ;;  %v7118_v37 = vpop.f32.mrf.mxu1  ;;  %v14755_v39 = vpop.f32.mrf.mxu0  ;;  %v8372_v31 = vpack.c.b16 %v8356_v17, %v8355_v10  ;;  %v11343_v27 = vrot.slane %v9497_v55, 9  ;;  %v8904_v9 = vor.u32 %v8903_v13, %v8899_v20 }
 0x621   : > { %v7179_v47 = vadd.f32 %v7118_v37, %v6777_v45  ;;  %v8066_v62 = vpop.f32.mrf.mxu3 }
 0x622   : > { %v8125_v43 = vadd.f32 %v8061_v42, %v7467_v25  ;;  %11238 = vmatmul.msk.bf16.gmra.mxu0 %vm3815_vm13, %v8372_v31  ;;  %v9566_v25 = vrot.slane %v8841_v57, 5  ;;  %v8843_v57 = vld [vmem:[#allocation3 + $0x28] sm:$0xf]  ;;  %v8905_v28 = vrot.slane %v8904_v9, 4 }
 0x623   : > { %11202 = vmatmul.msk.bf16.gmra.mxu3 %vm3815_vm13, %v7970_v50 }
 0x624   : > { %v14758_v16 = vadd.f32 %v14706_v60, %v8125_v43  ;;  %v8888_v60 = vshrl.u32 %v8839_v23, 16  ;;  %v9567_v17 = vsel %vm12315_vm12, %v9565_v7, %v9566_v25  ;;  %v8844_v25 = vld [vmem:[#allocation3 + $0x2c] sm:$0x1] }
 0x625   : > { %v9677_v23 = vunpack.c.l.b16 %v9567_v17 }
 0x626   : > { %v8890_v10 = vrot.slane %v8888_v60, 4 }
 0x627   : > { %v7406_v42 = vpop.f32.mrf.mxu2 }
 0x628   : > { %v7468_v58 = vadd.f32 %v7406_v42, %v7178_v8  ;;  %v7121_v45 = vpop.f32.mrf.mxu1  ;;  %v14764_v11 = vpop.f32.mrf.mxu0  ;;  %v8894_v19 = vor.u32 %v8893_v24, %v8890_v10  ;;  %v8921_v24 = vshll.u32 %v8843_v57, 16 }
 0x629   : > { %v7180_v22 = vadd.f32 %v7121_v45, %v14402_v4  ;;  %v8069_v8 = vpop.f32.mrf.mxu3  ;;  %v15505_v4 = vld [vmem:[#allocation19_spill] sm:$0xff]  ;;  %v9498_v45 = vld [vmem:[#allocation3 + $0x24] sm:$0xe] }
 0x62a   : > { %v8126_v34 = vadd.f32 %v8064_v18, %v7468_v58  ;;  %v9564_v18 = vsel %vm12315_vm12, %v11343_v27, %v9563_v3  ;;  %v6779_v37 = vadd.f32 %v14424_v52, %v15505_v4  ;;  %v5089_v3 = vld [vmem:[%s15374_s2] sm:$0xff]  ;;  %v8895_v56 = vrot.slane %v8894_v19, 4 }
 0x62b   : > { %11098 = vmatmul.msk.bf16.gmra.mxu1 %vm3815_vm13, %v7022_v41  ;;  %v9676_v50 = vunpack.c.l.b16 %v9564_v18  ;;  %v9570_v27 = vrot.slane %v8843_v57, 5  ;;  %v11344_v4 = vrot.slane %v9498_v45, 9  ;;  %v9573_v19 = vrot.slane %v8844_v25, 5 }
 0x62c   : > { %v14767_v6 = vadd.f32 %v14726_v21, %v8126_v34  ;;  %v11541_v21 = vld [vmem:[#allocation3 + $0xc0] sm:$0xff]  ;;  %v8900_v18 = vsel %vm12301_vm9, %v8895_v56, %v8899_v20  ;;  %v5090_v20 = vld [vmem:[%s15374_s2 + $0x8] sm:$0xff]  ;;  %v6781_v45 = vadd.f32 %v14454_v35, %v14369_v46  ;;  %v8845_v35 = vld [vmem:[#allocation3 + $0x30] sm:$0xf] }
 0x62d   : > { %v9708_v54 = vpack.c.b16 %v9677_v23, %v9676_v50  ;;  %v8923_v23 = vrot.slane %v8921_v24, 5 }
 0x62f   : > { %v7408_v43 = vpop.f32.mrf.mxu2  ;;  %11182 = vmatmul.msk.bf16.gmra.mxu2 %vm3815_vm13, %v11541_v21 }
 0x630   : > { %v7469_v31 = vadd.f32 %v7408_v43, %v7179_v47  ;;  %v7123_v55 = vpop.f32.mrf.mxu1  ;;  %v14776_v41 = vpop.f32.mrf.mxu0  ;;  %v8842_v47 = vld [vmem:[#allocation3 + $0x24] sm:$0xf]  ;;  %v11545_v43 = vld [vmem:[#allocation3 + $0x18] sm:$0xff] }
 0x631   : > { %v7181_v58 = vadd.f32 %v7123_v55, %v6779_v37  ;;  %v8071_v52 = vpop.f32.mrf.mxu3  ;;  %v8912_v34 = vshrl.u32 %v8842_v47, 16  ;;  %v8915_v10 = vshll.u32 %v8842_v47, 16 }
 0x632   : > { %v8127_v42 = vadd.f32 %v8066_v62, %v7469_v31  ;;  %v8909_v62 = vrot.slane %v8907_v53, 5  ;;  %11379 = vmatmul.msk.f32.vlgmr.msra.gmra.mxu0 %vm9931_vm4, %v5089_v3  ;;  %v9572_v53 = vrot.slane %v9570_v27, 4  ;;  %v9274_v3 = vunpack.c.l.b16 %v8900_v18 }
 0x633   : > { %11363 = vmatmul.msk.bf16.vlgmr.msrb.gmra.mxu3 %vm3815_vm13, %v9708_v54  ;;  %v8914_v21 = vrot.slane %v8912_v34, 4  ;;  %v8931_v54 = vshll.u32 %v8844_v25, 16  ;;  %v8846_v25 = vld [vmem:[#allocation3 + $0x34] sm:$0xf] }
 0x634   : > { %v14782_v60 = vadd.f32 %v14735_v32, %v8127_v42  ;;  %v8925_v32 = vshrl.u32 %v8843_v57, 16  ;;  %v8910_v17 = vsel %vm12301_vm9, %v8905_v28, %v8909_v62  ;;  %v9574_v57 = vsel %vm12315_vm12, %v9572_v53, %v9573_v19  ;;  %v8847_v19 = vld [vmem:[#allocation3 + $0x38] sm:$0x1] }
 0x636   : > { %v8927_v42 = vrot.slane %v8925_v32, 4 }
 0x637   : > { %v7411_v7 = vpop.f32.mrf.mxu2 }
 0x638   : > { %v7470_v13 = vadd.f32 %v7411_v7, %v7180_v22  ;;  %v7126_v31 = vpop.f32.mrf.mxu1  ;;  %v14792_v50 = vpop.f32.mrf.mxu0  ;;  %v8917_v22 = vrot.slane %v8915_v10, 5  ;;  %v8928_v62 = vor.u32 %v8927_v42, %v8923_v23  ;;  %v9679_v10 = vunpack.c.l.b16 %v9574_v57 }
 0x639   : > { %v7182_v9 = vadd.f32 %v7126_v31, %v14435_v38  ;;  %v8074_v47 = vpop.f32.mrf.mxu3  ;;  %v9571_v38 = vsel %vm12315_vm12, %v11344_v4, %v9570_v27  ;;  %v5091_v4 = vld [vmem:[%s15374_s2 + $0x10] sm:$0xff] }
 0x63a   : > { %v8128_v37 = vadd.f32 %v8069_v8, %v7470_v13  ;;  %v9275_v8 = vunpack.c.l.b16 %v8910_v17  ;;  %11380 = vmatmul.msk.f32.gmra.mxu0 %vm9931_vm4, %v5090_v20  ;;  %v8918_v28 = vor.u32 %v8917_v22, %v8914_v21  ;;  %v9678_v7 = vunpack.c.l.b16 %v9571_v38  ;;  %v11546_v38 = vld [vmem:[#allocation3 + $0x24] sm:$0xff] }
 0x63b   : > { %11307 = vmatmul.msk.bf16.vlgmr.msra.gmra.mxu1 %vm3815_vm13, %v11545_v43  ;;  %v8929_v18 = vrot.slane %v8928_v62, 4  ;;  %v8933_v17 = vrot.slane %v8931_v54, 5  ;;  %v8936_v22 = vshrl.u32 %v8845_v35, 16  ;;  %v8939_v20 = vshll.u32 %v8845_v35, 16 }
 0x63c   : > { %v14798_v55 = vadd.f32 %v14755_v39, %v8128_v37  ;;  %v9306_v39 = vpack.c.b16 %v9275_v8, %v9274_v3  ;;  %v8919_v27 = vrot.slane %v8918_v28, 4  ;;  %v9577_v37 = vrot.slane %v8846_v25, 5 }
 0x63d   : > { %v8934_v53 = vsel %vm12301_vm9, %v8929_v18, %v8933_v17  ;;  %v8945_v3 = vshll.u32 %v8846_v25, 16  ;;  %v8949_v8 = vshrl.u32 %v8846_v25, 16  ;;  %v9580_v54 = vrot.slane %v8847_v19, 5 }
 0x63e   : > { %v8924_v21 = vsel %vm12301_vm9, %v8919_v27, %v8923_v23  ;;  %v9579_v62 = vrot.slane %v9577_v37, 4 }
 0x63f   : > { %v7413_v56 = vpop.f32.mrf.mxu2  ;;  %11327 = vmatmul.msk.bf16.vlgmr.msra.gmra.mxu2 %vm3815_vm13, %v9306_v39  ;;  %v9277_v39 = vunpack.c.l.b16 %v8934_v53  ;;  %v8951_v27 = vrot.slane %v8949_v8, 4 }
 0x640   : > { %v7471_v34 = vadd.f32 %v7413_v56, %v7181_v58  ;;  %v7128_v32 = vpop.f32.mrf.mxu1  ;;  %v14808_v43 = vpop.f32.mrf.mxu0  ;;  %v9581_v18 = vsel %vm12315_vm12, %v9579_v62, %v9580_v54  ;;  %v9500_v62 = vld [vmem:[#allocation3 + $0x3c] sm:$0xe] }
 0x641   : > { %v7183_v13 = vadd.f32 %v7128_v32, %v6781_v45  ;;  %v8076_v46 = vpop.f32.mrf.mxu3  ;;  %v8947_v32 = vrot.slane %v8945_v3, 5  ;;  %v9681_v53 = vunpack.c.l.b16 %v9581_v18 }
 0x642   : > { %v8129_v24 = vadd.f32 %v8071_v52, %v7471_v34  ;;  %v9709_v52 = vpack.c.b16 %v9679_v10, %v9678_v7  ;;  %11381 = vmatmul.msk.f32.gmra.mxu0 %vm9931_vm4, %v5091_v4  ;;  %v9276_v34 = vunpack.c.l.b16 %v8924_v21  ;;  %v8938_v7 = vrot.slane %v8936_v22, 4 }
 0x644   : > { %v14814_v58 = vadd.f32 %v14764_v11, %v8129_v24  ;;  %v9499_v11 = vld [vmem:[#allocation3 + $0x30] sm:$0xe]  ;;  %11364 = vmatmul.msk.bf16.gmra.mxu3 %vm3815_vm13, %v9709_v52  ;;  %v9307_v4 = vpack.c.b16 %v9277_v39, %v9276_v34  ;;  %v8955_v52 = vshll.u32 %v8847_v19, 16 }
 0x645   : > { %v11345_v28 = vrot.slane %v9499_v11, 9 }
 0x647   : > { %v7416_v31 = vpop.f32.mrf.mxu2 }
 0x648   : > { %v7472_v42 = vadd.f32 %v7416_v31, %v7182_v9  ;;  %v7131_v56 = vpop.f32.mrf.mxu1  ;;  %v14824_v45 = vpop.f32.mrf.mxu0  ;;  %v5092_v9 = vld [vmem:[%s15374_s2 + $0x18] sm:$0xff]  ;;  %v6783_v31 = vadd.f32 %v14536_v49, %v14416_v26  ;;  %v8957_v26 = vrot.slane %v8955_v52, 5  ;;  %v8849_v49 = vld [vmem:[#allocation3 + $0x40] sm:$0xf] }
 0x649   : > { %v7184_v23 = vadd.f32 %v7131_v56, %v14464_v1  ;;  %v8079_v24 = vpop.f32.mrf.mxu3  ;;  %v9578_v1 = vsel %vm12315_vm12, %v11345_v28, %v9577_v37  ;;  %v8850_v28 = vld [vmem:[#allocation3 + $0x44] sm:$0x1] }
 0x64a   : > { %v8130_v57 = vadd.f32 %v8074_v47, %v7472_v42  ;;  %v8941_v47 = vrot.slane %v8939_v20, 5  ;;  %11382 = vmatmul.msk.f32.gmra.mxu0 %vm9931_vm4, %v5092_v9  ;;  %v9680_v21 = vunpack.c.l.b16 %v9578_v1  ;;  %v5093_v20 = vld [vmem:[%s15374_s2 + $0x20] sm:$0xff]  ;;  %v8973_v1 = vshrl.u32 %v8849_v49, 16 }
 0x64b   : > { %11308 = vmatmul.msk.bf16.gmra.mxu1 %vm3815_vm13, %v11546_v38 }
 0x64c   : > { %v14830_v10 = vadd.f32 %v14776_v41, %v8130_v57  ;;  %v8942_v25 = vor.u32 %v8941_v47, %v8938_v7  ;;  %v8952_v41 = vor.u32 %v8951_v27, %v8947_v32  ;;  %v9710_v38 = vpack.c.b16 %v9681_v53, %v9680_v21  ;;  %v11547_v7 = vld [vmem:[#allocation3 + $0x30] sm:$0xff] }
 0x64d   : > { %v9584_v57 = vrot.slane %v8849_v49, 5  ;;  %v8969_v27 = vshll.u32 %v8849_v49, 16  ;;  %v8979_v49 = vshll.u32 %v8850_v28, 16 }
 0x64e   : > { %v8943_v19 = vrot.slane %v8942_v25, 4  ;;  %v8953_v8 = vrot.slane %v8952_v41, 4 }
 0x64f   : > { %v7418_v17 = vpop.f32.mrf.mxu2  ;;  %11328 = vmatmul.msk.bf16.gmra.mxu2 %vm3815_vm13, %v9307_v4  ;;  %v11346_v4 = vrot.slane %v9500_v62, 9  ;;  %v8971_v53 = vrot.slane %v8969_v27, 5 }
 0x650   : > { %v7473_v35 = vadd.f32 %v7418_v17, %v7183_v13  ;;  %v7133_v11 = vpop.f32.mrf.mxu1  ;;  %v14840_v37 = vpop.f32.mrf.mxu0  ;;  %v8948_v34 = vsel %vm12301_vm9, %v8943_v19, %v8947_v32  ;;  %v8958_v39 = vsel %vm12301_vm9, %v8953_v8, %v8957_v26  ;;  %v6785_v26 = vadd.f32 %v14422_v29, %v14446_v61  ;;  %v8851_v61 = vld [vmem:[#allocation3 + $0x48] sm:$0xf] }
 0x651   : > { %v7185_v42 = vadd.f32 %v7133_v11, %v6783_v31  ;;  %v8081_v13 = vpop.f32.mrf.mxu3  ;;  %v9278_v41 = vunpack.c.l.b16 %v8948_v34  ;;  %v9279_v52 = vunpack.c.l.b16 %v8958_v39  ;;  %v9585_v11 = vsel %vm12315_vm12, %v11346_v4, %v9584_v57  ;;  %v5095_v39 = vld [vmem:[%s15374_s2 + $0x30] sm:$0xff]  ;;  %v8853_v4 = vld [vmem:[#allocation3 + $0x50] sm:$0x1] }
 0x652   : > { %v8131_v22 = vadd.f32 %v8076_v46, %v7473_v35  ;;  %11383 = vmatmul.msk.f32.gmra.mxu0 %vm9931_vm4, %v5093_v20  ;;  %v8848_v46 = vld [vmem:[#allocation3 + $0x3c] sm:$0xf]  ;;  %v9587_v35 = vrot.slane %v8850_v28, 5  ;;  %v8852_v28 = vld [vmem:[#allocation3 + $0x4c] sm:$0xf]  ;;  %v8984_v27 = vshrl.u32 %v8851_v61, 16 }
 0x653   : > { %v8960_v9 = vshrl.u32 %v8848_v46, 16  ;;  %v8963_v47 = vshll.u32 %v8848_v46, 16  ;;  %v9308_v8 = vpack.c.b16 %v9279_v52, %v9278_v41  ;;  %v15506_v41 = vld [vmem:[#allocation38_spill] sm:$0xff]  ;;  %v15507_v52 = vld [vmem:[#allocation20_spill] sm:$0xff] }
 0x654   : > { %v14846_v3 = vadd.f32 %v14792_v50, %v8131_v22  ;;  %v6784_v50 = vadd.f32 %v14398_v0, %v14429_v12  ;;  %11365 = vmatmul.msk.bf16.gmra.mxu3 %vm3815_vm13, %v9710_v38  ;;  %v5094_v12 = vld [vmem:[%s15374_s2 + $0x28] sm:$0xff]  ;;  %v8975_v22 = vrot.slane %v8973_v1, 4  ;;  %v9501_v1 = vld [vmem:[#allocation3 + $0x48] sm:$0xe] }
 0x655   : > { %v8965_v21 = vrot.slane %v8963_v47, 5  ;;  %v8981_v47 = vrot.slane %v8979_v49, 5  ;;  %v9594_v49 = vrot.slane %v8853_v4, 5 }
 0x656   : > { %v8976_v46 = vor.u32 %v8975_v22, %v8971_v53 }
 0x657   : > { %v7421_v56 = vpop.f32.mrf.mxu2 }
 0x658   : > { %v7474_v54 = vadd.f32 %v7421_v56, %v7184_v23  ;;  %v7136_v17 = vpop.f32.mrf.mxu1  ;;  %v9586_v23 = vrot.slane %v9584_v57, 4  ;;  %v14857_v0 = vpop.f32.mrf.mxu0  ;;  %v9682_v56 = vunpack.c.l.b16 %v9585_v11  ;;  %v11548_v11 = vld [vmem:[#allocation3 + $0x3c] sm:$0xff] }
 0x659   : > { %v7186_v25 = vadd.f32 %v7136_v17, %v6784_v50  ;;  %v8084_v31 = vpop.f32.mrf.mxu3 }
 0x65a   : > { %v8132_v18 = vadd.f32 %v8079_v24, %v7474_v54  ;;  %v8962_v24 = vrot.slane %v8960_v9, 4  ;;  %v9588_v20 = vsel %vm12315_vm12, %v9586_v23, %v9587_v35  ;;  %11384 = vmatmul.msk.f32.gmra.mxu0 %vm9931_vm4, %v5094_v12  ;;  %v8977_v9 = vrot.slane %v8976_v46, 4 }
 0x65b   : > { %11309 = vmatmul.msk.bf16.gmra.mxu1 %vm3815_vm13, %v11547_v7  ;;  %v9683_v62 = vunpack.c.l.b16 %v9588_v20  ;;  %v8987_v23 = vshll.u32 %v8851_v61, 16  ;;  %v8993_v35 = vshll.u32 %v8852_v28, 16  ;;  %v11347_v20 = vrot.slane %v9501_v1, 9  ;;  %v15508_v1 = vld [vmem:[#allocation36_spill] sm:$0xff] }
 0x65c   : > { %v14863_v32 = vadd.f32 %v14808_v43, %v8132_v18  ;;  %v8966_v38 = vor.u32 %v8965_v21, %v8962_v24  ;;  %v9591_v18 = vrot.slane %v8852_v28, 5  ;;  %v6786_v24 = vadd.f32 %v15507_v52, %v15506_v41 }
 0x65d   : > { %v8982_v22 = vsel %vm12301_vm9, %v8977_v9, %v8981_v47  ;;  %v8989_v46 = vrot.slane %v8987_v23, 5 }
 0x65e   : > { %v8967_v7 = vrot.slane %v8966_v38, 4  ;;  %v9592_v61 = vsel %vm12315_vm12, %v11347_v20, %v9591_v18  ;;  %v8854_v20 = vld [vmem:[#allocation3 + $0x54] sm:$0xf] }
 0x65f   : > { %v7423_v19 = vpop.f32.mrf.mxu2  ;;  %11329 = vmatmul.msk.bf16.gmra.mxu2 %vm3815_vm13, %v9308_v8  ;;  %v8986_v8 = vrot.slane %v8984_v27, 4 }
 0x660   : > { %v7475_v43 = vadd.f32 %v7423_v19, %v7185_v42  ;;  %v7138_v50 = vpop.f32.mrf.mxu1  ;;  %v14873_v57 = vpop.f32.mrf.mxu0  ;;  %v8972_v21 = vsel %vm12301_vm9, %v8967_v7, %v8971_v53  ;;  %v5096_v53 = vld [vmem:[%s15374_s2 + $0x38] sm:$0xff] }
 0x661   : > { %v7187_v34 = vadd.f32 %v7138_v50, %v6785_v26  ;;  %v8086_v29 = vpop.f32.mrf.mxu3  ;;  %v9593_v26 = vrot.slane %v9591_v18, 4  ;;  %v9280_v50 = vunpack.c.l.b16 %v8972_v21  ;;  %v8990_v9 = vor.u32 %v8989_v46, %v8986_v8  ;;  %v8856_v46 = vld [vmem:[#allocation3 + $0x5c] sm:$0x1] }
 0x662   : > { %v8133_v54 = vadd.f32 %v8081_v13, %v7475_v43  ;;  %v9711_v13 = vpack.c.b16 %v9683_v62, %v9682_v56  ;;  %11385 = vmatmul.msk.f32.gmra.mxu0 %vm9931_vm4, %v5095_v39  ;;  %v8995_v56 = vrot.slane %v8993_v35, 5  ;;  %v9281_v39 = vunpack.c.l.b16 %v8982_v22 }
 0x663   : > { %v9684_v35 = vunpack.c.l.b16 %v9592_v61  ;;  %v8991_v18 = vrot.slane %v8990_v9, 4 }
 0x664   : > { %v14879_v42 = vadd.f32 %v14824_v45, %v8133_v54  ;;  %v8997_v45 = vshrl.u32 %v8852_v28, 16  ;;  %11366 = vmatmul.msk.bf16.gmra.mxu3 %vm3815_vm13, %v9711_v13  ;;  %v9595_v28 = vsel %vm12315_vm12, %v9593_v26, %v9594_v49  ;;  %v9003_v13 = vshll.u32 %v8853_v4, 16 }
 0x665   : > { %v8996_v26 = vsel %vm12301_vm9, %v8991_v18, %v8995_v56 }
 0x666   : > { %v8999_v62 = vrot.slane %v8997_v45, 4  ;;  %v9685_v45 = vunpack.c.l.b16 %v9595_v28  ;;  %v9005_v21 = vrot.slane %v9003_v13, 5  ;;  %v15510_v28 = vld [vmem:[#allocation34_spill] sm:$0xff] }
 0x667   : > { %v7426_v17 = vpop.f32.mrf.mxu2 }
 0x668   : > { %v7476_v12 = vadd.f32 %v7426_v17, %v7186_v25  ;;  %v7141_v43 = vpop.f32.mrf.mxu1  ;;  %v14890_v25 = vpop.f32.mrf.mxu0  ;;  %v9000_v47 = vor.u32 %v8999_v62, %v8995_v56  ;;  %v15509_v17 = vld [vmem:[#allocation30_spill] sm:$0xff]  ;;  %v9008_v62 = vshrl.u32 %v8854_v20, 16 }
 0x669   : > { %v7188_v38 = vadd.f32 %v7141_v43, %v6786_v24  ;;  %v6787_v23 = vadd.f32 %v15509_v17, %v15508_v1  ;;  %v9601_v1 = vrot.slane %v8856_v46, 5 }
 0x66a   : > { %v8134_v19 = vadd.f32 %v8084_v31, %v7476_v12  ;;  %v8089_v31 = vpop.f32.mrf.mxu3  ;;  %11386 = vmatmul.msk.f32.gmra.mxu0 %vm9931_vm4, %v5096_v53  ;;  %v9001_v24 = vrot.slane %v9000_v47, 4  ;;  %v11549_v47 = vld [vmem:[#allocation3 + $0x48] sm:$0xff] }
 0x66b   : > { %11310 = vmatmul.msk.bf16.gmra.mxu1 %vm3815_vm13, %v11548_v11  ;;  %v5097_v11 = vld [vmem:[%s15374_s2 + $0x40] sm:$0xff] }
 0x66c   : > { %v14896_v54 = vadd.f32 %v14840_v37, %v8134_v19  ;;  %v9309_v37 = vpack.c.b16 %v9281_v39, %v9280_v50  ;;  %v8855_v19 = vld [vmem:[#allocation3 + $0x58] sm:$0xf]  ;;  %v9006_v49 = vsel %vm12301_vm9, %v9001_v24, %v9005_v21  ;;  %v9011_v50 = vshll.u32 %v8854_v20, 16 }
 0x66d   : > { %v9598_v43 = vrot.slane %v8855_v19, 5  ;;  %v9017_v39 = vshll.u32 %v8855_v19, 16  ;;  %v9021_v61 = vshrl.u32 %v8855_v19, 16 }
 0x66e   : > { %v9013_v24 = vrot.slane %v9011_v50, 5 }
 0x66f   : > { %v7428_v7 = vpop.f32.mrf.mxu2  ;;  %11330 = vmatmul.msk.bf16.gmra.mxu2 %vm3815_vm13, %v9309_v37  ;;  %v9600_v56 = vrot.slane %v9598_v43, 4  ;;  %v9023_v21 = vrot.slane %v9021_v61, 4 }
 0x670   : > { %v7477_v27 = vadd.f32 %v7428_v7, %v7187_v34  ;;  %v7143_v41 = vpop.f32.mrf.mxu1  ;;  %v14906_v22 = vpop.f32.mrf.mxu0  ;;  %v15511_v7 = vld [vmem:[#allocation28_spill] sm:$0xff] }
 0x671   : > { %v7189_v52 = vadd.f32 %v7143_v41, %v6787_v23  ;;  %v6788_v9 = vadd.f32 %v15511_v7, %v15510_v28  ;;  %v9282_v23 = vunpack.c.l.b16 %v8996_v26  ;;  %v9602_v20 = vsel %vm12315_vm12, %v9600_v56, %v9601_v1 }
 0x672   : > { %v8135_v12 = vadd.f32 %v8086_v29, %v7477_v27  ;;  %v8091_v4 = vpop.f32.mrf.mxu3  ;;  %v9712_v29 = vpack.c.b16 %v9685_v45, %v9684_v35  ;;  %11387 = vmatmul.msk.f32.gmra.mxu0 %vm9931_vm4, %v5097_v11  ;;  %v9283_v35 = vunpack.c.l.b16 %v9006_v49  ;;  %v9027_v49 = vshll.u32 %v8856_v46, 16 }
 0x674   : > { %v14912_v34 = vadd.f32 %v14857_v0, %v8135_v12  ;;  %v9502_v0 = vld [vmem:[#allocation3 + $0x54] sm:$0xe]  ;;  %11367 = vmatmul.msk.bf16.gmra.mxu3 %vm3815_vm13, %v9712_v29  ;;  %v5098_v12 = vld [vmem:[%s15374_s2 + $0x48] sm:$0xff]  ;;  %v9310_v29 = vpack.c.b16 %v9283_v35, %v9282_v23  ;;  %v8859_v35 = vld [vmem:[#allocation3 + $0x68] sm:$0x1] }
 0x675   : > { %v11348_v37 = vrot.slane %v9502_v0, 9  ;;  %v15513_v0 = vld [vmem:[#allocation33_spill] sm:$0xff] }
 0x677   : > { %v7431_v8 = vpop.f32.mrf.mxu2  ;;  %v9599_v11 = vsel %vm12315_vm12, %v11348_v37, %v9598_v43  ;;  %v8858_v37 = vld [vmem:[#allocation3 + $0x64] sm:$0xf] }
 0x678   : > { %v7478_v53 = vadd.f32 %v7431_v8, %v7188_v38  ;;  %v7146_v27 = vpop.f32.mrf.mxu1  ;;  %v14923_v45 = vpop.f32.mrf.mxu0  ;;  %v9010_v38 = vrot.slane %v9008_v62, 4  ;;  %v15512_v62 = vld [vmem:[#allocation32_spill] sm:$0xff]  ;;  %v9686_v50 = vunpack.c.l.b16 %v9599_v11  ;;  %v9605_v1 = vrot.slane %v8858_v37, 5 }
 0x679   : > { %v7190_v17 = vadd.f32 %v7146_v27, %v6788_v9  ;;  %v5099_v9 = vld [vmem:[%s15374_s2 + $0x50] sm:$0xff]  ;;  %v9029_v27 = vrot.slane %v9027_v49, 5 }
 0x67a   : > { %v8136_v13 = vadd.f32 %v8089_v31, %v7478_v53  ;;  %v8094_v18 = vpop.f32.mrf.mxu3  ;;  %v9019_v31 = vrot.slane %v9017_v39, 5  ;;  %11388 = vmatmul.msk.f32.gmra.mxu0 %vm9931_vm4, %v5098_v12  ;;  %v9014_v26 = vor.u32 %v9013_v24, %v9010_v38  ;;  %v6789_v53 = vadd.f32 %v15513_v0, %v15512_v62  ;;  %v9503_v38 = vld [vmem:[#allocation3 + $0x60] sm:$0xe] }
 0x67b   : > { %11311 = vmatmul.msk.bf16.gmra.mxu1 %vm3815_vm13, %v11549_v47  ;;  %v9687_v39 = vunpack.c.l.b16 %v9602_v20  ;;  %v15514_v24 = vld [vmem:[#allocation26_spill] sm:$0xff]  ;;  %v11349_v0 = vrot.slane %v9503_v38, 9 }
 0x67c   : > { %v14929_v41 = vadd.f32 %v14873_v57, %v8136_v13  ;;  %v9024_v57 = vor.u32 %v9023_v21, %v9019_v31  ;;  %v9015_v46 = vrot.slane %v9014_v26, 4  ;;  %v15515_v21 = vld [vmem:[#allocation31_spill] sm:$0xff]  ;;  %v9041_v26 = vshll.u32 %v8858_v37, 16 }
 0x67d   : > { %v9713_v56 = vpack.c.b16 %v9687_v39, %v9686_v50 }
 0x67e   : > { %v9025_v13 = vrot.slane %v9024_v57, 4  ;;  %v9020_v11 = vsel %vm12301_vm9, %v9015_v46, %v9019_v31  ;;  %v9045_v57 = vshrl.u32 %v8858_v37, 16  ;;  %v5100_v31 = vld [vmem:[%s15374_s2 + $0x58] sm:$0xff] }
 0x67f   : > { %v7433_v19 = vpop.f32.mrf.mxu2  ;;  %11331 = vmatmul.msk.bf16.gmra.mxu2 %vm3815_vm13, %v9310_v29 }
 0x680   : > { %v7479_v8 = vadd.f32 %v7433_v19, %v7189_v52  ;;  %v7148_v28 = vpop.f32.mrf.mxu1  ;;  %v14939_v43 = vpop.f32.mrf.mxu0  ;;  %v9030_v20 = vsel %vm12301_vm9, %v9025_v13, %v9029_v27  ;;  %v11550_v19 = vld [vmem:[#allocation3 + $0x54] sm:$0xff]  ;;  %v9043_v27 = vrot.slane %v9041_v26, 5  ;;  %v9047_v37 = vrot.slane %v9045_v57, 4 }
 0x681   : > { %v7191_v7 = vadd.f32 %v7148_v28, %v6789_v53  ;;  %v9608_v53 = vrot.slane %v8859_v35, 5  ;;  %v9284_v28 = vunpack.c.l.b16 %v9020_v11 }
 0x682   : > { %v8137_v61 = vadd.f32 %v8091_v4, %v7479_v8  ;;  %v8096_v52 = vpop.f32.mrf.mxu3  ;;  %11389 = vmatmul.msk.f32.gmra.mxu0 %vm9931_vm4, %v5099_v9  ;;  %v8857_v4 = vld [vmem:[#allocation3 + $0x60] sm:$0xf]  ;;  %v9285_v9 = vunpack.c.l.b16 %v9030_v20  ;;  %v9048_v20 = vor.u32 %v9047_v37, %v9043_v27  ;;  %v8862_v37 = vld [vmem:[#allocation3 + $0x74] sm:$0x1] }
 0x683   : > { %v9032_v29 = vshrl.u32 %v8857_v4, 16  ;;  %v9035_v8 = vshll.u32 %v8857_v4, 16 }
 0x684   : > { %v14945_v47 = vadd.f32 %v14890_v25, %v8137_v61  ;;  %v6790_v25 = vadd.f32 %v15515_v21, %v15514_v24  ;;  %11368 = vmatmul.msk.bf16.gmra.mxu3 %vm3815_vm13, %v9713_v56  ;;  %v9606_v56 = vsel %vm12315_vm12, %v11349_v0, %v9605_v1  ;;  %v9311_v38 = vpack.c.b16 %v9285_v9, %v9284_v28  ;;  %v15517_v24 = vld [vmem:[#allocation24_spill] sm:$0xff]  ;;  %v9504_v9 = vld [vmem:[#allocation3 + $0x6c] sm:$0xe] }
 0x685   : > { %v9037_v13 = vrot.slane %v9035_v8, 5  ;;  %v8861_v0 = vld [vmem:[#allocation3 + $0x70] sm:$0xf] }
 0x687   : > { %v7436_v23 = vpop.f32.mrf.mxu2 }
 0x688   : > { %v7480_v12 = vadd.f32 %v7436_v23, %v7190_v17  ;;  %v7151_v62 = vpop.f32.mrf.mxu1  ;;  %v9607_v17 = vrot.slane %v9605_v1, 4  ;;  %v14956_v39 = vpop.f32.mrf.mxu0 }
 0x689   : > { %v7192_v50 = vadd.f32 %v7151_v62, %v6790_v25  ;;  %v9051_v25 = vshll.u32 %v8859_v35, 16  ;;  %v8860_v35 = vld [vmem:[#allocation3 + $0x6c] sm:$0xf] }
 0x68a   : > { %v8138_v49 = vadd.f32 %v8094_v18, %v7480_v12  ;;  %v8099_v46 = vpop.f32.mrf.mxu3  ;;  %v9034_v18 = vrot.slane %v9032_v29, 4  ;;  %v9609_v4 = vsel %vm12315_vm12, %v9607_v17, %v9608_v53  ;;  %11390 = vmatmul.msk.f32.gmra.mxu0 %vm9931_vm4, %v5100_v31  ;;  %v15516_v12 = vld [vmem:[#allocation25_spill] sm:$0xff]  ;;  %v9049_v53 = vrot.slane %v9048_v20, 4 }
 0x68b   : > { %11312 = vmatmul.msk.bf16.gmra.mxu1 %vm3815_vm13, %v11550_v19  ;;  %v6791_v21 = vadd.f32 %v15517_v24, %v15516_v12  ;;  %v9688_v19 = vunpack.c.l.b16 %v9606_v56  ;;  %v9689_v29 = vunpack.c.l.b16 %v9609_v4  ;;  %v9053_v31 = vrot.slane %v9051_v25, 5  ;;  %v11551_v25 = vld [vmem:[#allocation3 + $0x60] sm:$0xff] }
 0x68c   : > { %v14962_v61 = vadd.f32 %v14906_v22, %v8138_v49  ;;  %v9038_v11 = vor.u32 %v9037_v13, %v9034_v18  ;;  %v5101_v49 = vld [vmem:[%s15374_s2 + $0x60] sm:$0xff]  ;;  %v9056_v28 = vshrl.u32 %v8860_v35, 16  ;;  %v9612_v18 = vrot.slane %v8861_v0, 5 }
 0x68d   : > { %v9059_v56 = vshll.u32 %v8860_v35, 16  ;;  %v9065_v4 = vshll.u32 %v8861_v0, 16 }
 0x68e   : > { %v9039_v17 = vrot.slane %v9038_v11, 4  ;;  %v11350_v11 = vrot.slane %v9504_v9, 9 }
 0x68f   : > { %v7438_v23 = vpop.f32.mrf.mxu2  ;;  %11332 = vmatmul.msk.bf16.gmra.mxu2 %vm3815_vm13, %v9311_v38  ;;  %v15519_v38 = vld [vmem:[#allocation29_spill] sm:$0xff]  ;;  %v9061_v35 = vrot.slane %v9059_v56, 5 }
 0x690   : > { %v7481_v22 = vadd.f32 %v7438_v23, %v7191_v7  ;;  %v7153_v26 = vpop.f32.mrf.mxu1  ;;  %v14972_v1 = vpop.f32.mrf.mxu0  ;;  %v9044_v24 = vsel %vm12301_vm9, %v9039_v17, %v9043_v27  ;;  %v5102_v27 = vld [vmem:[%s15374_s2 + $0x68] sm:$0xff] }
 0x691   : > { %v7193_v57 = vadd.f32 %v7153_v26, %v6791_v21  ;;  %v9054_v21 = vsel %vm12301_vm9, %v9049_v53, %v9053_v31  ;;  %v9615_v26 = vrot.slane %v8862_v37, 5  ;;  %v9286_v53 = vunpack.c.l.b16 %v9044_v24 }
 0x692   : > { %v8139_v8 = vadd.f32 %v8096_v52, %v7481_v22  ;;  %v8101_v62 = vpop.f32.mrf.mxu3  ;;  %v9714_v52 = vpack.c.b16 %v9689_v29, %v9688_v19  ;;  %11391 = vmatmul.msk.f32.gmra.mxu0 %vm9931_vm4, %v5101_v49  ;;  %v15518_v22 = vld [vmem:[#allocation22_spill] sm:$0xff]  ;;  %v9058_v29 = vrot.slane %v9056_v28, 4  ;;  %v9287_v31 = vunpack.c.l.b16 %v9054_v21 }
 0x693   : > { %v6792_v12 = vadd.f32 %v15519_v38, %v15518_v22  ;;  %v15521_v22 = vld [vmem:[#allocation39_spill] sm:$0xff] }
 0x694   : > { %v14978_v7 = vadd.f32 %v14923_v45, %v8139_v8  ;;  %v9069_v45 = vshrl.u32 %v8861_v0, 16  ;;  %11369 = vmatmul.msk.bf16.gmra.mxu3 %vm3815_vm13, %v9714_v52  ;;  %v9614_v8 = vrot.slane %v9612_v18, 4  ;;  %v9067_v0 = vrot.slane %v9065_v4, 5  ;;  %v15522_v38 = vld [vmem:[#allocation27_spill] sm:$0xff] }
 0x695   : > { %v9613_v52 = vsel %vm12315_vm12, %v11350_v11, %v9612_v18  ;;  %v9062_v56 = vor.u32 %v9061_v35, %v9058_v29  ;;  %v5103_v29 = vld [vmem:[%s15374_s2 + $0x70] sm:$0xff]  ;;  %v8864_v35 = vld [vmem:[#allocation3 + $0x7c] sm:$0xf] }
 0x696   : > { %v9616_v28 = vsel %vm12315_vm12, %v9614_v8, %v9615_v26  ;;  %v9690_v24 = vunpack.c.l.b16 %v9613_v52  ;;  %v8863_v26 = vld [vmem:[#allocation3 + $0x78] sm:$0xf]  ;;  %v8865_v52 = vld [vmem:[#allocation3 + $0x80] sm:$0x1] }
 0x697   : > { %v7441_v13 = vpop.f32.mrf.mxu2  ;;  %v9691_v21 = vunpack.c.l.b16 %v9616_v28  ;;  %v9063_v18 = vrot.slane %v9062_v56, 4  ;;  %v9080_v28 = vshrl.u32 %v8863_v26, 16  ;;  %v9083_v56 = vshll.u32 %v8863_v26, 16 }
 0x698   : > { %v7482_v23 = vadd.f32 %v7441_v13, %v7192_v50  ;;  %v7156_v19 = vpop.f32.mrf.mxu1  ;;  %v14989_v50 = vpop.f32.mrf.mxu0  ;;  %v9071_v13 = vrot.slane %v9069_v45, 4  ;;  %v9075_v45 = vshll.u32 %v8862_v37, 16 }
 0x699   : > { %v7194_v49 = vadd.f32 %v7156_v19, %v6792_v12  ;;  %v6793_v12 = vadd.f32 %v15522_v38, %v15521_v22  ;;  %v11552_v38 = vld [vmem:[#allocation3 + $0x6c] sm:$0xff] }
 0x69a   : > { %v8140_v20 = vadd.f32 %v8099_v46, %v7482_v23  ;;  %v8104_v46 = vpop.f32.mrf.mxu3  ;;  %11392 = vmatmul.msk.f32.gmra.mxu0 %vm9931_vm4, %v5102_v27  ;;  %v9072_v4 = vor.u32 %v9071_v13, %v9067_v0  ;;  %v9619_v13 = vrot.slane %v8864_v35, 5 }
 0x69b   : > { %11313 = vmatmul.msk.bf16.gmra.mxu1 %vm3815_vm13, %v11551_v25 }
 0x69c   : > { %v14995_v17 = vadd.f32 %v14939_v43, %v8140_v20  ;;  %v9312_v43 = vpack.c.b16 %v9287_v31, %v9286_v53  ;;  %v9073_v11 = vrot.slane %v9072_v4, 4  ;;  %v9068_v53 = vsel %vm12301_vm9, %v9063_v18, %v9067_v0 }
 0x69d   : > { %v9089_v4 = vshll.u32 %v8864_v35, 16  ;;  %v9621_v0 = vrot.slane %v9619_v13, 4 }
 0x69e   : > { %15520 = vst [vmem:[#allocation41_spill] sm:$0xff] %v14995_v17  ;;  %v9077_v17 = vrot.slane %v9075_v45, 5  ;;  %v9093_v45 = vshrl.u32 %v8864_v35, 16 }
 0x69f   : > { %v7443_v9 = vpop.f32.mrf.mxu2  ;;  %11333 = vmatmul.msk.bf16.gmra.mxu2 %vm3815_vm13, %v9312_v43  ;;  %v15524_v43 = vld [vmem:[#allocation23_spill] sm:$0xff] }
 0x6a0   : > { %v7483_v23 = vadd.f32 %v7443_v9, %v7193_v57  ;;  %v7158_v20 = vpop.f32.mrf.mxu1  ;;  %v15005_v8 = vpop.f32.mrf.mxu0  ;;  %v9078_v31 = vsel %vm12301_vm9, %v9073_v11, %v9077_v17  ;;  %v9288_v17 = vunpack.c.l.b16 %v9068_v53 }
 0x6a1   : > { %v7195_v19 = vadd.f32 %v7158_v20, %v6793_v12  ;;  %v9289_v18 = vunpack.c.l.b16 %v9078_v31 }
 0x6a2   : > { %v8141_v25 = vadd.f32 %v8101_v62, %v7483_v23  ;;  %v8106_v37 = vpop.f32.mrf.mxu3  ;;  %v9715_v62 = vpack.c.b16 %v9691_v21, %v9690_v24  ;;  %11393 = vmatmul.msk.f32.gmra.mxu0 %vm9931_vm4, %v5103_v29  ;;  %v15523_v23 = vld [vmem:[#allocation35_spill] sm:$0xff] }
 0x6a3   : > { %v6794_v22 = vadd.f32 %v15524_v43, %v15523_v23  ;;  %v5104_v29 = vld [vmem:[%s15374_s2 + $0x78] sm:$0xff]  ;;  %v9099_v43 = vshll.u32 %v8865_v52, 16 }
 0x6a4   : > { %v15011_v57 = vadd.f32 %v14956_v39, %v8141_v25  ;;  %v9505_v39 = vld [vmem:[#allocation3 + $0x78] sm:$0xe]  ;;  %11370 = vmatmul.msk.bf16.gmra.mxu3 %vm3815_vm13, %v9715_v62  ;;  %v9622_v25 = vrot.slane %v8865_v52, 5  ;;  %v9085_v62 = vrot.slane %v9083_v56, 5  ;;  %v15527_v56 = vld [vmem:[#allocation40_spill] sm:$0xff] }
 0x6a5   : > { %v11351_v21 = vrot.slane %v9505_v39, 9  ;;  %v9313_v39 = vpack.c.b16 %v9289_v18, %v9288_v17  ;;  %v9101_v17 = vrot.slane %v9099_v43, 5 }
 0x6a6   : > { %v9623_v31 = vsel %vm12315_vm12, %v9621_v0, %v9622_v25 }
 0x6a7   : > { %v7446_v27 = vpop.f32.mrf.mxu2  ;;  %v9620_v53 = vsel %vm12315_vm12, %v11351_v21, %v9619_v13  ;;  %v5105_v21 = vld [vmem:[%s15374_s2 + $0x80] sm:$0xff] }
 0x6a8   : > { %v7484_v9 = vadd.f32 %v7446_v27, %v7194_v49  ;;  %v7161_v24 = vpop.f32.mrf.mxu1  ;;  %v15022_v11 = vpop.f32.mrf.mxu0  ;;  %v9082_v49 = vrot.slane %v9080_v28, 4  ;;  %v9095_v27 = vrot.slane %v9093_v45, 4  ;;  %v9692_v45 = vunpack.c.l.b16 %v9620_v53 }
 0x6a9   : > { %v7196_v20 = vadd.f32 %v7161_v24, %v6794_v22  ;;  %v15526_v22 = vld [vmem:[#allocation37_spill] sm:$0xff] }
 0x6aa   : > { %v8142_v12 = vadd.f32 %v8104_v46, %v7484_v9  ;;  %v8109_v35 = vpop.f32.mrf.mxu3  ;;  %v9091_v46 = vrot.slane %v9089_v4, 5  ;;  %11394 = vmatmul.msk.f32.gmra.mxu0 %vm9931_vm4, %v5104_v29  ;;  %v9086_v23 = vor.u32 %v9085_v62, %v9082_v49  ;;  %v6795_v4 = vadd.f32 %v15527_v56, %v15526_v22  ;;  %v8867_v49 = vld [vmem:[#allocation3 + $0x88] sm:$0xf]  ;;  %v8868_v62 = vld [vmem:[#allocation3 + $0x8c] sm:$0x1] }
 0x6ab   : > { %11314 = vmatmul.msk.bf16.gmra.mxu1 %vm3815_vm13, %v11552_v38  ;;  %v9117_v43 = vshrl.u32 %v8867_v49, 16 }
 0x6ac   : > { %v15028_v26 = vadd.f32 %v14972_v1, %v8142_v12  ;;  %v9096_v1 = vor.u32 %v9095_v27, %v9091_v46  ;;  %v9693_v12 = vunpack.c.l.b16 %v9623_v31  ;;  %v9087_v52 = vrot.slane %v9086_v23, 4  ;;  %v9506_v31 = vld [vmem:[#allocation3 + $0x84] sm:$0xe] }
 0x6ae   : > { %15525 = vst [vmem:[#allocation42_spill] sm:$0xff] %v15028_v26  ;;  %v9097_v25 = vrot.slane %v9096_v1, 4  ;;  %v9716_v18 = vpack.c.b16 %v9693_v12, %v9692_v45  ;;  %v9092_v53 = vsel %vm12301_vm9, %v9087_v52, %v9091_v46  ;;  %v9113_v1 = vshll.u32 %v8867_v49, 16  ;;  %v5106_v46 = vld [vmem:[%s15374_s2 + $0x88] sm:$0xff] }
 0x6af   : > { %v7448_v28 = vpop.f32.mrf.mxu2  ;;  %11334 = vmatmul.msk.bf16.gmra.mxu2 %vm3815_vm13, %v9313_v39  ;;  %v11553_v39 = vld [vmem:[#allocation3 + $0x78] sm:$0xff] }
 0x6b0   : > { %v7485_v9 = vadd.f32 %v7448_v28, %v7195_v19  ;;  %v7163_v24 = vpop.f32.mrf.mxu1  ;;  %v15038_v13 = vpop.f32.mrf.mxu0  ;;  %v9626_v28 = vrot.slane %v8867_v49, 5 }
 0x6b1   : > { %v7197_v26 = vadd.f32 %v7163_v24, %v6795_v4  ;;  %v11352_v4 = vrot.slane %v9506_v31, 9  ;;  %v9290_v24 = vunpack.c.l.b16 %v9092_v53  ;;  %v9123_v53 = vshll.u32 %v8868_v62, 16 }
 0x6b2   : > { %v8143_v38 = vadd.f32 %v8106_v37, %v7485_v9  ;;  %v8111_v19 = vpop.f32.mrf.mxu3  ;;  %11395 = vmatmul.msk.f32.gmra.mxu0 %vm9931_vm4, %v5105_v21  ;;  %v8866_v37 = vld [vmem:[#allocation3 + $0x84] sm:$0xf]  ;;  %v9628_v45 = vrot.slane %v9626_v28, 4 }
 0x6b3   : > { %v9104_v9 = vshrl.u32 %v8866_v37, 16  ;;  %v9107_v23 = vshll.u32 %v8866_v37, 16  ;;  %v9627_v49 = vsel %vm12315_vm12, %v11352_v4, %v9626_v28  ;;  %v5107_v28 = vld [vmem:[%s15374_s2 + $0x90] sm:$0xff] }
 0x6b4   : > { %v15044_v0 = vadd.f32 %v14989_v50, %v8143_v38  ;;  %v9102_v50 = vsel %vm12301_vm9, %v9097_v25, %v9101_v17  ;;  %11371 = vmatmul.msk.bf16.gmra.mxu3 %vm3815_vm13, %v9716_v18  ;;  %v9115_v17 = vrot.slane %v9113_v1, 5  ;;  %v9119_v18 = vrot.slane %v9117_v43, 4 }
 0x6b5   : > { %v9291_v21 = vunpack.c.l.b16 %v9102_v50  ;;  %v9106_v25 = vrot.slane %v9104_v9, 4 }
 0x6b6   : > { %v9120_v31 = vor.u32 %v9119_v18, %v9115_v17 }
 0x6b7   : > { %v7451_v29 = vpop.f32.mrf.mxu2 }
 0x6b8   : > { %v7486_v27 = vadd.f32 %v7451_v29, %v7196_v20  ;;  %v8727_v56 = vpop.f32.mrf.mxu1  ;;  %v9629_v20 = vrot.slane %v8868_v62, 5  ;;  %v15053_v12 = vpop.f32.mrf.mxu0  ;;  %v8869_v62 = vld [vmem:[#allocation3 + $0x90] sm:$0xf] }
 0x6b9   : > { %v8807_v4 = vadd.f32 %v8727_v56, %v14593_v5  ;;  %v9131_v18 = vshll.u32 %v8869_v62, 16 }
 0x6ba   : > { %v8144_v22 = vadd.f32 %v8109_v35, %v7486_v27  ;;  %v9787_v52 = vpop.f32.mrf.mxu3  ;;  %v9109_v35 = vrot.slane %v9107_v23, 5  ;;  %v9630_v37 = vsel %vm12315_vm12, %v9628_v45, %v9629_v20  ;;  %11396 = vmatmul.msk.f32.gmra.mxu0 %vm9931_vm4, %v5106_v46  ;;  %v9314_v27 = vpack.c.b16 %v9291_v21, %v9290_v24  ;;  %v8870_v24 = vld [vmem:[#allocation3 + $0x94] sm:$0xf] }
 0x6bb   : > { %11315 = vmatmul.msk.bf16.gmra.mxu1 %vm3815_vm13, %v11553_v39  ;;  %v9695_v39 = vunpack.c.l.b16 %v9630_v37  ;;  %v9121_v20 = vrot.slane %v9120_v31, 4  ;;  %v9125_v46 = vrot.slane %v9123_v53, 5  ;;  %v9633_v5 = vrot.slane %v8870_v24, 5 }
 0x6bc   : > { %v15059_v38 = vadd.f32 %v15005_v8, %v8144_v22  ;;  %v9110_v50 = vor.u32 %v9109_v35, %v9106_v25  ;;  %v9694_v22 = vunpack.c.l.b16 %v9627_v49  ;;  %v8871_v25 = vld [vmem:[#allocation3 + $0x98] sm:$0x1]  ;;  %v9128_v35 = vshrl.u32 %v8869_v62, 16 }
 0x6bd   : > { %v9137_v49 = vshll.u32 %v8870_v24, 16 }
 0x6be   : > { %v9111_v45 = vrot.slane %v9110_v50, 4 }
 0x6bf   : > { %v7453_v29 = vpop.f32.mrf.mxu2  ;;  %11335 = vmatmul.msk.bf16.gmra.mxu2 %vm3815_vm13, %v9314_v27  ;;  %v11554_v27 = vld [vmem:[#allocation3 + $0x84] sm:$0xff]  ;;  %v9139_v62 = vrot.slane %v9137_v49, 5 }
 0x6c0   : > { %v7487_v8 = vadd.f32 %v7453_v29, %v7197_v26  ;;  %v8729_v23 = vpop.f32.mrf.mxu1  ;;  %v15067_v1 = vpop.f32.mrf.mxu0  ;;  %v9507_v29 = vld [vmem:[#allocation3 + $0x90] sm:$0xe]  ;;  %v9116_v56 = vsel %vm12301_vm9, %v9111_v45, %v9115_v17  ;;  %v5108_v17 = vld [vmem:[%s15374_s2 + $0x98] sm:$0xff] }
 0x6c1   : > { %v11353_v31 = vrot.slane %v9507_v29, 9  ;;  %v9147_v29 = vshll.u32 %v8871_v25, 16 }
 0x6c2   : > { %v8145_v9 = vadd.f32 %v8111_v19, %v7487_v8  ;;  %v9789_v26 = vpop.f32.mrf.mxu3  ;;  %v9717_v19 = vpack.c.b16 %v9695_v39, %v9694_v22  ;;  %11397 = vmatmul.msk.f32.gmra.mxu0 %vm9931_vm4, %v5107_v28  ;;  %v9126_v8 = vsel %vm12301_vm9, %v9121_v20, %v9125_v46  ;;  %v9635_v22 = vrot.slane %v9633_v5, 4 }
 0x6c3   : > { %v9636_v39 = vrot.slane %v8871_v25, 5  ;;  %v9133_v28 = vrot.slane %v9131_v18, 5  ;;  %v8808_v20 = vadd.f32 %v8729_v23, %v14613_v14  ;;  %v9292_v46 = vunpack.c.l.b16 %v9116_v56  ;;  %v5109_v25 = vld [vmem:[%s15374_s2 + $0xa0] sm:$0xff] }
 0x6c4   : > { %v15073_v43 = vadd.f32 %v15022_v11, %v8145_v9  ;;  %v9141_v11 = vshrl.u32 %v8870_v24, 16  ;;  %11372 = vmatmul.msk.bf16.gmra.mxu3 %vm3815_vm13, %v9717_v19  ;;  %v9130_v9 = vrot.slane %v9128_v35, 4  ;;  %v9634_v35 = vsel %vm12315_vm12, %v11353_v31, %v9633_v5 }
 0x6c5   : > { %v9637_v18 = vsel %vm12315_vm12, %v9635_v22, %v9636_v39  ;;  %v9696_v23 = vunpack.c.l.b16 %v9634_v35  ;;  %v9149_v31 = vrot.slane %v9147_v29, 5 }
 0x6c6   : > { %v9697_v56 = vunpack.c.l.b16 %v9637_v18 }
 0x6c7   : > { %v9385_v21 = vpop.f32.mrf.mxu2 }
 0x6c8   : > { %v9465_v37 = vadd.f32 %v9385_v21, %v8807_v4  ;;  %v8732_v50 = vpop.f32.mrf.mxu1  ;;  %v9143_v4 = vrot.slane %v9141_v11, 4  ;;  %v15083_v21 = vpop.f32.mrf.mxu0  ;;  %v9134_v11 = vor.u32 %v9133_v28, %v9130_v9 }
 0x6c9   : > { %v8809_v9 = vadd.f32 %v8732_v50, %v14622_v36 }
 0x6ca   : > { %v9867_v53 = vadd.f32 %v9787_v52, %v9465_v37  ;;  %v9293_v52 = vunpack.c.l.b16 %v9126_v8  ;;  %v9792_v19 = vpop.f32.mrf.mxu3  ;;  %11398 = vmatmul.msk.f32.gmra.mxu0 %vm9931_vm4, %v5108_v17  ;;  %v9144_v37 = vor.u32 %v9143_v4, %v9139_v62  ;;  %v8872_v4 = vld [vmem:[#allocation3 + $0x9c] sm:$0xf]  ;;  %v9718_v17 = vpack.c.b16 %v9697_v56, %v9696_v23 }
 0x6cb   : > { %11316 = vmatmul.msk.bf16.gmra.mxu1 %vm3815_vm13, %v11554_v27  ;;  %v9135_v27 = vrot.slane %v9134_v11, 4  ;;  %v9152_v35 = vshrl.u32 %v8872_v4, 16  ;;  %v9155_v36 = vshll.u32 %v8872_v4, 16  ;;  %v9508_v11 = vld [vmem:[#allocation3 + $0x9c] sm:$0xe] }
 0x6cc   : > { %v9899_v45 = vmax.f32 %v9867_v53, 0.0  ;;  %v9145_v53 = vrot.slane %v9144_v37, 4 }
 0x6cd   : > { %v9157_v4 = vrot.slane %v9155_v36, 5 }
 0x6ce   : > { %v10046_v24 = vadd.f32 %v15038_v13, %v9899_v45  ;;  %v9315_v13 = vpack.c.b16 %v9293_v52, %v9292_v46  ;;  %v9140_v46 = vsel %vm12301_vm9, %v9135_v27, %v9139_v62  ;;  %v9150_v52 = vsel %vm12301_vm9, %v9145_v53, %v9149_v31 }
 0x6cf   : > { %v9387_v49 = vpop.f32.mrf.mxu2  ;;  %v9295_v27 = vunpack.c.l.b16 %v9150_v52  ;;  %v9154_v53 = vrot.slane %v9152_v35, 4 }
 0x6d0   : > { %10141 = vst.msk [vmem:[%s15098_s28] sm:$0xff] %vm771_vm6, %v10046_v24  ;;  %v9466_v14 = vadd.f32 %v9387_v49, %v8808_v20  ;;  %v8734_v8 = vpop.f32.mrf.mxu1  ;;  %v15102_v22 = vpop.f32.mrf.mxu0  ;;  %11336 = vmatmul.msk.bf16.gmra.mxu2 %vm3815_vm13, %v9315_v13  ;;  %v8874_v24 = vld [vmem:[#allocation3 + $0xa4] sm:$0x1]  ;;  %v11354_v13 = vrot.slane %v9508_v11, 9 }
 0x6d1   : > { %v9643_v23 = vrot.slane %v8874_v24, 5  ;;  %v8810_v56 = vadd.f32 %v8734_v8, %v14642_v40  ;;  %v9158_v35 = vor.u32 %v9157_v4, %v9154_v53  ;;  %v9509_v4 = vld [vmem:[#allocation3 + $0xa8] sm:$0xe] }
 0x6d2   : > { %v9868_v5 = vadd.f32 %v9789_v26, %v9466_v14  ;;  %v9794_v28 = vpop.f32.mrf.mxu3  ;;  %v8873_v26 = vld [vmem:[#allocation3 + $0xa0] sm:$0xf]  ;;  %11399 = vmatmul.msk.f32.gmra.mxu0 %vm9931_vm4, %v5109_v25  ;;  %v5110_v25 = vld [vmem:[%s15374_s2 + $0xa8] sm:$0xff] }
 0x6d3   : > { %v9161_v18 = vshll.u32 %v8873_v26, 16  ;;  %v9165_v49 = vshrl.u32 %v8873_v26, 16  ;;  %v9640_v37 = vrot.slane %v8873_v26, 5 }
 0x6d4   : > { %v9900_v39 = vmax.f32 %v9868_v5, 0.0  ;;  %11373 = vmatmul.msk.bf16.gmra.mxu3 %vm3815_vm13, %v9718_v17  ;;  %v9294_v5 = vunpack.c.l.b16 %v9140_v46 }
 0x6d5   : > { %v9642_v62 = vrot.slane %v9640_v37, 4  ;;  %v9167_v17 = vrot.slane %v9165_v49, 4  ;;  %v9641_v40 = vsel %vm12315_vm12, %v11354_v13, %v9640_v37 }
 0x6d6   : > { %v10049_v45 = vadd.f32 %v15053_v12, %v9900_v39  ;;  %v11555_v12 = vld [vmem:[#allocation3 + $0x90] sm:$0xff]  ;;  %v9316_v52 = vpack.c.b16 %v9295_v27, %v9294_v5  ;;  %v8876_v5 = vld [vmem:[#allocation3 + $0xac] sm:$0xf]  ;;  %v8875_v27 = vld [vmem:[#allocation3 + $0xa8] sm:$0xf] }
 0x6d7   : > { %v9390_v20 = vpop.f32.mrf.mxu2  ;;  %v9644_v8 = vsel %vm12315_vm12, %v9642_v62, %v9643_v23  ;;  %v9159_v62 = vrot.slane %v9158_v35, 4 }
 0x6d8   : > { %10142 = vst.msk [vmem:[%s15098_s28 + $0x8] sm:$0xff] %vm771_vm6, %v10049_v45  ;;  %v9467_v50 = vadd.f32 %v9390_v20, %v8809_v9  ;;  %v8737_v14 = vpop.f32.mrf.mxu1  ;;  %v15119_v31 = vpop.f32.mrf.mxu0  ;;  %v9171_v20 = vshll.u32 %v8874_v24, 16 }
 0x6d9   : > { %v8811_v24 = vadd.f32 %v8737_v14, %v14651_v33 }
 0x6da   : > { %v9869_v29 = vadd.f32 %v9792_v19, %v9467_v50  ;;  %v9797_v9 = vpop.f32.mrf.mxu3  ;;  %v9163_v19 = vrot.slane %v9161_v18, 5  ;;  %11400 = vmatmul.msk.f32.gmra.mxu0 %vm9931_vm4, %v5110_v25  ;;  %v9698_v50 = vunpack.c.l.b16 %v9641_v40  ;;  %v9699_v18 = vunpack.c.l.b16 %v9644_v8  ;;  %v8877_v25 = vld [vmem:[#allocation3 + $0xb0] sm:$0x1] }
 0x6db   : > { %11317 = vmatmul.msk.bf16.gmra.mxu1 %vm3815_vm13, %v11555_v12  ;;  %v9173_v11 = vrot.slane %v9171_v20, 5  ;;  %v5111_v12 = vld [vmem:[%s15374_s2 + $0xb0] sm:$0xff]  ;;  %v9179_v40 = vshll.u32 %v8875_v27, 16  ;;  %v9185_v8 = vshll.u32 %v8876_v5, 16 }
 0x6dc   : > { %v9901_v39 = vmax.f32 %v9869_v29, 0.0  ;;  %v9168_v36 = vor.u32 %v9167_v17, %v9163_v19  ;;  %v9164_v33 = vsel %vm12301_vm9, %v9159_v62, %v9163_v19  ;;  %v9647_v17 = vrot.slane %v8876_v5, 5  ;;  %v5112_v19 = vld [vmem:[%s15374_s2 + $0xb8] sm:$0xff] }
 0x6dd   : > { %v9187_v62 = vrot.slane %v9185_v8, 5 }
 0x6de   : > { %v10052_v26 = vadd.f32 %v15067_v1, %v9901_v39  ;;  %v9169_v23 = vrot.slane %v9168_v36, 4  ;;  %v9649_v35 = vrot.slane %v9647_v17, 4  ;;  %v9650_v36 = vrot.slane %v8877_v25, 5 }
 0x6df   : > { %v9392_v45 = vpop.f32.mrf.mxu2 }
 0x6e0   : > { %10143 = vst.msk [vmem:[%s15098_s28 + $0x10] sm:$0xff] %vm771_vm6, %v10052_v26  ;;  %v9468_v46 = vadd.f32 %v9392_v45, %v8810_v56  ;;  %v8739_v1 = vpop.f32.mrf.mxu1  ;;  %v15133_v37 = vpop.f32.mrf.mxu0  ;;  %11337 = vmatmul.msk.bf16.gmra.mxu2 %vm3815_vm13, %v9316_v52  ;;  %v9719_v56 = vpack.c.b16 %v9699_v18, %v9698_v50  ;;  %v9174_v14 = vsel %vm12301_vm9, %v9169_v23, %v9173_v11  ;;  %v11556_v26 = vld [vmem:[#allocation3 + $0x9c] sm:$0xff]  ;;  %v9189_v45 = vshrl.u32 %v8876_v5, 16 }
 0x6e1   : > { %v11355_v52 = vrot.slane %v9509_v4, 9  ;;  %v9296_v11 = vunpack.c.l.b16 %v9164_v33 }
 0x6e2   : > { %v9870_v49 = vadd.f32 %v9794_v28, %v9468_v46  ;;  %v9799_v13 = vpop.f32.mrf.mxu3  ;;  %11401 = vmatmul.msk.f32.gmra.mxu0 %vm9931_vm4, %v5111_v12  ;;  %v9297_v12 = vunpack.c.l.b16 %v9174_v14  ;;  %v9191_v23 = vrot.slane %v9189_v45, 4 }
 0x6e3   : > { %v9648_v5 = vsel %vm12315_vm12, %v11355_v52, %v9647_v17  ;;  %v5113_v17 = vld [vmem:[%s15374_s2 + $0xc0] sm:$0xff] }
 0x6e4   : > { %v9902_v29 = vmax.f32 %v9870_v49, 0.0  ;;  %11374 = vmatmul.msk.bf16.gmra.mxu3 %vm3815_vm13, %v9719_v56  ;;  %v8812_v49 = vadd.f32 %v8739_v1, %v14671_v63  ;;  %v9192_v33 = vor.u32 %v9191_v23, %v9187_v62  ;;  %v9700_v14 = vunpack.c.l.b16 %v9648_v5 }
 0x6e6   : > { %v10055_v28 = vadd.f32 %v15083_v21, %v9902_v29  ;;  %v9176_v21 = vshrl.u32 %v8875_v27, 16  ;;  %v9317_v27 = vpack.c.b16 %v9297_v12, %v9296_v11  ;;  %v9193_v52 = vrot.slane %v9192_v33, 4 }
 0x6e7   : > { %v9395_v53 = vpop.f32.mrf.mxu2 }
 0x6e8   : > { %10144 = vst.msk [vmem:[%s15098_s28 + $0x18] sm:$0xff] %vm771_vm6, %v10055_v28  ;;  %v9469_v39 = vadd.f32 %v9395_v53, %v8811_v24  ;;  %v8742_v46 = vpop.f32.mrf.mxu1  ;;  %v15149_v50 = vpop.f32.mrf.mxu0  ;;  %v9181_v24 = vrot.slane %v9179_v40, 5  ;;  %v9651_v28 = vsel %vm12315_vm12, %v9649_v35, %v9650_v36  ;;  %v9195_v53 = vshll.u32 %v8877_v25, 16  ;;  %v8878_v25 = vld [vmem:[#allocation3 + $0xb4] sm:$0xf] }
 0x6e9   : > { %v9701_v4 = vunpack.c.l.b16 %v9651_v28  ;;  %v8813_v8 = vadd.f32 %v8742_v46, %v14680_v51  ;;  %v9200_v11 = vshrl.u32 %v8878_v25, 16  ;;  %v9203_v12 = vshll.u32 %v8878_v25, 16 }
 0x6ea   : > { %v9871_v20 = vadd.f32 %v9797_v9, %v9469_v39  ;;  %v9802_v29 = vpop.f32.mrf.mxu3  ;;  %v9178_v9 = vrot.slane %v9176_v21, 4  ;;  %11402 = vmatmul.msk.f32.gmra.mxu0 %vm9931_vm4, %v5112_v19  ;;  %v9197_v35 = vrot.slane %v9195_v53, 5 }
 0x6eb   : > { %11318 = vmatmul.msk.bf16.gmra.mxu1 %vm3815_vm13, %v11556_v26  ;;  %v9720_v36 = vpack.c.b16 %v9701_v4, %v9700_v14  ;;  %v9205_v33 = vrot.slane %v9203_v12, 5 }
 0x6ec   : > { %v9903_v18 = vmax.f32 %v9871_v20, 0.0  ;;  %v9182_v39 = vor.u32 %v9181_v24, %v9178_v9  ;;  %v9510_v24 = vld [vmem:[#allocation3 + $0xb4] sm:$0xe]  ;;  %v9198_v5 = vsel %vm12301_vm9, %v9193_v52, %v9197_v35 }
 0x6ee   : > { %v10058_v56 = vadd.f32 %v15102_v22, %v9903_v18  ;;  %v9183_v20 = vrot.slane %v9182_v39, 4  ;;  %v9202_v39 = vrot.slane %v9200_v11, 4 }
 0x6ef   : > { %v9397_v63 = vpop.f32.mrf.mxu2 }
 0x6f0   : > { %10145 = vst.msk [vmem:[%s15098_s28 + $0x20] sm:$0xff] %vm771_vm6, %v10058_v56  ;;  %v9470_v1 = vadd.f32 %v9397_v63, %v8812_v49  ;;  %v8744_v22 = vpop.f32.mrf.mxu1  ;;  %v15164_v21 = vpop.f32.mrf.mxu0  ;;  %11338 = vmatmul.msk.bf16.gmra.mxu2 %vm3815_vm13, %v9317_v27  ;;  %v8880_v49 = vld [vmem:[#allocation3 + $0xbc] sm:$0x1]  ;;  %v9188_v56 = vsel %vm12301_vm9, %v9183_v20, %v9187_v62 }
 0x6f1   : > { %v9657_v53 = vrot.slane %v8880_v49, 5  ;;  %v5114_v62 = vld [vmem:[%s15374_s2 + $0xc8] sm:$0xff] }
 0x6f2   : > { %v9872_v26 = vadd.f32 %v9799_v13, %v9470_v1  ;;  %v9804_v45 = vpop.f32.mrf.mxu3  ;;  %v8879_v13 = vld [vmem:[#allocation3 + $0xb8] sm:$0xf]  ;;  %11403 = vmatmul.msk.f32.gmra.mxu0 %vm9931_vm4, %v5113_v17  ;;  %v11356_v1 = vrot.slane %v9510_v24, 9 }
 0x6f3   : > { %v9209_v9 = vshll.u32 %v8879_v13, 16  ;;  %v9213_v51 = vshrl.u32 %v8879_v13, 16  ;;  %v9654_v23 = vrot.slane %v8879_v13, 5  ;;  %v9206_v13 = vor.u32 %v9205_v33, %v9202_v39 }
 0x6f4   : > { %v9904_v40 = vmax.f32 %v9872_v26, 0.0  ;;  %11375 = vmatmul.msk.bf16.gmra.mxu3 %vm3815_vm13, %v9720_v36 }
 0x6f5   : > { %v9656_v27 = vrot.slane %v9654_v23, 4  ;;  %v9211_v14 = vrot.slane %v9209_v9, 5  ;;  %v9215_v4 = vrot.slane %v9213_v51, 4  ;;  %v9655_v52 = vsel %vm12315_vm12, %v11356_v1, %v9654_v23 }
 0x6f6   : > { %v10061_v19 = vadd.f32 %v15119_v31, %v9904_v40  ;;  %v11557_v31 = vld [vmem:[#allocation3 + $0xa8] sm:$0xff]  ;;  %v8814_v40 = vadd.f32 %v8744_v22, %v14700_v59  ;;  %v9702_v11 = vunpack.c.l.b16 %v9655_v52  ;;  %v9207_v51 = vrot.slane %v9206_v13, 4 }
 0x6f7   : > { %v9400_v18 = vpop.f32.mrf.mxu2  ;;  %v9658_v35 = vsel %vm12315_vm12, %v9656_v27, %v9657_v53 }
 0x6f8   : > { %10146 = vst.msk [vmem:[%s15098_s28 + $0x28] sm:$0xff] %vm771_vm6, %v10061_v19  ;;  %v9471_v46 = vadd.f32 %v9400_v18, %v8813_v8  ;;  %v8747_v63 = vpop.f32.mrf.mxu1  ;;  %v15180_v26 = vpop.f32.mrf.mxu0  ;;  %v9298_v8 = vunpack.c.l.b16 %v9188_v56  ;;  %v9216_v19 = vor.u32 %v9215_v4, %v9211_v14  ;;  %v9219_v18 = vshll.u32 %v8880_v49, 16  ;;  %v5115_v56 = vld [vmem:[%s15374_s2 + $0xd0] sm:$0xff]  ;;  %v8883_v4 = vld [vmem:[#allocation3 + $0xc8] sm:$0x1] }
 0x6f9   : > { %v9703_v12 = vunpack.c.l.b16 %v9658_v35  ;;  %v8815_v49 = vadd.f32 %v8747_v63, %v14709_v30  ;;  %v9212_v39 = vsel %vm12301_vm9, %v9207_v51, %v9211_v14 }
 0x6fa   : > { %v9873_v28 = vadd.f32 %v9802_v29, %v9471_v46  ;;  %v9299_v29 = vunpack.c.l.b16 %v9198_v5  ;;  %v9807_v25 = vpop.f32.mrf.mxu3  ;;  %11404 = vmatmul.msk.f32.gmra.mxu0 %vm9931_vm4, %v5114_v62  ;;  %v9217_v46 = vrot.slane %v9216_v19, 4  ;;  %v9221_v24 = vrot.slane %v9219_v18, 5 }
 0x6fb   : > { %11319 = vmatmul.msk.bf16.gmra.mxu1 %vm3815_vm13, %v11557_v31  ;;  %v9721_v1 = vpack.c.b16 %v9703_v12, %v9702_v11  ;;  %v9300_v19 = vunpack.c.l.b16 %v9212_v39  ;;  %v5116_v11 = vld [vmem:[%s15374_s2 + $0xd8] sm:$0xff] }
 0x6fc   : > { %v9905_v17 = vmax.f32 %v9873_v28, 0.0  ;;  %v9318_v22 = vpack.c.b16 %v9299_v29, %v9298_v8  ;;  %v8881_v28 = vld [vmem:[#allocation3 + $0xc0] sm:$0xf]  ;;  %v9222_v33 = vsel %vm12301_vm9, %v9217_v46, %v9221_v24 }
 0x6fd   : > { %v9224_v62 = vshrl.u32 %v8881_v28, 16  ;;  %v9227_v30 = vshll.u32 %v8881_v28, 16  ;;  %v9511_v8 = vld [vmem:[#allocation3 + $0xc0] sm:$0xe]  ;;  %v9301_v18 = vunpack.c.l.b16 %v9222_v33 }
 0x6fe   : > { %v10064_v20 = vadd.f32 %v15133_v37, %v9905_v17  ;;  %v11357_v35 = vrot.slane %v9511_v8, 9 }
 0x6ff   : > { %v9402_v36 = vpop.f32.mrf.mxu2  ;;  %v9229_v51 = vrot.slane %v9227_v30, 5  ;;  %v9319_v28 = vpack.c.b16 %v9301_v18, %v9300_v19  ;;  %v5117_v30 = vld [vmem:[%s15374_s2 + $0xe0] sm:$0xff]  ;;  %v11559_v18 = vld [vmem:[#allocation3 + $0xc0] sm:$0xff] }
 0x700   : > { %10147 = vst.msk [vmem:[%s15098_s28 + $0x30] sm:$0xff] %vm771_vm6, %v10064_v20  ;;  %v9472_v59 = vadd.f32 %v9402_v36, %v8814_v40  ;;  %v8749_v37 = vpop.f32.mrf.mxu1  ;;  %v15195_v23 = vpop.f32.mrf.mxu0  ;;  %11339 = vmatmul.msk.bf16.gmra.mxu2 %vm3815_vm13, %v9318_v22  ;;  %v9664_v36 = vrot.slane %v8883_v4, 5 }
 0x701   : > { %v8816_v13 = vadd.f32 %v8749_v37, %v14729_v48 }
 0x702   : > { %v9874_v9 = vadd.f32 %v9804_v45, %v9472_v59  ;;  %v9809_v31 = vpop.f32.mrf.mxu3  ;;  %v8882_v45 = vld [vmem:[#allocation3 + $0xc4] sm:$0xf]  ;;  %11405 = vmatmul.msk.f32.gmra.mxu0 %vm9931_vm4, %v5115_v56  ;;  %v9226_v59 = vrot.slane %v9224_v62, 4 }
 0x703   : > { %v9233_v17 = vshll.u32 %v8882_v45, 16  ;;  %v9237_v40 = vshrl.u32 %v8882_v45, 16  ;;  %v9661_v29 = vrot.slane %v8882_v45, 5 }
 0x704   : > { %v9906_v5 = vmax.f32 %v9874_v9, 0.0  ;;  %11376 = vmatmul.msk.bf16.gmra.mxu3 %vm3815_vm13, %v9721_v1  ;;  %v9230_v1 = vor.u32 %v9229_v51, %v9226_v59 }
 0x705   : > { %v9663_v14 = vrot.slane %v9661_v29, 4  ;;  %v9239_v46 = vrot.slane %v9237_v40, 4  ;;  %v9662_v48 = vsel %vm12315_vm12, %v11357_v35, %v9661_v29 }
 0x706   : > { %v10067_v27 = vadd.f32 %v15149_v50, %v9906_v5  ;;  %v11558_v50 = vld [vmem:[#allocation3 + $0xb4] sm:$0xff]  ;;  %v9243_v5 = vshll.u32 %v8883_v4, 16  ;;  %v9231_v40 = vrot.slane %v9230_v1, 4 }
 0x707   : > { %v9405_v53 = vpop.f32.mrf.mxu2  ;;  %v9665_v37 = vsel %vm12315_vm12, %v9663_v14, %v9664_v36  ;;  %v8886_v14 = vld [vmem:[#allocation3 + $0xd4] sm:$0x1] }
 0x708   : > { %10148 = vst.msk [vmem:[%s15098_s28 + $0x38] sm:$0xff] %vm771_vm6, %v10067_v27  ;;  %v9473_v63 = vadd.f32 %v9405_v53, %v8815_v49  ;;  %v8752_v52 = vpop.f32.mrf.mxu1  ;;  %v15212_v22 = vpop.f32.mrf.mxu0  ;;  %v9704_v27 = vunpack.c.l.b16 %v9662_v48  ;;  %v9705_v53 = vunpack.c.l.b16 %v9665_v37  ;;  %v9245_v33 = vrot.slane %v9243_v5, 5 }
 0x709   : > { %v8817_v4 = vadd.f32 %v8752_v52, %v14738_v15  ;;  %v9671_v37 = vrot.slane %v8886_v14, 5 }
 0x70a   : > { %v9875_v20 = vadd.f32 %v9807_v25, %v9473_v63  ;;  %v9812_v9 = vpop.f32.mrf.mxu3  ;;  %v9235_v25 = vrot.slane %v9233_v17, 5  ;;  %11406 = vmatmul.msk.f32.gmra.mxu0 %vm9931_vm4, %v5116_v11  ;;  %v9722_v29 = vpack.c.b16 %v9705_v53, %v9704_v27 }
 0x70b   : > { %11320 = vmatmul.msk.bf16.gmra.mxu1 %vm3815_vm13, %v11558_v50  ;;  %v8885_v50 = vld [vmem:[#allocation3 + $0xd0] sm:$0xf] }
 0x70c   : > { %v9907_v12 = vmax.f32 %v9875_v20, 0.0  ;;  %v9240_v45 = vor.u32 %v9239_v46, %v9235_v25  ;;  %v8884_v20 = vld [vmem:[#allocation3 + $0xcc] sm:$0xf]  ;;  %v9236_v15 = vsel %vm12301_vm9, %v9231_v40, %v9235_v25  ;;  %v9668_v19 = vrot.slane %v8885_v50, 5  ;;  %v5118_v25 = vld [vmem:[%s15374_s2 + $0xe8] sm:$0xff] }
 0x70d   : > { %v9251_v59 = vshll.u32 %v8884_v20, 16  ;;  %v9257_v11 = vshll.u32 %v8885_v50, 16  ;;  %v9267_v40 = vshll.u32 %v8886_v14, 16 }
 0x70e   : > { %v10070_v24 = vadd.f32 %v15164_v21, %v9907_v12  ;;  %v9241_v8 = vrot.slane %v9240_v45, 4  ;;  %v9261_v12 = vshrl.u32 %v8885_v50, 16  ;;  %v9670_v48 = vrot.slane %v9668_v19, 4 }
 0x70f   : > { %v9407_v56 = vpop.f32.mrf.mxu2  ;;  %v9253_v27 = vrot.slane %v9251_v59, 5  ;;  %v9259_v53 = vrot.slane %v9257_v11, 5 }
 0x710   : > { %10149 = vst.msk [vmem:[%s15098_s28 + $0x40] sm:$0xff] %vm771_vm6, %v10070_v24  ;;  %v9474_v49 = vadd.f32 %v9407_v56, %v8816_v13  ;;  %v8754_v21 = vpop.f32.mrf.mxu1  ;;  %v15226_v62 = vpop.f32.mrf.mxu0  ;;  %11340 = vmatmul.msk.bf16.gmra.mxu2 %vm3815_vm13, %v9319_v28  ;;  %v9246_v52 = vsel %vm12301_vm9, %v9241_v8, %v9245_v33  ;;  %v9512_v13 = vld [vmem:[#allocation3 + $0xcc] sm:$0xe]  ;;  %v9302_v28 = vunpack.c.l.b16 %v9236_v15 }
 0x711   : > { %v11358_v24 = vrot.slane %v9512_v13, 9  ;;  %v9303_v1 = vunpack.c.l.b16 %v9246_v52 }
 0x712   : > { %v9876_v39 = vadd.f32 %v9809_v31, %v9474_v49  ;;  %v9814_v17 = vpop.f32.mrf.mxu3  ;;  %11407 = vmatmul.msk.f32.gmra.mxu0 %vm9931_vm4, %v5117_v30  ;;  %v8818_v49 = vadd.f32 %v8754_v21, %v14758_v16 }
 0x713   : > { %v9669_v30 = vsel %vm12315_vm12, %v11358_v24, %v9668_v19  ;;  %v9269_v19 = vrot.slane %v9267_v40, 5 }
 0x714   : > { %v9908_v63 = vmax.f32 %v9876_v39, 0.0  ;;  %11377 = vmatmul.msk.bf16.gmra.mxu3 %vm3815_vm13, %v9722_v29  ;;  %v9263_v39 = vrot.slane %v9261_v12, 4  ;;  %v9706_v50 = vunpack.c.l.b16 %v9669_v30  ;;  %v11560_v12 = vld [vmem:[#allocation3 + $0xcc] sm:$0xff] }
 0x716   : > { %v10073_v31 = vadd.f32 %v15180_v26, %v9908_v63  ;;  %v9248_v26 = vshrl.u32 %v8884_v20, 16  ;;  %v9672_v63 = vsel %vm12315_vm12, %v9670_v48, %v9671_v37  ;;  %v9264_v29 = vor.u32 %v9263_v39, %v9259_v53 }
 0x717   : > { %v9410_v35 = vpop.f32.mrf.mxu2 }
 0x718   : > { %10150 = vst.msk [vmem:[%s15098_s28 + $0x48] sm:$0xff] %vm771_vm6, %v10073_v31  ;;  %v9475_v36 = vadd.f32 %v9410_v35, %v8817_v4  ;;  %v8757_v46 = vpop.f32.mrf.mxu1  ;;  %v15242_v56 = vpop.f32.mrf.mxu0  ;;  %v9320_v4 = vpack.c.b16 %v9303_v1, %v9302_v28  ;;  %v9707_v31 = vunpack.c.l.b16 %v9672_v63  ;;  %v9265_v14 = vrot.slane %v9264_v29, 4 }
 0x719   : > { %v8819_v15 = vadd.f32 %v8757_v46, %v14767_v6 }
 0x71a   : > { %v9877_v51 = vadd.f32 %v9812_v9, %v9475_v36  ;;  %v9817_v45 = vpop.f32.mrf.mxu3  ;;  %v9250_v9 = vrot.slane %v9248_v26, 4  ;;  %11408 = vmatmul.msk.f32.gmra.mxu0 %vm9931_vm4, %v5118_v25  ;;  %v9270_v6 = vsel %vm12301_vm9, %v9265_v14, %v9269_v19 }
 0x71b   : > { %11321 = vmatmul.msk.bf16.gmra.mxu1 %vm3815_vm13, %v11559_v18  ;;  %v9723_v18 = vpack.c.b16 %v9707_v31, %v9706_v50 }
 0x71c   : > { %v9909_v5 = vmax.f32 %v9877_v51, 0.0  ;;  %v9254_v8 = vor.u32 %v9253_v27, %v9250_v9 }
 0x71e   : > { %v10076_v33 = vadd.f32 %v15195_v23, %v9909_v5  ;;  %v9255_v13 = vrot.slane %v9254_v8, 4  ;;  %v9305_v5 = vunpack.c.l.b16 %v9270_v6 }
 0x71f   : > { %v9412_v16 = vpop.f32.mrf.mxu2 }
 0x720   : > { %10151 = vst.msk [vmem:[%s15098_s28 + $0x50] sm:$0xff] %vm771_vm6, %v10076_v33  ;;  %v9476_v21 = vadd.f32 %v9412_v16, %v8818_v49  ;;  %v8759_v20 = vpop.f32.mrf.mxu1  ;;  %v10087_v35 = vpop.f32.mrf.mxu0  ;;  %11341 = vmatmul.msk.bf16.gmra.mxu2 %vm3815_vm13, %v9320_v4  ;;  %v9260_v11 = vsel %vm12301_vm9, %v9255_v13, %v9259_v53 }
 0x721   : > { %v8820_v37 = vadd.f32 %v8759_v20, %v14782_v60  ;;  %v9304_v25 = vunpack.c.l.b16 %v9260_v11 }
 0x722   : > { %v9878_v23 = vadd.f32 %v9814_v17, %v9476_v21  ;;  %v9819_v52 = vpop.f32.mrf.mxu3  ;;  %11409 = vmatmul.msk.f32.gmra.mxu0 %vm9931_vm4, %v5119_v44 }
 0x724   : > { %v9910_v36 = vmax.f32 %v9878_v23, 0.0  ;;  %11378 = vmatmul.msk.bf16.gmra.mxu3 %vm3815_vm13, %v9723_v18 }
 0x726   : > { %v10079_v26 = vadd.f32 %v15212_v22, %v9910_v36  ;;  %v5120_v22 = vld [vmem:[%s15374_s2 + $0xf8] sm:$0xff] }
 0x727   : > { %v9415_v17 = vpop.f32.mrf.mxu2 }
 0x728   : > { %10152 = vst.msk [vmem:[%s15098_s28 + $0x58] sm:$0xff] %vm771_vm6, %v10079_v26  ;;  %v9477_v59 = vadd.f32 %v9415_v17, %v8819_v15  ;;  %v8762_v46 = vpop.f32.mrf.mxu1  ;;  %v10090_v24 = vpop.f32.mrf.mxu0 }
 0x729   : > { %v8821_v60 = vadd.f32 %v8762_v46, %v14798_v55 }
 0x72a   : > { %v9879_v51 = vadd.f32 %v9817_v45, %v9477_v59  ;;  %v9822_v49 = vpop.f32.mrf.mxu3  ;;  %11410 = vmatmul.msk.f32.gmra.mxu0 %vm9931_vm4, %v5120_v22  ;;  %v9321_v45 = vpack.c.b16 %v9305_v5, %v9304_v25 }
 0x72b   : > { %11322 = vmatmul.msk.bf16.gmra.mxu1 %vm3815_vm13, %v11560_v12 }
 0x72c   : > { %v9911_v48 = vmax.f32 %v9879_v51, 0.0 }
 0x72e   : > { %v10082_v2 = vadd.f32 %v15226_v62, %v9911_v48 }
 0x72f   : > { %v9417_v28 = vpop.f32.mrf.mxu2 }
 0x730   : > { %10153 = vst.msk [vmem:[%s15098_s28 + $0x60] sm:$0xff] %vm771_vm6, %v10082_v2  ;;  %v9478_v1 = vadd.f32 %v9417_v28, %v8820_v37  ;;  %v8764_v27 = vpop.f32.mrf.mxu1  ;;  %v10093_v53 = vpop.f32.mrf.mxu0  ;;  %11342 = vmatmul.msk.bf16.gmra.mxu2 %vm3815_vm13, %v9321_v45 }
 0x731   : > { %v8822_v8 = vadd.f32 %v8764_v27, %v14814_v58 }
 0x732   : > { %v9880_v9 = vadd.f32 %v9819_v52, %v9478_v1  ;;  %v9824_v33 = vpop.f32.mrf.mxu3 }
 0x734   : > { %v9912_v39 = vmax.f32 %v9880_v9, 0.0 }
 0x736   : > { %v10085_v30 = vadd.f32 %v15242_v56, %v9912_v39 }
 0x737   : > { %v9420_v62 = vpop.f32.mrf.mxu2 }
 0x738   : > { %10154 = vst.msk [vmem:[%s15098_s28 + $0x68] sm:$0xff] %vm771_vm6, %v10085_v30  ;;  %v9479_v63 = vadd.f32 %v9420_v62, %v8821_v60  ;;  %v8767_v21 = vpop.f32.mrf.mxu1  ;;  %v10096_v4 = vpop.f32.mrf.mxu0 }
 0x739   : > { %v8823_v36 = vadd.f32 %v8767_v21, %v14830_v10 }
 0x73a   : > { %v9881_v16 = vadd.f32 %v9822_v49, %v9479_v63  ;;  %v9827_v29 = vpop.f32.mrf.mxu3 }
 0x73c   : > { %v9913_v40 = vmax.f32 %v9881_v16, 0.0 }
 0x73e   : > { %v10088_v50 = vadd.f32 %v10087_v35, %v9913_v40 }
 0x73f   : > { %v9422_v31 = vpop.f32.mrf.mxu2 }
 0x740   : > { %10155 = vst.msk [vmem:[%s15098_s28 + $0x70] sm:$0xff] %vm771_vm6, %v10088_v50  ;;  %v9480_v55 = vadd.f32 %v9422_v31, %v8822_v8  ;;  %v8769_v20 = vpop.f32.mrf.mxu1  ;;  %v10099_v56 = vpop.f32.mrf.mxu0 }
 0x741   : > { %v8824_v26 = vadd.f32 %v8769_v20, %v14846_v3 }
 0x742   : > { %v9882_v23 = vadd.f32 %v9824_v33, %v9480_v55  ;;  %v9829_v15 = vpop.f32.mrf.mxu3 }
 0x744   : > { %v9914_v44 = vmax.f32 %v9882_v23, 0.0 }
 0x746   : > { %v10091_v52 = vadd.f32 %v10090_v24, %v9914_v44 }
 0x747   : > { %v9425_v13 = vpop.f32.mrf.mxu2 }
 0x748   : > { %10156 = vst.msk [vmem:[%s15098_s28 + $0x78] sm:$0xff] %vm771_vm6, %v10091_v52  ;;  %v9481_v14 = vadd.f32 %v9425_v13, %v8823_v36  ;;  %v8772_v19 = vpop.f32.mrf.mxu1  ;;  %v10102_v35 = vpop.f32.mrf.mxu0 }
 0x749   : > { %v8825_v46 = vadd.f32 %v8772_v19, %v14863_v32 }
 0x74a   : > { %v9883_v58 = vadd.f32 %v9827_v29, %v9481_v14  ;;  %v9832_v17 = vpop.f32.mrf.mxu3 }
 0x74c   : > { %v9915_v18 = vmax.f32 %v9883_v58, 0.0 }
 0x74e   : > { %v10094_v59 = vadd.f32 %v10093_v53, %v9915_v18 }
 0x74f   : > { %v9427_v11 = vpop.f32.mrf.mxu2 }
 0x750   : > { %10157 = vst.msk [vmem:[%s15098_s28 + $0x80] sm:$0xff] %vm771_vm6, %v10094_v59  ;;  %v9482_v6 = vadd.f32 %v9427_v11, %v8824_v26  ;;  %v8774_v12 = vpop.f32.mrf.mxu1  ;;  %v10105_v22 = vpop.f32.mrf.mxu0 }
 0x751   : > { %v8826_v2 = vadd.f32 %v8774_v12, %v14879_v42 }
 0x752   : > { %v9884_v10 = vadd.f32 %v9829_v15, %v9482_v6  ;;  %v9834_v24 = vpop.f32.mrf.mxu3 }
 0x754   : > { %v9916_v51 = vmax.f32 %v9884_v10, 0.0 }
 0x756   : > { %v10097_v48 = vadd.f32 %v10096_v4, %v9916_v51 }
 0x757   : > { %v9430_v37 = vpop.f32.mrf.mxu2 }
 0x758   : > { %10158 = vst.msk [vmem:[%s15098_s28 + $0x88] sm:$0xff] %vm771_vm6, %v10097_v48  ;;  %v9483_v25 = vadd.f32 %v9430_v37, %v8825_v46  ;;  %v8777_v5 = vpop.f32.mrf.mxu1  ;;  %v10108_v45 = vpop.f32.mrf.mxu0 }
 0x759   : > { %v8827_v60 = vadd.f32 %v8777_v5, %v14896_v54 }
 0x75a   : > { %v9885_v3 = vadd.f32 %v9832_v17, %v9483_v25  ;;  %v9837_v28 = vpop.f32.mrf.mxu3 }
 0x75c   : > { %v9917_v49 = vmax.f32 %v9885_v3, 0.0 }
 0x75e   : > { %v10100_v1 = vadd.f32 %v10099_v56, %v9917_v49 }
 0x75f   : > { %v9432_v9 = vpop.f32.mrf.mxu2 }
 0x760   : > { %10159 = vst.msk [vmem:[%s15098_s28 + $0x90] sm:$0xff] %vm771_vm6, %v10100_v1  ;;  %v9484_v32 = vadd.f32 %v9432_v9, %v8826_v2  ;;  %v8779_v53 = vpop.f32.mrf.mxu1  ;;  %v10111_v42 = vpop.f32.mrf.mxu0 }
 0x761   : > { %v8828_v40 = vadd.f32 %v8779_v53, %v14912_v34 }
 0x762   : > { %v9886_v27 = vadd.f32 %v9834_v24, %v9484_v32  ;;  %v9839_v33 = vpop.f32.mrf.mxu3 }
 0x764   : > { %v9918_v39 = vmax.f32 %v9886_v27, 0.0 }
 0x766   : > { %v10103_v30 = vadd.f32 %v10102_v35, %v9918_v39 }
 0x767   : > { %v9435_v62 = vpop.f32.mrf.mxu2 }
 0x768   : > { %10160 = vst.msk [vmem:[%s15098_s28 + $0x98] sm:$0xff] %vm771_vm6, %v10103_v30  ;;  %v9485_v63 = vadd.f32 %v9435_v62, %v8827_v60  ;;  %v8782_v21 = vpop.f32.mrf.mxu1  ;;  %v10114_v23 = vpop.f32.mrf.mxu0 }
 0x769   : > { %v8829_v56 = vadd.f32 %v8782_v21, %v14929_v41 }
 0x76a   : > { %v9887_v16 = vadd.f32 %v9837_v28, %v9485_v63  ;;  %v9842_v8 = vpop.f32.mrf.mxu3 }
 0x76c   : > { %v9919_v4 = vmax.f32 %v9887_v16, 0.0 }
 0x76e   : > { %v10106_v29 = vadd.f32 %v10105_v22, %v9919_v4 }
 0x76f   : > { %v9437_v50 = vpop.f32.mrf.mxu2 }
 0x770   : > { %10161 = vst.msk [vmem:[%s15098_s28 + $0xa0] sm:$0xff] %vm771_vm6, %v10106_v29  ;;  %v9486_v31 = vadd.f32 %v9437_v50, %v8828_v40  ;;  %v8784_v55 = vpop.f32.mrf.mxu1  ;;  %v10117_v35 = vpop.f32.mrf.mxu0 }
 0x771   : > { %v8830_v58 = vadd.f32 %v8784_v55, %v14945_v47 }
 0x772   : > { %v9888_v54 = vadd.f32 %v9839_v33, %v9486_v31  ;;  %v9844_v44 = vpop.f32.mrf.mxu3 }
 0x774   : > { %v9920_v20 = vmax.f32 %v9888_v54, 0.0 }
 0x776   : > { %v10109_v36 = vadd.f32 %v10108_v45, %v9920_v20  ;;  %v15528_v45 = vld [vmem:[#allocation41_spill] sm:$0xff] }
 0x777   : > { %v9440_v15 = vpop.f32.mrf.mxu2 }
 0x778   : > { %10162 = vst.msk [vmem:[%s15098_s28 + $0xa8] sm:$0xff] %vm771_vm6, %v10109_v36  ;;  %v9487_v52 = vadd.f32 %v9440_v15, %v8829_v56  ;;  %v8787_v13 = vpop.f32.mrf.mxu1  ;;  %v10120_v51 = vpop.f32.mrf.mxu0 }
 0x779   : > { %v8831_v6 = vadd.f32 %v8787_v13, %v14962_v61 }
 0x77a   : > { %v9889_v34 = vadd.f32 %v9842_v8, %v9487_v52  ;;  %v9847_v19 = vpop.f32.mrf.mxu3  ;;  %v15529_v8 = vld [vmem:[#allocation42_spill] sm:$0xff] }
 0x77c   : > { %v9921_v14 = vmax.f32 %v9889_v34, 0.0 }
 0x77e   : > { %v10112_v18 = vadd.f32 %v10111_v42, %v9921_v14 }
 0x77f   : > { %v9442_v26 = vpop.f32.mrf.mxu2 }
 0x780   : > { %10163 = vst.msk [vmem:[%s15098_s28 + $0xb0] sm:$0xff] %vm771_vm6, %v10112_v18  ;;  %v9488_v17 = vadd.f32 %v9442_v26, %v8830_v58  ;;  %v8789_v59 = vpop.f32.mrf.mxu1  ;;  %v10123_v61 = vpop.f32.mrf.mxu0 }
 0x781   : > { %v8832_v37 = vadd.f32 %v8789_v59, %v14978_v7 }
 0x782   : > { %v9890_v41 = vadd.f32 %v9844_v44, %v9488_v17  ;;  %v9849_v10 = vpop.f32.mrf.mxu3 }
 0x784   : > { %v9922_v11 = vmax.f32 %v9890_v41, 0.0 }
 0x786   : > { %v10115_v12 = vadd.f32 %v10114_v23, %v9922_v11 }
 0x787   : > { %v9445_v46 = vpop.f32.mrf.mxu2 }
 0x788   : > { %10164 = vst.msk [vmem:[%s15098_s28 + $0xb8] sm:$0xff] %vm771_vm6, %v10115_v12  ;;  %v9489_v47 = vadd.f32 %v9445_v46, %v8831_v6  ;;  %v8792_v22 = vpop.f32.mrf.mxu1  ;;  %v10126_v60 = vpop.f32.mrf.mxu0 }
 0x789   : > { %v8833_v9 = vadd.f32 %v8792_v22, %v15528_v45 }
 0x78a   : > { %v9891_v24 = vadd.f32 %v9847_v19, %v9489_v47  ;;  %v9852_v5 = vpop.f32.mrf.mxu3 }
 0x78c   : > { %v9923_v48 = vmax.f32 %v9891_v24, 0.0 }
 0x78e   : > { %v10118_v25 = vadd.f32 %v10117_v35, %v9923_v48 }
 0x78f   : > { %v9447_v3 = vpop.f32.mrf.mxu2 }
 0x790   : > { %10165 = vst.msk [vmem:[%s15098_s28 + $0xc0] sm:$0xff] %vm771_vm6, %v10118_v25  ;;  %v9490_v49 = vadd.f32 %v9447_v3, %v8832_v37  ;;  %v8794_v28 = vpop.f32.mrf.mxu1  ;;  %v10129_v50 = vpop.f32.mrf.mxu0 }
 0x791   : > { %v8834_v62 = vadd.f32 %v8794_v28, %v15011_v57 }
 0x792   : > { %v9892_v2 = vadd.f32 %v9849_v10, %v9490_v49  ;;  %v9854_v39 = vpop.f32.mrf.mxu3 }
 0x794   : > { %v9924_v1 = vmax.f32 %v9892_v2, 0.0 }
 0x796   : > { %v10121_v32 = vadd.f32 %v10120_v51, %v9924_v1 }
 0x797   : > { %v9450_v27 = vpop.f32.mrf.mxu2 }
 0x798   : > { %10166 = vst.msk [vmem:[%s15098_s28 + $0xc8] sm:$0xff] %vm771_vm6, %v10121_v32  ;;  %v9491_v53 = vadd.f32 %v9450_v27, %v8833_v9  ;;  %v8797_v33 = vpop.f32.mrf.mxu1  ;;  %v10132_v15 = vpop.f32.mrf.mxu0 }
 0x799   : > { %v8835_v29 = vadd.f32 %v8797_v33, %v15529_v8 }
 0x79a   : > { %v9893_v7 = vadd.f32 %v9852_v5, %v9491_v53  ;;  %v9857_v4 = vpop.f32.mrf.mxu3 }
 0x79c   : > { %v9925_v30 = vmax.f32 %v9893_v7, 0.0 }
 0x79e   : > { %v10124_v63 = vadd.f32 %v10123_v61, %v9925_v30 }
 0x79f   : > { %v9452_v42 = vpop.f32.mrf.mxu2 }
 0x7a0   : > { %10167 = vst.msk [vmem:[%s15098_s28 + $0xd0] sm:$0xff] %vm771_vm6, %v10124_v63  ;;  %v9492_v16 = vadd.f32 %v9452_v42, %v8834_v62  ;;  %v8799_v31 = vpop.f32.mrf.mxu1  ;;  %v10135_v41 = vpop.f32.mrf.mxu0 }
 0x7a1   : > { %v8836_v56 = vadd.f32 %v8799_v31, %v15044_v0 }
 0x7a2   : > { %v9894_v21 = vadd.f32 %v9854_v39, %v9492_v16  ;;  %v9859_v44 = vpop.f32.mrf.mxu3 }
 0x7a4   : > { %v9926_v40 = vmax.f32 %v9894_v21, 0.0 }
 0x7a6   : > { %v10127_v54 = vadd.f32 %v10126_v60, %v9926_v40 }
 0x7a7   : > { %v9455_v55 = vpop.f32.mrf.mxu2 }
 0x7a8   : > { %10168 = vst.msk [vmem:[%s15098_s28 + $0xd8] sm:$0xff] %vm771_vm6, %v10127_v54  ;;  %v9493_v23 = vadd.f32 %v9455_v55, %v8835_v29  ;;  %v8802_v34 = vpop.f32.mrf.mxu1  ;;  %v10138_v47 = vpop.f32.mrf.mxu0 }
 0x7a9   : > { %v8837_v19 = vadd.f32 %v8802_v34, %v15059_v38 }
 0x7aa   : > { %v9895_v20 = vadd.f32 %v9857_v4, %v9493_v23  ;;  %v9862_v26 = vpop.f32.mrf.mxu3 }
 0x7ac   : > { %v9927_v57 = vmax.f32 %v9895_v20, 0.0 }
 0x7ae   : > { %v10130_v36 = vadd.f32 %v10129_v50, %v9927_v57 }
 0x7af   : > { %v9457_v52 = vpop.f32.mrf.mxu2 }
 0x7b0   : > { %10169 = vst.msk [vmem:[%s15098_s28 + $0xe0] sm:$0xff] %vm771_vm6, %v10130_v36  ;;  %v9494_v13 = vadd.f32 %v9457_v52, %v8836_v56  ;;  %v8804_v17 = vpop.f32.mrf.mxu1 }
 0x7b1   : > { %v8838_v6 = vadd.f32 %v8804_v17, %v15073_v43 }
 0x7b2   : > { %v9896_v14 = vadd.f32 %v9859_v44, %v9494_v13  ;;  %v9864_v51 = vpop.f32.mrf.mxu3 }
 0x7b4   : > { %v9928_v58 = vmax.f32 %v9896_v14, 0.0 }
 0x7b6   : > { %v10133_v35 = vadd.f32 %v10132_v15, %v9928_v58 }
 0x7b7   : > { %v9460_v18 = vpop.f32.mrf.mxu2 }
 0x7b8   : > { %10170 = vst.msk [vmem:[%s15098_s28 + $0xe8] sm:$0xff] %vm771_vm6, %v10133_v35  ;;  %v9495_v0 = vadd.f32 %v9460_v18, %v8837_v19 }
 0x7ba   : > { %v9897_v59 = vadd.f32 %v9862_v26, %v9495_v0 }
 0x7bc   : > { %v9929_v11 = vmax.f32 %v9897_v59, 0.0 }
 0x7be   : > { %v10136_v10 = vadd.f32 %v10135_v41, %v9929_v11 }
 0x7bf   : > { %v9462_v12 = vpop.f32.mrf.mxu2 }
 0x7c0   : > { %10171 = vst.msk [vmem:[%s15098_s28 + $0xf0] sm:$0xff] %vm771_vm6, %v10136_v10  ;;  %v9496_v38 = vadd.f32 %v9462_v12, %v8838_v6 }
 0x7c2   : > { %v9898_v46 = vadd.f32 %v9864_v51, %v9496_v38 }
 0x7c4   : > { %v9930_v24 = vmax.f32 %v9898_v46, 0.0 }
 0x7c6   : > { %v10139_v43 = vadd.f32 %v10138_v47, %v9930_v24 }
 0x7c8   : > { %10172 = vst.msk [vmem:[%s15098_s28 + $0xf8] sm:$0xff] %vm771_vm6, %v10139_v43 }
 0x7c9   : > { %11885 = shalt.err (!%p11882_p12)
}
 0x7ca   : > { %s11945_s16 = smov 128   ;;  %s11946_s28 = smov 8  }
 0x7cb   : > { %11590 = dma.vmem_to_hbm [thread:$0]  (%p12091_p3), %s10187_s7, 4096, %s10189_s22, %s10174_s21, %s11945_s16, %s11945_s16, %s11946_s28  }
 0x7cc PF: > { %s10203_s12 = sand.u32 1, %s11920_s17   ;;  %p15531_p13 = scmp.ge.s32.totalorder %s11932_s20, 2 }
 0x7cd   : > { %s10204_s29 = scalar_lea.sflag [#allocation6], %s10203_s12 }
 0x7ce   : > { %p11610_p0 = pnand %p15531_p13, %p12042_p6 }
 0x7d0   : > { %p11611_p5 = pneg %p11610_p0 }
 0x7d2   : > { %11915 = dma.done.wait (%p11611_p5), %s10204_s29, 4096  }
 0x7d3   : > { %11917 = vsyncadd (%p11611_p5), %s10204_s29, 4294963200  ;;  %p26_p7 = scmp.ge.s32.totalorder %s12081_s15, 4   ;;  %s15532_s17 = smov %s11924_s18 }
 0x7d4   : > { %s15533_s18 = smov %s11928_s19  ;;  %s15534_s19 = smov %s12097_s24 }
 0x7d5   : > { %s15535_s20 = smov %s12081_s15  ;;  %28 = sbr.rel (!%p26_p7) target bundleno = 12 (0xc), region = 164 }
 0x7da   :  { %10210 = vsyncpa [#allocation5], 1 }
 0x7db   :  { %10212 = vsyncpa [#allocation5 + $0x1], 1 }
 0x7dc   :  { %10213 = vsyncpa [#allocation8], 1 }
 0x7dd   :  { %10214 = vsyncpa [#allocation11], 1 }
 0x7de   :  { %10215 = vsyncpa [#allocation6], 1 }
 0x7df   :  { %10217 = vsyncpa [#allocation6 + $0x1], 1 }

</bundles_post_ra>
